<compile_context>
chip_gen: v7x
topology: tpu7x:2x2x1
jax: 0.10.0
libtpu: 0.0.40
codegen_flags: <defaults>
</compile_context>

<pallas_src>
import functools

import jax
import jax.numpy as jnp
from jax.experimental import pallas as pl
from jax.experimental.pallas import tpu as pltpu

NEG_SLOPE = 0.01     # F.leaky_relu default
BN_EPS = 1e-5        # nn.BatchNorm default
F_HIDDEN = 1000      # fc1/fc2 width in the PyTorch module
VMEM_LIMIT = 32 * 1024 * 1024   # safe on v5e/v6e (128 MiB) and v7x (64 MiB)


def _round_up(x, m):
    return ((x + m - 1) // m) * m


def _pick_tile(n, candidates):
    for c in candidates:
        if n % c == 0:
            return c
    return n


# ---------------------------------------------------------------------------
# Pallas kernels
# ---------------------------------------------------------------------------
def _conv_bn_lrelu_kernel(inv_n, w_ref, p_ref, b_ref, g_ref, bb_ref,
                          o_ref, y_ref, sum_ref):
    """Fused conv-as-GEMM + BatchNorm2d(batch stats) + LeakyReLU.

    grid = (nt,) over spatial tiles.  Each tile's pre-BN GEMM result is kept
    resident in the VMEM scratch `y_ref` (nt, Op, ts); per-channel sums are
    accumulated on the fly.  The last tile computes the exact mean, then a
    centered variance over the resident data, and writes the normalized,
    activated output in bf16 (single writeback of the full output block).
    """
    nt, _, ts = y_ref.shape
    t = pl.program_id(0)

    # GEMM for this spatial tile: (Op, Kp) @ (Kp, ts), bf16 in / f32 acc.
    y = jnp.dot(w_ref[...], p_ref[...],
                preferred_element_type=jnp.float32) + b_ref[...]

    @pl.when(t == 0)
    def _():
        sum_ref[...] = jnp.zeros_like(sum_ref[...])

    sum_ref[...] += jnp.sum(y, axis=1, keepdims=True)
    y_ref[t] = y                               # keep pre-BN result resident

    @pl.when(t == nt - 1)
    def _():
        mean = sum_ref[...] * inv_n
        # Exact two-pass variance over the VMEM-resident activations
        # (avoids the E[x^2] - E[x]^2 cancellation of the old kernel).
        m2 = jnp.zeros_like(mean)
        for i in range(nt):                    # nt is static -> static slices
            d = y_ref[i] - mean
            m2 = m2 + jnp.sum(d * d, axis=1, keepdims=True)
        inv_std = jax.lax.rsqrt(m2 * inv_n + BN_EPS)
        scale = g_ref[...] * inv_std
        shift = bb_ref[...] - mean * scale
        for i in range(nt):
            z = y_ref[i] * scale + shift
            o_ref[:, i * ts:(i + 1) * ts] = jnp.where(
                z >= 0.0, z, NEG_SLOPE * z).astype(o_ref.dtype)


def _fc_stack_kernel(batch, x_ref,
                     w1_ref, b1_ref, g1_ref, bb1_ref,
                     w2_ref, b2_ref, g2_ref, bb2_ref,
                     w3_ref, b3_ref, o_ref):
    """Fused fc1+BN+LReLU -> fc2+BN+LReLU -> merged heads (fc31|fc32)+LReLU.

    All weights are resident in VMEM; hidden activations live in vregs.
    Batch rows are padded to 16; BN statistics are masked to the real batch.
    """
    inv_n = 1.0 / batch

    def bn_lrelu(y, g, bb):
        row = jax.lax.broadcasted_iota(jnp.int32, y.shape, 0)
        mask = (row < batch).astype(jnp.float32)
        mean = jnp.sum(y * mask, axis=0, keepdims=True) * inv_n
        d = (y - mean) * mask
        var = jnp.sum(d * d, axis=0, keepdims=True) * inv_n
        xn = (y - mean) * jax.lax.rsqrt(var + BN_EPS)
        z = xn * g + bb
        return jnp.where(z >= 0.0, z, NEG_SLOPE * z)

    h1 = bn_lrelu(jnp.dot(x_ref[...], w1_ref[...],
                          preferred_element_type=jnp.float32) + b1_ref[...],
                  g1_ref[...], bb1_ref[...])
    h2 = bn_lrelu(jnp.dot(h1.astype(jnp.bfloat16), w2_ref[...],
                          preferred_element_type=jnp.float32) + b2_ref[...],
                  g2_ref[...], bb2_ref[...])
    y3 = jnp.dot(h2.astype(jnp.bfloat16), w3_ref[...],
                 preferred_element_type=jnp.float32) + b3_ref[...]
    o_ref[...] = jnp.where(y3 >= 0.0, y3, NEG_SLOPE * y3)


# ---------------------------------------------------------------------------
# Pallas wrappers
# ---------------------------------------------------------------------------
def conv_bn_lrelu(x, layer, k, pad, out_ch):
    """x: (C, B, H, W) bf16 -> (out_ch, B, Ho, Wo) bf16."""
    patches, Ho, Wo = im2col_cb(x, k, k, pad)          # (Kp, B*Ho*Wo) bf16
    Kp, S = patches.shape
    Op = layer["w"].shape[0]                           # out channels, pad to 8
    ts = _pick_tile(S, (4096, 2048, 1024, 512, 256, 128))
    nt = S // ts
    kern = functools.partial(_conv_bn_lrelu_kernel, 1.0 / S)
    out = pl.pallas_call(
        kern,
        out_shape=jax.ShapeDtypeStruct((Op, S), jnp.bfloat16),
        grid=(nt,),
        in_specs=[
            pl.BlockSpec((Op, Kp), lambda t: (0, 0)),   # weights (resident)
            pl.BlockSpec((Kp, ts), lambda t: (0, t)),   # patches tile
            pl.BlockSpec((Op, 1), lambda t: (0, 0)),    # conv bias
            pl.BlockSpec((Op, 1), lambda t: (0, 0)),    # bn gamma
            pl.BlockSpec((Op, 1), lambda t: (0, 0)),    # bn beta
        ],
        # Constant output index: single writeback after the last grid step.
        out_specs=pl.BlockSpec((Op, S), lambda t: (0, 0)),
        scratch_shapes=[pltpu.VMEM((nt, Op, ts), jnp.float32),  # resident y
                        pltpu.VMEM((Op, 1), jnp.float32)],      # channel sums
        compiler_params=pltpu.CompilerParams(
            dimension_semantics=("arbitrary",),   # cross-tile scratch carry
            vmem_limit_bytes=VMEM_LIMIT),
    )(layer["w"], patches, layer["b"], layer["g"], layer["beta"])
    B = S // (Ho * Wo)
    return out.reshape(Op, B, Ho, Wo)[:out_ch]


def fc_stack(x, packed, batch):
    """x: (Bp, K1p) bf16 -> (Bp, Hp) f32 (padded head output, slice outside)."""
    Bp = x.shape[0]
    fc1, fc2 = packed["fc1"], packed["fc2"]
    w3, b3 = packed["heads_w"], packed["heads_b"]
    Hp = w3.shape[1]
    args = (x,
            fc1["w"], fc1["b"], fc1["g"], fc1["beta"],
            fc2["w"], fc2["b"], fc2["g"], fc2["beta"],
            w3, b3)

    def spec(a):
        return pl.BlockSpec(a.shape, lambda i: (0,) * a.ndim)

    return pl.pallas_call(
        functools.partial(_fc_stack_kernel, batch),
        out_shape=jax.ShapeDtypeStruct((Bp, Hp), jnp.float32),
        grid=(1,),
        in_specs=[spec(a) for a in args],
        out_specs=pl.BlockSpec((Bp, Hp), lambda i: (0, 0)),
        compiler_params=pltpu.CompilerParams(
            dimension_semantics=("arbitrary",),
            vmem_limit_bytes=VMEM_LIMIT),
    )(*args)


# ---------------------------------------------------------------------------
# XLA glue (patch extraction, pooling, layout plumbing)
# ---------------------------------------------------------------------------
def im2col_cb(x, kh, kw, pad):
    """x: (C, B, H, W) -> (Kp, B*Ho*Wo); K = C*kh*kw ordered (c, i, j) to match
    PyTorch conv-weight flattening, zero-padded to a multiple of 16 sublanes
    (bf16 packs 16 rows per vreg)."""
    C, B, H, W = x.shape
    Ho = H + 2 * pad - kh + 1
    Wo = W + 2 * pad - kw + 1
    xp = jnp.pad(x, ((0, 0), (0, 0), (pad, pad), (pad, pad)))
    cols = [xp[:, :, i:i + Ho, j:j + Wo]
            for i in range(kh) for j in range(kw)]
    patches = jnp.stack(cols, axis=1)                  # (C, kh*kw, B, Ho, Wo)
    K = C * kh * kw
    patches = patches.reshape(K, B * Ho * Wo)
    Kp = _round_up(K, 16)
    if Kp != K:
        patches = jnp.pad(patches, ((0, Kp - K), (0, 0)))
    return patches, Ho, Wo


def maxpool2x2(x):
    # nn.MaxPool2d(2, 2); spatial dims are even along this network.
    C, B, H, W = x.shape
    return x.reshape(C, B, H // 2, 2, W // 2, 2).max(axis=(3, 5))


# ---------------------------------------------------------------------------
# Q_net forward
# ---------------------------------------------------------------------------
@functools.partial(jax.jit, static_argnums=(2, 3))
def q_net_forward(packed, x, N, z_dim):
    B = x.shape[0]
    # NCHW -> (C, B, H, W); bf16 operands for the MXU (convs emit bf16).
    h = x.transpose(1, 0, 2, 3).astype(jnp.bfloat16)
    h = maxpool2x2(conv_bn_lrelu(h, packed["conv1"], 5, 2, N))
    h = maxpool2x2(conv_bn_lrelu(h, packed["conv2"], 5, 2, 2 * N))
    h = maxpool2x2(conv_bn_lrelu(h, packed["conv3"], 5, 2, 4 * N))
    h = maxpool2x2(conv_bn_lrelu(h, packed["conv4"], 3, 0, 4 * N))
    # (C, B, 3, 3) -> (B, C*3*3)  == torch x.view(-1, 4*N*3*3)
    C, _, Hh, Ww = h.shape
    flat = h.transpose(1, 0, 2, 3).reshape(B, C * Hh * Ww)
    # Pad batch rows to 16 (bf16 LHS) and feature cols to the packed fc1 width.
    K1p = packed["fc1"]["w"].shape[0]
    Bp = _round_up(B, 16)
    flat = jnp.pad(flat, ((0, Bp - B), (0, K1p - flat.shape[1])))
    heads = fc_stack(flat, packed, B)                  # (Bp, Hp) f32
    return heads[:B, :z_dim], heads[:B, z_dim:2 * z_dim]


# ---------------------------------------------------------------------------
# Parameter packing (runs ONCE, outside jit): flatten/transpose/pad/bf16-cast
# ---------------------------------------------------------------------------
def prepare_params(p, N, z_dim):
    f_pad = _round_up(F_HIDDEN, 128)        # 1000 -> 1024 lanes

    def conv_pack(w, b, g, beta):
        O, Cc, kh, kw = w.shape
        K = Cc * kh * kw
        Kp, Op = _round_up(K, 16), _round_up(O, 8)
        wm = jnp.pad(w.reshape(O, K).astype(jnp.float32),
                     ((0, Op - O), (0, Kp - K)))
        col = lambda v, fill: jnp.pad(
            v.astype(jnp.float32).reshape(O, 1), ((0, Op - O), (0, 0)),
            constant_values=fill)
        return {"w": wm.astype(jnp.bfloat16), "b": col(b, 0.0),
                "g": col(g, 1.0), "beta": col(beta, 0.0)}

    def fc_pack(w, b, g, beta, in_pad, out_pad):
        out_d, in_d = w.shape
        wm = jnp.pad(w.T.astype(jnp.float32),
                     ((0, in_pad - in_d), (0, out_pad - out_d)))
        row = lambda v, fill: jnp.pad(
            v.astype(jnp.float32).reshape(1, out_d),
            ((0, 0), (0, out_pad - out_d)), constant_values=fill)
        return {"w": wm.astype(jnp.bfloat16), "b": row(b, 0.0),
                "g": row(g, 1.0), "beta": row(beta, 0.0)}

    fin = _round_up(4 * N * 9, 16)
    packed = {
        "conv1": conv_pack(p["conv1_w"], p["conv1_b"], p["bn1_g"], p["bn1_b"]),
        "conv2": conv_pack(p["conv2_w"], p["conv2_b"], p["bn2_g"], p["bn2_b"]),
        "conv3": conv_pack(p["conv3_w"], p["conv3_b"], p["bn3_g"], p["bn3_b"]),
        "conv4": conv_pack(p["conv4_w"], p["conv4_b"], p["bn4_g"], p["bn4_b"]),
        "fc1": fc_pack(p["fc1_w"], p["fc1_b"], p["bnf1_g"], p["bnf1_b"],
                       fin, f_pad),
        "fc2": fc_pack(p["fc2_w"], p["fc2_b"], p["bnf2_g"], p["bnf2_b"],
                       f_pad, f_pad),
    }
    # Merge the two heads (fc31 | fc32) into one GEMM; pad output to 128 lanes
    # so the head store path is lane-dense (sliced back outside the kernel).
    h_pad = _round_up(2 * z_dim, 128)
    w_h = jnp.concatenate([p["fc31_w"], p["fc32_w"]], axis=0)   # (2z, 1000)
    b_h = jnp.concatenate([p["fc31_b"], p["fc32_b"]], axis=0)   # (2z,)
    packed["heads_w"] = jnp.pad(
        w_h.T.astype(jnp.float32),
        ((0, f_pad - F_HIDDEN), (0, h_pad - 2 * z_dim))).astype(jnp.bfloat16)
    packed["heads_b"] = jnp.pad(
        b_h.reshape(1, -1).astype(jnp.float32),
        ((0, 0), (0, h_pad - 2 * z_dim)))
    return packed


# ---------------------------------------------------------------------------
# Deterministic parameter initialization (PyTorch-like uniform fan-in bounds)
# ---------------------------------------------------------------------------
def init_params(key, N, z_dim):
    def u(k, shape, fan_in):
        bound = 1.0 / (fan_in ** 0.5)
        return jax.random.uniform(k, shape, jnp.float32, -bound, bound)

    ks = iter(jax.random.split(key, 32))
    p = {}
    p["conv1_w"] = u(next(ks), (N, 1, 5, 5), 1 * 25)
    p["conv1_b"] = u(next(ks), (N,), 1 * 25)
    p["conv2_w"] = u(next(ks), (2 * N, N, 5, 5), N * 25)
    p["conv2_b"] = u(next(ks), (2 * N,), N * 25)
    p["conv3_w"] = u(next(ks), (4 * N, 2 * N, 5, 5), 2 * N * 25)
    p["conv3_b"] = u(next(ks), (4 * N,), 2 * N * 25)
    p["conv4_w"] = u(next(ks), (4 * N, 4 * N, 3, 3), 4 * N * 9)
    p["conv4_b"] = u(next(ks), (4 * N,), 4 * N * 9)
    for name, c in [("bn1", N), ("bn2", 2 * N), ("bn3", 4 * N), ("bn4", 4 * N),
                    ("bnf1", 1000), ("bnf2", 1000)]:
        p[name + "_g"] = jnp.ones((c,), jnp.float32)
        p[name + "_b"] = jnp.zeros((c,), jnp.float32)
    fin = 4 * N * 3 * 3
    p["fc1_w"] = u(next(ks), (1000, fin), fin)
    p["fc1_b"] = u(next(ks), (1000,), fin)
    p["fc2_w"] = u(next(ks), (1000, 1000), 1000)
    p["fc2_b"] = u(next(ks), (1000,), 1000)
    p["fc31_w"] = u(next(ks), (z_dim, 1000), 1000)
    p["fc31_b"] = u(next(ks), (z_dim,), 1000)
    p["fc32_w"] = u(next(ks), (z_dim, 1000), 1000)
    p["fc32_b"] = u(next(ks), (z_dim,), 1000)
    return p


if __name__ == "__main__":
    N, z_dim, batch = 4, 16, 2
    key = jax.random.PRNGKey(0)
    pkey, xkey = jax.random.split(key)
    raw = init_params(pkey, N, z_dim)
    packed = prepare_params(raw, N, z_dim)      # weight packing outside jit
    # Input spatial size must be 64x64 so the flatten matches 4*N*3*3.
    x = jax.random.normal(xkey, (batch, 1, 64, 64), jnp.float32)
    mean, std = q_net_forward(packed, x, N, z_dim)
    jax.block_until_ready((mean, std))
    assert mean.shape == (batch, z_dim) and std.shape == (batch, z_dim)
    assert bool(jnp.all(jnp.isfinite(mean))) and bool(jnp.all(jnp.isfinite(std)))
    print("KERNEL_OK")
</pallas_src>

<mosaic_0001>
module attributes {stable_mosaic.version = 11 : i64} {
  func.func @_conv_bn_lrelu_kernel(%arg0: i32, %arg1: memref<8x32xbf16, #tpu.memory_space<vmem>>, %arg2: memref<32x4096xbf16, #tpu.memory_space<vmem>>, %arg3: memref<8x1xf32, #tpu.memory_space<vmem>>, %arg4: memref<8x1xf32, #tpu.memory_space<vmem>>, %arg5: memref<8x1xf32, #tpu.memory_space<vmem>>, %arg6: memref<8x8192xbf16, #tpu.memory_space<vmem>>, %arg7: memref<2x8x4096xf32, #tpu.memory_space<vmem>>, %arg8: memref<8x1xf32, #tpu.memory_space<vmem>>) attributes {dimension_semantics = [#tpu.dimension_semantics<arbitrary>], iteration_bounds = array<i64: 2>, scalar_prefetch = 0 : i64, scratch_operands = 2 : i64, tpu.core_type = #tpu.core_type<tc>, window_params = [{pipeline_mode = #tpu.pipeline_mode<synchronous>, transform_indices = @transform_0, window_bounds = array<i64: 8, 32>}, {transform_indices = @transform_1, window_bounds = array<i64: 32, 4096>}, {pipeline_mode = #tpu.pipeline_mode<synchronous>, transform_indices = @transform_2, window_bounds = array<i64: 8, 1>}, {pipeline_mode = #tpu.pipeline_mode<synchronous>, transform_indices = @transform_3, window_bounds = array<i64: 8, 1>}, {pipeline_mode = #tpu.pipeline_mode<synchronous>, transform_indices = @transform_4, window_bounds = array<i64: 8, 1>}, {pipeline_mode = #tpu.pipeline_mode<synchronous>, transform_indices = @transform_5, window_bounds = array<i64: 8, 8192>}]} {
    %c0 = arith.constant 0 : index
    %c0_0 = arith.constant 0 : index
    %0 = vector.load %arg1[%c0, %c0_0] : memref<8x32xbf16, #tpu.memory_space<vmem>>, vector<8x32xbf16>
    %c0_1 = arith.constant 0 : index
    %c0_2 = arith.constant 0 : index
    %1 = vector.load %arg2[%c0_1, %c0_2] : memref<32x4096xbf16, #tpu.memory_space<vmem>>, vector<32x4096xbf16>
    %cst = arith.constant dense<0.000000e+00> : vector<8x4096xf32>
    %2 = tpu.matmul %0, %1, %cst {dimension_numbers = #tpu.dot_dimension_numbers<[1], [0], [0], [1], [0, 0, 1, 1], [], []>} : vector<8x32xbf16>, vector<32x4096xbf16>, vector<8x4096xf32> -> vector<8x4096xf32>
    %c0_3 = arith.constant 0 : index
    %c0_4 = arith.constant 0 : index
    %3 = vector.load %arg3[%c0_3, %c0_4] : memref<8x1xf32, #tpu.memory_space<vmem>>, vector<8x1xf32>
    %4 = vector.broadcast %3 : vector<8x1xf32> to vector<8x4096xf32>
    %5 = arith.addf %2, %4 : vector<8x4096xf32>
    %c0_i32 = arith.constant 0 : i32
    %6 = arith.cmpi eq, %arg0, %c0_i32 : i32
    %7 = arith.extui %6 : i1 to i32
    %c0_i32_5 = arith.constant 0 : i32
    %8 = arith.cmpi ne, %7, %c0_i32_5 : i32
    scf.if %8 {
      %cst_14 = arith.constant 0.000000e+00 : f32
      %21 = vector.broadcast %cst_14 : f32 to vector<8x1xf32>
      %c0_15 = arith.constant 0 : index
      %c0_16 = arith.constant 0 : index
      %22 = vector.load %arg8[%c0_15, %c0_16] : memref<8x1xf32, #tpu.memory_space<vmem>>, vector<8x1xf32>
      tpu.vector_store %arg8[%c0_15, %c0_16], %21 {strides = array<i32>} : memref<8x1xf32, #tpu.memory_space<vmem>>, vector<8x1xf32>,
    } else {
    }
    %c0_6 = arith.constant 0 : index
    %c0_7 = arith.constant 0 : index
    %9 = vector.load %arg8[%c0_6, %c0_7] : memref<8x1xf32, #tpu.memory_space<vmem>>, vector<8x1xf32>
    %cst_8 = arith.constant dense<0.000000e+00> : vector<8xf32>
    %10 = vector.multi_reduction <add>, %5, %cst_8 [1] : vector<8x4096xf32> to vector<8xf32>
    %11 = vector.shape_cast %10 : vector<8xf32> to vector<8x1xf32>
    %12 = arith.addf %9, %11 : vector<8x1xf32>
    %c0_9 = arith.constant 0 : index
    %c0_10 = arith.constant 0 : index
    %13 = vector.load %arg8[%c0_9, %c0_10] : memref<8x1xf32, #tpu.memory_space<vmem>>, vector<8x1xf32>
    tpu.vector_store %arg8[%c0_9, %c0_10], %12 {strides = array<i32>} : memref<8x1xf32, #tpu.memory_space<vmem>>, vector<8x1xf32>,
    %14 = arith.index_cast %arg0 : i32 to index
    %c0_11 = arith.constant 0 : index
    %c0_12 = arith.constant 0 : index
    %15 = vector.load %arg7[%14, %c0_11, %c0_12] : memref<2x8x4096xf32, #tpu.memory_space<vmem>>, vector<1x8x4096xf32>
    %16 = vector.shape_cast %15 : vector<1x8x4096xf32> to vector<8x4096xf32>
    %17 = vector.shape_cast %5 : vector<8x4096xf32> to vector<1x8x4096xf32>
    tpu.vector_store %arg7[%14, %c0_11, %c0_12], %17 {strides = array<i32>} : memref<2x8x4096xf32, #tpu.memory_space<vmem>>, vector<1x8x4096xf32>,
    %c1_i32 = arith.constant 1 : i32
    %18 = arith.cmpi eq, %arg0, %c1_i32 : i32
    %19 = arith.extui %18 : i1 to i32
    %c0_i32_13 = arith.constant 0 : i32
    %20 = arith.cmpi ne, %19, %c0_i32_13 : i32
    scf.if %20 {
      %c0_14 = arith.constant 0 : index
      %c0_15 = arith.constant 0 : index
      %21 = vector.load %arg8[%c0_14, %c0_15] : memref<8x1xf32, #tpu.memory_space<vmem>>, vector<8x1xf32>
      %cst_16 = arith.constant 1.22070313E-4 : f32
      %22 = vector.broadcast %cst_16 : f32 to vector<8x1xf32>
      %23 = arith.mulf %21, %22 : vector<8x1xf32>
      %cst_17 = arith.constant 0.000000e+00 : f32
      %24 = vector.broadcast %cst_17 : f32 to vector<8x1xf32>
      %c0_18 = arith.constant 0 : index
      %c0_19 = arith.constant 0 : index
      %c0_20 = arith.constant 0 : index
      %25 = vector.load %arg7[%c0_18, %c0_19, %c0_20] : memref<2x8x4096xf32, #tpu.memory_space<vmem>>, vector<1x8x4096xf32>
      %26 = vector.shape_cast %25 : vector<1x8x4096xf32> to vector<8x4096xf32>
      %27 = vector.broadcast %23 : vector<8x1xf32> to vector<8x4096xf32>
      %28 = arith.subf %26, %27 : vector<8x4096xf32>
      %29 = arith.mulf %28, %28 : vector<8x4096xf32>
      %cst_21 = arith.constant dense<0.000000e+00> : vector<8xf32>
      %30 = vector.multi_reduction <add>, %29, %cst_21 [1] : vector<8x4096xf32> to vector<8xf32>
      %31 = vector.shape_cast %30 : vector<8xf32> to vector<8x1xf32>
      %32 = arith.addf %24, %31 : vector<8x1xf32>
      %c1 = arith.constant 1 : index
      %c0_22 = arith.constant 0 : index
      %c0_23 = arith.constant 0 : index
      %33 = vector.load %arg7[%c1, %c0_22, %c0_23] : memref<2x8x4096xf32, #tpu.memory_space<vmem>>, vector<1x8x4096xf32>
      %34 = vector.shape_cast %33 : vector<1x8x4096xf32> to vector<8x4096xf32>
      %35 = vector.broadcast %23 : vector<8x1xf32> to vector<8x4096xf32>
      %36 = arith.subf %34, %35 : vector<8x4096xf32>
      %37 = arith.mulf %36, %36 : vector<8x4096xf32>
      %cst_24 = arith.constant dense<0.000000e+00> : vector<8xf32>
      %38 = vector.multi_reduction <add>, %37, %cst_24 [1] : vector<8x4096xf32> to vector<8xf32>
      %39 = vector.shape_cast %38 : vector<8xf32> to vector<8x1xf32>
      %40 = arith.addf %32, %39 : vector<8x1xf32>
      %cst_25 = arith.constant 1.22070313E-4 : f32
      %41 = vector.broadcast %cst_25 : f32 to vector<8x1xf32>
      %42 = arith.mulf %40, %41 : vector<8x1xf32>
      %cst_26 = arith.constant 9.99999974E-6 : f32
      %43 = vector.broadcast %cst_26 : f32 to vector<8x1xf32>
      %44 = arith.addf %42, %43 : vector<8x1xf32>
      %45 = math.rsqrt %44 : vector<8x1xf32>
      %c0_27 = arith.constant 0 : index
      %c0_28 = arith.constant 0 : index
      %46 = vector.load %arg4[%c0_27, %c0_28] : memref<8x1xf32, #tpu.memory_space<vmem>>, vector<8x1xf32>
      %47 = arith.mulf %46, %45 : vector<8x1xf32>
      %c0_29 = arith.constant 0 : index
      %c0_30 = arith.constant 0 : index
      %48 = vector.load %arg5[%c0_29, %c0_30] : memref<8x1xf32, #tpu.memory_space<vmem>>, vector<8x1xf32>
      %49 = arith.mulf %23, %47 : vector<8x1xf32>
      %50 = arith.subf %48, %49 : vector<8x1xf32>
      %c0_31 = arith.constant 0 : index
      %c0_32 = arith.constant 0 : index
      %c0_33 = arith.constant 0 : index
      %51 = vector.load %arg7[%c0_31, %c0_32, %c0_33] : memref<2x8x4096xf32, #tpu.memory_space<vmem>>, vector<1x8x4096xf32>
      %52 = vector.shape_cast %51 : vector<1x8x4096xf32> to vector<8x4096xf32>
      %53 = vector.broadcast %47 : vector<8x1xf32> to vector<8x4096xf32>
      %54 = arith.mulf %52, %53 : vector<8x4096xf32>
      %55 = vector.broadcast %50 : vector<8x1xf32> to vector<8x4096xf32>
      %56 = arith.addf %54, %55 : vector<8x4096xf32>
      %cst_34 = arith.constant 0.000000e+00 : f32
      %57 = vector.broadcast %cst_34 : f32 to vector<8x4096xf32>
      %58 = arith.cmpf oge, %56, %57 : vector<8x4096xf32>
      %cst_35 = arith.constant 0.00999999977 : f32
      %59 = vector.broadcast %cst_35 : f32 to vector<8x4096xf32>
      %60 = arith.mulf %59, %56 : vector<8x4096xf32>
      %61 = arith.select %58, %56, %60 : vector<8x4096xi1>, vector<8x4096xf32>
      %62 = arith.truncf %61 : vector<8x4096xf32> to vector<8x4096xbf16>
      %c0_36 = arith.constant 0 : index
      %c0_37 = arith.constant 0 : index
      %63 = vector.load %arg6[%c0_36, %c0_37] : memref<8x8192xbf16, #tpu.memory_space<vmem>>, vector<8x4096xbf16>
      tpu.vector_store %arg6[%c0_36, %c0_37], %62 {strides = array<i32>} : memref<8x8192xbf16, #tpu.memory_space<vmem>>, vector<8x4096xbf16>,
      %c1_38 = arith.constant 1 : index
      %c0_39 = arith.constant 0 : index
      %c0_40 = arith.constant 0 : index
      %64 = vector.load %arg7[%c1_38, %c0_39, %c0_40] : memref<2x8x4096xf32, #tpu.memory_space<vmem>>, vector<1x8x4096xf32>
      %65 = vector.shape_cast %64 : vector<1x8x4096xf32> to vector<8x4096xf32>
      %66 = vector.broadcast %47 : vector<8x1xf32> to vector<8x4096xf32>
      %67 = arith.mulf %65, %66 : vector<8x4096xf32>
      %68 = vector.broadcast %50 : vector<8x1xf32> to vector<8x4096xf32>
      %69 = arith.addf %67, %68 : vector<8x4096xf32>
      %cst_41 = arith.constant 0.000000e+00 : f32
      %70 = vector.broadcast %cst_41 : f32 to vector<8x4096xf32>
      %71 = arith.cmpf oge, %69, %70 : vector<8x4096xf32>
      %cst_42 = arith.constant 0.00999999977 : f32
      %72 = vector.broadcast %cst_42 : f32 to vector<8x4096xf32>
      %73 = arith.mulf %72, %69 : vector<8x4096xf32>
      %74 = arith.select %71, %69, %73 : vector<8x4096xi1>, vector<8x4096xf32>
      %75 = arith.truncf %74 : vector<8x4096xf32> to vector<8x4096xbf16>
      %c0_43 = arith.constant 0 : index
      %c4096 = arith.constant 4096 : index
      %76 = vector.load %arg6[%c0_43, %c4096] : memref<8x8192xbf16, #tpu.memory_space<vmem>>, vector<8x4096xbf16>
      tpu.vector_store %arg6[%c0_43, %c4096], %75 {strides = array<i32>} : memref<8x8192xbf16, #tpu.memory_space<vmem>>, vector<8x4096xbf16>,
    } else {
    }
    return
  }
  func.func @transform_0(%arg0: i32) -> (i32, i32) {
    %c0_i32 = arith.constant 0 : i32
    %c0_i32_0 = arith.constant 0 : i32
    %c0_i32_1 = arith.constant 0 : i32
    return %c0_i32, %c0_i32_0 : i32, i32
  }
  func.func @transform_1(%arg0: i32) -> (i32, i32) {
    %c0_i32 = arith.constant 0 : i32
    %c0_i32_0 = arith.constant 0 : i32
    return %c0_i32, %arg0 : i32, i32
  }
  func.func @transform_2(%arg0: i32) -> (i32, i32) {
    %c0_i32 = arith.constant 0 : i32
    %c0_i32_0 = arith.constant 0 : i32
    %c0_i32_1 = arith.constant 0 : i32
    return %c0_i32, %c0_i32_0 : i32, i32
  }
  func.func @transform_3(%arg0: i32) -> (i32, i32) {
    %c0_i32 = arith.constant 0 : i32
    %c0_i32_0 = arith.constant 0 : i32
    %c0_i32_1 = arith.constant 0 : i32
    return %c0_i32, %c0_i32_0 : i32, i32
  }
  func.func @transform_4(%arg0: i32) -> (i32, i32) {
    %c0_i32 = arith.constant 0 : i32
    %c0_i32_0 = arith.constant 0 : i32
    %c0_i32_1 = arith.constant 0 : i32
    return %c0_i32, %c0_i32_0 : i32, i32
  }
  func.func @transform_5(%arg0: i32) -> (i32, i32) {
    %c0_i32 = arith.constant 0 : i32
    %c0_i32_0 = arith.constant 0 : i32
    %c0_i32_1 = arith.constant 0 : i32
    return %c0_i32, %c0_i32_0 : i32, i32
  }
}

module attributes {stable_mosaic.version = 11 : i64} {
  func.func @_conv_bn_lrelu_kernel(%arg0: i32, %arg1: memref<8x112xbf16, #tpu.memory_space<vmem>>, %arg2: memref<112x2048xbf16, #tpu.memory_space<vmem>>, %arg3: memref<8x1xf32, #tpu.memory_space<vmem>>, %arg4: memref<8x1xf32, #tpu.memory_space<vmem>>, %arg5: memref<8x1xf32, #tpu.memory_space<vmem>>, %arg6: memref<8x2048xbf16, #tpu.memory_space<vmem>>, %arg7: memref<1x8x2048xf32, #tpu.memory_space<vmem>>, %arg8: memref<8x1xf32, #tpu.memory_space<vmem>>) attributes {dimension_semantics = [#tpu.dimension_semantics<arbitrary>], iteration_bounds = array<i64: 1>, scalar_prefetch = 0 : i64, scratch_operands = 2 : i64, tpu.core_type = #tpu.core_type<tc>, window_params = [{pipeline_mode = #tpu.pipeline_mode<synchronous>, transform_indices = @transform_0, window_bounds = array<i64: 8, 112>}, {transform_indices = @transform_1, window_bounds = array<i64: 112, 2048>}, {pipeline_mode = #tpu.pipeline_mode<synchronous>, transform_indices = @transform_2, window_bounds = array<i64: 8, 1>}, {pipeline_mode = #tpu.pipeline_mode<synchronous>, transform_indices = @transform_3, window_bounds = array<i64: 8, 1>}, {pipeline_mode = #tpu.pipeline_mode<synchronous>, transform_indices = @transform_4, window_bounds = array<i64: 8, 1>}, {pipeline_mode = #tpu.pipeline_mode<synchronous>, transform_indices = @transform_5, window_bounds = array<i64: 8, 2048>}]} {
    %c0 = arith.constant 0 : index
    %c0_0 = arith.constant 0 : index
    %0 = vector.load %arg1[%c0, %c0_0] : memref<8x112xbf16, #tpu.memory_space<vmem>>, vector<8x112xbf16>
    %c0_1 = arith.constant 0 : index
    %c0_2 = arith.constant 0 : index
    %1 = vector.load %arg2[%c0_1, %c0_2] : memref<112x2048xbf16, #tpu.memory_space<vmem>>, vector<112x2048xbf16>
    %cst = arith.constant dense<0.000000e+00> : vector<8x2048xf32>
    %2 = tpu.matmul %0, %1, %cst {dimension_numbers = #tpu.dot_dimension_numbers<[1], [0], [0], [1], [0, 0, 1, 1], [], []>} : vector<8x112xbf16>, vector<112x2048xbf16>, vector<8x2048xf32> -> vector<8x2048xf32>
    %c0_3 = arith.constant 0 : index
    %c0_4 = arith.constant 0 : index
    %3 = vector.load %arg3[%c0_3, %c0_4] : memref<8x1xf32, #tpu.memory_space<vmem>>, vector<8x1xf32>
    %4 = vector.broadcast %3 : vector<8x1xf32> to vector<8x2048xf32>
    %5 = arith.addf %2, %4 : vector<8x2048xf32>
    %c0_i32 = arith.constant 0 : i32
    %6 = arith.cmpi eq, %arg0, %c0_i32 : i32
    %7 = arith.extui %6 : i1 to i32
    %c0_i32_5 = arith.constant 0 : i32
    %8 = arith.cmpi ne, %7, %c0_i32_5 : i32
    scf.if %8 {
      %cst_15 = arith.constant 0.000000e+00 : f32
      %21 = vector.broadcast %cst_15 : f32 to vector<8x1xf32>
      %c0_16 = arith.constant 0 : index
      %c0_17 = arith.constant 0 : index
      %22 = vector.load %arg8[%c0_16, %c0_17] : memref<8x1xf32, #tpu.memory_space<vmem>>, vector<8x1xf32>
      tpu.vector_store %arg8[%c0_16, %c0_17], %21 {strides = array<i32>} : memref<8x1xf32, #tpu.memory_space<vmem>>, vector<8x1xf32>,
    } else {
    }
    %c0_6 = arith.constant 0 : index
    %c0_7 = arith.constant 0 : index
    %9 = vector.load %arg8[%c0_6, %c0_7] : memref<8x1xf32, #tpu.memory_space<vmem>>, vector<8x1xf32>
    %cst_8 = arith.constant dense<0.000000e+00> : vector<8xf32>
    %10 = vector.multi_reduction <add>, %5, %cst_8 [1] : vector<8x2048xf32> to vector<8xf32>
    %11 = vector.shape_cast %10 : vector<8xf32> to vector<8x1xf32>
    %12 = arith.addf %9, %11 : vector<8x1xf32>
    %c0_9 = arith.constant 0 : index
    %c0_10 = arith.constant 0 : index
    %13 = vector.load %arg8[%c0_9, %c0_10] : memref<8x1xf32, #tpu.memory_space<vmem>>, vector<8x1xf32>
    tpu.vector_store %arg8[%c0_9, %c0_10], %12 {strides = array<i32>} : memref<8x1xf32, #tpu.memory_space<vmem>>, vector<8x1xf32>,
    %14 = arith.index_cast %arg0 : i32 to index
    %c0_11 = arith.constant 0 : index
    %c0_12 = arith.constant 0 : index
    %15 = vector.load %arg7[%14, %c0_11, %c0_12] : memref<1x8x2048xf32, #tpu.memory_space<vmem>>, vector<1x8x2048xf32>
    %16 = vector.shape_cast %15 : vector<1x8x2048xf32> to vector<8x2048xf32>
    %17 = vector.shape_cast %5 : vector<8x2048xf32> to vector<1x8x2048xf32>
    tpu.vector_store %arg7[%14, %c0_11, %c0_12], %17 {strides = array<i32>} : memref<1x8x2048xf32, #tpu.memory_space<vmem>>, vector<1x8x2048xf32>,
    %c0_i32_13 = arith.constant 0 : i32
    %18 = arith.cmpi eq, %arg0, %c0_i32_13 : i32
    %19 = arith.extui %18 : i1 to i32
    %c0_i32_14 = arith.constant 0 : i32
    %20 = arith.cmpi ne, %19, %c0_i32_14 : i32
    scf.if %20 {
      %c0_15 = arith.constant 0 : index
      %c0_16 = arith.constant 0 : index
      %21 = vector.load %arg8[%c0_15, %c0_16] : memref<8x1xf32, #tpu.memory_space<vmem>>, vector<8x1xf32>
      %cst_17 = arith.constant 4.8828125E-4 : f32
      %22 = vector.broadcast %cst_17 : f32 to vector<8x1xf32>
      %23 = arith.mulf %21, %22 : vector<8x1xf32>
      %cst_18 = arith.constant 0.000000e+00 : f32
      %24 = vector.broadcast %cst_18 : f32 to vector<8x1xf32>
      %c0_19 = arith.constant 0 : index
      %c0_20 = arith.constant 0 : index
      %c0_21 = arith.constant 0 : index
      %25 = vector.load %arg7[%c0_19, %c0_20, %c0_21] : memref<1x8x2048xf32, #tpu.memory_space<vmem>>, vector<1x8x2048xf32>
      %26 = vector.shape_cast %25 : vector<1x8x2048xf32> to vector<8x2048xf32>
      %27 = vector.broadcast %23 : vector<8x1xf32> to vector<8x2048xf32>
      %28 = arith.subf %26, %27 : vector<8x2048xf32>
      %29 = arith.mulf %28, %28 : vector<8x2048xf32>
      %cst_22 = arith.constant dense<0.000000e+00> : vector<8xf32>
      %30 = vector.multi_reduction <add>, %29, %cst_22 [1] : vector<8x2048xf32> to vector<8xf32>
      %31 = vector.shape_cast %30 : vector<8xf32> to vector<8x1xf32>
      %32 = arith.addf %24, %31 : vector<8x1xf32>
      %cst_23 = arith.constant 4.8828125E-4 : f32
      %33 = vector.broadcast %cst_23 : f32 to vector<8x1xf32>
      %34 = arith.mulf %32, %33 : vector<8x1xf32>
      %cst_24 = arith.constant 9.99999974E-6 : f32
      %35 = vector.broadcast %cst_24 : f32 to vector<8x1xf32>
      %36 = arith.addf %34, %35 : vector<8x1xf32>
      %37 = math.rsqrt %36 : vector<8x1xf32>
      %c0_25 = arith.constant 0 : index
      %c0_26 = arith.constant 0 : index
      %38 = vector.load %arg4[%c0_25, %c0_26] : memref<8x1xf32, #tpu.memory_space<vmem>>, vector<8x1xf32>
      %39 = arith.mulf %38, %37 : vector<8x1xf32>
      %c0_27 = arith.constant 0 : index
      %c0_28 = arith.constant 0 : index
      %40 = vector.load %arg5[%c0_27, %c0_28] : memref<8x1xf32, #tpu.memory_space<vmem>>, vector<8x1xf32>
      %41 = arith.mulf %23, %39 : vector<8x1xf32>
      %42 = arith.subf %40, %41 : vector<8x1xf32>
      %c0_29 = arith.constant 0 : index
      %c0_30 = arith.constant 0 : index
      %c0_31 = arith.constant 0 : index
      %43 = vector.load %arg7[%c0_29, %c0_30, %c0_31] : memref<1x8x2048xf32, #tpu.memory_space<vmem>>, vector<1x8x2048xf32>
      %44 = vector.shape_cast %43 : vector<1x8x2048xf32> to vector<8x2048xf32>
      %45 = vector.broadcast %39 : vector<8x1xf32> to vector<8x2048xf32>
      %46 = arith.mulf %44, %45 : vector<8x2048xf32>
      %47 = vector.broadcast %42 : vector<8x1xf32> to vector<8x2048xf32>
      %48 = arith.addf %46, %47 : vector<8x2048xf32>
      %cst_32 = arith.constant 0.000000e+00 : f32
      %49 = vector.broadcast %cst_32 : f32 to vector<8x2048xf32>
      %50 = arith.cmpf oge, %48, %49 : vector<8x2048xf32>
      %cst_33 = arith.constant 0.00999999977 : f32
      %51 = vector.broadcast %cst_33 : f32 to vector<8x2048xf32>
      %52 = arith.mulf %51, %48 : vector<8x2048xf32>
      %53 = arith.select %50, %48, %52 : vector<8x2048xi1>, vector<8x2048xf32>
      %54 = arith.truncf %53 : vector<8x2048xf32> to vector<8x2048xbf16>
      %c0_34 = arith.constant 0 : index
      %c0_35 = arith.constant 0 : index
      %55 = vector.load %arg6[%c0_34, %c0_35] : memref<8x2048xbf16, #tpu.memory_space<vmem>>, vector<8x2048xbf16>
      tpu.vector_store %arg6[%c0_34, %c0_35], %54 {strides = array<i32>} : memref<8x2048xbf16, #tpu.memory_space<vmem>>, vector<8x2048xbf16>,
    } else {
    }
    return
  }
  func.func @transform_0(%arg0: i32) -> (i32, i32) {
    %c0_i32 = arith.constant 0 : i32
    %c0_i32_0 = arith.constant 0 : i32
    %c0_i32_1 = arith.constant 0 : i32
    return %c0_i32, %c0_i32_0 : i32, i32
  }
  func.func @transform_1(%arg0: i32) -> (i32, i32) {
    %c0_i32 = arith.constant 0 : i32
    %c0_i32_0 = arith.constant 0 : i32
    return %c0_i32, %arg0 : i32, i32
  }
  func.func @transform_2(%arg0: i32) -> (i32, i32) {
    %c0_i32 = arith.constant 0 : i32
    %c0_i32_0 = arith.constant 0 : i32
    %c0_i32_1 = arith.constant 0 : i32
    return %c0_i32, %c0_i32_0 : i32, i32
  }
  func.func @transform_3(%arg0: i32) -> (i32, i32) {
    %c0_i32 = arith.constant 0 : i32
    %c0_i32_0 = arith.constant 0 : i32
    %c0_i32_1 = arith.constant 0 : i32
    return %c0_i32, %c0_i32_0 : i32, i32
  }
  func.func @transform_4(%arg0: i32) -> (i32, i32) {
    %c0_i32 = arith.constant 0 : i32
    %c0_i32_0 = arith.constant 0 : i32
    %c0_i32_1 = arith.constant 0 : i32
    return %c0_i32, %c0_i32_0 : i32, i32
  }
  func.func @transform_5(%arg0: i32) -> (i32, i32) {
    %c0_i32 = arith.constant 0 : i32
    %c0_i32_0 = arith.constant 0 : i32
    %c0_i32_1 = arith.constant 0 : i32
    return %c0_i32, %c0_i32_0 : i32, i32
  }
}

module attributes {stable_mosaic.version = 11 : i64} {
  func.func @_conv_bn_lrelu_kernel(%arg0: i32, %arg1: memref<16x208xbf16, #tpu.memory_space<vmem>>, %arg2: memref<208x512xbf16, #tpu.memory_space<vmem>>, %arg3: memref<16x1xf32, #tpu.memory_space<vmem>>, %arg4: memref<16x1xf32, #tpu.memory_space<vmem>>, %arg5: memref<16x1xf32, #tpu.memory_space<vmem>>, %arg6: memref<16x512xbf16, #tpu.memory_space<vmem>>, %arg7: memref<1x16x512xf32, #tpu.memory_space<vmem>>, %arg8: memref<16x1xf32, #tpu.memory_space<vmem>>) attributes {dimension_semantics = [#tpu.dimension_semantics<arbitrary>], iteration_bounds = array<i64: 1>, scalar_prefetch = 0 : i64, scratch_operands = 2 : i64, tpu.core_type = #tpu.core_type<tc>, window_params = [{pipeline_mode = #tpu.pipeline_mode<synchronous>, transform_indices = @transform_0, window_bounds = array<i64: 16, 208>}, {transform_indices = @transform_1, window_bounds = array<i64: 208, 512>}, {pipeline_mode = #tpu.pipeline_mode<synchronous>, transform_indices = @transform_2, window_bounds = array<i64: 16, 1>}, {pipeline_mode = #tpu.pipeline_mode<synchronous>, transform_indices = @transform_3, window_bounds = array<i64: 16, 1>}, {pipeline_mode = #tpu.pipeline_mode<synchronous>, transform_indices = @transform_4, window_bounds = array<i64: 16, 1>}, {pipeline_mode = #tpu.pipeline_mode<synchronous>, transform_indices = @transform_5, window_bounds = array<i64: 16, 512>}]} {
    %c0 = arith.constant 0 : index
    %c0_0 = arith.constant 0 : index
    %0 = vector.load %arg1[%c0, %c0_0] : memref<16x208xbf16, #tpu.memory_space<vmem>>, vector<16x208xbf16>
    %c0_1 = arith.constant 0 : index
    %c0_2 = arith.constant 0 : index
    %1 = vector.load %arg2[%c0_1, %c0_2] : memref<208x512xbf16, #tpu.memory_space<vmem>>, vector<208x512xbf16>
    %cst = arith.constant dense<0.000000e+00> : vector<16x512xf32>
    %2 = tpu.matmul %0, %1, %cst {dimension_numbers = #tpu.dot_dimension_numbers<[1], [0], [0], [1], [0, 0, 1, 1], [], []>} : vector<16x208xbf16>, vector<208x512xbf16>, vector<16x512xf32> -> vector<16x512xf32>
    %c0_3 = arith.constant 0 : index
    %c0_4 = arith.constant 0 : index
    %3 = vector.load %arg3[%c0_3, %c0_4] : memref<16x1xf32, #tpu.memory_space<vmem>>, vector<16x1xf32>
    %4 = vector.broadcast %3 : vector<16x1xf32> to vector<16x512xf32>
    %5 = arith.addf %2, %4 : vector<16x512xf32>
    %c0_i32 = arith.constant 0 : i32
    %6 = arith.cmpi eq, %arg0, %c0_i32 : i32
    %7 = arith.extui %6 : i1 to i32
    %c0_i32_5 = arith.constant 0 : i32
    %8 = arith.cmpi ne, %7, %c0_i32_5 : i32
    scf.if %8 {
      %cst_15 = arith.constant 0.000000e+00 : f32
      %21 = vector.broadcast %cst_15 : f32 to vector<16x1xf32>
      %c0_16 = arith.constant 0 : index
      %c0_17 = arith.constant 0 : index
      %22 = vector.load %arg8[%c0_16, %c0_17] : memref<16x1xf32, #tpu.memory_space<vmem>>, vector<16x1xf32>
      tpu.vector_store %arg8[%c0_16, %c0_17], %21 {strides = array<i32>} : memref<16x1xf32, #tpu.memory_space<vmem>>, vector<16x1xf32>,
    } else {
    }
    %c0_6 = arith.constant 0 : index
    %c0_7 = arith.constant 0 : index
    %9 = vector.load %arg8[%c0_6, %c0_7] : memref<16x1xf32, #tpu.memory_space<vmem>>, vector<16x1xf32>
    %cst_8 = arith.constant dense<0.000000e+00> : vector<16xf32>
    %10 = vector.multi_reduction <add>, %5, %cst_8 [1] : vector<16x512xf32> to vector<16xf32>
    %11 = vector.shape_cast %10 : vector<16xf32> to vector<16x1xf32>
    %12 = arith.addf %9, %11 : vector<16x1xf32>
    %c0_9 = arith.constant 0 : index
    %c0_10 = arith.constant 0 : index
    %13 = vector.load %arg8[%c0_9, %c0_10] : memref<16x1xf32, #tpu.memory_space<vmem>>, vector<16x1xf32>
    tpu.vector_store %arg8[%c0_9, %c0_10], %12 {strides = array<i32>} : memref<16x1xf32, #tpu.memory_space<vmem>>, vector<16x1xf32>,
    %14 = arith.index_cast %arg0 : i32 to index
    %c0_11 = arith.constant 0 : index
    %c0_12 = arith.constant 0 : index
    %15 = vector.load %arg7[%14, %c0_11, %c0_12] : memref<1x16x512xf32, #tpu.memory_space<vmem>>, vector<1x16x512xf32>
    %16 = vector.shape_cast %15 : vector<1x16x512xf32> to vector<16x512xf32>
    %17 = vector.shape_cast %5 : vector<16x512xf32> to vector<1x16x512xf32>
    tpu.vector_store %arg7[%14, %c0_11, %c0_12], %17 {strides = array<i32>} : memref<1x16x512xf32, #tpu.memory_space<vmem>>, vector<1x16x512xf32>,
    %c0_i32_13 = arith.constant 0 : i32
    %18 = arith.cmpi eq, %arg0, %c0_i32_13 : i32
    %19 = arith.extui %18 : i1 to i32
    %c0_i32_14 = arith.constant 0 : i32
    %20 = arith.cmpi ne, %19, %c0_i32_14 : i32
    scf.if %20 {
      %c0_15 = arith.constant 0 : index
      %c0_16 = arith.constant 0 : index
      %21 = vector.load %arg8[%c0_15, %c0_16] : memref<16x1xf32, #tpu.memory_space<vmem>>, vector<16x1xf32>
      %cst_17 = arith.constant 0.001953125 : f32
      %22 = vector.broadcast %cst_17 : f32 to vector<16x1xf32>
      %23 = arith.mulf %21, %22 : vector<16x1xf32>
      %cst_18 = arith.constant 0.000000e+00 : f32
      %24 = vector.broadcast %cst_18 : f32 to vector<16x1xf32>
      %c0_19 = arith.constant 0 : index
      %c0_20 = arith.constant 0 : index
      %c0_21 = arith.constant 0 : index
      %25 = vector.load %arg7[%c0_19, %c0_20, %c0_21] : memref<1x16x512xf32, #tpu.memory_space<vmem>>, vector<1x16x512xf32>
      %26 = vector.shape_cast %25 : vector<1x16x512xf32> to vector<16x512xf32>
      %27 = vector.broadcast %23 : vector<16x1xf32> to vector<16x512xf32>
      %28 = arith.subf %26, %27 : vector<16x512xf32>
      %29 = arith.mulf %28, %28 : vector<16x512xf32>
      %cst_22 = arith.constant dense<0.000000e+00> : vector<16xf32>
      %30 = vector.multi_reduction <add>, %29, %cst_22 [1] : vector<16x512xf32> to vector<16xf32>
      %31 = vector.shape_cast %30 : vector<16xf32> to vector<16x1xf32>
      %32 = arith.addf %24, %31 : vector<16x1xf32>
      %cst_23 = arith.constant 0.001953125 : f32
      %33 = vector.broadcast %cst_23 : f32 to vector<16x1xf32>
      %34 = arith.mulf %32, %33 : vector<16x1xf32>
      %cst_24 = arith.constant 9.99999974E-6 : f32
      %35 = vector.broadcast %cst_24 : f32 to vector<16x1xf32>
      %36 = arith.addf %34, %35 : vector<16x1xf32>
      %37 = math.rsqrt %36 : vector<16x1xf32>
      %c0_25 = arith.constant 0 : index
      %c0_26 = arith.constant 0 : index
      %38 = vector.load %arg4[%c0_25, %c0_26] : memref<16x1xf32, #tpu.memory_space<vmem>>, vector<16x1xf32>
      %39 = arith.mulf %38, %37 : vector<16x1xf32>
      %c0_27 = arith.constant 0 : index
      %c0_28 = arith.constant 0 : index
      %40 = vector.load %arg5[%c0_27, %c0_28] : memref<16x1xf32, #tpu.memory_space<vmem>>, vector<16x1xf32>
      %41 = arith.mulf %23, %39 : vector<16x1xf32>
      %42 = arith.subf %40, %41 : vector<16x1xf32>
      %c0_29 = arith.constant 0 : index
      %c0_30 = arith.constant 0 : index
      %c0_31 = arith.constant 0 : index
      %43 = vector.load %arg7[%c0_29, %c0_30, %c0_31] : memref<1x16x512xf32, #tpu.memory_space<vmem>>, vector<1x16x512xf32>
      %44 = vector.shape_cast %43 : vector<1x16x512xf32> to vector<16x512xf32>
      %45 = vector.broadcast %39 : vector<16x1xf32> to vector<16x512xf32>
      %46 = arith.mulf %44, %45 : vector<16x512xf32>
      %47 = vector.broadcast %42 : vector<16x1xf32> to vector<16x512xf32>
      %48 = arith.addf %46, %47 : vector<16x512xf32>
      %cst_32 = arith.constant 0.000000e+00 : f32
      %49 = vector.broadcast %cst_32 : f32 to vector<16x512xf32>
      %50 = arith.cmpf oge, %48, %49 : vector<16x512xf32>
      %cst_33 = arith.constant 0.00999999977 : f32
      %51 = vector.broadcast %cst_33 : f32 to vector<16x512xf32>
      %52 = arith.mulf %51, %48 : vector<16x512xf32>
      %53 = arith.select %50, %48, %52 : vector<16x512xi1>, vector<16x512xf32>
      %54 = arith.truncf %53 : vector<16x512xf32> to vector<16x512xbf16>
      %c0_34 = arith.constant 0 : index
      %c0_35 = arith.constant 0 : index
      %55 = vector.load %arg6[%c0_34, %c0_35] : memref<16x512xbf16, #tpu.memory_space<vmem>>, vector<16x512xbf16>
      tpu.vector_store %arg6[%c0_34, %c0_35], %54 {strides = array<i32>} : memref<16x512xbf16, #tpu.memory_space<vmem>>, vector<16x512xbf16>,
    } else {
    }
    return
  }
  func.func @transform_0(%arg0: i32) -> (i32, i32) {
    %c0_i32 = arith.constant 0 : i32
    %c0_i32_0 = arith.constant 0 : i32
    %c0_i32_1 = arith.constant 0 : i32
    return %c0_i32, %c0_i32_0 : i32, i32
  }
  func.func @transform_1(%arg0: i32) -> (i32, i32) {
    %c0_i32 = arith.constant 0 : i32
    %c0_i32_0 = arith.constant 0 : i32
    return %c0_i32, %arg0 : i32, i32
  }
  func.func @transform_2(%arg0: i32) -> (i32, i32) {
    %c0_i32 = arith.constant 0 : i32
    %c0_i32_0 = arith.constant 0 : i32
    %c0_i32_1 = arith.constant 0 : i32
    return %c0_i32, %c0_i32_0 : i32, i32
  }
  func.func @transform_3(%arg0: i32) -> (i32, i32) {
    %c0_i32 = arith.constant 0 : i32
    %c0_i32_0 = arith.constant 0 : i32
    %c0_i32_1 = arith.constant 0 : i32
    return %c0_i32, %c0_i32_0 : i32, i32
  }
  func.func @transform_4(%arg0: i32) -> (i32, i32) {
    %c0_i32 = arith.constant 0 : i32
    %c0_i32_0 = arith.constant 0 : i32
    %c0_i32_1 = arith.constant 0 : i32
    return %c0_i32, %c0_i32_0 : i32, i32
  }
  func.func @transform_5(%arg0: i32) -> (i32, i32) {
    %c0_i32 = arith.constant 0 : i32
    %c0_i32_0 = arith.constant 0 : i32
    %c0_i32_1 = arith.constant 0 : i32
    return %c0_i32, %c0_i32_0 : i32, i32
  }
}

module attributes {stable_mosaic.version = 11 : i64} {
  func.func @_conv_bn_lrelu_kernel(%arg0: i32, %arg1: memref<16x144xbf16, #tpu.memory_space<vmem>>, %arg2: memref<144x72xbf16, #tpu.memory_space<vmem>>, %arg3: memref<16x1xf32, #tpu.memory_space<vmem>>, %arg4: memref<16x1xf32, #tpu.memory_space<vmem>>, %arg5: memref<16x1xf32, #tpu.memory_space<vmem>>, %arg6: memref<16x72xbf16, #tpu.memory_space<vmem>>, %arg7: memref<1x16x72xf32, #tpu.memory_space<vmem>>, %arg8: memref<16x1xf32, #tpu.memory_space<vmem>>) attributes {dimension_semantics = [#tpu.dimension_semantics<arbitrary>], iteration_bounds = array<i64: 1>, scalar_prefetch = 0 : i64, scratch_operands = 2 : i64, tpu.core_type = #tpu.core_type<tc>, window_params = [{pipeline_mode = #tpu.pipeline_mode<synchronous>, transform_indices = @transform_0, window_bounds = array<i64: 16, 144>}, {transform_indices = @transform_1, window_bounds = array<i64: 144, 72>}, {pipeline_mode = #tpu.pipeline_mode<synchronous>, transform_indices = @transform_2, window_bounds = array<i64: 16, 1>}, {pipeline_mode = #tpu.pipeline_mode<synchronous>, transform_indices = @transform_3, window_bounds = array<i64: 16, 1>}, {pipeline_mode = #tpu.pipeline_mode<synchronous>, transform_indices = @transform_4, window_bounds = array<i64: 16, 1>}, {pipeline_mode = #tpu.pipeline_mode<synchronous>, transform_indices = @transform_5, window_bounds = array<i64: 16, 72>}]} {
    %c0 = arith.constant 0 : index
    %c0_0 = arith.constant 0 : index
    %0 = vector.load %arg1[%c0, %c0_0] : memref<16x144xbf16, #tpu.memory_space<vmem>>, vector<16x144xbf16>
    %c0_1 = arith.constant 0 : index
    %c0_2 = arith.constant 0 : index
    %1 = vector.load %arg2[%c0_1, %c0_2] : memref<144x72xbf16, #tpu.memory_space<vmem>>, vector<144x72xbf16>
    %cst = arith.constant dense<0.000000e+00> : vector<16x72xf32>
    %2 = tpu.matmul %0, %1, %cst {dimension_numbers = #tpu.dot_dimension_numbers<[1], [0], [0], [1], [0, 0, 1, 1], [], []>} : vector<16x144xbf16>, vector<144x72xbf16>, vector<16x72xf32> -> vector<16x72xf32>
    %c0_3 = arith.constant 0 : index
    %c0_4 = arith.constant 0 : index
    %3 = vector.load %arg3[%c0_3, %c0_4] : memref<16x1xf32, #tpu.memory_space<vmem>>, vector<16x1xf32>
    %4 = vector.broadcast %3 : vector<16x1xf32> to vector<16x72xf32>
    %5 = arith.addf %2, %4 : vector<16x72xf32>
    %c0_i32 = arith.constant 0 : i32
    %6 = arith.cmpi eq, %arg0, %c0_i32 : i32
    %7 = arith.extui %6 : i1 to i32
    %c0_i32_5 = arith.constant 0 : i32
    %8 = arith.cmpi ne, %7, %c0_i32_5 : i32
    scf.if %8 {
      %cst_15 = arith.constant 0.000000e+00 : f32
      %21 = vector.broadcast %cst_15 : f32 to vector<16x1xf32>
      %c0_16 = arith.constant 0 : index
      %c0_17 = arith.constant 0 : index
      %22 = vector.load %arg8[%c0_16, %c0_17] : memref<16x1xf32, #tpu.memory_space<vmem>>, vector<16x1xf32>
      tpu.vector_store %arg8[%c0_16, %c0_17], %21 {strides = array<i32>} : memref<16x1xf32, #tpu.memory_space<vmem>>, vector<16x1xf32>,
    } else {
    }
    %c0_6 = arith.constant 0 : index
    %c0_7 = arith.constant 0 : index
    %9 = vector.load %arg8[%c0_6, %c0_7] : memref<16x1xf32, #tpu.memory_space<vmem>>, vector<16x1xf32>
    %cst_8 = arith.constant dense<0.000000e+00> : vector<16xf32>
    %10 = vector.multi_reduction <add>, %5, %cst_8 [1] : vector<16x72xf32> to vector<16xf32>
    %11 = vector.shape_cast %10 : vector<16xf32> to vector<16x1xf32>
    %12 = arith.addf %9, %11 : vector<16x1xf32>
    %c0_9 = arith.constant 0 : index
    %c0_10 = arith.constant 0 : index
    %13 = vector.load %arg8[%c0_9, %c0_10] : memref<16x1xf32, #tpu.memory_space<vmem>>, vector<16x1xf32>
    tpu.vector_store %arg8[%c0_9, %c0_10], %12 {strides = array<i32>} : memref<16x1xf32, #tpu.memory_space<vmem>>, vector<16x1xf32>,
    %14 = arith.index_cast %arg0 : i32 to index
    %c0_11 = arith.constant 0 : index
    %c0_12 = arith.constant 0 : index
    %15 = vector.load %arg7[%14, %c0_11, %c0_12] : memref<1x16x72xf32, #tpu.memory_space<vmem>>, vector<1x16x72xf32>
    %16 = vector.shape_cast %15 : vector<1x16x72xf32> to vector<16x72xf32>
    %17 = vector.shape_cast %5 : vector<16x72xf32> to vector<1x16x72xf32>
    tpu.vector_store %arg7[%14, %c0_11, %c0_12], %17 {strides = array<i32>} : memref<1x16x72xf32, #tpu.memory_space<vmem>>, vector<1x16x72xf32>,
    %c0_i32_13 = arith.constant 0 : i32
    %18 = arith.cmpi eq, %arg0, %c0_i32_13 : i32
    %19 = arith.extui %18 : i1 to i32
    %c0_i32_14 = arith.constant 0 : i32
    %20 = arith.cmpi ne, %19, %c0_i32_14 : i32
    scf.if %20 {
      %c0_15 = arith.constant 0 : index
      %c0_16 = arith.constant 0 : index
      %21 = vector.load %arg8[%c0_15, %c0_16] : memref<16x1xf32, #tpu.memory_space<vmem>>, vector<16x1xf32>
      %cst_17 = arith.constant 0.013888889 : f32
      %22 = vector.broadcast %cst_17 : f32 to vector<16x1xf32>
      %23 = arith.mulf %21, %22 : vector<16x1xf32>
      %cst_18 = arith.constant 0.000000e+00 : f32
      %24 = vector.broadcast %cst_18 : f32 to vector<16x1xf32>
      %c0_19 = arith.constant 0 : index
      %c0_20 = arith.constant 0 : index
      %c0_21 = arith.constant 0 : index
      %25 = vector.load %arg7[%c0_19, %c0_20, %c0_21] : memref<1x16x72xf32, #tpu.memory_space<vmem>>, vector<1x16x72xf32>
      %26 = vector.shape_cast %25 : vector<1x16x72xf32> to vector<16x72xf32>
      %27 = vector.broadcast %23 : vector<16x1xf32> to vector<16x72xf32>
      %28 = arith.subf %26, %27 : vector<16x72xf32>
      %29 = arith.mulf %28, %28 : vector<16x72xf32>
      %cst_22 = arith.constant dense<0.000000e+00> : vector<16xf32>
      %30 = vector.multi_reduction <add>, %29, %cst_22 [1] : vector<16x72xf32> to vector<16xf32>
      %31 = vector.shape_cast %30 : vector<16xf32> to vector<16x1xf32>
      %32 = arith.addf %24, %31 : vector<16x1xf32>
      %cst_23 = arith.constant 0.013888889 : f32
      %33 = vector.broadcast %cst_23 : f32 to vector<16x1xf32>
      %34 = arith.mulf %32, %33 : vector<16x1xf32>
      %cst_24 = arith.constant 9.99999974E-6 : f32
      %35 = vector.broadcast %cst_24 : f32 to vector<16x1xf32>
      %36 = arith.addf %34, %35 : vector<16x1xf32>
      %37 = math.rsqrt %36 : vector<16x1xf32>
      %c0_25 = arith.constant 0 : index
      %c0_26 = arith.constant 0 : index
      %38 = vector.load %arg4[%c0_25, %c0_26] : memref<16x1xf32, #tpu.memory_space<vmem>>, vector<16x1xf32>
      %39 = arith.mulf %38, %37 : vector<16x1xf32>
      %c0_27 = arith.constant 0 : index
      %c0_28 = arith.constant 0 : index
      %40 = vector.load %arg5[%c0_27, %c0_28] : memref<16x1xf32, #tpu.memory_space<vmem>>, vector<16x1xf32>
      %41 = arith.mulf %23, %39 : vector<16x1xf32>
      %42 = arith.subf %40, %41 : vector<16x1xf32>
      %c0_29 = arith.constant 0 : index
      %c0_30 = arith.constant 0 : index
      %c0_31 = arith.constant 0 : index
      %43 = vector.load %arg7[%c0_29, %c0_30, %c0_31] : memref<1x16x72xf32, #tpu.memory_space<vmem>>, vector<1x16x72xf32>
      %44 = vector.shape_cast %43 : vector<1x16x72xf32> to vector<16x72xf32>
      %45 = vector.broadcast %39 : vector<16x1xf32> to vector<16x72xf32>
      %46 = arith.mulf %44, %45 : vector<16x72xf32>
      %47 = vector.broadcast %42 : vector<16x1xf32> to vector<16x72xf32>
      %48 = arith.addf %46, %47 : vector<16x72xf32>
      %cst_32 = arith.constant 0.000000e+00 : f32
      %49 = vector.broadcast %cst_32 : f32 to vector<16x72xf32>
      %50 = arith.cmpf oge, %48, %49 : vector<16x72xf32>
      %cst_33 = arith.constant 0.00999999977 : f32
      %51 = vector.broadcast %cst_33 : f32 to vector<16x72xf32>
      %52 = arith.mulf %51, %48 : vector<16x72xf32>
      %53 = arith.select %50, %48, %52 : vector<16x72xi1>, vector<16x72xf32>
      %54 = arith.truncf %53 : vector<16x72xf32> to vector<16x72xbf16>
      %c0_34 = arith.constant 0 : index
      %c0_35 = arith.constant 0 : index
      %55 = vector.load %arg6[%c0_34, %c0_35] : memref<16x72xbf16, #tpu.memory_space<vmem>>, vector<16x72xbf16>
      tpu.vector_store %arg6[%c0_34, %c0_35], %54 {strides = array<i32>} : memref<16x72xbf16, #tpu.memory_space<vmem>>, vector<16x72xbf16>,
    } else {
    }
    return
  }
  func.func @transform_0(%arg0: i32) -> (i32, i32) {
    %c0_i32 = arith.constant 0 : i32
    %c0_i32_0 = arith.constant 0 : i32
    %c0_i32_1 = arith.constant 0 : i32
    return %c0_i32, %c0_i32_0 : i32, i32
  }
  func.func @transform_1(%arg0: i32) -> (i32, i32) {
    %c0_i32 = arith.constant 0 : i32
    %c0_i32_0 = arith.constant 0 : i32
    return %c0_i32, %arg0 : i32, i32
  }
  func.func @transform_2(%arg0: i32) -> (i32, i32) {
    %c0_i32 = arith.constant 0 : i32
    %c0_i32_0 = arith.constant 0 : i32
    %c0_i32_1 = arith.constant 0 : i32
    return %c0_i32, %c0_i32_0 : i32, i32
  }
  func.func @transform_3(%arg0: i32) -> (i32, i32) {
    %c0_i32 = arith.constant 0 : i32
    %c0_i32_0 = arith.constant 0 : i32
    %c0_i32_1 = arith.constant 0 : i32
    return %c0_i32, %c0_i32_0 : i32, i32
  }
  func.func @transform_4(%arg0: i32) -> (i32, i32) {
    %c0_i32 = arith.constant 0 : i32
    %c0_i32_0 = arith.constant 0 : i32
    %c0_i32_1 = arith.constant 0 : i32
    return %c0_i32, %c0_i32_0 : i32, i32
  }
  func.func @transform_5(%arg0: i32) -> (i32, i32) {
    %c0_i32 = arith.constant 0 : i32
    %c0_i32_0 = arith.constant 0 : i32
    %c0_i32_1 = arith.constant 0 : i32
    return %c0_i32, %c0_i32_0 : i32, i32
  }
}

module attributes {stable_mosaic.version = 11 : i64} {
  func.func @_fc_stack_kernel(%arg0: i32, %arg1: memref<16x144xbf16, #tpu.memory_space<vmem>>, %arg2: memref<144x1024xbf16, #tpu.memory_space<vmem>>, %arg3: memref<1x1024xf32, #tpu.memory_space<vmem>>, %arg4: memref<1x1024xf32, #tpu.memory_space<vmem>>, %arg5: memref<1x1024xf32, #tpu.memory_space<vmem>>, %arg6: memref<1024x1024xbf16, #tpu.memory_space<vmem>>, %arg7: memref<1x1024xf32, #tpu.memory_space<vmem>>, %arg8: memref<1x1024xf32, #tpu.memory_space<vmem>>, %arg9: memref<1x1024xf32, #tpu.memory_space<vmem>>, %arg10: memref<1024x128xbf16, #tpu.memory_space<vmem>>, %arg11: memref<1x128xf32, #tpu.memory_space<vmem>>, %arg12: memref<16x128xf32, #tpu.memory_space<vmem>>) attributes {dimension_semantics = [#tpu.dimension_semantics<arbitrary>], iteration_bounds = array<i64: 1>, scalar_prefetch = 0 : i64, scratch_operands = 0 : i64, tpu.core_type = #tpu.core_type<tc>, window_params = [{pipeline_mode = #tpu.pipeline_mode<synchronous>, transform_indices = @transform_0, window_bounds = array<i64: 16, 144>}, {pipeline_mode = #tpu.pipeline_mode<synchronous>, transform_indices = @transform_1, window_bounds = array<i64: 144, 1024>}, {pipeline_mode = #tpu.pipeline_mode<synchronous>, transform_indices = @transform_2, window_bounds = array<i64: 1, 1024>}, {pipeline_mode = #tpu.pipeline_mode<synchronous>, transform_indices = @transform_3, window_bounds = array<i64: 1, 1024>}, {pipeline_mode = #tpu.pipeline_mode<synchronous>, transform_indices = @transform_4, window_bounds = array<i64: 1, 1024>}, {pipeline_mode = #tpu.pipeline_mode<synchronous>, transform_indices = @transform_5, window_bounds = array<i64: 1024, 1024>}, {pipeline_mode = #tpu.pipeline_mode<synchronous>, transform_indices = @transform_6, window_bounds = array<i64: 1, 1024>}, {pipeline_mode = #tpu.pipeline_mode<synchronous>, transform_indices = @transform_7, window_bounds = array<i64: 1, 1024>}, {pipeline_mode = #tpu.pipeline_mode<synchronous>, transform_indices = @transform_8, window_bounds = array<i64: 1, 1024>}, {pipeline_mode = #tpu.pipeline_mode<synchronous>, transform_indices = @transform_9, window_bounds = array<i64: 1024, 128>}, {pipeline_mode = #tpu.pipeline_mode<synchronous>, transform_indices = @transform_10, window_bounds = array<i64: 1, 128>}, {pipeline_mode = #tpu.pipeline_mode<synchronous>, transform_indices = @transform_11, window_bounds = array<i64: 16, 128>}]} {
    %c0 = arith.constant 0 : index
    %c0_0 = arith.constant 0 : index
    %0 = vector.load %arg1[%c0, %c0_0] : memref<16x144xbf16, #tpu.memory_space<vmem>>, vector<16x144xbf16>
    %c0_1 = arith.constant 0 : index
    %c0_2 = arith.constant 0 : index
    %1 = vector.load %arg2[%c0_1, %c0_2] : memref<144x1024xbf16, #tpu.memory_space<vmem>>, vector<144x1024xbf16>
    %cst = arith.constant dense<0.000000e+00> : vector<16x1024xf32>
    %2 = tpu.matmul %0, %1, %cst {dimension_numbers = #tpu.dot_dimension_numbers<[1], [0], [0], [1], [0, 0, 1, 1], [], []>} : vector<16x144xbf16>, vector<144x1024xbf16>, vector<16x1024xf32> -> vector<16x1024xf32>
    %c0_3 = arith.constant 0 : index
    %c0_4 = arith.constant 0 : index
    %3 = vector.load %arg3[%c0_3, %c0_4] : memref<1x1024xf32, #tpu.memory_space<vmem>>, vector<1x1024xf32>
    %4 = vector.broadcast %3 : vector<1x1024xf32> to vector<16x1024xf32>
    %5 = arith.addf %2, %4 : vector<16x1024xf32>
    %c0_5 = arith.constant 0 : index
    %c0_6 = arith.constant 0 : index
    %6 = vector.load %arg4[%c0_5, %c0_6] : memref<1x1024xf32, #tpu.memory_space<vmem>>, vector<1x1024xf32>
    %c0_7 = arith.constant 0 : index
    %c0_8 = arith.constant 0 : index
    %7 = vector.load %arg5[%c0_7, %c0_8] : memref<1x1024xf32, #tpu.memory_space<vmem>>, vector<1x1024xf32>
    %8 = tpu.iota {dimensions = array<i32: 0>} : vector<16x1024xi32>
    %c2_i32 = arith.constant 2 : i32
    %9 = vector.broadcast %c2_i32 : i32 to vector<16x1024xi32>
    %10 = arith.cmpi slt, %8, %9 : vector<16x1024xi32>
    %11 = arith.extui %10 : vector<16x1024xi1> to vector<16x1024xi32>
    %12 = arith.sitofp %11 : vector<16x1024xi32> to vector<16x1024xf32>
    %13 = arith.mulf %5, %12 : vector<16x1024xf32>
    %cst_9 = arith.constant dense<0.000000e+00> : vector<1024xf32>
    %14 = vector.multi_reduction <add>, %13, %cst_9 [0] : vector<16x1024xf32> to vector<1024xf32>
    %15 = vector.shape_cast %14 : vector<1024xf32> to vector<1x1024xf32>
    %cst_10 = arith.constant 5.000000e-01 : f32
    %16 = vector.broadcast %cst_10 : f32 to vector<1x1024xf32>
    %17 = arith.mulf %15, %16 : vector<1x1024xf32>
    %18 = vector.broadcast %17 : vector<1x1024xf32> to vector<16x1024xf32>
    %19 = arith.subf %5, %18 : vector<16x1024xf32>
    %20 = arith.mulf %19, %12 : vector<16x1024xf32>
    %21 = arith.mulf %20, %20 : vector<16x1024xf32>
    %cst_11 = arith.constant dense<0.000000e+00> : vector<1024xf32>
    %22 = vector.multi_reduction <add>, %21, %cst_11 [0] : vector<16x1024xf32> to vector<1024xf32>
    %23 = vector.shape_cast %22 : vector<1024xf32> to vector<1x1024xf32>
    %cst_12 = arith.constant 5.000000e-01 : f32
    %24 = vector.broadcast %cst_12 : f32 to vector<1x1024xf32>
    %25 = arith.mulf %23, %24 : vector<1x1024xf32>
    %26 = vector.broadcast %17 : vector<1x1024xf32> to vector<16x1024xf32>
    %27 = arith.subf %5, %26 : vector<16x1024xf32>
    %cst_13 = arith.constant 9.99999974E-6 : f32
    %28 = vector.broadcast %cst_13 : f32 to vector<1x1024xf32>
    %29 = arith.addf %25, %28 : vector<1x1024xf32>
    %30 = math.rsqrt %29 : vector<1x1024xf32>
    %31 = vector.broadcast %30 : vector<1x1024xf32> to vector<16x1024xf32>
    %32 = arith.mulf %27, %31 : vector<16x1024xf32>
    %33 = vector.broadcast %6 : vector<1x1024xf32> to vector<16x1024xf32>
    %34 = arith.mulf %32, %33 : vector<16x1024xf32>
    %35 = vector.broadcast %7 : vector<1x1024xf32> to vector<16x1024xf32>
    %36 = arith.addf %34, %35 : vector<16x1024xf32>
    %cst_14 = arith.constant 0.000000e+00 : f32
    %37 = vector.broadcast %cst_14 : f32 to vector<16x1024xf32>
    %38 = arith.cmpf oge, %36, %37 : vector<16x1024xf32>
    %cst_15 = arith.constant 0.00999999977 : f32
    %39 = vector.broadcast %cst_15 : f32 to vector<16x1024xf32>
    %40 = arith.mulf %39, %36 : vector<16x1024xf32>
    %41 = arith.select %38, %36, %40 : vector<16x1024xi1>, vector<16x1024xf32>
    %42 = arith.truncf %41 : vector<16x1024xf32> to vector<16x1024xbf16>
    %c0_16 = arith.constant 0 : index
    %c0_17 = arith.constant 0 : index
    %43 = vector.load %arg6[%c0_16, %c0_17] : memref<1024x1024xbf16, #tpu.memory_space<vmem>>, vector<1024x1024xbf16>
    %cst_18 = arith.constant dense<0.000000e+00> : vector<16x1024xf32>
    %44 = tpu.matmul %42, %43, %cst_18 {dimension_numbers = #tpu.dot_dimension_numbers<[1], [0], [0], [1], [0, 0, 1, 1], [], []>} : vector<16x1024xbf16>, vector<1024x1024xbf16>, vector<16x1024xf32> -> vector<16x1024xf32>
    %c0_19 = arith.constant 0 : index
    %c0_20 = arith.constant 0 : index
    %45 = vector.load %arg7[%c0_19, %c0_20] : memref<1x1024xf32, #tpu.memory_space<vmem>>, vector<1x1024xf32>
    %46 = vector.broadcast %45 : vector<1x1024xf32> to vector<16x1024xf32>
    %47 = arith.addf %44, %46 : vector<16x1024xf32>
    %c0_21 = arith.constant 0 : index
    %c0_22 = arith.constant 0 : index
    %48 = vector.load %arg8[%c0_21, %c0_22] : memref<1x1024xf32, #tpu.memory_space<vmem>>, vector<1x1024xf32>
    %c0_23 = arith.constant 0 : index
    %c0_24 = arith.constant 0 : index
    %49 = vector.load %arg9[%c0_23, %c0_24] : memref<1x1024xf32, #tpu.memory_space<vmem>>, vector<1x1024xf32>
    %50 = tpu.iota {dimensions = array<i32: 0>} : vector<16x1024xi32>
    %c2_i32_25 = arith.constant 2 : i32
    %51 = vector.broadcast %c2_i32_25 : i32 to vector<16x1024xi32>
    %52 = arith.cmpi slt, %50, %51 : vector<16x1024xi32>
    %53 = arith.extui %52 : vector<16x1024xi1> to vector<16x1024xi32>
    %54 = arith.sitofp %53 : vector<16x1024xi32> to vector<16x1024xf32>
    %55 = arith.mulf %47, %54 : vector<16x1024xf32>
    %cst_26 = arith.constant dense<0.000000e+00> : vector<1024xf32>
    %56 = vector.multi_reduction <add>, %55, %cst_26 [0] : vector<16x1024xf32> to vector<1024xf32>
    %57 = vector.shape_cast %56 : vector<1024xf32> to vector<1x1024xf32>
    %cst_27 = arith.constant 5.000000e-01 : f32
    %58 = vector.broadcast %cst_27 : f32 to vector<1x1024xf32>
    %59 = arith.mulf %57, %58 : vector<1x1024xf32>
    %60 = vector.broadcast %59 : vector<1x1024xf32> to vector<16x1024xf32>
    %61 = arith.subf %47, %60 : vector<16x1024xf32>
    %62 = arith.mulf %61, %54 : vector<16x1024xf32>
    %63 = arith.mulf %62, %62 : vector<16x1024xf32>
    %cst_28 = arith.constant dense<0.000000e+00> : vector<1024xf32>
    %64 = vector.multi_reduction <add>, %63, %cst_28 [0] : vector<16x1024xf32> to vector<1024xf32>
    %65 = vector.shape_cast %64 : vector<1024xf32> to vector<1x1024xf32>
    %cst_29 = arith.constant 5.000000e-01 : f32
    %66 = vector.broadcast %cst_29 : f32 to vector<1x1024xf32>
    %67 = arith.mulf %65, %66 : vector<1x1024xf32>
    %68 = vector.broadcast %59 : vector<1x1024xf32> to vector<16x1024xf32>
    %69 = arith.subf %47, %68 : vector<16x1024xf32>
    %cst_30 = arith.constant 9.99999974E-6 : f32
    %70 = vector.broadcast %cst_30 : f32 to vector<1x1024xf32>
    %71 = arith.addf %67, %70 : vector<1x1024xf32>
    %72 = math.rsqrt %71 : vector<1x1024xf32>
    %73 = vector.broadcast %72 : vector<1x1024xf32> to vector<16x1024xf32>
    %74 = arith.mulf %69, %73 : vector<16x1024xf32>
    %75 = vector.broadcast %48 : vector<1x1024xf32> to vector<16x1024xf32>
    %76 = arith.mulf %74, %75 : vector<16x1024xf32>
    %77 = vector.broadcast %49 : vector<1x1024xf32> to vector<16x1024xf32>
    %78 = arith.addf %76, %77 : vector<16x1024xf32>
    %cst_31 = arith.constant 0.000000e+00 : f32
    %79 = vector.broadcast %cst_31 : f32 to vector<16x1024xf32>
    %80 = arith.cmpf oge, %78, %79 : vector<16x1024xf32>
    %cst_32 = arith.constant 0.00999999977 : f32
    %81 = vector.broadcast %cst_32 : f32 to vector<16x1024xf32>
    %82 = arith.mulf %81, %78 : vector<16x1024xf32>
    %83 = arith.select %80, %78, %82 : vector<16x1024xi1>, vector<16x1024xf32>
    %84 = arith.truncf %83 : vector<16x1024xf32> to vector<16x1024xbf16>
    %c0_33 = arith.constant 0 : index
    %c0_34 = arith.constant 0 : index
    %85 = vector.load %arg10[%c0_33, %c0_34] : memref<1024x128xbf16, #tpu.memory_space<vmem>>, vector<1024x128xbf16>
    %cst_35 = arith.constant dense<0.000000e+00> : vector<16x128xf32>
    %86 = tpu.matmul %84, %85, %cst_35 {dimension_numbers = #tpu.dot_dimension_numbers<[1], [0], [0], [1], [0, 0, 1, 1], [], []>} : vector<16x1024xbf16>, vector<1024x128xbf16>, vector<16x128xf32> -> vector<16x128xf32>
    %c0_36 = arith.constant 0 : index
    %c0_37 = arith.constant 0 : index
    %87 = vector.load %arg11[%c0_36, %c0_37] : memref<1x128xf32, #tpu.memory_space<vmem>>, vector<1x128xf32>
    %88 = vector.broadcast %87 : vector<1x128xf32> to vector<16x128xf32>
    %89 = arith.addf %86, %88 : vector<16x128xf32>
    %cst_38 = arith.constant 0.000000e+00 : f32
    %90 = vector.broadcast %cst_38 : f32 to vector<16x128xf32>
    %91 = arith.cmpf oge, %89, %90 : vector<16x128xf32>
    %cst_39 = arith.constant 0.00999999977 : f32
    %92 = vector.broadcast %cst_39 : f32 to vector<16x128xf32>
    %93 = arith.mulf %92, %89 : vector<16x128xf32>
    %94 = arith.select %91, %89, %93 : vector<16x128xi1>, vector<16x128xf32>
    %c0_40 = arith.constant 0 : index
    %c0_41 = arith.constant 0 : index
    %95 = vector.load %arg12[%c0_40, %c0_41] : memref<16x128xf32, #tpu.memory_space<vmem>>, vector<16x128xf32>
    tpu.vector_store %arg12[%c0_40, %c0_41], %94 {strides = array<i32>} : memref<16x128xf32, #tpu.memory_space<vmem>>, vector<16x128xf32>,
    return
  }
  func.func @transform_0(%arg0: i32) -> (i32, i32) {
    %c0_i32 = arith.constant 0 : i32
    %c0_i32_0 = arith.constant 0 : i32
    %c0_i32_1 = arith.constant 0 : i32
    return %c0_i32, %c0_i32_0 : i32, i32
  }
  func.func @transform_1(%arg0: i32) -> (i32, i32) {
    %c0_i32 = arith.constant 0 : i32
    %c0_i32_0 = arith.constant 0 : i32
    %c0_i32_1 = arith.constant 0 : i32
    return %c0_i32, %c0_i32_0 : i32, i32
  }
  func.func @transform_2(%arg0: i32) -> (i32, i32) {
    %c0_i32 = arith.constant 0 : i32
    %c0_i32_0 = arith.constant 0 : i32
    %c0_i32_1 = arith.constant 0 : i32
    return %c0_i32, %c0_i32_0 : i32, i32
  }
  func.func @transform_3(%arg0: i32) -> (i32, i32) {
    %c0_i32 = arith.constant 0 : i32
    %c0_i32_0 = arith.constant 0 : i32
    %c0_i32_1 = arith.constant 0 : i32
    return %c0_i32, %c0_i32_0 : i32, i32
  }
  func.func @transform_4(%arg0: i32) -> (i32, i32) {
    %c0_i32 = arith.constant 0 : i32
    %c0_i32_0 = arith.constant 0 : i32
    %c0_i32_1 = arith.constant 0 : i32
    return %c0_i32, %c0_i32_0 : i32, i32
  }
  func.func @transform_5(%arg0: i32) -> (i32, i32) {
    %c0_i32 = arith.constant 0 : i32
    %c0_i32_0 = arith.constant 0 : i32
    %c0_i32_1 = arith.constant 0 : i32
    return %c0_i32, %c0_i32_0 : i32, i32
  }
  func.func @transform_6(%arg0: i32) -> (i32, i32) {
    %c0_i32 = arith.constant 0 : i32
    %c0_i32_0 = arith.constant 0 : i32
    %c0_i32_1 = arith.constant 0 : i32
    return %c0_i32, %c0_i32_0 : i32, i32
  }
  func.func @transform_7(%arg0: i32) -> (i32, i32) {
    %c0_i32 = arith.constant 0 : i32
    %c0_i32_0 = arith.constant 0 : i32
    %c0_i32_1 = arith.constant 0 : i32
    return %c0_i32, %c0_i32_0 : i32, i32
  }
  func.func @transform_8(%arg0: i32) -> (i32, i32) {
    %c0_i32 = arith.constant 0 : i32
    %c0_i32_0 = arith.constant 0 : i32
    %c0_i32_1 = arith.constant 0 : i32
    return %c0_i32, %c0_i32_0 : i32, i32
  }
  func.func @transform_9(%arg0: i32) -> (i32, i32) {
    %c0_i32 = arith.constant 0 : i32
    %c0_i32_0 = arith.constant 0 : i32
    %c0_i32_1 = arith.constant 0 : i32
    return %c0_i32, %c0_i32_0 : i32, i32
  }
  func.func @transform_10(%arg0: i32) -> (i32, i32) {
    %c0_i32 = arith.constant 0 : i32
    %c0_i32_0 = arith.constant 0 : i32
    %c0_i32_1 = arith.constant 0 : i32
    return %c0_i32, %c0_i32_0 : i32, i32
  }
  func.func @transform_11(%arg0: i32) -> (i32, i32) {
    %c0_i32 = arith.constant 0 : i32
    %c0_i32_0 = arith.constant 0 : i32
    %c0_i32_1 = arith.constant 0 : i32
    return %c0_i32, %c0_i32_0 : i32, i32
  }
}

</mosaic_0001>

<bundles_post_ra>
// kernel: q_net_forward.5
= control target key start
LH: loop header
LB: loop body
LE: loop exit
PB: predicated region body
PF: predicated region fallthrough
CT: control target
= control target key end

     0   :  { %s2702_s18 = smov 0   ;;  %s2704_s19 = smov 0   ;;  %s4247_s0 = inlined_call_operand.vmem [shape: bf16[8,32], index: 0, kind: input, shape index: {}]   ;;  %s4248_s1 = inlined_call_operand.vmem [shape: bf16[32,8192], index: 1, kind: input, shape index: {}]   ;;  %s4249_s2 = inlined_call_operand.vmem [shape: f32[8,1], index: 2, kind: input, shape index: {}]   ;;  %s4250_s3 = inlined_call_operand.vmem [shape: f32[8,1], index: 3, kind: input, shape index: {}]   ;;  %s4251_s4 = inlined_call_operand.vmem [shape: f32[8,1], index: 4, kind: input, shape index: {}]   ;;  %s4252_s5 = inlined_call_operand.vmem [shape: bf16[8,8192], index: 5, kind: output, shape index: {}]  }
   0x1   :  { %s2706_s20 = smov 0  }
   0x2 LB: > { %s2718_s21 = sadd.s32 4294967295, %s2667_s20   ;;  %s2721_s22 = sadd.s32 1, %s2667_s20   ;;  %s2667_s20 = sphi %s2706_s20, %s4370_s20   ;;  %s2663_s19 = sphi %s2704_s19, %s4369_s19   ;;  %s2659_s18 = sphi %s2702_s18, %s4368_s18  }
   0x3   : > { %s40_s23 = ssub.s32 %s2667_s20, %s2721_s22  ;;  %s43_s24 = sadd.s32 1, %s2663_s19 }
   0x4   : > { %p41_p0 = scmp.eq.s32.totalorder %s40_s23, 0  ;;  %p50_p1 = scmp.ne.s32.totalorder %s2663_s19, %s2659_s18 }
   0x5   : > { %p51_p2 = scmp.eq.s32.totalorder %s2667_s20, 0  ;;  %p2455_p4 = scmp.ge.s32.totalorder %s2667_s20, 2 }
   0x6   : > { %s2730_s25 = scalar_select %p41_p0, %s2663_s19, %s43_s24  }
   0x7   : > { %p52_p3 = por %p51_p2, %p50_p1  ;;  %172 = sbr.rel (%p2455_p4) target bundleno = 50 (0x32), region = 32 }
   0xe   : > { %175 = sbr.rel (!%p52_p3) target bundleno = 50 (0x32), region = 36  ;;  %s177_s26 = sand.u32 (%p52_p3), 1, %s2663_s19  }
   0xf   : > { %s2579_s27 = sshll.u32 (%p52_p3), %s2667_s20, 7  ;;  %s2456_s28 = sshll.u32 (%p52_p3), %s177_s26, 9 }
  0x10   : > { %s2738_s6 = scalar_lea.vmem (%p52_p3), %s4248_s1, %s2579_s27  ;;  %s2743_s7 = scalar_lea.vmem (%p52_p3), [#allocation4], %s2456_s28 }
  0x11   : > { %v195_v0 = vld [vmem:[%s2738_s6] sm:$0xff] (%p52_p3)  ;;  %v197_v1 = vld [vmem:[%s2738_s6 + $0x8] sm:$0xff] (%p52_p3)  ;;  %v199_v2 = vld [vmem:[%s2738_s6 + $0x10] sm:$0xff] (%p52_p3) }
  0x12   : > { %196 = vst [vmem:[%s2743_s7] sm:$0xff] (%p52_p3), %v195_v0  ;;  %198 = vst [vmem:[%s2743_s7 + $0x8] sm:$0xff] (%p52_p3), %v197_v1  ;;  %v201_v3 = vld [vmem:[%s2738_s6 + $0x18] sm:$0xff] (%p52_p3)  ;;  %v203_v4 = vld [vmem:[%s2738_s6 + $0x20] sm:$0xff] (%p52_p3) }
  0x13   : > { %200 = vst [vmem:[%s2743_s7 + $0x10] sm:$0xff] (%p52_p3), %v199_v2  ;;  %v205_v5 = vld [vmem:[%s2738_s6 + $0x28] sm:$0xff] (%p52_p3)  ;;  %202 = vst [vmem:[%s2743_s7 + $0x18] sm:$0xff] (%p52_p3), %v201_v3  ;;  %v207_v6 = vld [vmem:[%s2738_s6 + $0x30] sm:$0xff] (%p52_p3) }
  0x14   : > { %204 = vst [vmem:[%s2743_s7 + $0x20] sm:$0xff] (%p52_p3), %v203_v4  ;;  %206 = vst [vmem:[%s2743_s7 + $0x28] sm:$0xff] (%p52_p3), %v205_v5  ;;  %v209_v7 = vld [vmem:[%s2738_s6 + $0x38] sm:$0xff] (%p52_p3)  ;;  %v211_v8 = vld [vmem:[%s2738_s6 + $0x40] sm:$0xff] (%p52_p3) }
  0x15   : > { %208 = vst [vmem:[%s2743_s7 + $0x30] sm:$0xff] %v207_v6  ;;  %210 = vst [vmem:[%s2743_s7 + $0x38] sm:$0xff] %v209_v7  ;;  %v213_v9 = vld [vmem:[%s2738_s6 + $0x48] sm:$0xff]  ;;  %v215_v10 = vld [vmem:[%s2738_s6 + $0x50] sm:$0xff] }
  0x16   : > { %212 = vst [vmem:[%s2743_s7 + $0x40] sm:$0xff] %v211_v8  ;;  %v217_v11 = vld [vmem:[%s2738_s6 + $0x58] sm:$0xff]  ;;  %214 = vst [vmem:[%s2743_s7 + $0x48] sm:$0xff] %v213_v9  ;;  %v219_v12 = vld [vmem:[%s2738_s6 + $0x60] sm:$0xff] }
  0x17   : > { %216 = vst [vmem:[%s2743_s7 + $0x50] sm:$0xff] %v215_v10  ;;  %218 = vst [vmem:[%s2743_s7 + $0x58] sm:$0xff] %v217_v11  ;;  %v221_v13 = vld [vmem:[%s2738_s6 + $0x68] sm:$0xff]  ;;  %v223_v14 = vld [vmem:[%s2738_s6 + $0x70] sm:$0xff] }
  0x18   : > { %220 = vst [vmem:[%s2743_s7 + $0x60] sm:$0xff] %v219_v12  ;;  %222 = vst [vmem:[%s2743_s7 + $0x68] sm:$0xff] %v221_v13  ;;  %v225_v15 = vld [vmem:[%s2738_s6 + $0x78] sm:$0xff]  ;;  %v227_v16 = vld [vmem:[%s2738_s6 + $0x100] sm:$0xff] }
  0x19   : > { %224 = vst [vmem:[%s2743_s7 + $0x70] sm:$0xff] %v223_v14  ;;  %v229_v17 = vld [vmem:[%s2738_s6 + $0x108] sm:$0xff]  ;;  %226 = vst [vmem:[%s2743_s7 + $0x78] sm:$0xff] %v225_v15  ;;  %v231_v18 = vld [vmem:[%s2738_s6 + $0x110] sm:$0xff] }
  0x1a   : > { %228 = vst [vmem:[%s2743_s7 + $0x80] sm:$0xff] %v227_v16  ;;  %230 = vst [vmem:[%s2743_s7 + $0x88] sm:$0xff] %v229_v17  ;;  %v233_v19 = vld [vmem:[%s2738_s6 + $0x118] sm:$0xff]  ;;  %v235_v20 = vld [vmem:[%s2738_s6 + $0x120] sm:$0xff] }
  0x1b   : > { %232 = vst [vmem:[%s2743_s7 + $0x90] sm:$0xff] %v231_v18  ;;  %234 = vst [vmem:[%s2743_s7 + $0x98] sm:$0xff] %v233_v19  ;;  %v237_v21 = vld [vmem:[%s2738_s6 + $0x128] sm:$0xff]  ;;  %v239_v22 = vld [vmem:[%s2738_s6 + $0x130] sm:$0xff] }
  0x1c   : > { %236 = vst [vmem:[%s2743_s7 + $0xa0] sm:$0xff] %v235_v20  ;;  %v241_v23 = vld [vmem:[%s2738_s6 + $0x138] sm:$0xff]  ;;  %238 = vst [vmem:[%s2743_s7 + $0xa8] sm:$0xff] %v237_v21  ;;  %v243_v24 = vld [vmem:[%s2738_s6 + $0x140] sm:$0xff] }
  0x1d   : > { %240 = vst [vmem:[%s2743_s7 + $0xb0] sm:$0xff] %v239_v22  ;;  %242 = vst [vmem:[%s2743_s7 + $0xb8] sm:$0xff] %v241_v23  ;;  %v245_v25 = vld [vmem:[%s2738_s6 + $0x148] sm:$0xff]  ;;  %v247_v26 = vld [vmem:[%s2738_s6 + $0x150] sm:$0xff] }
  0x1e   : > { %244 = vst [vmem:[%s2743_s7 + $0xc0] sm:$0xff] %v243_v24  ;;  %246 = vst [vmem:[%s2743_s7 + $0xc8] sm:$0xff] %v245_v25  ;;  %v249_v27 = vld [vmem:[%s2738_s6 + $0x158] sm:$0xff]  ;;  %v251_v28 = vld [vmem:[%s2738_s6 + $0x160] sm:$0xff] }
  0x1f   : > { %248 = vst [vmem:[%s2743_s7 + $0xd0] sm:$0xff] %v247_v26  ;;  %v253_v29 = vld [vmem:[%s2738_s6 + $0x168] sm:$0xff]  ;;  %250 = vst [vmem:[%s2743_s7 + $0xd8] sm:$0xff] %v249_v27  ;;  %v255_v30 = vld [vmem:[%s2738_s6 + $0x170] sm:$0xff] }
  0x20   : > { %252 = vst [vmem:[%s2743_s7 + $0xe0] sm:$0xff] %v251_v28  ;;  %254 = vst [vmem:[%s2743_s7 + $0xe8] sm:$0xff] %v253_v29  ;;  %v257_v31 = vld [vmem:[%s2738_s6 + $0x178] sm:$0xff]  ;;  %v259_v32 = vld [vmem:[%s2738_s6 + $0x200] sm:$0xff] }
  0x21   : > { %256 = vst [vmem:[%s2743_s7 + $0xf0] sm:$0xff] %v255_v30  ;;  %258 = vst [vmem:[%s2743_s7 + $0xf8] sm:$0xff] %v257_v31  ;;  %v261_v33 = vld [vmem:[%s2738_s6 + $0x208] sm:$0xff]  ;;  %v263_v34 = vld [vmem:[%s2738_s6 + $0x210] sm:$0xff] }
  0x22   : > { %260 = vst [vmem:[%s2743_s7 + $0x100] sm:$0xff] %v259_v32  ;;  %v265_v35 = vld [vmem:[%s2738_s6 + $0x218] sm:$0xff]  ;;  %262 = vst [vmem:[%s2743_s7 + $0x108] sm:$0xff] %v261_v33  ;;  %v267_v36 = vld [vmem:[%s2738_s6 + $0x220] sm:$0xff] }
  0x23   : > { %264 = vst [vmem:[%s2743_s7 + $0x110] sm:$0xff] %v263_v34  ;;  %266 = vst [vmem:[%s2743_s7 + $0x118] sm:$0xff] %v265_v35  ;;  %v269_v37 = vld [vmem:[%s2738_s6 + $0x228] sm:$0xff]  ;;  %v271_v38 = vld [vmem:[%s2738_s6 + $0x230] sm:$0xff] }
  0x24   : > { %268 = vst [vmem:[%s2743_s7 + $0x120] sm:$0xff] %v267_v36  ;;  %270 = vst [vmem:[%s2743_s7 + $0x128] sm:$0xff] %v269_v37  ;;  %v273_v39 = vld [vmem:[%s2738_s6 + $0x238] sm:$0xff]  ;;  %v275_v40 = vld [vmem:[%s2738_s6 + $0x240] sm:$0xff] }
  0x25   : > { %272 = vst [vmem:[%s2743_s7 + $0x130] sm:$0xff] %v271_v38  ;;  %v277_v41 = vld [vmem:[%s2738_s6 + $0x248] sm:$0xff]  ;;  %274 = vst [vmem:[%s2743_s7 + $0x138] sm:$0xff] %v273_v39  ;;  %v279_v42 = vld [vmem:[%s2738_s6 + $0x250] sm:$0xff] }
  0x26   : > { %276 = vst [vmem:[%s2743_s7 + $0x140] sm:$0xff] %v275_v40  ;;  %278 = vst [vmem:[%s2743_s7 + $0x148] sm:$0xff] %v277_v41  ;;  %v281_v43 = vld [vmem:[%s2738_s6 + $0x258] sm:$0xff]  ;;  %v283_v44 = vld [vmem:[%s2738_s6 + $0x260] sm:$0xff] }
  0x27   : > { %280 = vst [vmem:[%s2743_s7 + $0x150] sm:$0xff] %v279_v42  ;;  %282 = vst [vmem:[%s2743_s7 + $0x158] sm:$0xff] %v281_v43  ;;  %v285_v45 = vld [vmem:[%s2738_s6 + $0x268] sm:$0xff]  ;;  %v287_v46 = vld [vmem:[%s2738_s6 + $0x270] sm:$0xff] }
  0x28   : > { %284 = vst [vmem:[%s2743_s7 + $0x160] sm:$0xff] %v283_v44  ;;  %v289_v47 = vld [vmem:[%s2738_s6 + $0x278] sm:$0xff]  ;;  %286 = vst [vmem:[%s2743_s7 + $0x168] sm:$0xff] %v285_v45  ;;  %v291_v48 = vld [vmem:[%s2738_s6 + $0x300] sm:$0xff] }
  0x29   : > { %288 = vst [vmem:[%s2743_s7 + $0x170] sm:$0xff] %v287_v46  ;;  %290 = vst [vmem:[%s2743_s7 + $0x178] sm:$0xff] %v289_v47  ;;  %v293_v49 = vld [vmem:[%s2738_s6 + $0x308] sm:$0xff]  ;;  %v295_v50 = vld [vmem:[%s2738_s6 + $0x310] sm:$0xff] }
  0x2a   : > { %292 = vst [vmem:[%s2743_s7 + $0x180] sm:$0xff] %v291_v48  ;;  %294 = vst [vmem:[%s2743_s7 + $0x188] sm:$0xff] %v293_v49  ;;  %v297_v51 = vld [vmem:[%s2738_s6 + $0x318] sm:$0xff]  ;;  %v299_v52 = vld [vmem:[%s2738_s6 + $0x320] sm:$0xff] }
  0x2b   : > { %296 = vst [vmem:[%s2743_s7 + $0x190] sm:$0xff] %v295_v50  ;;  %v301_v53 = vld [vmem:[%s2738_s6 + $0x328] sm:$0xff]  ;;  %298 = vst [vmem:[%s2743_s7 + $0x198] sm:$0xff] %v297_v51  ;;  %v303_v54 = vld [vmem:[%s2738_s6 + $0x330] sm:$0xff] }
  0x2c   : > { %300 = vst [vmem:[%s2743_s7 + $0x1a0] sm:$0xff] %v299_v52  ;;  %302 = vst [vmem:[%s2743_s7 + $0x1a8] sm:$0xff] %v301_v53  ;;  %v305_v55 = vld [vmem:[%s2738_s6 + $0x338] sm:$0xff]  ;;  %v307_v56 = vld [vmem:[%s2738_s6 + $0x340] sm:$0xff] }
  0x2d   : > { %304 = vst [vmem:[%s2743_s7 + $0x1b0] sm:$0xff] %v303_v54  ;;  %306 = vst [vmem:[%s2743_s7 + $0x1b8] sm:$0xff] %v305_v55  ;;  %v309_v57 = vld [vmem:[%s2738_s6 + $0x348] sm:$0xff]  ;;  %v311_v58 = vld [vmem:[%s2738_s6 + $0x350] sm:$0xff] }
  0x2e   : > { %308 = vst [vmem:[%s2743_s7 + $0x1c0] sm:$0xff] %v307_v56  ;;  %v313_v59 = vld [vmem:[%s2738_s6 + $0x358] sm:$0xff]  ;;  %310 = vst [vmem:[%s2743_s7 + $0x1c8] sm:$0xff] %v309_v57  ;;  %v315_v60 = vld [vmem:[%s2738_s6 + $0x360] sm:$0xff] }
  0x2f   : > { %312 = vst [vmem:[%s2743_s7 + $0x1d0] sm:$0xff] %v311_v58  ;;  %314 = vst [vmem:[%s2743_s7 + $0x1d8] sm:$0xff] %v313_v59  ;;  %v317_v61 = vld [vmem:[%s2738_s6 + $0x368] sm:$0xff]  ;;  %v319_v62 = vld [vmem:[%s2738_s6 + $0x370] sm:$0xff] }
  0x30   : > { %316 = vst [vmem:[%s2743_s7 + $0x1e0] sm:$0xff] %v315_v60  ;;  %318 = vst [vmem:[%s2743_s7 + $0x1e8] sm:$0xff] %v317_v61  ;;  %v321_v63 = vld [vmem:[%s2738_s6 + $0x378] sm:$0xff] }
  0x31   : > { %320 = vst [vmem:[%s2743_s7 + $0x1f0] sm:$0xff] %v319_v62  ;;  %322 = vst [vmem:[%s2743_s7 + $0x1f8] sm:$0xff] %v321_v63 }
  0x32 PF: > { %p2459_p5 = scmp.ge.s32.totalorder %s2667_s20, 1  ;;  %p327_p6 = scmp.lt.s32.totalorder %s2667_s20, 3 }
  0x34   : > { %p328_p7 = pnand %p2459_p5, %p327_p6 }
  0x35   : > { %s334_s8 = sand.u32 (!%p328_p7), 1, %s2659_s18   ;;  %v423_v0 = vld [vmem:[%s4249_s2] sm:$0xff] (!%p328_p7)  ;;  %v2669_v1 = vmov (!%p328_p7), 0   ;;  %vm749_vm0 = vcmask (!%p328_p7), 261120   ;;  %p2541_p8 = scmp.ne.s32.totalorder (!%p328_p7), %s2718_s21, 0 }
  0x36   : > { %331 = sbr.rel (%p328_p7) target bundleno = 1149 (0x47d), region = 59  ;;  %s2460_s11 = sshll.u32 (!%p328_p7), %s334_s8, 9  ;;  %785 = vmatprep.mubr.bf16.mxu0 (!%p328_p7), %v2669_v1  ;;  %826 = vmatprep.mubr.bf16.mxu1 (!%p328_p7), %v2669_v1  ;;  %v2900_v28 = vld [vmem:[%s4247_s0] sm:$0xf] (!%p328_p7) }
  0x37   : > { %2640 = vset.pattern.permute.xlu0 (!%p328_p7), %v2669_v1  ;;  %s2879_s12 = scalar_lea.vmem (!%p328_p7), [#allocation4], %s2460_s11 }
  0x38   : > { %v359_v2 = vld [vmem:[%s2879_s12] sm:$0xff] (!%p328_p7)  ;;  %v360_v4 = vld [vmem:[%s2879_s12 + $0x8] sm:$0xff] (!%p328_p7)  ;;  %426 = vperm.xlu0 (!%p328_p7), %2640, %v423_v0   ;;  %v361_v15 = vld [vmem:[%s2879_s12 + $0x10] sm:$0xff] (!%p328_p7) }
  0x39   : > { %v375_v3 = vld [vmem:[%s2879_s12 + $0x80] sm:$0xff] (!%p328_p7)  ;;  %v376_v6 = vld [vmem:[%s2879_s12 + $0x88] sm:$0xff] (!%p328_p7)  ;;  %v377_v17 = vld [vmem:[%s2879_s12 + $0x90] sm:$0xff] (!%p328_p7) }
  0x3a   : > { %v2462_v5 = vcombine.high (!%p328_p7), %v359_v2, %v375_v3  ;;  %v2461_v7 = vcombine.low (!%p328_p7), %v359_v2, %v375_v3  ;;  %v391_v8 = vld [vmem:[%s2879_s12 + $0x100] sm:$0xff] (!%p328_p7)  ;;  %v2464_v10 = vcombine.high (!%p328_p7), %v360_v4, %v376_v6  ;;  %v2463_v11 = vcombine.low (!%p328_p7), %v360_v4, %v376_v6  ;;  %v392_v13 = vld [vmem:[%s2879_s12 + $0x108] sm:$0xff] (!%p328_p7)  ;;  %v362_v18 = vld [vmem:[%s2879_s12 + $0x18] sm:$0xff] (!%p328_p7) }
  0x3b   : > { %v407_v9 = vld [vmem:[%s2879_s12 + $0x180] sm:$0xff] (!%p328_p7)  ;;  %v408_v14 = vld [vmem:[%s2879_s12 + $0x188] sm:$0xff] (!%p328_p7)  ;;  %v378_v19 = vld [vmem:[%s2879_s12 + $0x98] sm:$0xff] (!%p328_p7)  ;;  %v2466_v22 = vcombine.high (!%p328_p7), %v361_v15, %v377_v17  ;;  %v2465_v29 = vcombine.low (!%p328_p7), %v361_v15, %v377_v17 }
  0x3c   : > { %v2494_v12 = vcombine.high (!%p328_p7), %v391_v8, %v407_v9  ;;  %753 = vmatprep.subr.bf16.mxu0 (!%p328_p7), %v2462_v5  ;;  %v2496_v16 = vcombine.high (!%p328_p7), %v392_v13, %v408_v14  ;;  %794 = vmatprep.subr.bf16.mxu1 (!%p328_p7), %v2464_v10  ;;  %v2493_v20 = vcombine.low (!%p328_p7), %v391_v8, %v407_v9  ;;  %v393_v24 = vld [vmem:[%s2879_s12 + $0x110] sm:$0xff] (!%p328_p7)  ;;  %v394_v26 = vld [vmem:[%s2879_s12 + $0x118] sm:$0xff] (!%p328_p7)  ;;  %v363_v33 = vld [vmem:[%s2879_s12 + $0x20] sm:$0xff] (!%p328_p7) }
  0x3d   : > { %754 = vmatpush1.bf16.msra.mxu0 %v2461_v7  ;;  %795 = vmatpush1.bf16.msra.mxu1 %v2463_v11  ;;  %v2495_v21 = vcombine.low %v392_v13, %v408_v14  ;;  %v2468_v23 = vcombine.high %v362_v18, %v378_v19  ;;  %v409_v25 = vld [vmem:[%s2879_s12 + $0x190] sm:$0xff]  ;;  %v410_v27 = vld [vmem:[%s2879_s12 + $0x198] sm:$0xff]  ;;  %v2467_v30 = vcombine.low %v362_v18, %v378_v19  ;;  %v379_v34 = vld [vmem:[%s2879_s12 + $0xa0] sm:$0xff]  ;;  %vm1413_vm1 = vcmask (!%p2541_p8), 7168  }
  0x3e   : > { %755 = vmatprep.subr.bf16.mxu0 %v2494_v12  ;;  %796 = vmatprep.subr.bf16.mxu1 %v2496_v16  ;;  %v2498_v31 = vcombine.high %v393_v24, %v409_v25  ;;  %v2500_v32 = vcombine.high %v394_v26, %v410_v27  ;;  %v364_v35 = vld [vmem:[%s2879_s12 + $0x28] sm:$0xff]  ;;  %v2497_v37 = vcombine.low %v393_v24, %v409_v25  ;;  %v395_v41 = vld [vmem:[%s2879_s12 + $0x120] sm:$0xff]  ;;  %v365_v49 = vld [vmem:[%s2879_s12 + $0x30] sm:$0xff] }
  0x3f   : > { %v380_v36 = vld [vmem:[%s2879_s12 + $0xa8] sm:$0xff]  ;;  %v2499_v38 = vcombine.low %v394_v26, %v410_v27  ;;  %v2470_v39 = vcombine.high %v363_v33, %v379_v34  ;;  %v411_v42 = vld [vmem:[%s2879_s12 + $0x1a0] sm:$0xff]  ;;  %v2469_v45 = vcombine.low %v363_v33, %v379_v34  ;;  %v381_v50 = vld [vmem:[%s2879_s12 + $0xb0] sm:$0xff] }
  0x40   : > { %v2472_v40 = vcombine.high %v364_v35, %v380_v36  ;;  %v396_v43 = vld [vmem:[%s2879_s12 + $0x128] sm:$0xff]  ;;  %v2471_v46 = vcombine.low %v364_v35, %v380_v36  ;;  %v2502_v47 = vcombine.high %v395_v41, %v411_v42  ;;  %v366_v51 = vld [vmem:[%s2879_s12 + $0x38] sm:$0xff]  ;;  %v2501_v53 = vcombine.low %v395_v41, %v411_v42  ;;  %v397_v57 = vld [vmem:[%s2879_s12 + $0x130] sm:$0xff] }
  0x41   : > { %756 = vmatpush1.bf16.msra.mxu0 %v2493_v20  ;;  %797 = vmatpush1.bf16.msra.mxu1 %v2495_v21  ;;  %v412_v44 = vld [vmem:[%s2879_s12 + $0x1a8] sm:$0xff]  ;;  %v382_v52 = vld [vmem:[%s2879_s12 + $0xb8] sm:$0xff]  ;;  %v2474_v55 = vcombine.high %v365_v49, %v381_v50  ;;  %v413_v58 = vld [vmem:[%s2879_s12 + $0x1b0] sm:$0xff]  ;;  %v2473_v61 = vcombine.low %v365_v49, %v381_v50 }
  0x42   : > { %835 = vmatprep.subr.bf16.mxu0 %v2466_v22  ;;  %876 = vmatprep.subr.bf16.mxu1 %v2468_v23  ;;  %v2504_v48 = vcombine.high %v396_v43, %v412_v44  ;;  %v2503_v54 = vcombine.low %v396_v43, %v412_v44  ;;  %v2476_v56 = vcombine.high %v366_v51, %v382_v52  ;;  %v398_v59 = vld [vmem:[%s2879_s12 + $0x138] sm:$0xff]  ;;  %v367_v2 = vld [vmem:[%s2879_s12 + $0x40] sm:$0xff]  ;;  %v368_v4 = vld [vmem:[%s2879_s12 + $0x48] sm:$0xff] }
  0x43   : > { %v414_v60 = vld [vmem:[%s2879_s12 + $0x1b8] sm:$0xff]  ;;  %v2475_v62 = vcombine.low %v366_v51, %v382_v52  ;;  %v2506_v63 = vcombine.high %v397_v57, %v413_v58  ;;  %v383_v3 = vld [vmem:[%s2879_s12 + $0xc0] sm:$0xff]  ;;  %v384_v5 = vld [vmem:[%s2879_s12 + $0xc8] sm:$0xff]  ;;  %v2505_v6 = vcombine.low %v397_v57, %v413_v58 }
  0x44   : > { %2525 = vmatmul.mubr.msk.bf16.vlgmr.msra.gmra.mrb[0].mxu0 %vm749_vm0, %v2900_v28  ;;  %2526 = vmatmul.mubr.msk.bf16.vlgmr.msra.gmra.mrb[0].mxu1 %vm749_vm0, %v2900_v28  ;;  %v2508_v0 = vcombine.high %v398_v59, %v414_v60  ;;  %v2507_v7 = vcombine.low %v398_v59, %v414_v60  ;;  %v2478_v8 = vcombine.high %v367_v2, %v383_v3  ;;  %v399_v10 = vld [vmem:[%s2879_s12 + $0x140] sm:$0xff]  ;;  %v400_v12 = vld [vmem:[%s2879_s12 + $0x148] sm:$0xff]  ;;  %v369_v18 = vld [vmem:[%s2879_s12 + $0x50] sm:$0xff] }
  0x45   : > { %836 = vmatpush1.bf16.msra.mxu0 %v2465_v29  ;;  %877 = vmatpush1.bf16.msra.mxu1 %v2467_v30  ;;  %v2480_v9 = vcombine.high %v368_v4, %v384_v5  ;;  %v415_v11 = vld [vmem:[%s2879_s12 + $0x1c0] sm:$0xff]  ;;  %v416_v13 = vld [vmem:[%s2879_s12 + $0x1c8] sm:$0xff]  ;;  %v2477_v14 = vcombine.low %v367_v2, %v383_v3  ;;  %v2479_v15 = vcombine.low %v368_v4, %v384_v5  ;;  %v385_v19 = vld [vmem:[%s2879_s12 + $0xd0] sm:$0xff] }
  0x46   : > { %837 = vmatprep.subr.bf16.mxu0 %v2498_v31  ;;  %878 = vmatprep.subr.bf16.mxu1 %v2500_v32  ;;  %v2510_v16 = vcombine.high %v399_v10, %v415_v11  ;;  %v2512_v17 = vcombine.high %v400_v12, %v416_v13  ;;  %v370_v20 = vld [vmem:[%s2879_s12 + $0x58] sm:$0xff]  ;;  %v2509_v22 = vcombine.low %v399_v10, %v415_v11  ;;  %v401_v26 = vld [vmem:[%s2879_s12 + $0x150] sm:$0xff]  ;;  %v371_v35 = vld [vmem:[%s2879_s12 + $0x60] sm:$0xff] }
  0x47   : > { %867 = vmatprep.mubr.bf16.mxu0 %v2669_v1  ;;  %908 = vmatprep.mubr.bf16.mxu1 %v2669_v1  ;;  %v386_v21 = vld [vmem:[%s2879_s12 + $0xd8] sm:$0xff]  ;;  %v2511_v23 = vcombine.low %v400_v12, %v416_v13  ;;  %v2482_v24 = vcombine.high %v369_v18, %v385_v19  ;;  %v417_v27 = vld [vmem:[%s2879_s12 + $0x1d0] sm:$0xff]  ;;  %v2481_v31 = vcombine.low %v369_v18, %v385_v19  ;;  %v387_v36 = vld [vmem:[%s2879_s12 + $0xe0] sm:$0xff] }
  0x48   : > { %v2484_v25 = vcombine.high %v370_v20, %v386_v21  ;;  %v402_v29 = vld [vmem:[%s2879_s12 + $0x158] sm:$0xff]  ;;  %v2483_v32 = vcombine.low %v370_v20, %v386_v21  ;;  %v2514_v33 = vcombine.high %v401_v26, %v417_v27  ;;  %v2486_v41 = vcombine.high %v371_v35, %v387_v36  ;;  %v403_v43 = vld [vmem:[%s2879_s12 + $0x160] sm:$0xff]  ;;  %v373_v51 = vld [vmem:[%s2879_s12 + $0x70] sm:$0xff] }
  0x49   : > { %838 = vmatpush1.bf16.msra.mxu0 %v2497_v37  ;;  %879 = vmatpush1.bf16.msra.mxu1 %v2499_v38  ;;  %v418_v30 = vld [vmem:[%s2879_s12 + $0x1d8] sm:$0xff]  ;;  %v372_v37 = vld [vmem:[%s2879_s12 + $0x68] sm:$0xff]  ;;  %v419_v44 = vld [vmem:[%s2879_s12 + $0x1e0] sm:$0xff] }
  0x4a   : > { %917 = vmatprep.subr.bf16.mxu0 %v2470_v39  ;;  %958 = vmatprep.subr.bf16.mxu1 %v2472_v40  ;;  %v2516_v34 = vcombine.high %v402_v29, %v418_v30  ;;  %v388_v38 = vld [vmem:[%s2879_s12 + $0xe8] sm:$0xff]  ;;  %v2513_v39 = vcombine.low %v401_v26, %v417_v27  ;;  %v2515_v40 = vcombine.low %v402_v29, %v418_v30  ;;  %v389_v52 = vld [vmem:[%s2879_s12 + $0xf0] sm:$0xff] }
  0x4b   : > { %v2488_v42 = vcombine.high %v372_v37, %v388_v38  ;;  %v2518_v49 = vcombine.high %v403_v43, %v419_v44  ;;  %v2490_v57 = vcombine.high %v373_v51, %v389_v52  ;;  %v405_v59 = vld [vmem:[%s2879_s12 + $0x170] sm:$0xff] }
  0x4c   : > { %2527 = vmatmul.mubr.msk.bf16.vlgmr.msra.gmra.mrb[4].mxu0 %vm749_vm0, %v2900_v28  ;;  %2528 = vmatmul.mubr.msk.bf16.vlgmr.msra.gmra.mrb[4].mxu1 %vm749_vm0, %v2900_v28  ;;  %v421_v60 = vld [vmem:[%s2879_s12 + $0x1f0] sm:$0xff] }
  0x4d   : > { %918 = vmatpush1.bf16.msra.mxu0 %v2469_v45  ;;  %959 = vmatpush1.bf16.msra.mxu1 %v2471_v46  ;;  %v404_v45 = vld [vmem:[%s2879_s12 + $0x168] sm:$0xff]  ;;  %v2522_v2 = vcombine.high %v405_v59, %v421_v60  ;;  %v2521_v4 = vcombine.low %v405_v59, %v421_v60 }
  0x4e   : > { %919 = vmatprep.subr.bf16.mxu0 %v2502_v47  ;;  %960 = vmatprep.subr.bf16.mxu1 %v2504_v48  ;;  %v420_v46 = vld [vmem:[%s2879_s12 + $0x1e8] sm:$0xff]  ;;  %v2485_v47 = vcombine.low %v371_v35, %v387_v36  ;;  %v2487_v48 = vcombine.low %v372_v37, %v388_v38 }
  0x4f   : > { %949 = vmatprep.mubr.bf16.mxu0 %v2669_v1  ;;  %990 = vmatprep.mubr.bf16.mxu1 %v2669_v1  ;;  %v2520_v50 = vcombine.high %v404_v45, %v420_v46 }
  0x51   : > { %920 = vmatpush1.bf16.msra.mxu0 %v2501_v53  ;;  %961 = vmatpush1.bf16.msra.mxu1 %v2503_v54  ;;  %v374_v53 = vld [vmem:[%s2879_s12 + $0x78] sm:$0xff] }
  0x52   : > { %999 = vmatprep.subr.bf16.mxu0 %v2474_v55  ;;  %1040 = vmatprep.subr.bf16.mxu1 %v2476_v56  ;;  %v390_v54 = vld [vmem:[%s2879_s12 + $0xf8] sm:$0xff]  ;;  %v2517_v55 = vcombine.low %v403_v43, %v419_v44  ;;  %v2519_v56 = vcombine.low %v404_v45, %v420_v46 }
  0x53   : > { %v2492_v58 = vcombine.high %v374_v53, %v390_v54 }
  0x54   : > { %2529 = vmatmul.mubr.msk.bf16.vlgmr.msra.gmra.mrb[8].mxu0 %vm749_vm0, %v2900_v28  ;;  %2530 = vmatmul.mubr.msk.bf16.vlgmr.msra.gmra.mrb[8].mxu1 %vm749_vm0, %v2900_v28 }
  0x55   : > { %1000 = vmatpush1.bf16.msra.mxu0 %v2473_v61  ;;  %1041 = vmatpush1.bf16.msra.mxu1 %v2475_v62  ;;  %v406_v61 = vld [vmem:[%s2879_s12 + $0x178] sm:$0xff] }
  0x56   : > { %1001 = vmatprep.subr.bf16.mxu0 %v2506_v63  ;;  %1042 = vmatprep.subr.bf16.mxu1 %v2508_v0  ;;  %v422_v62 = vld [vmem:[%s2879_s12 + $0x1f8] sm:$0xff]  ;;  %v2489_v63 = vcombine.low %v373_v51, %v389_v52  ;;  %v2491_v0 = vcombine.low %v374_v53, %v390_v54 }
  0x57   : > { %1031 = vmatprep.mubr.bf16.mxu0 %v2669_v1  ;;  %1072 = vmatprep.mubr.bf16.mxu1 %v2669_v1  ;;  %v2524_v3 = vcombine.high %v406_v61, %v422_v62  ;;  %v2523_v5 = vcombine.low %v406_v61, %v422_v62 }
  0x59   : > { %1002 = vmatpush1.bf16.msra.mxu0 %v2505_v6  ;;  %1043 = vmatpush1.bf16.msra.mxu1 %v2507_v7 }
  0x5a   : > { %1081 = vmatprep.subr.bf16.mxu0 %v2478_v8  ;;  %1122 = vmatprep.subr.bf16.mxu1 %v2480_v9 }
  0x5c   : > { %2531 = vmatmul.mubr.msk.bf16.vlgmr.msra.gmra.mrb[12].mxu0 %vm749_vm0, %v2900_v28  ;;  %2532 = vmatmul.mubr.msk.bf16.vlgmr.msra.gmra.mrb[12].mxu1 %vm749_vm0, %v2900_v28 }
  0x5d   : > { %1082 = vmatpush1.bf16.msra.mxu0 %v2477_v14  ;;  %1123 = vmatpush1.bf16.msra.mxu1 %v2479_v15 }
  0x5e   : > { %1083 = vmatprep.subr.bf16.mxu0 %v2510_v16  ;;  %1124 = vmatprep.subr.bf16.mxu1 %v2512_v17 }
  0x5f   : > { %1113 = vmatprep.mubr.bf16.mxu0 %v2669_v1  ;;  %1154 = vmatprep.mubr.bf16.mxu1 %v2669_v1 }
  0x61   : > { %1084 = vmatpush1.bf16.msra.mxu0 %v2509_v22  ;;  %1125 = vmatpush1.bf16.msra.mxu1 %v2511_v23 }
  0x62   : > { %1163 = vmatprep.subr.bf16.mxu0 %v2482_v24  ;;  %1204 = vmatprep.subr.bf16.mxu1 %v2484_v25 }
  0x64   : > { %2533 = vmatmul.mubr.msk.bf16.vlgmr.msra.gmra.mrb[16].mxu0 %vm749_vm0, %v2900_v28  ;;  %2534 = vmatmul.mubr.msk.bf16.vlgmr.msra.gmra.mrb[16].mxu1 %vm749_vm0, %v2900_v28 }
  0x65   : > { %1164 = vmatpush1.bf16.msra.mxu0 %v2481_v31  ;;  %1205 = vmatpush1.bf16.msra.mxu1 %v2483_v32 }
  0x66   : > { %1165 = vmatprep.subr.bf16.mxu0 %v2514_v33  ;;  %1206 = vmatprep.subr.bf16.mxu1 %v2516_v34 }
  0x67   : > { %1195 = vmatprep.mubr.bf16.mxu0 %v2669_v1  ;;  %1236 = vmatprep.mubr.bf16.mxu1 %v2669_v1 }
  0x69   : > { %1166 = vmatpush1.bf16.msra.mxu0 %v2513_v39  ;;  %1207 = vmatpush1.bf16.msra.mxu1 %v2515_v40 }
  0x6a   : > { %1245 = vmatprep.subr.bf16.mxu0 %v2486_v41  ;;  %1286 = vmatprep.subr.bf16.mxu1 %v2488_v42 }
  0x6c   : > { %2535 = vmatmul.mubr.msk.bf16.vlgmr.msra.gmra.mrb[20].mxu0 %vm749_vm0, %v2900_v28  ;;  %2536 = vmatmul.mubr.msk.bf16.vlgmr.msra.gmra.mrb[20].mxu1 %vm749_vm0, %v2900_v28 }
  0x6d   : > { %1246 = vmatpush1.bf16.msra.mxu0 %v2485_v47  ;;  %1287 = vmatpush1.bf16.msra.mxu1 %v2487_v48 }
  0x6e   : > { %1247 = vmatprep.subr.bf16.mxu0 %v2518_v49  ;;  %1288 = vmatprep.subr.bf16.mxu1 %v2520_v50 }
  0x6f   : > { %1277 = vmatprep.mubr.bf16.mxu0 %v2669_v1  ;;  %1318 = vmatprep.mubr.bf16.mxu1 %v2669_v1 }
  0x71   : > { %1248 = vmatpush1.bf16.msra.mxu0 %v2517_v55  ;;  %1289 = vmatpush1.bf16.msra.mxu1 %v2519_v56 }
  0x72   : > { %1327 = vmatprep.subr.bf16.mxu0 %v2490_v57  ;;  %1368 = vmatprep.subr.bf16.mxu1 %v2492_v58 }
  0x74   : > { %2537 = vmatmul.mubr.msk.bf16.vlgmr.msra.gmra.mrb[24].mxu0 %vm749_vm0, %v2900_v28  ;;  %2538 = vmatmul.mubr.msk.bf16.vlgmr.msra.gmra.mrb[24].mxu1 %vm749_vm0, %v2900_v28 }
  0x75   : > { %1328 = vmatpush1.bf16.msra.mxu0 %v2489_v63  ;;  %1369 = vmatpush1.bf16.msra.mxu1 %v2491_v0 }
  0x76   : > { %1329 = vmatprep.subr.bf16.mxu0 %v2522_v2  ;;  %1370 = vmatprep.subr.bf16.mxu1 %v2524_v3 }
  0x77   : > { %1359 = vmatprep.mubr.bf16.mxu0 %v2669_v1  ;;  %1400 = vmatprep.mubr.bf16.mxu1 %v2669_v1 }
  0x79   : > { %1330 = vmatpush1.bf16.msra.mxu0 %v2521_v4  ;;  %1371 = vmatpush1.bf16.msra.mxu1 %v2523_v5 }
  0x7c   : > { %2539 = vmatmul.mubr.msk.bf16.vlgmr.msra.gmra.mrb[28].mxu0 %vm749_vm0, %v2900_v28  ;;  %2540 = vmatmul.mubr.msk.bf16.vlgmr.msra.gmra.mrb[28].mxu1 %vm749_vm0, %v2900_v28 }
  0xb7   : > { %v2996_v6 = vpop.permute.xlu0 %426 }
 0x117   : > { %v787_v7 = vpop.f32.mrb[0].mxu0  ;;  %v828_v8 = vpop.f32.mrb[0].mxu1 }
 0x118   : > { %v2999_v9 = vadd.f32 %v787_v7, %v2996_v6  ;;  %v789_v10 = vpop.f32.mrb[1].mxu0  ;;  %v3002_v11 = vadd.f32 %v828_v8, %v2996_v6  ;;  %v830_v12 = vpop.f32.mrb[1].mxu1 }
 0x119   : > { %v3005_v1 = vadd.f32 %v789_v10, %v2996_v6  ;;  %v791_v13 = vpop.f32.mrb[2].mxu0  ;;  %v3008_v14 = vadd.f32 %v830_v12, %v2996_v6  ;;  %v832_v28 = vpop.f32.mrb[2].mxu1 }
 0x11a   : > { %v792_v15 = vpop.f32.mrb[3].mxu0  ;;  %v833_v16 = vpop.f32.mrb[3].mxu1 }
 0x11f   : > { %v869_v17 = vpop.f32.mrb[4].mxu0  ;;  %v910_v19 = vpop.f32.mrb[4].mxu1 }
 0x120   : > { %v3011_v18 = vadd.f32 %v869_v17, %v2996_v6  ;;  %v871_v20 = vpop.f32.mrb[5].mxu0  ;;  %v3014_v21 = vadd.f32 %v910_v19, %v2996_v6  ;;  %v912_v23 = vpop.f32.mrb[5].mxu1 }
 0x121   : > { %v3017_v22 = vadd.f32 %v871_v20, %v2996_v6  ;;  %v873_v24 = vpop.f32.mrb[6].mxu0  ;;  %v3020_v25 = vadd.f32 %v912_v23, %v2996_v6  ;;  %v914_v26 = vpop.f32.mrb[6].mxu1 }
 0x122   : > { %v874_v27 = vpop.f32.mrb[7].mxu0  ;;  %v915_v29 = vpop.f32.mrb[7].mxu1 }
 0x127   : > { %v951_v30 = vpop.f32.mrb[8].mxu0  ;;  %v992_v32 = vpop.f32.mrb[8].mxu1 }
 0x128   : > { %v3023_v31 = vadd.f32 %v951_v30, %v2996_v6  ;;  %v953_v33 = vpop.f32.mrb[9].mxu0  ;;  %v3026_v34 = vadd.f32 %v992_v32, %v2996_v6  ;;  %v994_v36 = vpop.f32.mrb[9].mxu1 }
 0x129   : > { %v3029_v35 = vadd.f32 %v953_v33, %v2996_v6  ;;  %v955_v37 = vpop.f32.mrb[10].mxu0  ;;  %v3032_v38 = vadd.f32 %v994_v36, %v2996_v6  ;;  %v996_v39 = vpop.f32.mrb[10].mxu1 }
 0x12a   : > { %v956_v40 = vpop.f32.mrb[11].mxu0  ;;  %v997_v41 = vpop.f32.mrb[11].mxu1 }
 0x12f   : > { %v1033_v42 = vpop.f32.mrb[12].mxu0  ;;  %v1074_v44 = vpop.f32.mrb[12].mxu1 }
 0x130   : > { %v3035_v43 = vadd.f32 %v1033_v42, %v2996_v6  ;;  %v1035_v45 = vpop.f32.mrb[13].mxu0  ;;  %v3038_v46 = vadd.f32 %v1074_v44, %v2996_v6  ;;  %v1076_v48 = vpop.f32.mrb[13].mxu1 }
 0x131   : > { %v3041_v47 = vadd.f32 %v1035_v45, %v2996_v6  ;;  %v1037_v49 = vpop.f32.mrb[14].mxu0  ;;  %v3044_v50 = vadd.f32 %v1076_v48, %v2996_v6  ;;  %v1078_v51 = vpop.f32.mrb[14].mxu1 }
 0x132   : > { %v1038_v52 = vpop.f32.mrb[15].mxu0  ;;  %v1079_v53 = vpop.f32.mrb[15].mxu1 }
 0x137   : > { %v1115_v54 = vpop.f32.mrb[16].mxu0  ;;  %v1156_v56 = vpop.f32.mrb[16].mxu1 }
 0x138   : > { %v3047_v55 = vadd.f32 %v1115_v54, %v2996_v6  ;;  %v1117_v57 = vpop.f32.mrb[17].mxu0  ;;  %v3050_v58 = vadd.f32 %v1156_v56, %v2996_v6  ;;  %v1158_v60 = vpop.f32.mrb[17].mxu1  ;;  %v2670_v56 = vmov (!%p2541_p8), 0.0  }
 0x139   : > { %v3053_v59 = vadd.f32 %v1117_v57, %v2996_v6  ;;  %v1119_v61 = vpop.f32.mrb[18].mxu0  ;;  %v3056_v62 = vadd.f32 %v1158_v60, %v2996_v6  ;;  %v1160_v63 = vpop.f32.mrb[18].mxu1  ;;  %1414 = vst.msk [vmem:[#allocation3] sm:$0xff] (!%p2541_p8), %vm1413_vm1, %v2670_v56 }
 0x13a   : > { %v1120_v0 = vpop.f32.mrb[19].mxu0  ;;  %v1161_v2 = vpop.f32.mrb[19].mxu1 }
 0x13f   : > { %v1197_v3 = vpop.f32.mrb[20].mxu0  ;;  %v1238_v5 = vpop.f32.mrb[20].mxu1 }
 0x140   : > { %v3059_v4 = vadd.f32 %v1197_v3, %v2996_v6  ;;  %v1199_v7 = vpop.f32.mrb[21].mxu0  ;;  %v3062_v8 = vadd.f32 %v1238_v5, %v2996_v6  ;;  %v1240_v12 = vpop.f32.mrb[21].mxu1 }
 0x141   : > { %v3065_v10 = vadd.f32 %v1199_v7, %v2996_v6  ;;  %v1201_v13 = vpop.f32.mrb[22].mxu0  ;;  %v3068_v28 = vadd.f32 %v1240_v12, %v2996_v6  ;;  %v1242_v15 = vpop.f32.mrb[22].mxu1 }
 0x142   : > { %v1202_v16 = vpop.f32.mrb[23].mxu0  ;;  %v1243_v17 = vpop.f32.mrb[23].mxu1 }
 0x147   : > { %v1279_v19 = vpop.f32.mrb[24].mxu0  ;;  %v1320_v23 = vpop.f32.mrb[24].mxu1 }
 0x148   : > { %v3071_v20 = vadd.f32 %v1279_v19, %v2996_v6  ;;  %v1281_v24 = vpop.f32.mrb[25].mxu0  ;;  %v3074_v26 = vadd.f32 %v1320_v23, %v2996_v6  ;;  %v1322_v29 = vpop.f32.mrb[25].mxu1 }
 0x149   : > { %v3077_v27 = vadd.f32 %v1281_v24, %v2996_v6  ;;  %v1283_v30 = vpop.f32.mrb[26].mxu0  ;;  %v3080_v32 = vadd.f32 %v1322_v29, %v2996_v6  ;;  %v1324_v33 = vpop.f32.mrb[26].mxu1 }
 0x14a   : > { %v1284_v36 = vpop.f32.mrb[27].mxu0  ;;  %v1325_v37 = vpop.f32.mrb[27].mxu1 }
 0x14c   : > { %1412 = sbr.rel (%p2541_p8) target bundleno = 339 (0x153), region = 67 }
 0x14f   : > { %v1361_v39 = vpop.f32.mrb[28].mxu0  ;;  %v1402_v41 = vpop.f32.mrb[28].mxu1 }
 0x150   : > { %v3083_v40 = vadd.f32 %v1361_v39, %v2996_v6  ;;  %v1363_v42 = vpop.f32.mrb[29].mxu0  ;;  %v3086_v44 = vadd.f32 %v1402_v41, %v2996_v6  ;;  %v1404_v48 = vpop.f32.mrb[29].mxu1 }
 0x151   : > { %v3089_v45 = vadd.f32 %v1363_v42, %v2996_v6  ;;  %v1365_v49 = vpop.f32.mrb[30].mxu0  ;;  %v3092_v51 = vadd.f32 %v1404_v48, %v2996_v6  ;;  %v1406_v52 = vpop.f32.mrb[30].mxu1 }
 0x152   : > { %v1366_v53 = vpop.f32.mrb[31].mxu0  ;;  %v1407_v54 = vpop.f32.mrb[31].mxu1 }
 0x153 PF: > { %v1416_v57 = vadd.f32 %v3005_v1, %v2999_v9  ;;  %s2580_s15 = sshll.u32 %s2718_s21, 8  ;;  %vm1450_vm2 = vcmask 7168   ;;  %p2544_p9 = scmp.ne.s32.totalorder %s2718_s21, 1 }
 0x154   : > { %s3128_s16 = scalar_lea.vmem [#allocation2], %s2580_s15 }
 0x155   : > { %v1417_v60 = vadd.f32 %v1416_v57, %v3002_v11  ;;  %1455 = vst [vmem:[%s3128_s16] sm:$0xff] %v2999_v9  ;;  %1456 = vst [vmem:[%s3128_s16 + $0x8] sm:$0xff] %v3005_v1  ;;  %v1415_v9 = vld [vmem:[#allocation3] sm:$0xff] }
 0x156   : > { %1457 = vst [vmem:[%s3128_s16 + $0x10] sm:$0xff] %v3002_v11  ;;  %1458 = vst [vmem:[%s3128_s16 + $0x18] sm:$0xff] %v3008_v14 }
 0x157   : > { %v1418_v61 = vadd.f32 %v1417_v60, %v3008_v14  ;;  %1459 = vst [vmem:[%s3128_s16 + $0x20] sm:$0xff] %v3011_v18  ;;  %1460 = vst [vmem:[%s3128_s16 + $0x28] sm:$0xff] %v3017_v22 }
 0x158   : > { %1461 = vst [vmem:[%s3128_s16 + $0x30] sm:$0xff] %v3014_v21  ;;  %1462 = vst [vmem:[%s3128_s16 + $0x38] sm:$0xff] %v3020_v25 }
 0x159   : > { %v1419_v6 = vadd.f32 %v1418_v61, %v3011_v18  ;;  %1463 = vst [vmem:[%s3128_s16 + $0x40] sm:$0xff] %v3023_v31  ;;  %1464 = vst [vmem:[%s3128_s16 + $0x48] sm:$0xff] %v3029_v35 }
 0x15a   : > { %1465 = vst [vmem:[%s3128_s16 + $0x50] sm:$0xff] %v3026_v34  ;;  %1466 = vst [vmem:[%s3128_s16 + $0x58] sm:$0xff] %v3032_v38 }
 0x15b   : > { %v1420_v63 = vadd.f32 %v1419_v6, %v3017_v22  ;;  %1467 = vst [vmem:[%s3128_s16 + $0x60] sm:$0xff] %v3035_v43  ;;  %1468 = vst [vmem:[%s3128_s16 + $0x68] sm:$0xff] %v3041_v47 }
 0x15c   : > { %1469 = vst [vmem:[%s3128_s16 + $0x70] sm:$0xff] %v3038_v46  ;;  %1470 = vst [vmem:[%s3128_s16 + $0x78] sm:$0xff] %v3044_v50 }
 0x15d   : > { %v1421_v0 = vadd.f32 %v1420_v63, %v3014_v21  ;;  %1471 = vst [vmem:[%s3128_s16 + $0x80] sm:$0xff] %v3047_v55  ;;  %1472 = vst [vmem:[%s3128_s16 + $0x88] sm:$0xff] %v3053_v59 }
 0x15e   : > { %1473 = vst [vmem:[%s3128_s16 + $0x90] sm:$0xff] %v3050_v58  ;;  %1474 = vst [vmem:[%s3128_s16 + $0x98] sm:$0xff] %v3056_v62 }
 0x15f   : > { %v1422_v2 = vadd.f32 %v1421_v0, %v3020_v25  ;;  %1475 = vst [vmem:[%s3128_s16 + $0xa0] sm:$0xff] %v3059_v4  ;;  %1476 = vst [vmem:[%s3128_s16 + $0xa8] sm:$0xff] %v3065_v10 }
 0x160   : > { %1477 = vst [vmem:[%s3128_s16 + $0xb0] sm:$0xff] %v3062_v8  ;;  %1478 = vst [vmem:[%s3128_s16 + $0xb8] sm:$0xff] %v3068_v28 }
 0x161   : > { %v1423_v3 = vadd.f32 %v1422_v2, %v3023_v31  ;;  %1479 = vst [vmem:[%s3128_s16 + $0xc0] sm:$0xff] %v3071_v20  ;;  %1480 = vst [vmem:[%s3128_s16 + $0xc8] sm:$0xff] %v3077_v27 }
 0x162   : > { %1481 = vst [vmem:[%s3128_s16 + $0xd0] sm:$0xff] %v3074_v26  ;;  %1482 = vst [vmem:[%s3128_s16 + $0xd8] sm:$0xff] %v3080_v32 }
 0x163   : > { %v1424_v5 = vadd.f32 %v1423_v3, %v3029_v35  ;;  %1483 = vst [vmem:[%s3128_s16 + $0xe0] sm:$0xff] %v3083_v40  ;;  %1484 = vst [vmem:[%s3128_s16 + $0xe8] sm:$0xff] %v3089_v45 }
 0x164   : > { %1485 = vst [vmem:[%s3128_s16 + $0xf0] sm:$0xff] %v3086_v44  ;;  %1486 = vst [vmem:[%s3128_s16 + $0xf8] sm:$0xff] %v3092_v51 }
 0x165   : > { %v1425_v7 = vadd.f32 %v1424_v5, %v3026_v34 }
 0x167   : > { %v1426_v12 = vadd.f32 %v1425_v7, %v3032_v38 }
 0x169   : > { %v1427_v13 = vadd.f32 %v1426_v12, %v3035_v43 }
 0x16b   : > { %v1428_v15 = vadd.f32 %v1427_v13, %v3041_v47 }
 0x16d   : > { %v1429_v16 = vadd.f32 %v1428_v15, %v3038_v46 }
 0x16f   : > { %v1430_v17 = vadd.f32 %v1429_v16, %v3044_v50 }
 0x171   : > { %v1431_v19 = vadd.f32 %v1430_v17, %v3047_v55 }
 0x173   : > { %v1432_v23 = vadd.f32 %v1431_v19, %v3053_v59 }
 0x175   : > { %v1433_v24 = vadd.f32 %v1432_v23, %v3050_v58 }
 0x177   : > { %v1434_v29 = vadd.f32 %v1433_v24, %v3056_v62 }
 0x179   : > { %v1435_v30 = vadd.f32 %v1434_v29, %v3059_v4 }
 0x17b   : > { %v1436_v33 = vadd.f32 %v1435_v30, %v3065_v10 }
 0x17d   : > { %v1437_v36 = vadd.f32 %v1436_v33, %v3062_v8 }
 0x17f   : > { %v1438_v37 = vadd.f32 %v1437_v36, %v3068_v28 }
 0x181   : > { %v1439_v39 = vadd.f32 %v1438_v37, %v3071_v20 }
 0x183   : > { %v1440_v41 = vadd.f32 %v1439_v39, %v3077_v27 }
 0x185   : > { %v1441_v42 = vadd.f32 %v1440_v41, %v3074_v26 }
 0x187   : > { %v1442_v48 = vadd.f32 %v1441_v42, %v3080_v32 }
 0x189   : > { %v1443_v49 = vadd.f32 %v1442_v48, %v3083_v40 }
 0x18b   : > { %v1444_v52 = vadd.f32 %v1443_v49, %v3089_v45 }
 0x18d   : > { %v1445_v53 = vadd.f32 %v1444_v52, %v3086_v44 }
 0x18f   : > { %v1446_v54 = vadd.f32 %v1445_v53, %v3092_v51 }
 0x191   : > { %1447 = vadd.xlane.f32.xlu0 %v1446_v54 }
 0x21b   : > { %1490 = sbr.rel (%p2544_p9) target bundleno = 1149 (0x47d), region = 71 }
 0x21e   : > { %v1448_v11 = vpop.xlane.xlu0 %1447 }
 0x21f   : > { %v1449_v1 = vadd.f32 %v1448_v11, %v1415_v9 }
 0x221   : > { %1451 = vst.msk [vmem:[#allocation3] sm:$0xff] %vm1450_vm2, %v1449_v1 }
 0x222   : > { %v2671_v18 = vmov 0   ;;  %v3200_v25 = vld [vmem:[#allocation2 + $0x100] sm:$0xff]  ;;  %v3202_v31 = vld [vmem:[#allocation2 + $0x108] sm:$0xff]  ;;  %v3208_v38 = vld [vmem:[#allocation2 + $0x110] sm:$0xff] }
 0x223   : > { %2641 = vset.pattern.permute.xlu0 %v2671_v18  ;;  %2642 = vset.pattern.permute.xlu1 %v2671_v18  ;;  %v3210_v43 = vld [vmem:[#allocation2 + $0x118] sm:$0xff]  ;;  %v3214_v55 = vld [vmem:[#allocation2 + $0x120] sm:$0xff]  ;;  %v3218_v59 = vld [vmem:[#allocation2 + $0x128] sm:$0xff] }
 0x224   : > { %v3222_v10 = vld [vmem:[#allocation2 + $0x130] sm:$0xff]  ;;  %v3226_v27 = vld [vmem:[#allocation2 + $0x138] sm:$0xff]  ;;  %v3230_v45 = vld [vmem:[#allocation2 + $0x140] sm:$0xff] }
 0x225   : > { %v3232_v51 = vld [vmem:[#allocation2 + $0x148] sm:$0xff]  ;;  %v3236_v61 = vld [vmem:[#allocation2] sm:$0xff]  ;;  %v3242_v3 = vld [vmem:[#allocation2 + $0x150] sm:$0xff] }
 0x226   : > { %4276 = vst [vmem:[#allocation5_spill] sm:$0xff] %v3232_v51  ;;  %v3238_v6 = vld [vmem:[#allocation2 + $0x8] sm:$0xff]  ;;  %4277 = vst [vmem:[#allocation6_spill] sm:$0xff] %v3242_v3  ;;  %v3246_v7 = vld [vmem:[#allocation2 + $0x158] sm:$0xff] }
 0x227   : > { %4278 = vst [vmem:[#allocation7_spill] sm:$0xff] %v3246_v7  ;;  %v3252_v17 = vld [vmem:[#allocation2 + $0x10] sm:$0xff]  ;;  %v3254_v19 = vld [vmem:[#allocation2 + $0x160] sm:$0xff]  ;;  %v3260_v36 = vld [vmem:[#allocation2 + $0x18] sm:$0xff] }
 0x228   : > { %v1491_v14 = vld [vmem:[#allocation3] sm:$0xff]  ;;  %4279 = vst [vmem:[#allocation8_spill] sm:$0xff] %v3254_v19  ;;  %v3262_v37 = vld [vmem:[#allocation2 + $0x168] sm:$0xff]  ;;  %v3270_v53 = vld [vmem:[#allocation2 + $0x170] sm:$0xff] }
 0x229   : > { %v3195_v21 = vmul.f32 0.00012207031, %v1491_v14  ;;  %4280 = vst [vmem:[#allocation9_spill] sm:$0xff] %v3262_v37  ;;  %v3268_v52 = vld [vmem:[#allocation2 + $0x20] sm:$0xff]  ;;  %4281 = vst [vmem:[#allocation10_spill] sm:$0xff] %v3270_v53  ;;  %v3276_v18 = vld [vmem:[#allocation2 + $0x28] sm:$0xff] }
 0x22b   : > { %1527 = vperm.xlu0 %2641, %v3195_v21  }
 0x2aa   : > { %v3198_v22 = vpop.permute.xlu0 %1527 }
 0x2ab   : > { %v1661_v34 = vsub.f32 %v3200_v25, %v3198_v22  ;;  %v1662_v35 = vsub.f32 %v3202_v31, %v3198_v22  ;;  %v1663_v46 = vsub.f32 %v3208_v38, %v3198_v22  ;;  %v1664_v58 = vsub.f32 %v3210_v43, %v3198_v22 }
 0x2ac   : > { %v1665_v62 = vsub.f32 %v3214_v55, %v3198_v22  ;;  %v1666_v28 = vsub.f32 %v3218_v59, %v3198_v22  ;;  %v1667_v32 = vsub.f32 %v3222_v10, %v3198_v22  ;;  %v1668_v56 = vsub.f32 %v3226_v27, %v3198_v22 }
 0x2ad   : > { %v1693_v47 = vmul.f32 %v1661_v34, %v1661_v34  ;;  %v1694_v50 = vmul.f32 %v1662_v35, %v1662_v35  ;;  %v1695_v4 = vmul.f32 %v1663_v46, %v1663_v46  ;;  %v1696_v20 = vmul.f32 %v1664_v58, %v1664_v58  ;;  %v3278_v34 = vld [vmem:[#allocation2 + $0x178] sm:$0xff] }
 0x2ae   : > { %v1697_v40 = vmul.f32 %v1665_v62, %v1665_v62  ;;  %v1698_v57 = vmul.f32 %v1666_v28, %v1666_v28  ;;  %v1669_v63 = vsub.f32 %v3230_v45, %v3198_v22  ;;  %v1699_v0 = vmul.f32 %v1667_v32, %v1667_v32  ;;  %4282 = vst [vmem:[#allocation11_spill] sm:$0xff] %v3278_v34 }
 0x2af   : > { %v1725_v8 = vadd.f32 %v1694_v50, %v1693_v47  ;;  %v1670_v5 = vsub.f32 %v3232_v51, %v3198_v22  ;;  %v1700_v12 = vmul.f32 %v1668_v56, %v1668_v56  ;;  %v1530_v15 = vsub.f32 %v3236_v61, %v3198_v22  ;;  %v3292_v56 = vld [vmem:[#allocation2 + $0x38] sm:$0xff] }
 0x2b0   : > { %v1531_v16 = vsub.f32 %v3238_v6, %v3198_v22  ;;  %v1671_v23 = vsub.f32 %v3242_v3, %v3198_v22  ;;  %v1701_v24 = vmul.f32 %v1669_v63, %v1669_v63  ;;  %v1672_v30 = vsub.f32 %v3246_v7, %v3198_v22 }
 0x2b1   : > { %v1726_v26 = vadd.f32 %v1725_v8, %v1695_v4  ;;  %v1702_v33 = vmul.f32 %v1670_v5, %v1670_v5  ;;  %v1532_v41 = vsub.f32 %v3252_v17, %v3198_v22  ;;  %v1562_v42 = vmul.f32 %v1530_v15, %v1530_v15  ;;  %v3284_v4 = vld [vmem:[#allocation2 + $0x30] sm:$0xff]  ;;  %v3286_v8 = vld [vmem:[#allocation2 + $0x180] sm:$0xff] }
 0x2b2   : > { %v1563_v48 = vmul.f32 %v1531_v16, %v1531_v16  ;;  %v1673_v49 = vsub.f32 %v3254_v19, %v3198_v22  ;;  %v1703_v54 = vmul.f32 %v1671_v23, %v1671_v23  ;;  %v1533_v11 = vsub.f32 %v3260_v36, %v3198_v22  ;;  %4283 = vst [vmem:[#allocation12_spill] sm:$0xff] %v3286_v8  ;;  %v3302_v15 = vld [vmem:[#allocation2 + $0x190] sm:$0xff] }
 0x2b3   : > { %v1727_v44 = vadd.f32 %v1726_v26, %v1696_v20  ;;  %v1674_v1 = vsub.f32 %v3262_v37, %v3198_v22  ;;  %v1704_v14 = vmul.f32 %v1672_v30, %v1672_v30  ;;  %v1534_v46 = vsub.f32 %v3268_v52, %v3198_v22  ;;  %4285 = vst [vmem:[#allocation14_spill] sm:$0xff] %v3302_v15 }
 0x2b4   : > { %v1564_v47 = vmul.f32 %v1532_v41, %v1532_v41  ;;  %v1594_v50 = vadd.f32 %v1563_v48, %v1562_v42  ;;  %v1675_v58 = vsub.f32 %v3270_v53, %v3198_v22  ;;  %v1705_v62 = vmul.f32 %v1673_v49, %v1673_v49  ;;  %v3310_v41 = vld [vmem:[#allocation2 + $0x198] sm:$0xff] }
 0x2b5   : > { %v1728_v60 = vadd.f32 %v1727_v44, %v1697_v40  ;;  %v1535_v20 = vsub.f32 %v3276_v18, %v3198_v22  ;;  %v1565_v26 = vmul.f32 %v1533_v11, %v1533_v11  ;;  %v1676_v40 = vsub.f32 %v3278_v34, %v3198_v22  ;;  %4286 = vst [vmem:[#allocation15_spill] sm:$0xff] %v3310_v41 }
 0x2b6   : > { %v1595_v32 = vadd.f32 %v1594_v50, %v1564_v47  ;;  %v1706_v44 = vmul.f32 %v1674_v1, %v1674_v1  ;;  %v1536_v63 = vsub.f32 %v3284_v4, %v3198_v22  ;;  %v1677_v5 = vsub.f32 %v3286_v8, %v3198_v22  ;;  %v3316_v1 = vld [vmem:[#allocation2 + $0x50] sm:$0xff]  ;;  %v3422_v8 = vld [vmem:[#allocation2 + $0xc0] sm:$0xff] }
 0x2b7   : > { %v1729_v2 = vadd.f32 %v1728_v60, %v1698_v57  ;;  %v3294_v57 = vld [vmem:[#allocation2 + $0x188] sm:$0xff]  ;;  %v1537_v23 = vsub.f32 %v3292_v56, %v3198_v22 }
 0x2b8   : > { %4284 = vst [vmem:[#allocation13_spill] sm:$0xff] %v3294_v57  ;;  %v1678_v30 = vsub.f32 %v3294_v57, %v3198_v22  ;;  %v1568_v49 = vmul.f32 %v1536_v63, %v1536_v63  ;;  %v1709_v11 = vmul.f32 %v1677_v5, %v1677_v5  ;;  %v3418_v57 = vld [vmem:[#allocation2 + $0xb8] sm:$0xff] }
 0x2b9   : > { %v1730_v13 = vadd.f32 %v1729_v2, %v1699_v0  ;;  %v1566_v0 = vmul.f32 %v1534_v46, %v1534_v46  ;;  %v1596_v2 = vadd.f32 %v1595_v32, %v1565_v26  ;;  %v1569_v47 = vmul.f32 %v1537_v23, %v1537_v23 }
 0x2ba   : > { %v1540_v32 = vsub.f32 %v3316_v1, %v3198_v22 }
 0x2bb   : > { %v1731_v29 = vadd.f32 %v1730_v13, %v1700_v12  ;;  %v1707_v12 = vmul.f32 %v1675_v58, %v1675_v58  ;;  %v3300_v13 = vld [vmem:[#allocation2 + $0x40] sm:$0xff]  ;;  %v1680_v58 = vsub.f32 %v3310_v41, %v3198_v22 }
 0x2bc   : > { %v1538_v48 = vsub.f32 %v3300_v13, %v3198_v22 }
 0x2bd   : > { %v1732_v39 = vadd.f32 %v1731_v29, %v1701_v24  ;;  %v1567_v24 = vmul.f32 %v1535_v20, %v1535_v20  ;;  %v1597_v29 = vadd.f32 %v1596_v2, %v1566_v0  ;;  %v3326_v20 = vld [vmem:[#allocation2 + $0x1a8] sm:$0xff]  ;;  %v3332_v0 = vld [vmem:[#allocation2 + $0x60] sm:$0xff]  ;;  %v3334_v2 = vld [vmem:[#allocation2 + $0x1b0] sm:$0xff] }
 0x2be   : > { %4288 = vst [vmem:[#allocation17_spill] sm:$0xff] %v3326_v20  ;;  %4289 = vst [vmem:[#allocation18_spill] sm:$0xff] %v3334_v2 }
 0x2bf   : > { %v1733_v9 = vadd.f32 %v1732_v39, %v1702_v33  ;;  %v1708_v33 = vmul.f32 %v1676_v40, %v1676_v40  ;;  %v3308_v39 = vld [vmem:[#allocation2 + $0x48] sm:$0xff]  ;;  %v1570_v40 = vmul.f32 %v1538_v48, %v1538_v48  ;;  %v1542_v48 = vsub.f32 %v3332_v0, %v3198_v22 }
 0x2c0   : > { %v1539_v46 = vsub.f32 %v3308_v39, %v3198_v22 }
 0x2c1   : > { %v1734_v35 = vadd.f32 %v1733_v9, %v1703_v54  ;;  %v1598_v54 = vadd.f32 %v1597_v29, %v1567_v24  ;;  %v1679_v9 = vsub.f32 %v3302_v15, %v3198_v22  ;;  %v1682_v24 = vsub.f32 %v3326_v20, %v3198_v22 }
 0x2c2   : > { %v1712_v29 = vmul.f32 %v1680_v58, %v1680_v58 }
 0x2c3   : > { %v1735_v28 = vadd.f32 %v1734_v35, %v1704_v14  ;;  %v3318_v14 = vld [vmem:[#allocation2 + $0x1a0] sm:$0xff]  ;;  %v1599_v50 = vadd.f32 %v1598_v54, %v1568_v49  ;;  %v1711_v63 = vmul.f32 %v1679_v9, %v1679_v9  ;;  %v1572_v49 = vmul.f32 %v1540_v32, %v1540_v32  ;;  %v3356_v32 = vld [vmem:[#allocation2 + $0x78] sm:$0xff] }
 0x2c4   : > { %4287 = vst [vmem:[#allocation16_spill] sm:$0xff] %v3318_v14  ;;  %v1683_v9 = vsub.f32 %v3334_v2, %v3198_v22 }
 0x2c5   : > { %v1736_v60 = vadd.f32 %v1735_v28, %v1705_v62  ;;  %v1710_v62 = vmul.f32 %v1678_v30, %v1678_v30  ;;  %v3324_v28 = vld [vmem:[#allocation2 + $0x58] sm:$0xff]  ;;  %v3340_v30 = vld [vmem:[#allocation2 + $0x68] sm:$0xff] }
 0x2c7   : > { %v1737_v16 = vadd.f32 %v1736_v60, %v1706_v44  ;;  %v1600_v44 = vadd.f32 %v1599_v50, %v1569_v47  ;;  %v1681_v60 = vsub.f32 %v3318_v14, %v3198_v22  ;;  %v1543_v50 = vsub.f32 %v3340_v30, %v3198_v22 }
 0x2c9   : > { %v1738_v42 = vadd.f32 %v1737_v16, %v1707_v12  ;;  %v1541_v12 = vsub.f32 %v3324_v28, %v3198_v22  ;;  %v1571_v16 = vmul.f32 %v1539_v46, %v1539_v46  ;;  %v1601_v23 = vadd.f32 %v1600_v44, %v1570_v40  ;;  %v3350_v46 = vld [vmem:[#allocation2 + $0x1c0] sm:$0xff]  ;;  %v3358_v44 = vld [vmem:[#allocation2 + $0x1c8] sm:$0xff] }
 0x2ca   : > { %4291 = vst [vmem:[#allocation20_spill] sm:$0xff] %v3350_v46  ;;  %v1714_v40 = vmul.f32 %v1682_v24, %v1682_v24  ;;  %4292 = vst [vmem:[#allocation21_spill] sm:$0xff] %v3358_v44  ;;  %v1545_v24 = vsub.f32 %v3356_v32, %v3198_v22 }
 0x2cb   : > { %v1739_v35 = vadd.f32 %v1738_v42, %v1708_v33  ;;  %v3342_v33 = vld [vmem:[#allocation2 + $0x1b8] sm:$0xff]  ;;  %v1602_v54 = vadd.f32 %v1601_v23, %v1571_v16  ;;  %v1573_v58 = vmul.f32 %v1541_v12, %v1541_v12  ;;  %v1685_v23 = vsub.f32 %v3350_v46, %v3198_v22  ;;  %v3364_v12 = vld [vmem:[#allocation2 + $0x80] sm:$0xff] }
 0x2cc   : > { %4290 = vst [vmem:[#allocation19_spill] sm:$0xff] %v3342_v33 }
 0x2cd   : > { %v1740_v26 = vadd.f32 %v1739_v35, %v1709_v11  ;;  %v1713_v11 = vmul.f32 %v1681_v60, %v1681_v60  ;;  %v3348_v35 = vld [vmem:[#allocation2 + $0x70] sm:$0xff] }
 0x2ce   : > { %v1544_v60 = vsub.f32 %v3348_v35, %v3198_v22 }
 0x2cf   : > { %v1741_v5 = vadd.f32 %v1740_v26, %v1710_v62  ;;  %v1603_v62 = vadd.f32 %v1602_v54, %v1572_v49  ;;  %v1684_v26 = vsub.f32 %v3342_v33, %v3198_v22  ;;  %v1575_v54 = vmul.f32 %v1543_v50, %v1543_v50  ;;  %v3380_v50 = vld [vmem:[#allocation2 + $0x90] sm:$0xff] }
 0x2d0   : > { %v1576_v46 = vmul.f32 %v1544_v60, %v1544_v60  ;;  %v3388_v60 = vld [vmem:[#allocation2 + $0x98] sm:$0xff] }
 0x2d1   : > { %v1742_v42 = vadd.f32 %v1741_v5, %v1711_v63  ;;  %v1574_v5 = vmul.f32 %v1542_v48, %v1542_v48  ;;  %v1604_v16 = vadd.f32 %v1603_v62, %v1573_v58  ;;  %v3372_v48 = vld [vmem:[#allocation2 + $0x88] sm:$0xff]  ;;  %v3374_v58 = vld [vmem:[#allocation2 + $0x1d8] sm:$0xff] }
 0x2d2   : > { %4294 = vst [vmem:[#allocation23_spill] sm:$0xff] %v3374_v58 }
 0x2d3   : > { %v1743_v47 = vadd.f32 %v1742_v42, %v1712_v29  ;;  %v1715_v29 = vmul.f32 %v1683_v9, %v1683_v9  ;;  %v3366_v42 = vld [vmem:[#allocation2 + $0x1d0] sm:$0xff]  ;;  %v1605_v33 = vadd.f32 %v1604_v16, %v1574_v5  ;;  %v1546_v9 = vsub.f32 %v3364_v12, %v3198_v22  ;;  %v3382_v5 = vld [vmem:[#allocation2 + $0x1e0] sm:$0xff] }
 0x2d4   : > { %4293 = vst [vmem:[#allocation22_spill] sm:$0xff] %v3366_v42  ;;  %4295 = vst [vmem:[#allocation24_spill] sm:$0xff] %v3382_v5 }
 0x2d5   : > { %v1744_v63 = vadd.f32 %v1743_v47, %v1713_v11  ;;  %v1686_v11 = vsub.f32 %v3358_v44, %v3198_v22  ;;  %v1716_v47 = vmul.f32 %v1684_v26, %v1684_v26  ;;  %v1606_v2 = vadd.f32 %v1605_v33, %v1575_v54  ;;  %v3390_v33 = vld [vmem:[#allocation2 + $0x1e8] sm:$0xff] }
 0x2d6   : > { %v1547_v26 = vsub.f32 %v3372_v48, %v3198_v22  ;;  %v1577_v44 = vmul.f32 %v1545_v24, %v1545_v24  ;;  %4296 = vst [vmem:[#allocation25_spill] sm:$0xff] %v3390_v33  ;;  %v3396_v24 = vld [vmem:[#allocation2 + $0xa0] sm:$0xff] }
 0x2d7   : > { %v1745_v49 = vadd.f32 %v1744_v63, %v1714_v40  ;;  %v1687_v40 = vsub.f32 %v3366_v42, %v3198_v22  ;;  %v1717_v63 = vmul.f32 %v1685_v23, %v1685_v23  ;;  %v1607_v20 = vadd.f32 %v1606_v2, %v1576_v46  ;;  %v3398_v2 = vld [vmem:[#allocation2 + $0x1f0] sm:$0xff] }
 0x2d8   : > { %v1548_v23 = vsub.f32 %v3380_v50, %v3198_v22  ;;  %v1578_v42 = vmul.f32 %v1546_v9, %v1546_v9  ;;  %4297 = vst [vmem:[#allocation26_spill] sm:$0xff] %v3398_v2  ;;  %v3404_v9 = vld [vmem:[#allocation2 + $0xa8] sm:$0xff] }
 0x2d9   : > { %v1746_v62 = vadd.f32 %v1745_v49, %v1715_v29  ;;  %v1688_v29 = vsub.f32 %v3374_v58, %v3198_v22  ;;  %v1718_v49 = vmul.f32 %v1686_v11, %v1686_v11  ;;  %v1608_v14 = vadd.f32 %v1607_v20, %v1577_v44  ;;  %v3406_v20 = vld [vmem:[#allocation2 + $0x1f8] sm:$0xff] }
 0x2da   : > { %v1549_v11 = vsub.f32 %v3388_v60, %v3198_v22  ;;  %v1579_v58 = vmul.f32 %v1547_v26, %v1547_v26  ;;  %4298 = vst [vmem:[#allocation27_spill] sm:$0xff] %v3406_v20  ;;  %v3412_v26 = vld [vmem:[#allocation2 + $0xb0] sm:$0xff] }
 0x2db   : > { %v1747_v16 = vadd.f32 %v1746_v62, %v1716_v47  ;;  %v1689_v47 = vsub.f32 %v3382_v5, %v3198_v22  ;;  %v1719_v62 = vmul.f32 %v1687_v40, %v1687_v40  ;;  %v1609_v41 = vadd.f32 %v1608_v14, %v1578_v42 }
 0x2dc   : > { %v1550_v40 = vsub.f32 %v3396_v24, %v3198_v22  ;;  %v1580_v5 = vmul.f32 %v1548_v23, %v1548_v23  ;;  %v1551_v42 = vsub.f32 %v3404_v9, %v3198_v22 }
 0x2dd   : > { %v1748_v54 = vadd.f32 %v1747_v16, %v1717_v63  ;;  %v1690_v63 = vsub.f32 %v3390_v33, %v3198_v22  ;;  %v1720_v16 = vmul.f32 %v1688_v29, %v1688_v29  ;;  %v1610_v15 = vadd.f32 %v1609_v41, %v1579_v58 }
 0x2de   : > { %v1581_v29 = vmul.f32 %v1549_v11, %v1549_v11  ;;  %v1552_v41 = vsub.f32 %v3412_v26, %v3198_v22  ;;  %v1582_v58 = vmul.f32 %v1550_v40, %v1550_v40  ;;  %v1553_v11 = vsub.f32 %v3418_v57, %v3198_v22  ;;  %v3430_v40 = vld [vmem:[#allocation2 + $0xd0] sm:$0xff] }
 0x2df   : > { %v1749_v46 = vadd.f32 %v1748_v54, %v1718_v49  ;;  %v1691_v49 = vsub.f32 %v3398_v2, %v3198_v22  ;;  %v1721_v54 = vmul.f32 %v1689_v47, %v1689_v47  ;;  %v1611_v33 = vadd.f32 %v1610_v15, %v1580_v5 }
 0x2e0   : > { %v1583_v15 = vmul.f32 %v1551_v42, %v1551_v42  ;;  %v1556_v42 = vsub.f32 %v3430_v40, %v3198_v22 }
 0x2e1   : > { %v1750_v44 = vadd.f32 %v1749_v46, %v1719_v62  ;;  %v1692_v62 = vsub.f32 %v3406_v20, %v3198_v22  ;;  %v1722_v46 = vmul.f32 %v1690_v63, %v1690_v63  ;;  %v1612_v47 = vadd.f32 %v1611_v33, %v1581_v29  ;;  %v3426_v20 = vld [vmem:[#allocation2 + $0xc8] sm:$0xff] }
 0x2e2   : > { %v1723_v2 = vmul.f32 %v1691_v49, %v1691_v49  ;;  %v1555_v49 = vsub.f32 %v3426_v20, %v3198_v22  ;;  %v1585_v29 = vmul.f32 %v1553_v11, %v1553_v11  ;;  %v1588_v11 = vmul.f32 %v1556_v42, %v1556_v42 }
 0x2e3   : > { %v1751_v14 = vadd.f32 %v1750_v44, %v1720_v16  ;;  %v1613_v5 = vadd.f32 %v1612_v47, %v1582_v58  ;;  %v1724_v44 = vmul.f32 %v1692_v62, %v1692_v62  ;;  %v3438_v58 = vld [vmem:[#allocation2 + $0xe0] sm:$0xff] }
 0x2e4   : > { %v1587_v47 = vmul.f32 %v1555_v49, %v1555_v49 }
 0x2e5   : > { %v1752_v23 = vadd.f32 %v1751_v14, %v1721_v54  ;;  %v1554_v54 = vsub.f32 %v3422_v8, %v3198_v22  ;;  %v1584_v14 = vmul.f32 %v1552_v41, %v1552_v41  ;;  %v1614_v34 = vadd.f32 %v1613_v5, %v1583_v15  ;;  %v3442_v15 = vld [vmem:[#allocation2 + $0xe8] sm:$0xff] }
 0x2e7   : > { %v1753_v16 = vadd.f32 %v1752_v23, %v1722_v46  ;;  %v1615_v46 = vadd.f32 %v1614_v34, %v1584_v14  ;;  %v3434_v23 = vld [vmem:[#allocation2 + $0xd8] sm:$0xff]  ;;  %v1558_v34 = vsub.f32 %v3438_v58, %v3198_v22 }
 0x2e8   : > { %v1557_v41 = vsub.f32 %v3434_v23, %v3198_v22 }
 0x2e9   : > { %v1754_v63 = vadd.f32 %v1753_v16, %v1723_v2  ;;  %v1586_v2 = vmul.f32 %v1554_v54, %v1554_v54  ;;  %v1616_v62 = vadd.f32 %v1615_v46, %v1585_v29  ;;  %v1590_v46 = vmul.f32 %v1558_v34, %v1558_v34  ;;  %v1762_v34 = vld [vmem:[%s4250_s3] sm:$0xff] }
 0x2ea   : > { %v1589_v54 = vmul.f32 %v1557_v41, %v1557_v41 }
 0x2eb   : > { %v1755_v33 = vadd.f32 %v1754_v63, %v1724_v44  ;;  %v1617_v16 = vadd.f32 %v1616_v62, %v1586_v2  ;;  %v1523_v44 = vld [vmem:[#allocation2 + $0xf0] sm:$0xff]  ;;  %v1559_v63 = vsub.f32 %v3442_v15, %v3198_v22 }
 0x2ec   : > { %v1560_v29 = vsub.f32 %v1523_v44, %v3198_v22 }
 0x2ed   : > { %1756 = vadd.xlane.f32.xlu1 %v1755_v33  ;;  %v1618_v5 = vadd.f32 %v1617_v16, %v1587_v47  ;;  %v1524_v33 = vld [vmem:[#allocation2 + $0xf8] sm:$0xff]  ;;  %v1591_v2 = vmul.f32 %v1559_v63, %v1559_v63 }
 0x2ee   : > { %v1561_v49 = vsub.f32 %v1524_v33, %v3198_v22  ;;  %v1592_v37 = vmul.f32 %v1560_v29, %v1560_v29 }
 0x2ef   : > { %v1619_v14 = vadd.f32 %v1618_v5, %v1588_v11 }
 0x2f0   : > { %v1593_v7 = vmul.f32 %v1561_v49, %v1561_v49 }
 0x2f1   : > { %v1620_v53 = vadd.f32 %v1619_v14, %v1589_v54 }
 0x2f3   : > { %v1621_v62 = vadd.f32 %v1620_v53, %v1590_v46  ;;  %v1764_v53 = vld [vmem:[%s4251_s4] sm:$0xff] }
 0x2f5   : > { %v1622_v19 = vadd.f32 %v1621_v62, %v1591_v2 }
 0x2f7   : > { %v1623_v42 = vadd.f32 %v1622_v19, %v1592_v37 }
 0x2f9   : > { %v1624_v47 = vadd.f32 %v1623_v42, %v1593_v7 }
 0x2fb   : > { %1625 = vadd.xlane.f32.xlu0 %v1624_v47 }
 0x37a   : > { %v1757_v16 = vpop.xlane.xlu1 %1756 }
 0x388   : > { %v1626_v3 = vpop.xlane.xlu0 %1625 }
 0x389   : > { %v1758_v51 = vadd.f32 %v1757_v16, %v1626_v3 }
 0x38b   : > { %v1759_v41 = vmul.f32 0.00012207031, %v1758_v51 }
 0x38d   : > { %v1760_v11 = vadd.f32 1e-05, %v1759_v41 }
 0x38f   : > { %2643 = vrsqrt.f32 %v1760_v11 }
 0x399   : > { %v2644_v5 = vpop.eup %2643 }
 0x39a   : > { %v1763_v22 = vmul.f32 %v2644_v5, %v1762_v34 }
 0x39c   : > { %1769 = vperm.xlu1 %2642, %v1763_v22   ;;  %v1765_v7 = vmul.f32 %v1763_v22, %v3195_v21 }
 0x39e   : > { %v1766_v19 = vsub.f32 %v1764_v53, %v1765_v7 }
 0x3a0   : > { %1806 = vperm.xlu1 %2642, %v1766_v19  }
 0x41b   : > { %v3457_v37 = vpop.permute.xlu1 %1769 }
 0x41c   : > { %v1772_v51 = vmul.f32 %v3457_v37, %v3236_v61  ;;  %v1773_v3 = vmul.f32 %v3457_v37, %v3238_v6  ;;  %v1774_v63 = vmul.f32 %v3457_v37, %v3252_v17  ;;  %v1775_v54 = vmul.f32 %v3457_v37, %v3260_v36 }
 0x41d   : > { %v1776_v14 = vmul.f32 %v3457_v37, %v3268_v52  ;;  %v1777_v21 = vmul.f32 %v3457_v37, %v3276_v18  ;;  %v1778_v29 = vmul.f32 %v3457_v37, %v3284_v4  ;;  %v1779_v61 = vmul.f32 %v3457_v37, %v3292_v56 }
 0x41e   : > { %v1780_v6 = vmul.f32 %v3457_v37, %v3300_v13  ;;  %v1781_v17 = vmul.f32 %v3457_v37, %v3308_v39  ;;  %v1782_v36 = vmul.f32 %v3457_v37, %v3316_v1  ;;  %v1783_v52 = vmul.f32 %v3457_v37, %v3324_v28 }
 0x41f   : > { %v1784_v18 = vmul.f32 %v3457_v37, %v3332_v0  ;;  %v1785_v4 = vmul.f32 %v3457_v37, %v3340_v30  ;;  %v1786_v56 = vmul.f32 %v3457_v37, %v3348_v35  ;;  %v1787_v13 = vmul.f32 %v3457_v37, %v3356_v32 }
 0x420   : > { %v1788_v39 = vmul.f32 %v3457_v37, %v3364_v12  ;;  %v1789_v1 = vmul.f32 %v3457_v37, %v3372_v48  ;;  %v1790_v28 = vmul.f32 %v3457_v37, %v3380_v50  ;;  %v1791_v0 = vmul.f32 %v3457_v37, %v3388_v60 }
 0x421   : > { %v1792_v30 = vmul.f32 %v3457_v37, %v3396_v24  ;;  %v1793_v35 = vmul.f32 %v3457_v37, %v3404_v9  ;;  %v1794_v32 = vmul.f32 %v3457_v37, %v3412_v26  ;;  %v1795_v12 = vmul.f32 %v3457_v37, %v3418_v57 }
 0x422   : > { %v1796_v48 = vmul.f32 %v3457_v37, %v3422_v8  ;;  %v1797_v50 = vmul.f32 %v3457_v37, %v3426_v20  ;;  %v1798_v60 = vmul.f32 %v3457_v37, %v3430_v40  ;;  %v1799_v24 = vmul.f32 %v3457_v37, %v3434_v23  ;;  %v3529_v40 = vpop.permute.xlu1 %1806 }
 0x423   : > { %v1800_v9 = vmul.f32 %v3457_v37, %v3438_v58  ;;  %v1801_v26 = vmul.f32 %v3457_v37, %v3442_v15  ;;  %v1802_v57 = vmul.f32 %v3457_v37, %v1523_v44  ;;  %v1803_v46 = vmul.f32 %v3457_v37, %v1524_v33  ;;  %v4307_v44 = vld [vmem:[#allocation5_spill] sm:$0xff] }
 0x424   : > { %v3523_v8 = vmul.f32 %v3457_v37, %v3200_v25  ;;  %v3527_v20 = vmul.f32 %v3457_v37, %v3202_v31  ;;  %v3533_v23 = vmul.f32 %v3457_v37, %v3208_v38  ;;  %v3537_v58 = vmul.f32 %v3457_v37, %v3210_v43 }
 0x425   : > { %v3541_v15 = vmul.f32 %v3457_v37, %v3214_v55  ;;  %v3545_v25 = vmul.f32 %v3457_v37, %v3218_v59  ;;  %v3549_v31 = vmul.f32 %v3457_v37, %v3222_v10  ;;  %v3553_v38 = vmul.f32 %v3457_v37, %v3226_v27 }
 0x426   : > { %4299 = vst [vmem:[#allocation28_spill] sm:$0xff] %v3527_v20  ;;  %4300 = vst [vmem:[#allocation29_spill] sm:$0xff] %v3533_v23  ;;  %v3557_v43 = vmul.f32 %v3457_v37, %v3230_v45  ;;  %v3561_v55 = vmul.f32 %v3457_v37, %v4307_v44  ;;  %v3564_v33 = vadd.f32 %v3529_v40, %v1772_v51 }
 0x427   : > { %4301 = vst [vmem:[#allocation30_spill] sm:$0xff] %v3537_v58  ;;  %4302 = vst [vmem:[#allocation31_spill] sm:$0xff] %v3541_v15  ;;  %v3567_v59 = vadd.f32 %v3529_v40, %v1773_v3  ;;  %v3570_v10 = vadd.f32 %v3529_v40, %v1774_v63  ;;  %v3573_v27 = vadd.f32 %v3529_v40, %v1775_v54 }
 0x428   : > { %4303 = vst [vmem:[#allocation32_spill] sm:$0xff] %v3545_v25  ;;  %4304 = vst [vmem:[#allocation33_spill] sm:$0xff] %v3549_v31  ;;  %v3576_v49 = vadd.f32 %v3529_v40, %v1776_v14  ;;  %v3579_v45 = vadd.f32 %v3529_v40, %v1777_v21  ;;  %v3582_v2 = vadd.f32 %v3529_v40, %v1778_v29  ;;  %vm1841_vm3 = vcmp.ge.f32.partialorder %v3564_v33, 0.0 }
 0x429   : > { %4305 = vst [vmem:[#allocation34_spill] sm:$0xff] %v3553_v38  ;;  %4306 = vst [vmem:[#allocation35_spill] sm:$0xff] %v3557_v43  ;;  %v3585_v62 = vadd.f32 %v3529_v40, %v1779_v61  ;;  %v3588_v42 = vadd.f32 %v3529_v40, %v1780_v6  ;;  %v3591_v47 = vadd.f32 %v3529_v40, %v1781_v17  ;;  %vm1842_vm4 = vcmp.ge.f32.partialorder %v3567_v59, 0.0 }
 0x42a   : > { %4308 = vst [vmem:[#allocation5_spill] sm:$0xff] %v3561_v55  ;;  %v3594_v16 = vadd.f32 %v3529_v40, %v1782_v36  ;;  %v3597_v41 = vadd.f32 %v3529_v40, %v1783_v52  ;;  %v3600_v11 = vadd.f32 %v3529_v40, %v1784_v18  ;;  %v3603_v34 = vadd.f32 %v3529_v40, %v1785_v4 }
 0x42b   : > { %v3606_v5 = vadd.f32 %v3529_v40, %v1786_v56  ;;  %v3609_v22 = vadd.f32 %v3529_v40, %v1787_v13  ;;  %v3612_v53 = vadd.f32 %v3529_v40, %v1788_v39  ;;  %v3615_v7 = vadd.f32 %v3529_v40, %v1789_v1 }
 0x42c   : > { %v3618_v19 = vadd.f32 %v3529_v40, %v1790_v28  ;;  %v3621_v51 = vadd.f32 %v3529_v40, %v1791_v0  ;;  %v3624_v3 = vadd.f32 %v3529_v40, %v1792_v30  ;;  %v3627_v63 = vadd.f32 %v3529_v40, %v1793_v35 }
 0x42d   : > { %v3630_v54 = vadd.f32 %v3529_v40, %v1794_v32  ;;  %v3633_v14 = vadd.f32 %v3529_v40, %v1795_v12  ;;  %v3636_v21 = vadd.f32 %v3529_v40, %v1796_v48  ;;  %v3639_v29 = vadd.f32 %v3529_v40, %v1797_v50 }
 0x42e   : > { %v3642_v61 = vadd.f32 %v3529_v40, %v1798_v60  ;;  %v3645_v6 = vadd.f32 %v3529_v40, %v1799_v24  ;;  %v3648_v17 = vadd.f32 %v3529_v40, %v1800_v9  ;;  %v3651_v36 = vadd.f32 %v3529_v40, %v1801_v26 }
 0x42f   : > { %vm1843_vm5 = vcmp.ge.f32.partialorder %v3570_v10, 0.0  ;;  %vm1844_vm6 = vcmp.ge.f32.partialorder %v3573_v27, 0.0  ;;  %vm1845_vm7 = vcmp.ge.f32.partialorder %v3576_v49, 0.0  ;;  %vm1846_vm8 = vcmp.ge.f32.partialorder %v3579_v45, 0.0 }
 0x430   : > { %vm1847_vm9 = vcmp.ge.f32.partialorder %v3582_v2, 0.0  ;;  %vm1848_vm10 = vcmp.ge.f32.partialorder %v3585_v62, 0.0  ;;  %vm1849_vm11 = vcmp.ge.f32.partialorder %v3588_v42, 0.0  ;;  %v3664_v52 = vadd.f32 %v3529_v40, %v1802_v57 }
 0x431   : > { %v1873_v18 = vmul.f32 0.01, %v3564_v33  ;;  %v1874_v4 = vmul.f32 0.01, %v3567_v59  ;;  %v1875_v56 = vmul.f32 0.01, %v3570_v10  ;;  %v3674_v13 = vadd.f32 %v3529_v40, %v1803_v46 }
 0x432   : > { %vm1856_vm2 = vcmp.ge.f32.partialorder %v3609_v22, 0.0  ;;  %vm1857_vm13 = vcmp.ge.f32.partialorder %v3612_v53, 0.0  ;;  %v1876_v39 = vmul.f32 0.01, %v3573_v27  ;;  %v1877_v1 = vmul.f32 0.01, %v3576_v49 }
 0x433   : > { %v1878_v28 = vmul.f32 0.01, %v3579_v45  ;;  %vm1862_vm1 = vcmp.ge.f32.partialorder %v3627_v63, 0.0  ;;  %v1879_v0 = vmul.f32 0.01, %v3582_v2  ;;  %v3693_v32 = vsel %vm1841_vm3, %v3564_v33, %v1873_v18 }
 0x434   : > { %v1880_v30 = vmul.f32 0.01, %v3585_v62  ;;  %v1881_v35 = vmul.f32 0.01, %v3588_v42  ;;  %vm1866_vm12 = vcmp.ge.f32.partialorder %v3639_v29, 0.0  ;;  %v3705_v60 = vsel %vm1842_vm4, %v3567_v59, %v1874_v4 }
 0x435   : > { %v1882_v12 = vmul.f32 0.01, %v3591_v47  ;;  %v1883_v48 = vmul.f32 0.01, %v3594_v16  ;;  %v1884_v50 = vmul.f32 0.01, %v3597_v41  ;;  %v1907_v57 = vsel %vm1843_vm5, %v3570_v10, %v1875_v56 }
 0x436   : > { %vm1868_vm14 = vcmp.ge.f32.partialorder %v3645_v6, 0.0  ;;  %vm1869_vm0 = vcmp.ge.f32.partialorder %v3648_v17, 0.0  ;;  %vm1870_vm15 = vcmp.ge.f32.partialorder %v3651_v36, 0.0  ;;  %v1885_v24 = vmul.f32 0.01, %v3600_v11 }
 0x437   : > { %v1886_v9 = vmul.f32 0.01, %v3603_v34  ;;  %v1887_v26 = vmul.f32 0.01, %v3606_v5  ;;  %vm1871_vm4 = vcmp.ge.f32.partialorder %v3664_v52, 0.0  ;;  %vm1872_vm3 = vcmp.ge.f32.partialorder %v3674_v13, 0.0 }
 0x438   : > { %v1888_v46 = vmul.f32 0.01, %v3609_v22  ;;  %v1889_v44 = vmul.f32 0.01, %v3612_v53  ;;  %v1890_v33 = vmul.f32 0.01, %v3615_v7  ;;  %v1908_v59 = vsel %vm1844_vm6, %v3573_v27, %v1876_v39 }
 0x439   : > { %v1891_v18 = vmul.f32 0.01, %v3618_v19  ;;  %v1892_v4 = vmul.f32 0.01, %v3621_v51  ;;  %v1893_v10 = vmul.f32 0.01, %v3624_v3  ;;  %v1909_v56 = vsel %vm1845_vm7, %v3576_v49, %v1877_v1 }
 0x43a   : > { %v1894_v55 = vmul.f32 0.01, %v3627_v63  ;;  %v1895_v43 = vmul.f32 0.01, %v3630_v54  ;;  %v1896_v38 = vmul.f32 0.01, %v3633_v14  ;;  %v1910_v27 = vsel %vm1846_vm8, %v3579_v45, %v1878_v28 }
 0x43b   : > { %v1897_v39 = vmul.f32 0.01, %v3636_v21  ;;  %v1898_v31 = vmul.f32 0.01, %v3639_v29  ;;  %v1899_v25 = vmul.f32 0.01, %v3642_v61  ;;  %v1911_v49 = vsel %vm1847_vm9, %v3582_v2, %v1879_v0 }
 0x43c   : > { %v1900_v1 = vmul.f32 0.01, %v3645_v6  ;;  %v1901_v15 = vmul.f32 0.01, %v3648_v17  ;;  %v1902_v58 = vmul.f32 0.01, %v3651_v36  ;;  %v1912_v45 = vsel %vm1848_vm10, %v3585_v62, %v1880_v30 }
 0x43d   : > { %v1903_v28 = vmul.f32 0.01, %v3664_v52  ;;  %v1904_v23 = vmul.f32 0.01, %v3674_v13  ;;  %v1913_v20 = vsel %vm1849_vm11, %v3588_v42, %v1881_v35  ;;  %vm4309_vm5 = vcmp.ge.f32.partialorder %v3591_v47, 0.0 }
 0x43e   : > { %v1914_v2 = vsel %vm4309_vm5, %v3591_v47, %v1882_v12  ;;  %vm4310_vm6 = vcmp.ge.f32.partialorder %v3594_v16, 0.0  ;;  %vm4311_vm7 = vcmp.ge.f32.partialorder %v3597_v41, 0.0  ;;  %vm4312_vm8 = vcmp.ge.f32.partialorder %v3600_v11, 0.0  ;;  %v4324_v12 = vld [vmem:[#allocation7_spill] sm:$0xff] }
 0x43f   : > { %v1915_v0 = vsel %vm4310_vm6, %v3594_v16, %v1883_v48  ;;  %v1916_v62 = vsel %vm4311_vm7, %v3597_v41, %v1884_v50  ;;  %v1917_v30 = vsel %vm4312_vm8, %v3600_v11, %v1885_v24  ;;  %vm4313_vm9 = vcmp.ge.f32.partialorder %v3603_v34, 0.0  ;;  %v4325_v24 = vld [vmem:[#allocation8_spill] sm:$0xff] }
 0x440   : > { %v1918_v42 = vsel %vm4313_vm9, %v3603_v34, %v1886_v9  ;;  %vm4314_vm10 = vcmp.ge.f32.partialorder %v3606_v5, 0.0  ;;  %v1920_v16 = vsel %vm1856_vm2, %v3609_v22, %v1888_v46  ;;  %v1921_v41 = vsel %vm1857_vm13, %v3612_v53, %v1889_v44  ;;  %v4327_v46 = vld [vmem:[#allocation10_spill] sm:$0xff] }
 0x441   : > { %v1919_v47 = vsel %vm4314_vm10, %v3606_v5, %v1887_v26  ;;  %vm4315_vm11 = vcmp.ge.f32.partialorder %v3615_v7, 0.0  ;;  %vm4316_vm5 = vcmp.ge.f32.partialorder %v3618_v19, 0.0  ;;  %vm4317_vm6 = vcmp.ge.f32.partialorder %v3621_v51, 0.0  ;;  %v4326_v26 = vld [vmem:[#allocation9_spill] sm:$0xff] }
 0x442   : > { %v1922_v11 = vsel %vm4315_vm11, %v3615_v7, %v1890_v33  ;;  %v1923_v34 = vsel %vm4316_vm5, %v3618_v19, %v1891_v18  ;;  %v1924_v5 = vsel %vm4317_vm6, %v3621_v51, %v1892_v4  ;;  %vm4318_vm7 = vcmp.ge.f32.partialorder %v3624_v3, 0.0  ;;  %v4328_v33 = vld [vmem:[#allocation11_spill] sm:$0xff]  ;;  %v4329_v18 = vld [vmem:[#allocation12_spill] sm:$0xff] }
 0x443   : > { %v1925_v22 = vsel %vm4318_vm7, %v3624_v3, %v1893_v10  ;;  %v1926_v53 = vsel %vm1862_vm1, %v3627_v63, %v1894_v55  ;;  %vm4319_vm13 = vcmp.ge.f32.partialorder %v3630_v54, 0.0  ;;  %vm4320_vm2 = vcmp.ge.f32.partialorder %v3633_v14, 0.0  ;;  %v4330_v10 = vld [vmem:[#allocation13_spill] sm:$0xff] }
 0x444   : > { %v1927_v7 = vsel %vm4319_vm13, %v3630_v54, %v1895_v43  ;;  %v1928_v19 = vsel %vm4320_vm2, %v3633_v14, %v1896_v38  ;;  %vm4321_vm8 = vcmp.ge.f32.partialorder %v3636_v21, 0.0  ;;  %v1930_v3 = vsel %vm1866_vm12, %v3639_v29, %v1898_v31 }
 0x445   : > { %v1929_v51 = vsel %vm4321_vm8, %v3636_v21, %v1897_v39  ;;  %vm4322_vm9 = vcmp.ge.f32.partialorder %v3642_v61, 0.0  ;;  %v1932_v43 = vsel %vm1868_vm14, %v3645_v6, %v1900_v1  ;;  %v1933_v38 = vsel %vm1869_vm0, %v3648_v17, %v1901_v15 }
 0x446   : > { %v1931_v55 = vsel %vm4322_vm9, %v3642_v61, %v1899_v25  ;;  %v1934_v63 = vsel %vm1870_vm15, %v3651_v36, %v1902_v58  ;;  %v1935_v31 = vsel %vm1871_vm4, %v3664_v52, %v1903_v28  ;;  %v1936_v25 = vsel %vm1872_vm3, %v3674_v13, %v1904_v23 }
 0x447   : > { %v2581_v54 = vpack.c.bf16 %v3705_v60, %v3693_v32  ;;  %v2582_v14 = vpack.c.bf16 %v1908_v59, %v1907_v57  ;;  %v2583_v21 = vpack.c.bf16 %v1910_v27, %v1909_v56  ;;  %v2584_v29 = vpack.c.bf16 %v1912_v45, %v1911_v49  ;;  %v4331_v27 = vld [vmem:[#allocation14_spill] sm:$0xff]  ;;  %v4332_v49 = vld [vmem:[#allocation15_spill] sm:$0xff]  ;;  %v4333_v45 = vld [vmem:[#allocation16_spill] sm:$0xff] }
 0x448   : > { %v2585_v61 = vpack.c.bf16 %v1914_v2, %v1913_v20  ;;  %v2586_v15 = vpack.c.bf16 %v1916_v62, %v1915_v0  ;;  %v2587_v6 = vpack.c.bf16 %v1918_v42, %v1917_v30  ;;  %v2588_v17 = vpack.c.bf16 %v1920_v16, %v1919_v47  ;;  %v4323_v20 = vld [vmem:[#allocation6_spill] sm:$0xff]  ;;  %v4334_v2 = vld [vmem:[#allocation17_spill] sm:$0xff]  ;;  %v4336_v42 = vld [vmem:[#allocation19_spill] sm:$0xff] }
 0x449   : > { %v2589_v35 = vpack.c.bf16 %v1922_v11, %v1921_v41  ;;  %v2590_v58 = vpack.c.bf16 %v1924_v5, %v1923_v34  ;;  %2065 = vst [vmem:[%s4252_s5] sm:$0xff] %v2581_v54  ;;  %2066 = vst [vmem:[%s4252_s5 + $0x8] sm:$0xff] %v2582_v14  ;;  %v2591_v23 = vpack.c.bf16 %v1926_v53, %v1925_v22  ;;  %v4335_v62 = vld [vmem:[#allocation18_spill] sm:$0xff]  ;;  %v4337_v16 = vld [vmem:[#allocation20_spill] sm:$0xff] }
 0x44a   : > { %v2592_v36 = vpack.c.bf16 %v1928_v19, %v1927_v7  ;;  %v2593_v52 = vpack.c.bf16 %v1930_v3, %v1929_v51  ;;  %v2594_v13 = vpack.c.bf16 %v1932_v43, %v1931_v55  ;;  %2067 = vst [vmem:[%s4252_s5 + $0x10] sm:$0xff] %v2583_v21  ;;  %2068 = vst [vmem:[%s4252_s5 + $0x18] sm:$0xff] %v2584_v29  ;;  %v4338_v11 = vld [vmem:[#allocation21_spill] sm:$0xff]  ;;  %v4339_v5 = vld [vmem:[#allocation22_spill] sm:$0xff] }
 0x44b   : > { %2069 = vst [vmem:[%s4252_s5 + $0x20] sm:$0xff] %v2585_v61  ;;  %2070 = vst [vmem:[%s4252_s5 + $0x28] sm:$0xff] %v2586_v15  ;;  %v2123_v32 = vmul.f32 %v3457_v37, %v4323_v20  ;;  %v2124_v48 = vmul.f32 %v3457_v37, %v4324_v12  ;;  %v2595_v50 = vpack.c.bf16 %v1934_v63, %v1933_v38  ;;  %v4340_v53 = vld [vmem:[#allocation23_spill] sm:$0xff]  ;;  %v4341_v19 = vld [vmem:[#allocation24_spill] sm:$0xff] }
 0x44c   : > { %v2596_v60 = vpack.c.bf16 %v1936_v25, %v1935_v31  ;;  %2071 = vst [vmem:[%s4252_s5 + $0x30] sm:$0xff] %v2587_v6  ;;  %2072 = vst [vmem:[%s4252_s5 + $0x38] sm:$0xff] %v2588_v17  ;;  %v2125_v9 = vmul.f32 %v3457_v37, %v4325_v24  ;;  %v2126_v57 = vmul.f32 %v3457_v37, %v4326_v26  ;;  %v4342_v3 = vld [vmem:[#allocation25_spill] sm:$0xff]  ;;  %v4343_v43 = vld [vmem:[#allocation26_spill] sm:$0xff] }
 0x44d   : > { %2073 = vst [vmem:[%s4252_s5 + $0x40] sm:$0xff] %v2589_v35  ;;  %2074 = vst [vmem:[%s4252_s5 + $0x48] sm:$0xff] %v2590_v58  ;;  %v2127_v44 = vmul.f32 %v3457_v37, %v4327_v46  ;;  %v2128_v59 = vmul.f32 %v3457_v37, %v4328_v33  ;;  %v2129_v4 = vmul.f32 %v3457_v37, %v4329_v18  ;;  %v4344_v63 = vld [vmem:[#allocation27_spill] sm:$0xff]  ;;  %v4345_v54 = vld [vmem:[#allocation28_spill] sm:$0xff] }
 0x44e   : > { %2075 = vst [vmem:[%s4252_s5 + $0x50] sm:$0xff] %v2591_v23  ;;  %2076 = vst [vmem:[%s4252_s5 + $0x58] sm:$0xff] %v2592_v36  ;;  %v2130_v56 = vmul.f32 %v3457_v37, %v4330_v10  ;;  %v2131_v39 = vmul.f32 %v3457_v37, %v4331_v27  ;;  %v2132_v1 = vmul.f32 %v3457_v37, %v4332_v49  ;;  %v4346_v21 = vld [vmem:[#allocation29_spill] sm:$0xff]  ;;  %v4347_v61 = vld [vmem:[#allocation30_spill] sm:$0xff] }
 0x44f   : > { %2077 = vst [vmem:[%s4252_s5 + $0x60] sm:$0xff] %v2593_v52  ;;  %2078 = vst [vmem:[%s4252_s5 + $0x68] sm:$0xff] %v2594_v13  ;;  %v2133_v28 = vmul.f32 %v3457_v37, %v4333_v45  ;;  %v2134_v0 = vmul.f32 %v3457_v37, %v4334_v2  ;;  %v2135_v30 = vmul.f32 %v3457_v37, %v4335_v62  ;;  %v4348_v6 = vld [vmem:[#allocation31_spill] sm:$0xff]  ;;  %v4350_v35 = vld [vmem:[#allocation33_spill] sm:$0xff] }
 0x450   : > { %2079 = vst [vmem:[%s4252_s5 + $0x70] sm:$0xff] %v2595_v50  ;;  %2080 = vst [vmem:[%s4252_s5 + $0x78] sm:$0xff] %v2596_v60  ;;  %v2136_v47 = vmul.f32 %v3457_v37, %v4336_v42  ;;  %v2137_v41 = vmul.f32 %v3457_v37, %v4337_v16  ;;  %v2138_v34 = vmul.f32 %v3457_v37, %v4338_v11  ;;  %v4351_v23 = vld [vmem:[#allocation34_spill] sm:$0xff]  ;;  %v4352_v52 = vld [vmem:[#allocation35_spill] sm:$0xff] }
 0x451   : > { %v2139_v22 = vmul.f32 %v3457_v37, %v4339_v5  ;;  %v2140_v7 = vmul.f32 %v3457_v37, %v4340_v53  ;;  %v2141_v51 = vmul.f32 %v3457_v37, %v4341_v19  ;;  %v2142_v55 = vmul.f32 %v3457_v37, %v4342_v3  ;;  %v4353_v20 = vld [vmem:[#allocation5_spill] sm:$0xff] }
 0x452   : > { %v2143_v38 = vmul.f32 %v3457_v37, %v4343_v43  ;;  %v2144_v31 = vmul.f32 %v3457_v37, %v4344_v63  ;;  %v3919_v25 = vadd.f32 %v3523_v8, %v3529_v40  ;;  %v3923_v14 = vadd.f32 %v4345_v54, %v3529_v40  ;;  %v4349_v37 = vld [vmem:[#allocation32_spill] sm:$0xff] }
 0x453   : > { %v3927_v29 = vadd.f32 %v4346_v21, %v3529_v40  ;;  %v3931_v15 = vadd.f32 %v4347_v61, %v3529_v40  ;;  %v3935_v17 = vadd.f32 %v4348_v6, %v3529_v40  ;;  %v3939_v8 = vadd.f32 %v4349_v37, %v3529_v40 }
 0x454   : > { %v3943_v58 = vadd.f32 %v4350_v35, %v3529_v40  ;;  %v3947_v36 = vadd.f32 %v4351_v23, %v3529_v40  ;;  %v3951_v13 = vadd.f32 %v4352_v52, %v3529_v40  ;;  %v3955_v12 = vadd.f32 %v4353_v20, %v3529_v40 }
 0x455   : > { %v3958_v50 = vadd.f32 %v2123_v32, %v3529_v40  ;;  %v3961_v60 = vadd.f32 %v2124_v48, %v3529_v40  ;;  %v3964_v24 = vadd.f32 %v2125_v9, %v3529_v40  ;;  %v3967_v26 = vadd.f32 %v2126_v57, %v3529_v40 }
 0x456   : > { %v3970_v46 = vadd.f32 %v2127_v44, %v3529_v40  ;;  %v3973_v33 = vadd.f32 %v2128_v59, %v3529_v40  ;;  %v3976_v18 = vadd.f32 %v2129_v4, %v3529_v40  ;;  %v3979_v32 = vadd.f32 %v2130_v56, %v3529_v40 }
 0x457   : > { %v3982_v48 = vadd.f32 %v2131_v39, %v3529_v40  ;;  %v3985_v9 = vadd.f32 %v2132_v1, %v3529_v40  ;;  %v3988_v57 = vadd.f32 %v2133_v28, %v3529_v40  ;;  %v3991_v44 = vadd.f32 %v2134_v0, %v3529_v40 }
 0x458   : > { %v3994_v59 = vadd.f32 %v2135_v30, %v3529_v40  ;;  %v3997_v4 = vadd.f32 %v2136_v47, %v3529_v40  ;;  %v4000_v10 = vadd.f32 %v2137_v41, %v3529_v40  ;;  %v4003_v56 = vadd.f32 %v2138_v34, %v3529_v40 }
 0x459   : > { %v4006_v27 = vadd.f32 %v2139_v22, %v3529_v40  ;;  %v4009_v39 = vadd.f32 %v2140_v7, %v3529_v40  ;;  %v4012_v49 = vadd.f32 %v2141_v51, %v3529_v40  ;;  %v4015_v1 = vadd.f32 %v2142_v55, %v3529_v40 }
 0x45a   : > { %vm2177_vm12 = vcmp.ge.f32.partialorder %v3919_v25, 0.0  ;;  %vm2178_vm14 = vcmp.ge.f32.partialorder %v3923_v14, 0.0  ;;  %vm2179_vm15 = vcmp.ge.f32.partialorder %v3927_v29, 0.0  ;;  %vm2180_vm0 = vcmp.ge.f32.partialorder %v3931_v15, 0.0 }
 0x45b   : > { %vm2181_vm1 = vcmp.ge.f32.partialorder %v3935_v17, 0.0  ;;  %vm2182_vm3 = vcmp.ge.f32.partialorder %v3939_v8, 0.0  ;;  %vm2183_vm4 = vcmp.ge.f32.partialorder %v3943_v58, 0.0  ;;  %vm2184_vm10 = vcmp.ge.f32.partialorder %v3947_v36, 0.0 }
 0x45c   : > { %vm2185_vm11 = vcmp.ge.f32.partialorder %v3951_v13, 0.0  ;;  %v4028_v45 = vadd.f32 %v2143_v38, %v3529_v40  ;;  %v2209_v28 = vmul.f32 0.01, %v3919_v25  ;;  %v2210_v2 = vmul.f32 0.01, %v3923_v14 }
 0x45d   : > { %v2211_v0 = vmul.f32 0.01, %v3927_v29  ;;  %v4038_v62 = vadd.f32 %v2144_v31, %v3529_v40  ;;  %vm2192_vm9 = vcmp.ge.f32.partialorder %v3973_v33, 0.0  ;;  %vm2193_vm6 = vcmp.ge.f32.partialorder %v3976_v18, 0.0 }
 0x45e   : > { %v2212_v30 = vmul.f32 0.01, %v3931_v15  ;;  %v2213_v42 = vmul.f32 0.01, %v3935_v17  ;;  %v2214_v47 = vmul.f32 0.01, %v3939_v8  ;;  %v4057_v11 = vsel %vm2177_vm12, %v3919_v25, %v2209_v28 }
 0x45f   : > { %vm2198_vm8 = vcmp.ge.f32.partialorder %v3991_v44, 0.0  ;;  %v2215_v40 = vmul.f32 0.01, %v3943_v58  ;;  %v2216_v16 = vmul.f32 0.01, %v3947_v36  ;;  %vm2202_vm5 = vcmp.ge.f32.partialorder %v4003_v56, 0.0 }
 0x460   : > { %v2217_v41 = vmul.f32 0.01, %v3951_v13  ;;  %v2218_v34 = vmul.f32 0.01, %v3955_v12  ;;  %v2219_v5 = vmul.f32 0.01, %v3958_v50  ;;  %v4069_v53 = vsel %vm2178_vm14, %v3923_v14, %v2210_v2 }
 0x461   : > { %v2220_v22 = vmul.f32 0.01, %v3961_v60  ;;  %vm2204_vm7 = vcmp.ge.f32.partialorder %v4009_v39, 0.0  ;;  %vm2205_vm2 = vcmp.ge.f32.partialorder %v4012_v49, 0.0  ;;  %vm2206_vm13 = vcmp.ge.f32.partialorder %v4015_v1, 0.0 }
 0x462   : > { %v2221_v7 = vmul.f32 0.01, %v3964_v24  ;;  %v2222_v19 = vmul.f32 0.01, %v3967_v26  ;;  %v2223_v51 = vmul.f32 0.01, %v3970_v46  ;;  %v2243_v3 = vsel %vm2179_vm15, %v3927_v29, %v2211_v0 }
 0x463   : > { %vm2207_vm14 = vcmp.ge.f32.partialorder %v4028_v45, 0.0  ;;  %vm2208_vm12 = vcmp.ge.f32.partialorder %v4038_v62, 0.0  ;;  %v2224_v55 = vmul.f32 0.01, %v3973_v33  ;;  %v2225_v43 = vmul.f32 0.01, %v3976_v18 }
 0x464   : > { %v2226_v38 = vmul.f32 0.01, %v3979_v32  ;;  %v2244_v63 = vsel %vm2180_vm0, %v3931_v15, %v2212_v30  ;;  %v2227_v31 = vmul.f32 0.01, %v3982_v48  ;;  %v2228_v25 = vmul.f32 0.01, %v3985_v9 }
 0x465   : > { %v2229_v54 = vmul.f32 0.01, %v3988_v57  ;;  %v2245_v14 = vsel %vm2181_vm1, %v3935_v17, %v2213_v42  ;;  %v2230_v21 = vmul.f32 0.01, %v3991_v44  ;;  %v2231_v29 = vmul.f32 0.01, %v3994_v59 }
 0x466   : > { %v2232_v61 = vmul.f32 0.01, %v3997_v4  ;;  %v2246_v15 = vsel %vm2182_vm3, %v3939_v8, %v2214_v47  ;;  %v2233_v6 = vmul.f32 0.01, %v4000_v10  ;;  %v2234_v37 = vmul.f32 0.01, %v4003_v56 }
 0x467   : > { %v2235_v35 = vmul.f32 0.01, %v4006_v27  ;;  %v2247_v17 = vsel %vm2183_vm4, %v3943_v58, %v2215_v40  ;;  %v2236_v23 = vmul.f32 0.01, %v4009_v39  ;;  %v2237_v52 = vmul.f32 0.01, %v4012_v49 }
 0x468   : > { %v2238_v20 = vmul.f32 0.01, %v4015_v1  ;;  %v2248_v8 = vsel %vm2184_vm10, %v3947_v36, %v2216_v16  ;;  %v2239_v28 = vmul.f32 0.01, %v4028_v45  ;;  %v2240_v2 = vmul.f32 0.01, %v4038_v62 }
 0x469   : > { %v2249_v0 = vsel %vm2185_vm11, %v3951_v13, %v2217_v41  ;;  %vm4354_vm15 = vcmp.ge.f32.partialorder %v3955_v12, 0.0  ;;  %vm4355_vm0 = vcmp.ge.f32.partialorder %v3958_v50, 0.0  ;;  %vm4356_vm1 = vcmp.ge.f32.partialorder %v3961_v60, 0.0 }
 0x46a   : > { %v2250_v58 = vsel %vm4354_vm15, %v3955_v12, %v2218_v34  ;;  %v2251_v30 = vsel %vm4355_vm0, %v3958_v50, %v2219_v5  ;;  %v2252_v36 = vsel %vm4356_vm1, %v3961_v60, %v2220_v22  ;;  %vm4357_vm3 = vcmp.ge.f32.partialorder %v3964_v24, 0.0 }
 0x46b   : > { %v2253_v42 = vsel %vm4357_vm3, %v3964_v24, %v2221_v7  ;;  %vm4358_vm4 = vcmp.ge.f32.partialorder %v3967_v26, 0.0  ;;  %vm4359_vm10 = vcmp.ge.f32.partialorder %v3970_v46, 0.0  ;;  %v2256_v50 = vsel %vm2192_vm9, %v3973_v33, %v2224_v55 }
 0x46c   : > { %v2254_v13 = vsel %vm4358_vm4, %v3967_v26, %v2222_v19  ;;  %v2255_v12 = vsel %vm4359_vm10, %v3970_v46, %v2223_v51  ;;  %v2257_v60 = vsel %vm2193_vm6, %v3976_v18, %v2225_v43  ;;  %vm4360_vm11 = vcmp.ge.f32.partialorder %v3979_v32, 0.0 }
 0x46d   : > { %v2258_v24 = vsel %vm4360_vm11, %v3979_v32, %v2226_v38  ;;  %vm4361_vm15 = vcmp.ge.f32.partialorder %v3982_v48, 0.0  ;;  %vm4362_vm0 = vcmp.ge.f32.partialorder %v3985_v9, 0.0  ;;  %vm4363_vm1 = vcmp.ge.f32.partialorder %v3988_v57, 0.0 }
 0x46e   : > { %v2259_v26 = vsel %vm4361_vm15, %v3982_v48, %v2227_v31  ;;  %v2260_v46 = vsel %vm4362_vm0, %v3985_v9, %v2228_v25  ;;  %v2261_v33 = vsel %vm4363_vm1, %v3988_v57, %v2229_v54  ;;  %v2262_v18 = vsel %vm2198_vm8, %v3991_v44, %v2230_v21 }
 0x46f   : > { %vm4364_vm6 = vcmp.ge.f32.partialorder %v3994_v59, 0.0  ;;  %vm4365_vm9 = vcmp.ge.f32.partialorder %v3997_v4, 0.0  ;;  %vm4366_vm3 = vcmp.ge.f32.partialorder %v4000_v10, 0.0  ;;  %v2266_v57 = vsel %vm2202_vm5, %v4003_v56, %v2234_v37 }
 0x470   : > { %v2263_v32 = vsel %vm4364_vm6, %v3994_v59, %v2231_v29  ;;  %v2264_v48 = vsel %vm4365_vm9, %v3997_v4, %v2232_v61  ;;  %v2265_v9 = vsel %vm4366_vm3, %v4000_v10, %v2233_v6  ;;  %vm4367_vm4 = vcmp.ge.f32.partialorder %v4006_v27, 0.0 }
 0x471   : > { %v2267_v44 = vsel %vm4367_vm4, %v4006_v27, %v2235_v35  ;;  %v2268_v59 = vsel %vm2204_vm7, %v4009_v39, %v2236_v23  ;;  %v2269_v4 = vsel %vm2205_vm2, %v4012_v49, %v2237_v52  ;;  %v2270_v10 = vsel %vm2206_vm13, %v4015_v1, %v2238_v20 }
 0x472   : > { %v2271_v56 = vsel %vm2207_vm14, %v4028_v45, %v2239_v28  ;;  %v2272_v27 = vsel %vm2208_vm12, %v4038_v62, %v2240_v2  ;;  %v2597_v47 = vpack.c.bf16 %v4069_v53, %v4057_v11  ;;  %v2598_v39 = vpack.c.bf16 %v2244_v63, %v2243_v3 }
 0x473   : > { %v2599_v40 = vpack.c.bf16 %v2246_v15, %v2245_v14  ;;  %v2600_v16 = vpack.c.bf16 %v2248_v8, %v2247_v17  ;;  %v2601_v41 = vpack.c.bf16 %v2250_v58, %v2249_v0  ;;  %v2602_v49 = vpack.c.bf16 %v2252_v36, %v2251_v30 }
 0x474   : > { %v2603_v34 = vpack.c.bf16 %v2254_v13, %v2253_v42  ;;  %v2604_v5 = vpack.c.bf16 %v2256_v50, %v2255_v12  ;;  %v2605_v22 = vpack.c.bf16 %v2258_v24, %v2257_v60  ;;  %v2606_v1 = vpack.c.bf16 %v2260_v46, %v2259_v26  ;;  %2401 = vst [vmem:[%s4252_s5 + $0x80] sm:$0xff] %v2597_v47 }
 0x475   : > { %2402 = vst [vmem:[%s4252_s5 + $0x88] sm:$0xff] %v2598_v39  ;;  %v2607_v45 = vpack.c.bf16 %v2262_v18, %v2261_v33  ;;  %v2608_v62 = vpack.c.bf16 %v2264_v48, %v2263_v32  ;;  %v2609_v11 = vpack.c.bf16 %v2266_v57, %v2265_v9  ;;  %v2610_v53 = vpack.c.bf16 %v2268_v59, %v2267_v44 }
 0x476   : > { %2403 = vst [vmem:[%s4252_s5 + $0x90] sm:$0xff] %v2599_v40  ;;  %2404 = vst [vmem:[%s4252_s5 + $0x98] sm:$0xff] %v2600_v16  ;;  %v2611_v7 = vpack.c.bf16 %v2270_v10, %v2269_v4  ;;  %v2612_v19 = vpack.c.bf16 %v2272_v27, %v2271_v56 }
 0x477   : > { %2405 = vst [vmem:[%s4252_s5 + $0xa0] sm:$0xff] %v2601_v41  ;;  %2406 = vst [vmem:[%s4252_s5 + $0xa8] sm:$0xff] %v2602_v49 }
 0x478   : > { %2407 = vst [vmem:[%s4252_s5 + $0xb0] sm:$0xff] %v2603_v34  ;;  %2408 = vst [vmem:[%s4252_s5 + $0xb8] sm:$0xff] %v2604_v5 }
 0x479   : > { %2409 = vst [vmem:[%s4252_s5 + $0xc0] sm:$0xff] %v2605_v22  ;;  %2410 = vst [vmem:[%s4252_s5 + $0xc8] sm:$0xff] %v2606_v1 }
 0x47a   : > { %2411 = vst [vmem:[%s4252_s5 + $0xd0] sm:$0xff] %v2607_v45  ;;  %2412 = vst [vmem:[%s4252_s5 + $0xd8] sm:$0xff] %v2608_v62 }
 0x47b   : > { %2413 = vst [vmem:[%s4252_s5 + $0xe0] sm:$0xff] %v2609_v11  ;;  %2414 = vst [vmem:[%s4252_s5 + $0xe8] sm:$0xff] %v2610_v53 }
 0x47c   : > { %2415 = vst [vmem:[%s4252_s5 + $0xf0] sm:$0xff] %v2611_v7  ;;  %2416 = vst [vmem:[%s4252_s5 + $0xf8] sm:$0xff] %v2612_v19 }
 0x47d PF: > { %p12_p10 = scmp.ge.s32.totalorder %s2721_s22, 4   ;;  %s4368_s18 = smov %s2663_s19 }
 0x47e   : > { %s4369_s19 = smov %s2730_s25  ;;  %s4370_s20 = smov %s2721_s22 }
 0x47f   :  { %14 = sbr.rel (!%p12_p10) target bundleno = 2 (0x2), region = 104 }

// kernel: q_net_forward.6
= control target key start
LH: loop header
LB: loop body
LE: loop exit
PB: predicated region body
PF: predicated region fallthrough
CT: control target
= control target key end

     0   :  { %v1470_v3 = vmov 0   ;;  %vm700_vm0 = vcmask 916480   ;;  %vm1036_vm1 = vcmask 7168   ;;  %s2000_s1 = inlined_call_operand.vmem [shape: bf16[112,2048], index: 1, kind: input, shape index: {}]   ;;  %s2001_s0 = inlined_call_operand.vmem [shape: bf16[8,112], index: 0, kind: input, shape index: {}]   ;;  %s2002_s2 = inlined_call_operand.vmem [shape: f32[8,1], index: 2, kind: input, shape index: {}]   ;;  %s2003_s3 = inlined_call_operand.vmem [shape: f32[8,1], index: 3, kind: input, shape index: {}]   ;;  %s2004_s4 = inlined_call_operand.vmem [shape: f32[8,1], index: 4, kind: input, shape index: {}]   ;;  %s2005_s5 = inlined_call_operand.vmem [shape: bf16[8,2048], index: 5, kind: output, shape index: {}]  }
   0x1   :  { %v22_v0 = vld [vmem:[%s2000_s1] sm:$0xff]  ;;  %v23_v2 = vld [vmem:[%s2000_s1 + $0x8] sm:$0xff]  ;;  %736 = vmatprep.mubr.bf16.mxu0 %v1470_v3  ;;  %777 = vmatprep.mubr.bf16.mxu1 %v1470_v3  ;;  %v24_v55 = vld [vmem:[%s2000_s1 + $0x10] sm:$0xff] }
   0x2   :  { %v30_v1 = vld [vmem:[%s2000_s1 + $0x40] sm:$0xff]  ;;  %v31_v5 = vld [vmem:[%s2000_s1 + $0x48] sm:$0xff]  ;;  %1466 = vset.pattern.permute.xlu0 %v1470_v3  ;;  %1467 = vset.pattern.permute.xlu1 %v1470_v3  ;;  %v32_v56 = vld [vmem:[%s2000_s1 + $0x50] sm:$0xff] }
   0x3   :  { %v1329_v4 = vcombine.high %v22_v0, %v30_v1  ;;  %v1328_v6 = vcombine.low %v22_v0, %v30_v1  ;;  %v38_v7 = vld [vmem:[%s2000_s1 + $0x80] sm:$0xff]  ;;  %v1331_v9 = vcombine.high %v23_v2, %v31_v5  ;;  %v1330_v10 = vcombine.low %v23_v2, %v31_v5  ;;  %v39_v12 = vld [vmem:[%s2000_s1 + $0x88] sm:$0xff]  ;;  %v25_v57 = vld [vmem:[%s2000_s1 + $0x18] sm:$0xff] }
   0x4   :  { %v46_v8 = vld [vmem:[%s2000_s1 + $0xc0] sm:$0xff]  ;;  %v47_v13 = vld [vmem:[%s2000_s1 + $0xc8] sm:$0xff]  ;;  %v33_v58 = vld [vmem:[%s2000_s1 + $0x58] sm:$0xff]  ;;  %v1333_v61 = vcombine.high %v24_v55, %v32_v56  ;;  %v1332_v5 = vcombine.low %v24_v55, %v32_v56 }
   0x5   :  { %v1345_v11 = vcombine.high %v38_v7, %v46_v8  ;;  %v54_v14 = vld [vmem:[%s2000_s1 + $0x100] sm:$0xff]  ;;  %704 = vmatprep.subr.bf16.mxu0 %v1329_v4  ;;  %v1347_v15 = vcombine.high %v39_v12, %v47_v13  ;;  %v55_v17 = vld [vmem:[%s2000_s1 + $0x108] sm:$0xff]  ;;  %745 = vmatprep.subr.bf16.mxu1 %v1331_v9  ;;  %v1344_v19 = vcombine.low %v38_v7, %v46_v8  ;;  %v40_v63 = vld [vmem:[%s2000_s1 + $0x90] sm:$0xff] }
   0x6   :  { %v62_v16 = vld [vmem:[%s2000_s1 + $0x140] sm:$0xff]  ;;  %v63_v18 = vld [vmem:[%s2000_s1 + $0x148] sm:$0xff]  ;;  %705 = vmatpush1.bf16.msra.mxu0 %v1328_v6  ;;  %746 = vmatpush1.bf16.msra.mxu1 %v1330_v10  ;;  %v1346_v20 = vcombine.low %v39_v12, %v47_v13  ;;  %v1335_v62 = vcombine.high %v25_v57, %v33_v58  ;;  %v48_v0 = vld [vmem:[%s2000_s1 + $0xd0] sm:$0xff]  ;;  %v1334_v6 = vcombine.low %v25_v57, %v33_v58 }
   0x7   :  { %706 = vmatprep.subr.bf16.mxu0 %v1345_v11  ;;  %v1361_v21 = vcombine.high %v54_v14, %v62_v16  ;;  %747 = vmatprep.subr.bf16.mxu1 %v1347_v15  ;;  %v1363_v22 = vcombine.high %v55_v17, %v63_v18  ;;  %v70_v23 = vld [vmem:[%s2000_s1 + $0x180] sm:$0xff]  ;;  %v71_v25 = vld [vmem:[%s2000_s1 + $0x188] sm:$0xff]  ;;  %v1360_v27 = vcombine.low %v54_v14, %v62_v16  ;;  %v41_v1 = vld [vmem:[%s2000_s1 + $0x98] sm:$0xff] }
   0x8   :  { %v78_v24 = vld [vmem:[%s2000_s1 + $0x1c0] sm:$0xff]  ;;  %v79_v26 = vld [vmem:[%s2000_s1 + $0x1c8] sm:$0xff]  ;;  %v1362_v28 = vcombine.low %v55_v17, %v63_v18  ;;  %v49_v2 = vld [vmem:[%s2000_s1 + $0xd8] sm:$0xff]  ;;  %v1349_v7 = vcombine.high %v40_v63, %v48_v0  ;;  %v1348_v13 = vcombine.low %v40_v63, %v48_v0 }
   0x9   :  { %v1377_v29 = vcombine.high %v70_v23, %v78_v24  ;;  %v1379_v30 = vcombine.high %v71_v25, %v79_v26  ;;  %v86_v31 = vld [vmem:[%s2000_s1 + $0x200] sm:$0xff]  ;;  %v87_v33 = vld [vmem:[%s2000_s1 + $0x208] sm:$0xff]  ;;  %v1376_v35 = vcombine.low %v70_v23, %v78_v24  ;;  %v1378_v36 = vcombine.low %v71_v25, %v79_v26  ;;  %v56_v9 = vld [vmem:[%s2000_s1 + $0x110] sm:$0xff] }
   0xa   :  { %707 = vmatpush1.bf16.msra.mxu0 %v1344_v19  ;;  %748 = vmatpush1.bf16.msra.mxu1 %v1346_v20  ;;  %v94_v32 = vld [vmem:[%s2000_s1 + $0x240] sm:$0xff]  ;;  %v95_v34 = vld [vmem:[%s2000_s1 + $0x248] sm:$0xff]  ;;  %v1351_v8 = vcombine.high %v41_v1, %v49_v2  ;;  %v64_v10 = vld [vmem:[%s2000_s1 + $0x150] sm:$0xff]  ;;  %v1350_v14 = vcombine.low %v41_v1, %v49_v2 }
   0xb   :  { %708 = vmatprep.subr.bf16.mxu0 %v1361_v21  ;;  %749 = vmatprep.subr.bf16.mxu1 %v1363_v22  ;;  %v1393_v37 = vcombine.high %v86_v31, %v94_v32  ;;  %v1395_v38 = vcombine.high %v87_v33, %v95_v34  ;;  %v102_v39 = vld [vmem:[%s2000_s1 + $0x280] sm:$0xff]  ;;  %v103_v41 = vld [vmem:[%s2000_s1 + $0x288] sm:$0xff]  ;;  %v1392_v43 = vcombine.low %v86_v31, %v94_v32  ;;  %v57_v11 = vld [vmem:[%s2000_s1 + $0x118] sm:$0xff] }
   0xc   :  { %v110_v40 = vld [vmem:[%s2000_s1 + $0x2c0] sm:$0xff]  ;;  %v111_v42 = vld [vmem:[%s2000_s1 + $0x2c8] sm:$0xff]  ;;  %v1394_v44 = vcombine.low %v87_v33, %v95_v34  ;;  %v65_v12 = vld [vmem:[%s2000_s1 + $0x158] sm:$0xff]  ;;  %v1365_v15 = vcombine.high %v56_v9, %v64_v10  ;;  %v1364_v21 = vcombine.low %v56_v9, %v64_v10 }
   0xd   :  { %v1409_v45 = vcombine.high %v102_v39, %v110_v40  ;;  %v1411_v46 = vcombine.high %v103_v41, %v111_v42  ;;  %v118_v47 = vld [vmem:[%s2000_s1 + $0x300] sm:$0xff]  ;;  %v119_v49 = vld [vmem:[%s2000_s1 + $0x308] sm:$0xff]  ;;  %v1408_v51 = vcombine.low %v102_v39, %v110_v40  ;;  %v1410_v52 = vcombine.low %v103_v41, %v111_v42  ;;  %v72_v17 = vld [vmem:[%s2000_s1 + $0x190] sm:$0xff] }
   0xe   :  { %709 = vmatpush1.bf16.msra.mxu0 %v1360_v27  ;;  %750 = vmatpush1.bf16.msra.mxu1 %v1362_v28  ;;  %v126_v48 = vld [vmem:[%s2000_s1 + $0x340] sm:$0xff]  ;;  %v127_v50 = vld [vmem:[%s2000_s1 + $0x348] sm:$0xff]  ;;  %v1367_v16 = vcombine.high %v57_v11, %v65_v12  ;;  %v80_v18 = vld [vmem:[%s2000_s1 + $0x1d0] sm:$0xff]  ;;  %v1366_v22 = vcombine.low %v57_v11, %v65_v12 }
   0xf   :  { %710 = vmatprep.subr.bf16.mxu0 %v1377_v29  ;;  %751 = vmatprep.subr.bf16.mxu1 %v1379_v30  ;;  %v1425_v53 = vcombine.high %v118_v47, %v126_v48  ;;  %v1427_v54 = vcombine.high %v119_v49, %v127_v50  ;;  %v1424_v59 = vcombine.low %v118_v47, %v126_v48  ;;  %v1617_v4 = vld [vmem:[%s2001_s0] sm:$0xf]  ;;  %v73_v19 = vld [vmem:[%s2000_s1 + $0x198] sm:$0xff]  ;;  %v88_v26 = vld [vmem:[%s2000_s1 + $0x210] sm:$0xff] }
  0x10   :  { %v1426_v60 = vcombine.low %v119_v49, %v127_v50  ;;  %v81_v20 = vld [vmem:[%s2000_s1 + $0x1d8] sm:$0xff]  ;;  %v1381_v23 = vcombine.high %v72_v17, %v80_v18  ;;  %v134_v24 = vld [vmem:[%s2002_s2] sm:$0xff]  ;;  %v96_v27 = vld [vmem:[%s2000_s1 + $0x250] sm:$0xff]  ;;  %v1380_v30 = vcombine.low %v72_v17, %v80_v18 }
  0x11   :  { %v1383_v25 = vcombine.high %v73_v19, %v81_v20  ;;  %137 = vperm.xlu0 %1466, %v134_v24   ;;  %v89_v28 = vld [vmem:[%s2000_s1 + $0x218] sm:$0xff]  ;;  %v1382_v31 = vcombine.low %v73_v19, %v81_v20  ;;  %v1397_v32 = vcombine.high %v88_v26, %v96_v27  ;;  %v104_v34 = vld [vmem:[%s2000_s1 + $0x290] sm:$0xff]  ;;  %v26_v50 = vld [vmem:[%s2000_s1 + $0x20] sm:$0xff] }
  0x12   :  { %711 = vmatpush1.bf16.msra.mxu0 %v1376_v35  ;;  %752 = vmatpush1.bf16.msra.mxu1 %v1378_v36  ;;  %v97_v29 = vld [vmem:[%s2000_s1 + $0x258] sm:$0xff]  ;;  %v112_v35 = vld [vmem:[%s2000_s1 + $0x2d0] sm:$0xff]  ;;  %v42_v58 = vld [vmem:[%s2000_s1 + $0xa0] sm:$0xff] }
  0x13   :  { %712 = vmatprep.subr.bf16.mxu0 %v1393_v37  ;;  %753 = vmatprep.subr.bf16.mxu1 %v1395_v38  ;;  %v1399_v33 = vcombine.high %v89_v28, %v97_v29  ;;  %v105_v36 = vld [vmem:[%s2000_s1 + $0x298] sm:$0xff]  ;;  %v1396_v38 = vcombine.low %v88_v26, %v96_v27  ;;  %v1398_v39 = vcombine.low %v89_v28, %v97_v29  ;;  %v120_v42 = vld [vmem:[%s2000_s1 + $0x310] sm:$0xff]  ;;  %v58_v2 = vld [vmem:[%s2000_s1 + $0x120] sm:$0xff] }
  0x14   :  { %v113_v37 = vld [vmem:[%s2000_s1 + $0x2d8] sm:$0xff]  ;;  %v1413_v40 = vcombine.high %v104_v34, %v112_v35  ;;  %v74_v12 = vld [vmem:[%s2000_s1 + $0x1a0] sm:$0xff] }
  0x15   :  { %v1415_v41 = vcombine.high %v105_v36, %v113_v37  ;;  %v1414_v47 = vcombine.low %v105_v36, %v113_v37  ;;  %v90_v20 = vld [vmem:[%s2000_s1 + $0x220] sm:$0xff] }
  0x16   :  { %713 = vmatpush1.bf16.msra.mxu0 %v1392_v43  ;;  %754 = vmatpush1.bf16.msra.mxu1 %v1394_v44  ;;  %v128_v43 = vld [vmem:[%s2000_s1 + $0x350] sm:$0xff]  ;;  %v121_v44 = vld [vmem:[%s2000_s1 + $0x318] sm:$0xff]  ;;  %v106_v28 = vld [vmem:[%s2000_s1 + $0x2a0] sm:$0xff] }
  0x17   :  { %714 = vmatprep.subr.bf16.mxu0 %v1409_v45  ;;  %755 = vmatprep.subr.bf16.mxu1 %v1411_v46  ;;  %v129_v45 = vld [vmem:[%s2000_s1 + $0x358] sm:$0xff]  ;;  %v1412_v46 = vcombine.low %v104_v34, %v112_v35  ;;  %v1429_v48 = vcombine.high %v120_v42, %v128_v43  ;;  %v114_v29 = vld [vmem:[%s2000_s1 + $0x2e0] sm:$0xff] }
  0x18   :  { %v1431_v49 = vcombine.high %v121_v44, %v129_v45  ;;  %v1430_v55 = vcombine.low %v121_v44, %v129_v45  ;;  %v1417_v34 = vcombine.high %v106_v28, %v114_v29  ;;  %v122_v36 = vld [vmem:[%s2000_s1 + $0x320] sm:$0xff]  ;;  %v28_v44 = vld [vmem:[%s2000_s1 + $0x30] sm:$0xff] }
  0x19   :  { %v130_v37 = vld [vmem:[%s2000_s1 + $0x360] sm:$0xff]  ;;  %v36_v45 = vld [vmem:[%s2000_s1 + $0x70] sm:$0xff] }
  0x1a   :  { %715 = vmatpush1.bf16.msra.mxu0 %v1408_v51  ;;  %756 = vmatpush1.bf16.msra.mxu1 %v1410_v52  ;;  %v34_v51 = vld [vmem:[%s2000_s1 + $0x60] sm:$0xff]  ;;  %v27_v52 = vld [vmem:[%s2000_s1 + $0x28] sm:$0xff] }
  0x1b   :  { %716 = vmatprep.subr.bf16.mxu0 %v1425_v53  ;;  %757 = vmatprep.subr.bf16.mxu1 %v1427_v54  ;;  %v35_v53 = vld [vmem:[%s2000_s1 + $0x68] sm:$0xff]  ;;  %v1428_v54 = vcombine.low %v120_v42, %v128_v43  ;;  %v1337_v56 = vcombine.high %v26_v50, %v34_v51  ;;  %v1433_v42 = vcombine.high %v122_v36, %v130_v37 }
  0x1c   :  { %v1339_v57 = vcombine.high %v27_v52, %v35_v53  ;;  %v1338_v63 = vcombine.low %v27_v52, %v35_v53  ;;  %v44_v52 = vld [vmem:[%s2000_s1 + $0xb0] sm:$0xff] }
  0x1d   :  { %v52_v53 = vld [vmem:[%s2000_s1 + $0xf0] sm:$0xff] }
  0x1e   :  { %717 = vmatpush1.bf16.msra.mxu0 %v1424_v59  ;;  %758 = vmatpush1.bf16.msra.mxu1 %v1426_v60  ;;  %v50_v59 = vld [vmem:[%s2000_s1 + $0xe0] sm:$0xff]  ;;  %v43_v60 = vld [vmem:[%s2000_s1 + $0xa8] sm:$0xff] }
  0x1f   :  { %786 = vmatprep.subr.bf16.mxu0 %v1333_v61  ;;  %827 = vmatprep.subr.bf16.mxu1 %v1335_v62  ;;  %v51_v61 = vld [vmem:[%s2000_s1 + $0xe8] sm:$0xff]  ;;  %v1336_v62 = vcombine.low %v26_v50, %v34_v51  ;;  %v1353_v0 = vcombine.high %v42_v58, %v50_v59  ;;  %v1341_v50 = vcombine.high %v28_v44, %v36_v45 }
  0x20   :  { %v1355_v1 = vcombine.high %v43_v60, %v51_v61  ;;  %v1354_v9 = vcombine.low %v43_v60, %v51_v61  ;;  %v60_v60 = vld [vmem:[%s2000_s1 + $0x130] sm:$0xff] }
  0x21   :  { %1440 = vmatmul.mubr.msk.bf16.vlgmr.msra.gmra.mrb[0].mxu0 %vm700_vm0, %v1617_v4  ;;  %1441 = vmatmul.mubr.msk.bf16.vlgmr.msra.gmra.mrb[0].mxu1 %vm700_vm0, %v1617_v4  ;;  %v68_v61 = vld [vmem:[%s2000_s1 + $0x170] sm:$0xff] }
  0x22   :  { %787 = vmatpush1.bf16.msra.mxu0 %v1332_v5  ;;  %828 = vmatpush1.bf16.msra.mxu1 %v1334_v6  ;;  %v66_v5 = vld [vmem:[%s2000_s1 + $0x160] sm:$0xff]  ;;  %v59_v6 = vld [vmem:[%s2000_s1 + $0x128] sm:$0xff] }
  0x23   :  { %788 = vmatprep.subr.bf16.mxu0 %v1349_v7  ;;  %829 = vmatprep.subr.bf16.mxu1 %v1351_v8  ;;  %v67_v7 = vld [vmem:[%s2000_s1 + $0x168] sm:$0xff]  ;;  %v1352_v8 = vcombine.low %v42_v58, %v50_v59  ;;  %v1369_v10 = vcombine.high %v58_v2, %v66_v5  ;;  %v1357_v58 = vcombine.high %v44_v52, %v52_v53 }
  0x24   :  { %818 = vmatprep.mubr.bf16.mxu0 %v1470_v3  ;;  %859 = vmatprep.mubr.bf16.mxu1 %v1470_v3  ;;  %v1371_v11 = vcombine.high %v59_v6, %v67_v7  ;;  %v1370_v17 = vcombine.low %v59_v6, %v67_v7  ;;  %v76_v6 = vld [vmem:[%s2000_s1 + $0x1b0] sm:$0xff] }
  0x25   :  { %v84_v7 = vld [vmem:[%s2000_s1 + $0x1f0] sm:$0xff] }
  0x26   :  { %789 = vmatpush1.bf16.msra.mxu0 %v1348_v13  ;;  %830 = vmatpush1.bf16.msra.mxu1 %v1350_v14  ;;  %v82_v13 = vld [vmem:[%s2000_s1 + $0x1e0] sm:$0xff]  ;;  %v75_v14 = vld [vmem:[%s2000_s1 + $0x1a8] sm:$0xff] }
  0x27   :  { %790 = vmatprep.subr.bf16.mxu0 %v1365_v15  ;;  %831 = vmatprep.subr.bf16.mxu1 %v1367_v16  ;;  %v83_v15 = vld [vmem:[%s2000_s1 + $0x1e8] sm:$0xff]  ;;  %v1368_v16 = vcombine.low %v58_v2, %v66_v5  ;;  %v1385_v18 = vcombine.high %v74_v12, %v82_v13  ;;  %v1384_v24 = vcombine.low %v74_v12, %v82_v13 }
  0x28   :  { %v1387_v19 = vcombine.high %v75_v14, %v83_v15  ;;  %v1373_v2 = vcombine.high %v60_v60, %v68_v61  ;;  %v1389_v12 = vcombine.high %v76_v6, %v84_v7 }
  0x2a   :  { %791 = vmatpush1.bf16.msra.mxu0 %v1364_v21  ;;  %832 = vmatpush1.bf16.msra.mxu1 %v1366_v22  ;;  %v98_v21 = vld [vmem:[%s2000_s1 + $0x260] sm:$0xff]  ;;  %v91_v22 = vld [vmem:[%s2000_s1 + $0x228] sm:$0xff] }
  0x2b   :  { %792 = vmatprep.subr.bf16.mxu0 %v1381_v23  ;;  %833 = vmatprep.subr.bf16.mxu1 %v1383_v25  ;;  %v99_v23 = vld [vmem:[%s2000_s1 + $0x268] sm:$0xff]  ;;  %v1386_v25 = vcombine.low %v75_v14, %v83_v15  ;;  %v1401_v26 = vcombine.high %v90_v20, %v98_v21  ;;  %v92_v14 = vld [vmem:[%s2000_s1 + $0x230] sm:$0xff] }
  0x2c   :  { %v1403_v27 = vcombine.high %v91_v22, %v99_v23  ;;  %v100_v15 = vld [vmem:[%s2000_s1 + $0x270] sm:$0xff] }
  0x2e   :  { %793 = vmatpush1.bf16.msra.mxu0 %v1380_v30  ;;  %834 = vmatpush1.bf16.msra.mxu1 %v1382_v31  ;;  %v107_v30 = vld [vmem:[%s2000_s1 + $0x2a8] sm:$0xff] }
  0x2f   :  { %794 = vmatprep.subr.bf16.mxu0 %v1397_v32  ;;  %835 = vmatprep.subr.bf16.mxu1 %v1399_v33  ;;  %v115_v31 = vld [vmem:[%s2000_s1 + $0x2e8] sm:$0xff]  ;;  %v1400_v32 = vcombine.low %v90_v20, %v98_v21  ;;  %v1402_v33 = vcombine.low %v91_v22, %v99_v23  ;;  %v108_v21 = vld [vmem:[%s2000_s1 + $0x2b0] sm:$0xff]  ;;  %v109_v23 = vld [vmem:[%s2000_s1 + $0x2b8] sm:$0xff] }
  0x30   :  { %v1419_v35 = vcombine.high %v107_v30, %v115_v31  ;;  %v116_v22 = vld [vmem:[%s2000_s1 + $0x2f0] sm:$0xff] }
  0x32   :  { %795 = vmatpush1.bf16.msra.mxu0 %v1396_v38  ;;  %836 = vmatpush1.bf16.msra.mxu1 %v1398_v39  ;;  %v123_v38 = vld [vmem:[%s2000_s1 + $0x328] sm:$0xff] }
  0x33   :  { %796 = vmatprep.subr.bf16.mxu0 %v1413_v40  ;;  %837 = vmatprep.subr.bf16.mxu1 %v1415_v41  ;;  %v131_v39 = vld [vmem:[%s2000_s1 + $0x368] sm:$0xff]  ;;  %v1416_v40 = vcombine.low %v106_v28, %v114_v29  ;;  %v1418_v41 = vcombine.low %v107_v30, %v115_v31  ;;  %v124_v29 = vld [vmem:[%s2000_s1 + $0x330] sm:$0xff]  ;;  %v125_v31 = vld [vmem:[%s2000_s1 + $0x338] sm:$0xff] }
  0x34   :  { %v1435_v43 = vcombine.high %v123_v38, %v131_v39  ;;  %v132_v30 = vld [vmem:[%s2000_s1 + $0x370] sm:$0xff] }
  0x36   :  { %797 = vmatpush1.bf16.msra.mxu0 %v1412_v46  ;;  %838 = vmatpush1.bf16.msra.mxu1 %v1414_v47  ;;  %v29_v46 = vld [vmem:[%s2000_s1 + $0x38] sm:$0xff] }
  0x37   :  { %798 = vmatprep.subr.bf16.mxu0 %v1429_v48  ;;  %839 = vmatprep.subr.bf16.mxu1 %v1431_v49  ;;  %v37_v47 = vld [vmem:[%s2000_s1 + $0x78] sm:$0xff]  ;;  %v1432_v48 = vcombine.low %v122_v36, %v130_v37  ;;  %v1434_v49 = vcombine.low %v123_v38, %v131_v39  ;;  %v1436_v37 = vcombine.low %v124_v29, %v132_v30  ;;  %v1471_v39 = vmov 0.0  }
  0x38   :  { %v1343_v51 = vcombine.high %v29_v46, %v37_v47  ;;  %1037 = vst.msk [vmem:[#allocation3] sm:$0xff] %vm1036_vm1, %v1471_v39 }
  0x3a   :  { %799 = vmatpush1.bf16.msra.mxu0 %v1428_v54  ;;  %840 = vmatpush1.bf16.msra.mxu1 %v1430_v55  ;;  %v45_v54 = vld [vmem:[%s2000_s1 + $0xb8] sm:$0xff] }
  0x3b   :  { %868 = vmatprep.subr.bf16.mxu0 %v1337_v56  ;;  %909 = vmatprep.subr.bf16.mxu1 %v1339_v57  ;;  %v53_v55 = vld [vmem:[%s2000_s1 + $0xf8] sm:$0xff]  ;;  %v1340_v56 = vcombine.low %v28_v44, %v36_v45  ;;  %v1342_v57 = vcombine.low %v29_v46, %v37_v47 }
  0x3c   :  { %v1359_v59 = vcombine.high %v45_v54, %v53_v55 }
  0x3d   :  { %1442 = vmatmul.mubr.msk.bf16.vlgmr.msra.gmra.mrb[4].mxu0 %vm700_vm0, %v1617_v4  ;;  %1443 = vmatmul.mubr.msk.bf16.vlgmr.msra.gmra.mrb[4].mxu1 %vm700_vm0, %v1617_v4 }
  0x3e   :  { %869 = vmatpush1.bf16.msra.mxu0 %v1336_v62  ;;  %910 = vmatpush1.bf16.msra.mxu1 %v1338_v63  ;;  %v61_v62 = vld [vmem:[%s2000_s1 + $0x138] sm:$0xff] }
  0x3f   :  { %870 = vmatprep.subr.bf16.mxu0 %v1353_v0  ;;  %911 = vmatprep.subr.bf16.mxu1 %v1355_v1  ;;  %v69_v63 = vld [vmem:[%s2000_s1 + $0x178] sm:$0xff]  ;;  %v1356_v0 = vcombine.low %v44_v52, %v52_v53  ;;  %v1358_v1 = vcombine.low %v45_v54, %v53_v55 }
  0x40   :  { %900 = vmatprep.mubr.bf16.mxu0 %v1470_v3  ;;  %941 = vmatprep.mubr.bf16.mxu1 %v1470_v3  ;;  %v1375_v5 = vcombine.high %v61_v62, %v69_v63 }
  0x42   :  { %871 = vmatpush1.bf16.msra.mxu0 %v1352_v8  ;;  %912 = vmatpush1.bf16.msra.mxu1 %v1354_v9  ;;  %v77_v8 = vld [vmem:[%s2000_s1 + $0x1b8] sm:$0xff] }
  0x43   :  { %872 = vmatprep.subr.bf16.mxu0 %v1369_v10  ;;  %913 = vmatprep.subr.bf16.mxu1 %v1371_v11  ;;  %v85_v9 = vld [vmem:[%s2000_s1 + $0x1f8] sm:$0xff]  ;;  %v1372_v10 = vcombine.low %v60_v60, %v68_v61  ;;  %v1374_v11 = vcombine.low %v61_v62, %v69_v63 }
  0x44   :  { %v1391_v13 = vcombine.high %v77_v8, %v85_v9 }
  0x46   :  { %873 = vmatpush1.bf16.msra.mxu0 %v1368_v16  ;;  %914 = vmatpush1.bf16.msra.mxu1 %v1370_v17  ;;  %v101_v16 = vld [vmem:[%s2000_s1 + $0x278] sm:$0xff]  ;;  %v1388_v17 = vcombine.low %v76_v6, %v84_v7 }
  0x47   :  { %874 = vmatprep.subr.bf16.mxu0 %v1385_v18  ;;  %915 = vmatprep.subr.bf16.mxu1 %v1387_v19  ;;  %v1390_v18 = vcombine.low %v77_v8, %v85_v9  ;;  %v1405_v19 = vcombine.high %v92_v14, %v100_v15 }
  0x4a   :  { %875 = vmatpush1.bf16.msra.mxu0 %v1384_v24  ;;  %916 = vmatpush1.bf16.msra.mxu1 %v1386_v25  ;;  %v117_v24 = vld [vmem:[%s2000_s1 + $0x2f8] sm:$0xff]  ;;  %v1404_v25 = vcombine.low %v92_v14, %v100_v15 }
  0x4b   :  { %876 = vmatprep.subr.bf16.mxu0 %v1401_v26  ;;  %917 = vmatprep.subr.bf16.mxu1 %v1403_v27  ;;  %v1421_v27 = vcombine.high %v108_v21, %v116_v22  ;;  %v1423_v28 = vcombine.high %v109_v23, %v117_v24 }
  0x4e   :  { %877 = vmatpush1.bf16.msra.mxu0 %v1400_v32  ;;  %918 = vmatpush1.bf16.msra.mxu1 %v1402_v33  ;;  %v133_v32 = vld [vmem:[%s2000_s1 + $0x378] sm:$0xff]  ;;  %v1420_v33 = vcombine.low %v108_v21, %v116_v22 }
  0x4f   :  { %878 = vmatprep.subr.bf16.mxu0 %v1417_v34  ;;  %919 = vmatprep.subr.bf16.mxu1 %v1419_v35  ;;  %v1422_v34 = vcombine.low %v109_v23, %v117_v24  ;;  %v1437_v35 = vcombine.high %v124_v29, %v132_v30  ;;  %v1439_v36 = vcombine.high %v125_v31, %v133_v32 }
  0x50   :  { %v1438_v38 = vcombine.low %v125_v31, %v133_v32 }
  0x52   :  { %879 = vmatpush1.bf16.msra.mxu0 %v1416_v40  ;;  %920 = vmatpush1.bf16.msra.mxu1 %v1418_v41 }
  0x53   :  { %880 = vmatprep.subr.bf16.mxu0 %v1433_v42  ;;  %921 = vmatprep.subr.bf16.mxu1 %v1435_v43 }
  0x56   :  { %881 = vmatpush1.bf16.msra.mxu0 %v1432_v48  ;;  %922 = vmatpush1.bf16.msra.mxu1 %v1434_v49 }
  0x57   :  { %950 = vmatprep.subr.bf16.mxu0 %v1341_v50  ;;  %991 = vmatprep.subr.bf16.mxu1 %v1343_v51 }
  0x59   :  { %1444 = vmatmul.mubr.msk.bf16.vlgmr.msra.gmra.mrb[8].mxu0 %vm700_vm0, %v1617_v4  ;;  %1445 = vmatmul.mubr.msk.bf16.vlgmr.msra.gmra.mrb[8].mxu1 %vm700_vm0, %v1617_v4 }
  0x5a   :  { %951 = vmatpush1.bf16.msra.mxu0 %v1340_v56  ;;  %992 = vmatpush1.bf16.msra.mxu1 %v1342_v57 }
  0x5b   :  { %952 = vmatprep.subr.bf16.mxu0 %v1357_v58  ;;  %993 = vmatprep.subr.bf16.mxu1 %v1359_v59 }
  0x5c   :  { %982 = vmatprep.mubr.bf16.mxu0 %v1470_v3  ;;  %1023 = vmatprep.mubr.bf16.mxu1 %v1470_v3  ;;  %v93_v3 = vld [vmem:[%s2000_s1 + $0x238] sm:$0xff] }
  0x5d   :  { %v1407_v20 = vcombine.high %v93_v3, %v101_v16  ;;  %v1406_v26 = vcombine.low %v93_v3, %v101_v16 }
  0x5e   :  { %953 = vmatpush1.bf16.msra.mxu0 %v1356_v0  ;;  %994 = vmatpush1.bf16.msra.mxu1 %v1358_v1 }
  0x5f   :  { %954 = vmatprep.subr.bf16.mxu0 %v1373_v2  ;;  %995 = vmatprep.subr.bf16.mxu1 %v1375_v5 }
  0x62   :  { %955 = vmatpush1.bf16.msra.mxu0 %v1372_v10  ;;  %996 = vmatpush1.bf16.msra.mxu1 %v1374_v11 }
  0x63   :  { %956 = vmatprep.subr.bf16.mxu0 %v1389_v12  ;;  %997 = vmatprep.subr.bf16.mxu1 %v1391_v13 }
  0x66   :  { %957 = vmatpush1.bf16.msra.mxu0 %v1388_v17  ;;  %998 = vmatpush1.bf16.msra.mxu1 %v1390_v18 }
  0x67   :  { %958 = vmatprep.subr.bf16.mxu0 %v1405_v19  ;;  %999 = vmatprep.subr.bf16.mxu1 %v1407_v20 }
  0x6a   :  { %959 = vmatpush1.bf16.msra.mxu0 %v1404_v25  ;;  %1000 = vmatpush1.bf16.msra.mxu1 %v1406_v26 }
  0x6b   :  { %960 = vmatprep.subr.bf16.mxu0 %v1421_v27  ;;  %1001 = vmatprep.subr.bf16.mxu1 %v1423_v28 }
  0x6e   :  { %961 = vmatpush1.bf16.msra.mxu0 %v1420_v33  ;;  %1002 = vmatpush1.bf16.msra.mxu1 %v1422_v34 }
  0x6f   :  { %962 = vmatprep.subr.bf16.mxu0 %v1437_v35  ;;  %1003 = vmatprep.subr.bf16.mxu1 %v1439_v36 }
  0x72   :  { %963 = vmatpush1.bf16.msra.mxu0 %v1436_v37  ;;  %1004 = vmatpush1.bf16.msra.mxu1 %v1438_v38 }
  0x75   :  { %1446 = vmatmul.mubr.msk.bf16.vlgmr.msra.gmra.mrb[12].mxu0 %vm700_vm0, %v1617_v4  ;;  %1447 = vmatmul.mubr.msk.bf16.vlgmr.msra.gmra.mrb[12].mxu1 %vm700_vm0, %v1617_v4 }
  0x90   :  { %v138_v55 = vpop.permute.xlu0 %137 }
  0xf4   :  { %v738_v40 = vpop.f32.mrb[0].mxu0  ;;  %v779_v42 = vpop.f32.mrb[0].mxu1 }
  0xf5   :  { %v740_v41 = vpop.f32.mrb[1].mxu0  ;;  %v781_v44 = vpop.f32.mrb[1].mxu1  ;;  %v1873_v56 = vadd.f32 %v738_v40, %v138_v55  ;;  %v1879_v59 = vadd.f32 %v779_v42, %v138_v55  ;;  %v1038_v40 = vld [vmem:[#allocation3] sm:$0xff] }
  0xf6   :  { %v742_v43 = vpop.f32.mrb[2].mxu0  ;;  %v783_v46 = vpop.f32.mrb[2].mxu1  ;;  %v1875_v57 = vadd.f32 %v740_v41, %v138_v55  ;;  %v1882_v61 = vadd.f32 %v781_v44, %v138_v55 }
  0xf7   :  { %v743_v45 = vpop.f32.mrb[3].mxu0  ;;  %v784_v47 = vpop.f32.mrb[3].mxu1 }
  0xf8   :  { %v1039_v58 = vadd.f32 %v1875_v57, %v1873_v56 }
  0xfa   :  { %v1040_v60 = vadd.f32 %v1039_v58, %v1879_v59 }
  0xfc   :  { %v1041_v0 = vadd.f32 %v1040_v60, %v1882_v61 }
 0x110   :  { %v820_v48 = vpop.f32.mrb[4].mxu0  ;;  %v861_v50 = vpop.f32.mrb[4].mxu1 }
 0x111   :  { %v822_v49 = vpop.f32.mrb[5].mxu0  ;;  %v863_v52 = vpop.f32.mrb[5].mxu1  ;;  %v1884_v62 = vadd.f32 %v820_v48, %v138_v55  ;;  %v1891_v13 = vadd.f32 %v861_v50, %v138_v55 }
 0x112   :  { %v824_v51 = vpop.f32.mrb[6].mxu0  ;;  %v865_v54 = vpop.f32.mrb[6].mxu1  ;;  %v1888_v8 = vadd.f32 %v822_v49, %v138_v55  ;;  %v1894_v15 = vadd.f32 %v863_v52, %v138_v55 }
 0x113   :  { %v825_v53 = vpop.f32.mrb[7].mxu0  ;;  %v866_v4 = vpop.f32.mrb[7].mxu1  ;;  %v1042_v7 = vadd.f32 %v1041_v0, %v1884_v62 }
 0x115   :  { %v1043_v12 = vadd.f32 %v1042_v7, %v1888_v8 }
 0x117   :  { %v1044_v14 = vadd.f32 %v1043_v12, %v1891_v13 }
 0x119   :  { %v1045_v16 = vadd.f32 %v1044_v14, %v1894_v15 }
 0x12c   :  { %v902_v63 = vpop.f32.mrb[8].mxu0  ;;  %v943_v2 = vpop.f32.mrb[8].mxu1 }
 0x12d   :  { %v904_v1 = vpop.f32.mrb[9].mxu0  ;;  %v945_v6 = vpop.f32.mrb[9].mxu1  ;;  %v1896_v3 = vadd.f32 %v902_v63, %v138_v55  ;;  %v1903_v20 = vadd.f32 %v943_v2, %v138_v55 }
 0x12e   :  { %v906_v5 = vpop.f32.mrb[10].mxu0  ;;  %v947_v10 = vpop.f32.mrb[10].mxu1  ;;  %v1900_v18 = vadd.f32 %v904_v1, %v138_v55  ;;  %v1906_v22 = vadd.f32 %v945_v6, %v138_v55 }
 0x12f   :  { %v907_v9 = vpop.f32.mrb[11].mxu0  ;;  %v948_v11 = vpop.f32.mrb[11].mxu1  ;;  %v1046_v17 = vadd.f32 %v1045_v16, %v1896_v3 }
 0x131   :  { %v1047_v19 = vadd.f32 %v1046_v17, %v1900_v18 }
 0x133   :  { %v1048_v21 = vadd.f32 %v1047_v19, %v1903_v20 }
 0x135   :  { %v1049_v24 = vadd.f32 %v1048_v21, %v1906_v22 }
 0x148   :  { %v984_v23 = vpop.f32.mrb[12].mxu0  ;;  %v1025_v26 = vpop.f32.mrb[12].mxu1 }
 0x149   :  { %v1909_v25 = vadd.f32 %v984_v23, %v138_v55  ;;  %v986_v27 = vpop.f32.mrb[13].mxu0  ;;  %v1027_v29 = vpop.f32.mrb[13].mxu1  ;;  %v1914_v35 = vadd.f32 %v1025_v26, %v138_v55 }
 0x14a   :  { %v1911_v28 = vadd.f32 %v986_v27, %v138_v55  ;;  %v988_v30 = vpop.f32.mrb[14].mxu0  ;;  %v1029_v33 = vpop.f32.mrb[14].mxu1  ;;  %v1917_v37 = vadd.f32 %v1027_v29, %v138_v55 }
 0x14b   :  { %v1050_v31 = vadd.f32 %v1049_v24, %v1909_v25  ;;  %v989_v32 = vpop.f32.mrb[15].mxu0  ;;  %v1030_v34 = vpop.f32.mrb[15].mxu1 }
 0x14d   :  { %v1051_v36 = vadd.f32 %v1050_v31, %v1911_v28 }
 0x14f   :  { %v1052_v38 = vadd.f32 %v1051_v36, %v1914_v35 }
 0x151   :  { %v1053_v39 = vadd.f32 %v1052_v38, %v1917_v37 }
 0x153   :  { %1054 = vadd.xlane.f32.xlu0 %v1053_v39 }
 0x1e0   :  { %v1055_v41 = vpop.xlane.xlu0 %1054 }
 0x1e1   :  { %v1056_v42 = vadd.f32 %v1055_v41, %v1038_v40 }
 0x1e3   :  { %1058 = vst.msk [vmem:[#allocation3] sm:$0xff] %vm1036_vm1, %v1056_v42 }
 0x1ea   :  { %v1081_v43 = vld [vmem:[#allocation3] sm:$0xff] }
 0x1eb   :  { %v1082_v44 = vmul.f32 0.00048828125, %v1081_v43 }
 0x1ed   :  { %1101 = vperm.xlu1 %1467, %v1082_v44  }
 0x26c   :  { %v1102_v45 = vpop.permute.xlu1 %1101 }
 0x26d   :  { %v1104_v46 = vsub.f32 %v1873_v56, %v1102_v45  ;;  %v1105_v47 = vsub.f32 %v1875_v57, %v1102_v45  ;;  %v1106_v48 = vsub.f32 %v1879_v59, %v1102_v45  ;;  %v1107_v51 = vsub.f32 %v1882_v61, %v1102_v45 }
 0x26e   :  { %v1108_v52 = vsub.f32 %v1884_v62, %v1102_v45  ;;  %v1109_v4 = vsub.f32 %v1888_v8, %v1102_v45  ;;  %v1110_v60 = vsub.f32 %v1891_v13, %v1102_v45  ;;  %v1111_v1 = vsub.f32 %v1894_v15, %v1102_v45 }
 0x26f   :  { %v1120_v49 = vmul.f32 %v1104_v46, %v1104_v46  ;;  %v1121_v50 = vmul.f32 %v1105_v47, %v1105_v47  ;;  %v1122_v53 = vmul.f32 %v1106_v48, %v1106_v48  ;;  %v1123_v55 = vmul.f32 %v1107_v51, %v1107_v51 }
 0x270   :  { %v1124_v63 = vmul.f32 %v1108_v52, %v1108_v52  ;;  %v1125_v2 = vmul.f32 %v1109_v4, %v1109_v4  ;;  %v1112_v6 = vsub.f32 %v1896_v3, %v1102_v45  ;;  %v1126_v7 = vmul.f32 %v1110_v60, %v1110_v60 }
 0x271   :  { %v1136_v54 = vadd.f32 %v1121_v50, %v1120_v49  ;;  %v1113_v10 = vsub.f32 %v1900_v18, %v1102_v45  ;;  %v1127_v11 = vmul.f32 %v1111_v1, %v1111_v1  ;;  %v1114_v14 = vsub.f32 %v1903_v20, %v1102_v45  ;;  %v1157_v50 = vld [vmem:[%s2003_s3] sm:$0xff] }
 0x272   :  { %v1128_v16 = vmul.f32 %v1112_v6, %v1112_v6  ;;  %v1115_v19 = vsub.f32 %v1906_v22, %v1102_v45  ;;  %v1116_v24 = vsub.f32 %v1909_v25, %v1102_v45  ;;  %v1117_v29 = vsub.f32 %v1911_v28, %v1102_v45 }
 0x273   :  { %v1137_v58 = vadd.f32 %v1136_v54, %v1122_v53  ;;  %v1129_v21 = vmul.f32 %v1113_v10, %v1113_v10  ;;  %v1130_v26 = vmul.f32 %v1114_v14, %v1114_v14  ;;  %v1118_v32 = vsub.f32 %v1914_v35, %v1102_v45 }
 0x274   :  { %v1131_v30 = vmul.f32 %v1115_v19, %v1115_v19  ;;  %v1132_v33 = vmul.f32 %v1116_v24, %v1116_v24  ;;  %v1119_v36 = vsub.f32 %v1917_v37, %v1102_v45  ;;  %v1133_v38 = vmul.f32 %v1117_v29, %v1117_v29  ;;  %v1159_v45 = vld [vmem:[%s2004_s4] sm:$0xff] }
 0x275   :  { %v1138_v0 = vadd.f32 %v1137_v58, %v1123_v55  ;;  %v1134_v40 = vmul.f32 %v1118_v32, %v1118_v32 }
 0x276   :  { %v1135_v42 = vmul.f32 %v1119_v36, %v1119_v36 }
 0x277   :  { %v1139_v5 = vadd.f32 %v1138_v0, %v1124_v63 }
 0x279   :  { %v1140_v9 = vadd.f32 %v1139_v5, %v1125_v2 }
 0x27b   :  { %v1141_v12 = vadd.f32 %v1140_v9, %v1126_v7 }
 0x27d   :  { %v1142_v17 = vadd.f32 %v1141_v12, %v1127_v11 }
 0x27f   :  { %v1143_v23 = vadd.f32 %v1142_v17, %v1128_v16 }
 0x281   :  { %v1144_v27 = vadd.f32 %v1143_v23, %v1129_v21 }
 0x283   :  { %v1145_v31 = vadd.f32 %v1144_v27, %v1130_v26 }
 0x285   :  { %v1146_v34 = vadd.f32 %v1145_v31, %v1131_v30 }
 0x287   :  { %v1147_v39 = vadd.f32 %v1146_v34, %v1132_v33 }
 0x289   :  { %v1148_v41 = vadd.f32 %v1147_v39, %v1133_v38 }
 0x28b   :  { %v1149_v43 = vadd.f32 %v1148_v41, %v1134_v40 }
 0x28d   :  { %v1150_v46 = vadd.f32 %v1149_v43, %v1135_v42 }
 0x28f   :  { %1151 = vadd.xlane.f32.xlu1 %v1150_v46 }
 0x31c   :  { %v1152_v47 = vpop.xlane.xlu1 %1151 }
 0x31d   :  { %v1154_v48 = vmul.f32 0.00048828125, %v1152_v47 }
 0x31f   :  { %v1155_v49 = vadd.f32 1e-05, %v1154_v48 }
 0x321   :  { %1468 = vrsqrt.f32 %v1155_v49 }
 0x32b   :  { %v1469_v51 = vpop.eup %1468 }
 0x32c   :  { %v1158_v52 = vmul.f32 %v1469_v51, %v1157_v50 }
 0x32e   :  { %1164 = vperm.xlu0 %1466, %v1158_v52   ;;  %v1160_v53 = vmul.f32 %v1158_v52, %v1082_v44 }
 0x330   :  { %v1161_v54 = vsub.f32 %v1159_v45, %v1160_v53 }
 0x332   :  { %1185 = vperm.xlu1 %1467, %v1161_v54  }
 0x3ad   :  { %v1165_v4 = vpop.permute.xlu0 %1164 }
 0x3ae   :  { %v1167_v55 = vmul.f32 %v1165_v4, %v1873_v56  ;;  %v1168_v58 = vmul.f32 %v1165_v4, %v1875_v57  ;;  %v1169_v60 = vmul.f32 %v1165_v4, %v1879_v59  ;;  %v1170_v63 = vmul.f32 %v1165_v4, %v1882_v61 }
 0x3af   :  { %v1171_v0 = vmul.f32 %v1165_v4, %v1884_v62  ;;  %v1172_v1 = vmul.f32 %v1165_v4, %v1888_v8  ;;  %v1173_v2 = vmul.f32 %v1165_v4, %v1891_v13  ;;  %v1174_v5 = vmul.f32 %v1165_v4, %v1894_v15 }
 0x3b0   :  { %v1175_v44 = vmul.f32 %v1165_v4, %v1896_v3  ;;  %v1176_v6 = vmul.f32 %v1165_v4, %v1900_v18  ;;  %v1177_v56 = vmul.f32 %v1165_v4, %v1903_v20  ;;  %v1178_v57 = vmul.f32 %v1165_v4, %v1906_v22 }
 0x3b1   :  { %v1179_v59 = vmul.f32 %v1165_v4, %v1909_v25  ;;  %v1180_v61 = vmul.f32 %v1165_v4, %v1911_v28  ;;  %v1181_v62 = vmul.f32 %v1165_v4, %v1914_v35  ;;  %v1182_v8 = vmul.f32 %v1165_v4, %v1917_v37  ;;  %v1186_v7 = vpop.permute.xlu1 %1185 }
 0x3b2   :  { %v1188_v13 = vadd.f32 %v1186_v7, %v1167_v55  ;;  %v1189_v9 = vadd.f32 %v1186_v7, %v1168_v58  ;;  %v1190_v15 = vadd.f32 %v1186_v7, %v1169_v60  ;;  %v1191_v10 = vadd.f32 %v1186_v7, %v1170_v63 }
 0x3b3   :  { %v1192_v3 = vadd.f32 %v1186_v7, %v1171_v0  ;;  %v1193_v11 = vadd.f32 %v1186_v7, %v1172_v1  ;;  %v1194_v18 = vadd.f32 %v1186_v7, %v1173_v2  ;;  %v1195_v12 = vadd.f32 %v1186_v7, %v1174_v5 }
 0x3b4   :  { %v1196_v20 = vadd.f32 %v1186_v7, %v1175_v44  ;;  %v1197_v14 = vadd.f32 %v1186_v7, %v1176_v6  ;;  %v1198_v22 = vadd.f32 %v1186_v7, %v1177_v56  ;;  %v1199_v16 = vadd.f32 %v1186_v7, %v1178_v57 }
 0x3b5   :  { %v1200_v25 = vadd.f32 %v1186_v7, %v1179_v59  ;;  %v1201_v17 = vadd.f32 %v1186_v7, %v1180_v61  ;;  %v1202_v28 = vadd.f32 %v1186_v7, %v1181_v62  ;;  %v1203_v19 = vadd.f32 %v1186_v7, %v1182_v8 }
 0x3b6   :  { %vm1204_vm2 = vcmp.ge.f32.partialorder %v1188_v13, 0.0  ;;  %vm1205_vm3 = vcmp.ge.f32.partialorder %v1189_v9, 0.0  ;;  %vm1206_vm4 = vcmp.ge.f32.partialorder %v1190_v15, 0.0  ;;  %vm1207_vm5 = vcmp.ge.f32.partialorder %v1191_v10, 0.0 }
 0x3b7   :  { %vm1208_vm6 = vcmp.ge.f32.partialorder %v1192_v3, 0.0  ;;  %vm1209_vm7 = vcmp.ge.f32.partialorder %v1193_v11, 0.0  ;;  %vm1210_vm8 = vcmp.ge.f32.partialorder %v1194_v18, 0.0  ;;  %vm1211_vm9 = vcmp.ge.f32.partialorder %v1195_v12, 0.0 }
 0x3b8   :  { %vm1212_vm10 = vcmp.ge.f32.partialorder %v1196_v20, 0.0  ;;  %vm1213_vm11 = vcmp.ge.f32.partialorder %v1197_v14, 0.0  ;;  %vm1214_vm12 = vcmp.ge.f32.partialorder %v1198_v22, 0.0  ;;  %vm1215_vm13 = vcmp.ge.f32.partialorder %v1199_v16, 0.0 }
 0x3b9   :  { %vm1216_vm14 = vcmp.ge.f32.partialorder %v1200_v25, 0.0  ;;  %vm1217_vm15 = vcmp.ge.f32.partialorder %v1201_v17, 0.0  ;;  %vm1218_vm0 = vcmp.ge.f32.partialorder %v1202_v28, 0.0  ;;  %vm1219_vm1 = vcmp.ge.f32.partialorder %v1203_v19, 0.0 }
 0x3ba   :  { %v1220_v35 = vmul.f32 0.01, %v1188_v13  ;;  %v1221_v37 = vmul.f32 0.01, %v1189_v9  ;;  %v1222_v21 = vmul.f32 0.01, %v1190_v15 }
 0x3bb   :  { %v1223_v23 = vmul.f32 0.01, %v1191_v10  ;;  %v1224_v24 = vmul.f32 0.01, %v1192_v3  ;;  %v1225_v26 = vmul.f32 0.01, %v1193_v11 }
 0x3bc   :  { %v1226_v27 = vmul.f32 0.01, %v1194_v18  ;;  %v1227_v29 = vmul.f32 0.01, %v1195_v12  ;;  %v1228_v30 = vmul.f32 0.01, %v1196_v20  ;;  %v1236_v31 = vsel %vm1204_vm2, %v1188_v13, %v1220_v35 }
 0x3bd   :  { %v1229_v32 = vmul.f32 0.01, %v1197_v14  ;;  %v1230_v33 = vmul.f32 0.01, %v1198_v22  ;;  %v1231_v34 = vmul.f32 0.01, %v1199_v16  ;;  %v1237_v36 = vsel %vm1205_vm3, %v1189_v9, %v1221_v37 }
 0x3be   :  { %v1232_v38 = vmul.f32 0.01, %v1200_v25  ;;  %v1233_v39 = vmul.f32 0.01, %v1201_v17  ;;  %v1234_v40 = vmul.f32 0.01, %v1202_v28  ;;  %v1238_v41 = vsel %vm1206_vm4, %v1190_v15, %v1222_v21 }
 0x3bf   :  { %v1235_v42 = vmul.f32 0.01, %v1203_v19  ;;  %v1239_v43 = vsel %vm1207_vm5, %v1191_v10, %v1223_v23  ;;  %v1240_v46 = vsel %vm1208_vm6, %v1192_v3, %v1224_v24  ;;  %v1241_v47 = vsel %vm1209_vm7, %v1193_v11, %v1225_v26 }
 0x3c0   :  { %v1242_v48 = vsel %vm1210_vm8, %v1194_v18, %v1226_v27  ;;  %v1243_v49 = vsel %vm1211_vm9, %v1195_v12, %v1227_v29  ;;  %v1244_v50 = vsel %vm1212_vm10, %v1196_v20, %v1228_v30  ;;  %v1245_v51 = vsel %vm1213_vm11, %v1197_v14, %v1229_v32 }
 0x3c1   :  { %v1246_v52 = vsel %vm1214_vm12, %v1198_v22, %v1230_v33  ;;  %v1247_v45 = vsel %vm1215_vm13, %v1199_v16, %v1231_v34  ;;  %v1248_v53 = vsel %vm1216_vm14, %v1200_v25, %v1232_v38  ;;  %v1249_v54 = vsel %vm1217_vm15, %v1201_v17, %v1233_v39 }
 0x3c2   :  { %v1250_v4 = vsel %vm1218_vm0, %v1202_v28, %v1234_v40  ;;  %v1251_v55 = vsel %vm1219_vm1, %v1203_v19, %v1235_v42  ;;  %v1456_v58 = vpack.c.bf16 %v1237_v36, %v1236_v31  ;;  %v1457_v60 = vpack.c.bf16 %v1239_v43, %v1238_v41 }
 0x3c3   :  { %v1458_v63 = vpack.c.bf16 %v1241_v47, %v1240_v46  ;;  %v1459_v0 = vpack.c.bf16 %v1243_v49, %v1242_v48  ;;  %v1460_v1 = vpack.c.bf16 %v1245_v51, %v1244_v50  ;;  %v1461_v2 = vpack.c.bf16 %v1247_v45, %v1246_v52 }
 0x3c4   :  { %v1462_v5 = vpack.c.bf16 %v1249_v54, %v1248_v53  ;;  %v1463_v44 = vpack.c.bf16 %v1251_v55, %v1250_v4  ;;  %1316 = vst [vmem:[%s2005_s5] sm:$0xff] %v1456_v58  ;;  %1317 = vst [vmem:[%s2005_s5 + $0x8] sm:$0xff] %v1457_v60 }
 0x3c5   :  { %1318 = vst [vmem:[%s2005_s5 + $0x10] sm:$0xff] %v1458_v63  ;;  %1319 = vst [vmem:[%s2005_s5 + $0x18] sm:$0xff] %v1459_v0 }
 0x3c6   :  { %1320 = vst [vmem:[%s2005_s5 + $0x20] sm:$0xff] %v1460_v1  ;;  %1321 = vst [vmem:[%s2005_s5 + $0x28] sm:$0xff] %v1461_v2 }
 0x3c7   :  { %1322 = vst [vmem:[%s2005_s5 + $0x30] sm:$0xff] %v1462_v5  ;;  %1323 = vst [vmem:[%s2005_s5 + $0x38] sm:$0xff] %v1463_v44 }

// kernel: q_net_forward.7
= control target key start
LH: loop header
LB: loop body
LE: loop exit
PB: predicated region body
PF: predicated region fallthrough
CT: control target
= control target key end

     0   :  { %v795_v1 = vmov 0   ;;  %vm356_vm0 = vcmask 654336   ;;  %vm450_vm1 = vcmask 7168   ;;  %v796_v57 = vmov 0.0   ;;  %s1063_s1 = inlined_call_operand.vmem [shape: bf16[208,512], index: 1, kind: input, shape index: {}]   ;;  %s1064_s0 = inlined_call_operand.vmem [shape: bf16[16,208], index: 0, kind: input, shape index: {}]   ;;  %s1065_s2 = inlined_call_operand.vmem [shape: f32[16,1], index: 2, kind: input, shape index: {}]   ;;  %s1066_s3 = inlined_call_operand.vmem [shape: f32[16,1], index: 3, kind: input, shape index: {}]   ;;  %s1067_s4 = inlined_call_operand.vmem [shape: f32[16,1], index: 4, kind: input, shape index: {}]   ;;  %s1068_s5 = inlined_call_operand.vmem [shape: bf16[16,512], index: 5, kind: output, shape index: {}]  }
   0x1   :  { %v710_v0 = vld [vmem:[%s1063_s1 + $0x4] ss:$16 sps:$4 sm:$0xff]   ;;  %708 = vset.pattern.permute.xlu0 %v795_v1  ;;  %709 = vset.pattern.permute.xlu1 %v795_v1  ;;  %v712_v2 = vld [vmem:[%s1063_s1 + $0xc] ss:$16 sps:$4 sm:$0xff]   ;;  %v714_v3 = vld [vmem:[%s1063_s1] ss:$16 sps:$4 sm:$0xff]  }
   0x2   :  { %360 = vmatprep.subr.bf16.mxu0 %v710_v0  ;;  %v715_v4 = vld [vmem:[%s1063_s1 + $0x8] ss:$16 sps:$4 sm:$0xff]   ;;  %403 = vmatprep.subr.bf16.mxu1 %v712_v2  ;;  %v716_v5 = vld [vmem:[%s1063_s1 + $0x24] ss:$16 sps:$4 sm:$0xff]   ;;  %v718_v6 = vld [vmem:[%s1063_s1 + $0x2c] ss:$16 sps:$4 sm:$0xff]  }
   0x3   :  { %361 = vmatpush1.bf16.msra.mxu0 %v714_v3  ;;  %404 = vmatpush1.bf16.msra.mxu1 %v715_v4  ;;  %v720_v7 = vld [vmem:[%s1063_s1 + $0x20] ss:$16 sps:$4 sm:$0xff]   ;;  %v721_v8 = vld [vmem:[%s1063_s1 + $0x28] ss:$16 sps:$4 sm:$0xff]   ;;  %v722_v9 = vld [vmem:[%s1063_s1 + $0x44] ss:$16 sps:$4 sm:$0xff]  }
   0x4   :  { %362 = vmatprep.subr.bf16.mxu0 %v716_v5  ;;  %405 = vmatprep.subr.bf16.mxu1 %v718_v6  ;;  %v724_v10 = vld [vmem:[%s1063_s1 + $0x4c] ss:$16 sps:$4 sm:$0xff]   ;;  %v726_v11 = vld [vmem:[%s1063_s1 + $0x40] ss:$16 sps:$4 sm:$0xff]   ;;  %v727_v12 = vld [vmem:[%s1063_s1 + $0x48] ss:$16 sps:$4 sm:$0xff]  }
   0x5   :  { %v728_v13 = vld [vmem:[%s1063_s1 + $0x64] ss:$16 sps:$4 sm:$0xff]   ;;  %v730_v14 = vld [vmem:[%s1063_s1 + $0x6c] ss:$16 sps:$4 sm:$0xff]   ;;  %v732_v15 = vld [vmem:[%s1063_s1 + $0x60] ss:$16 sps:$4 sm:$0xff]  }
   0x6   :  { %v733_v16 = vld [vmem:[%s1063_s1 + $0x68] ss:$16 sps:$4 sm:$0xff]   ;;  %v734_v17 = vld [vmem:[%s1063_s1 + $0x84] ss:$16 sps:$4 sm:$0xff]   ;;  %v736_v18 = vld [vmem:[%s1063_s1 + $0x8c] ss:$16 sps:$4 sm:$0xff]  }
   0x7   :  { %363 = vmatpush1.bf16.msra.mxu0 %v720_v7  ;;  %406 = vmatpush1.bf16.msra.mxu1 %v721_v8  ;;  %v738_v19 = vld [vmem:[%s1063_s1 + $0x80] ss:$16 sps:$4 sm:$0xff]   ;;  %v739_v20 = vld [vmem:[%s1063_s1 + $0x88] ss:$16 sps:$4 sm:$0xff]   ;;  %v740_v21 = vld [vmem:[%s1063_s1 + $0xa4] ss:$16 sps:$4 sm:$0xff]  }
   0x8   :  { %364 = vmatprep.subr.bf16.mxu0 %v722_v9  ;;  %407 = vmatprep.subr.bf16.mxu1 %v724_v10  ;;  %v742_v22 = vld [vmem:[%s1063_s1 + $0xac] ss:$16 sps:$4 sm:$0xff]   ;;  %v744_v23 = vld [vmem:[%s1063_s1 + $0xa0] ss:$16 sps:$4 sm:$0xff]   ;;  %v745_v24 = vld [vmem:[%s1063_s1 + $0xa8] ss:$16 sps:$4 sm:$0xff]  }
   0x9   :  { %v746_v25 = vld [vmem:[%s1063_s1 + $0xc4] ss:$16 sps:$4 sm:$0xff]   ;;  %v748_v26 = vld [vmem:[%s1063_s1 + $0xcc] ss:$16 sps:$4 sm:$0xff]   ;;  %v750_v27 = vld [vmem:[%s1063_s1 + $0xc0] ss:$16 sps:$4 sm:$0xff]  }
   0xa   :  { %v751_v28 = vld [vmem:[%s1063_s1 + $0xc8] ss:$16 sps:$4 sm:$0xff]   ;;  %v752_v29 = vld [vmem:[%s1063_s1 + $0xe4] ss:$16 sps:$4 sm:$0xff]   ;;  %v754_v30 = vld [vmem:[%s1063_s1 + $0xec] ss:$16 sps:$4 sm:$0xff]  }
   0xb   :  { %365 = vmatpush1.bf16.msra.mxu0 %v726_v11  ;;  %408 = vmatpush1.bf16.msra.mxu1 %v727_v12  ;;  %v756_v31 = vld [vmem:[%s1063_s1 + $0xe0] ss:$16 sps:$4 sm:$0xff]   ;;  %v757_v32 = vld [vmem:[%s1063_s1 + $0xe8] ss:$16 sps:$4 sm:$0xff]   ;;  %v758_v33 = vld [vmem:[%s1063_s1 + $0x104] ss:$16 sps:$4 sm:$0xff]  }
   0xc   :  { %366 = vmatprep.subr.bf16.mxu0 %v728_v13  ;;  %409 = vmatprep.subr.bf16.mxu1 %v730_v14  ;;  %v760_v34 = vld [vmem:[%s1063_s1 + $0x10c] ss:$16 sps:$4 sm:$0xff]   ;;  %v762_v35 = vld [vmem:[%s1063_s1 + $0x100] ss:$16 sps:$4 sm:$0xff]   ;;  %v763_v36 = vld [vmem:[%s1063_s1 + $0x108] ss:$16 sps:$4 sm:$0xff]  }
   0xd   :  { %v764_v37 = vld [vmem:[%s1063_s1 + $0x124] ss:$16 sps:$4 sm:$0xff]   ;;  %v766_v38 = vld [vmem:[%s1063_s1 + $0x12c] ss:$16 sps:$4 sm:$0xff]   ;;  %v768_v40 = vld [vmem:[%s1063_s1 + $0x120] ss:$16 sps:$4 sm:$0xff]  }
   0xe   :  { %v790_v39 = vld [vmem:[%s1064_s0 + $0x4] ss:$8 sps:$4 sm:$0xff]   ;;  %v769_v41 = vld [vmem:[%s1063_s1 + $0x128] ss:$16 sps:$4 sm:$0xff]   ;;  %v774_v45 = vld [vmem:[%s1063_s1 + $0x140] ss:$16 sps:$4 sm:$0xff]  }
   0xf   :  { %367 = vmatpush1.bf16.msra.mxu0 %v732_v15  ;;  %410 = vmatpush1.bf16.msra.mxu1 %v733_v16  ;;  %v75_v42 = vld [vmem:[%s1065_s2] sm:$0xff]  ;;  %v772_v44 = vld [vmem:[%s1063_s1 + $0x14c] ss:$16 sps:$4 sm:$0xff]   ;;  %v775_v46 = vld [vmem:[%s1063_s1 + $0x148] ss:$16 sps:$4 sm:$0xff]   ;;  %451 = vst.msk [vmem:[#allocation3] sm:$0xff] %vm450_vm1, %v796_v57 }
  0x10   :  { %368 = vmatprep.subr.bf16.mxu0 %v734_v17  ;;  %411 = vmatprep.subr.bf16.mxu1 %v736_v18  ;;  %v770_v43 = vld [vmem:[%s1063_s1 + $0x144] ss:$16 sps:$4 sm:$0xff]   ;;  %v76_v47 = vld [vmem:[%s1065_s2 + $0x8] sm:$0xff]  ;;  %v780_v50 = vld [vmem:[%s1063_s1 + $0x160] ss:$16 sps:$4 sm:$0xff]   ;;  %452 = vst.msk [vmem:[#allocation3 + $0x8] sm:$0xff] %vm450_vm1, %v796_v57 }
  0x11   :  { %696 = vmatprep.mubr.msk.bf16.mxu0 %vm356_vm0, %v790_v39  ;;  %697 = vmatprep.mubr.msk.bf16.mxu1 %vm356_vm0, %v790_v39  ;;  %v776_v48 = vld [vmem:[%s1063_s1 + $0x164] ss:$16 sps:$4 sm:$0xff]   ;;  %v778_v49 = vld [vmem:[%s1063_s1 + $0x16c] ss:$16 sps:$4 sm:$0xff]   ;;  %v781_v51 = vld [vmem:[%s1063_s1 + $0x168] ss:$16 sps:$4 sm:$0xff]  }
  0x12   :  { %79 = vperm.xlu0 %708, %v75_v42   ;;  %v782_v52 = vld [vmem:[%s1063_s1 + $0x184] ss:$16 sps:$4 sm:$0xff]   ;;  %v784_v53 = vld [vmem:[%s1063_s1 + $0x18c] ss:$16 sps:$4 sm:$0xff]   ;;  %v786_v54 = vld [vmem:[%s1063_s1 + $0x180] ss:$16 sps:$4 sm:$0xff]  }
  0x13   :  { %369 = vmatpush1.bf16.msra.mxu0 %v738_v19  ;;  %412 = vmatpush1.bf16.msra.mxu1 %v739_v20  ;;  %v787_v55 = vld [vmem:[%s1063_s1 + $0x188] ss:$16 sps:$4 sm:$0xff]  }
  0x14   :  { %370 = vmatprep.subr.bf16.mxu0 %v740_v21  ;;  %413 = vmatprep.subr.bf16.mxu1 %v742_v22  ;;  %v788_v56 = vld [vmem:[%s1064_s0] ss:$8 sps:$4 sm:$0xff]  }
  0x16   :  { %84 = vperm.xlu0 %708, %v76_v47   ;;  %v453_v18 = vld [vmem:[#allocation3] sm:$0xff] }
  0x17   :  { %371 = vmatpush1.bf16.msra.mxu0 %v744_v23  ;;  %414 = vmatpush1.bf16.msra.mxu1 %v745_v24  ;;  %v454_v21 = vld [vmem:[#allocation3 + $0x8] sm:$0xff] }
  0x18   :  { %372 = vmatprep.subr.bf16.mxu0 %v746_v25  ;;  %415 = vmatprep.subr.bf16.mxu1 %v748_v26 }
  0x1b   :  { %373 = vmatpush1.bf16.msra.mxu0 %v750_v27  ;;  %416 = vmatpush1.bf16.msra.mxu1 %v751_v28 }
  0x1c   :  { %374 = vmatprep.subr.bf16.mxu0 %v752_v29  ;;  %417 = vmatprep.subr.bf16.mxu1 %v754_v30 }
  0x1f   :  { %375 = vmatpush1.bf16.msra.mxu0 %v756_v31  ;;  %418 = vmatpush1.bf16.msra.mxu1 %v757_v32 }
  0x20   :  { %376 = vmatprep.subr.bf16.mxu0 %v758_v33  ;;  %419 = vmatprep.subr.bf16.mxu1 %v760_v34 }
  0x23   :  { %377 = vmatpush1.bf16.msra.mxu0 %v762_v35  ;;  %420 = vmatpush1.bf16.msra.mxu1 %v763_v36 }
  0x24   :  { %378 = vmatprep.subr.bf16.mxu0 %v764_v37  ;;  %421 = vmatprep.subr.bf16.mxu1 %v766_v38 }
  0x27   :  { %379 = vmatpush1.bf16.msra.mxu0 %v768_v40  ;;  %422 = vmatpush1.bf16.msra.mxu1 %v769_v41 }
  0x28   :  { %380 = vmatprep.subr.bf16.mxu0 %v770_v43  ;;  %423 = vmatprep.subr.bf16.mxu1 %v772_v44 }
  0x2b   :  { %381 = vmatpush1.bf16.msra.mxu0 %v774_v45  ;;  %424 = vmatpush1.bf16.msra.mxu1 %v775_v46 }
  0x2c   :  { %382 = vmatprep.subr.bf16.mxu0 %v776_v48  ;;  %425 = vmatprep.subr.bf16.mxu1 %v778_v49 }
  0x2f   :  { %383 = vmatpush1.bf16.msra.mxu0 %v780_v50  ;;  %426 = vmatpush1.bf16.msra.mxu1 %v781_v51 }
  0x30   :  { %384 = vmatprep.subr.bf16.mxu0 %v782_v52  ;;  %427 = vmatprep.subr.bf16.mxu1 %v784_v53 }
  0x33   :  { %385 = vmatpush1.bf16.msra.mxu0 %v786_v54  ;;  %428 = vmatpush1.bf16.msra.mxu1 %v787_v55 }
  0x36   :  { %393 = vmatmul.mubr.bf16.vlgmr.msra.gmra.mrb[0].mxu0 %v788_v56  ;;  %436 = vmatmul.mubr.bf16.vlgmr.msra.gmra.mrb[0].mxu1 %v788_v56 }
  0x91   :  { %v80_v58 = vpop.permute.xlu0 %79 }
  0x95   :  { %v85_v59 = vpop.permute.xlu0 %84 }
 0x109   :  { %v394_v60 = vpop.f32.mrb[0].mxu0  ;;  %v437_v61 = vpop.f32.mrb[0].mxu1 }
 0x10a   :  { %v997_v62 = vadd.f32 %v394_v60, %v80_v58  ;;  %v396_v63 = vpop.f32.mrb[1].mxu0  ;;  %v439_v0 = vpop.f32.mrb[1].mxu1  ;;  %v1003_v7 = vadd.f32 %v437_v61, %v80_v58  ;;  %v544_v61 = vld [vmem:[%s1067_s4] sm:$0xff] }
 0x10b   :  { %v999_v1 = vadd.f32 %v396_v63, %v80_v58  ;;  %v398_v2 = vpop.f32.mrb[2].mxu0  ;;  %v441_v3 = vpop.f32.mrb[2].mxu1  ;;  %v1009_v10 = vadd.f32 %v439_v0, %v80_v58  ;;  %v540_v58 = vld [vmem:[%s1066_s3] sm:$0xff]  ;;  %v541_v63 = vld [vmem:[%s1066_s3 + $0x8] sm:$0xff] }
 0x10c   :  { %v1001_v4 = vadd.f32 %v398_v2, %v85_v59  ;;  %v400_v5 = vpop.f32.mrb[3].mxu0  ;;  %v443_v6 = vpop.f32.mrb[3].mxu1  ;;  %v1011_v11 = vadd.f32 %v441_v3, %v85_v59 }
 0x10d   :  { %v1005_v8 = vadd.f32 %v400_v5, %v85_v59  ;;  %v455_v9 = vadd.f32 %v999_v1, %v997_v62  ;;  %v1018_v16 = vadd.f32 %v443_v6, %v85_v59  ;;  %v545_v6 = vld [vmem:[%s1067_s4 + $0x8] sm:$0xff] }
 0x10f   :  { %v460_v12 = vadd.f32 %v1005_v8, %v1001_v4  ;;  %v456_v13 = vadd.f32 %v455_v9, %v1003_v7 }
 0x111   :  { %v457_v14 = vadd.f32 %v456_v13, %v1009_v10  ;;  %v461_v15 = vadd.f32 %v460_v12, %v1011_v11 }
 0x113   :  { %458 = vadd.xlane.f32.xlu1 %v457_v14  ;;  %v462_v17 = vadd.f32 %v461_v15, %v1018_v16 }
 0x117   :  { %463 = vadd.xlane.f32.xlu1 %v462_v17 }
 0x1a0   :  { %v459_v19 = vpop.xlane.xlu1 %458 }
 0x1a1   :  { %v465_v20 = vadd.f32 %v459_v19, %v453_v18 }
 0x1a3   :  { %468 = vst.msk [vmem:[#allocation3] sm:$0xff] %vm450_vm1, %v465_v20 }
 0x1a4   :  { %v464_v22 = vpop.xlane.xlu1 %463 }
 0x1a5   :  { %v466_v23 = vadd.f32 %v464_v22, %v454_v21 }
 0x1a7   :  { %469 = vst.msk [vmem:[#allocation3 + $0x8] sm:$0xff] %vm450_vm1, %v466_v23 }
 0x1aa   :  { %v484_v24 = vld [vmem:[#allocation3] sm:$0xff] }
 0x1ab   :  { %v486_v25 = vmul.f32 0.001953125, %v484_v24 }
 0x1ad   :  { %498 = vperm.xlu0 %708, %v486_v25  }
 0x1ae   :  { %v485_v26 = vld [vmem:[#allocation3 + $0x8] sm:$0xff] }
 0x1af   :  { %v487_v27 = vmul.f32 0.001953125, %v485_v26 }
 0x1b1   :  { %503 = vperm.xlu1 %709, %v487_v27  }
 0x22c   :  { %v499_v28 = vpop.permute.xlu0 %498 }
 0x22d   :  { %v506_v29 = vsub.f32 %v997_v62, %v499_v28  ;;  %v507_v30 = vsub.f32 %v999_v1, %v499_v28  ;;  %v508_v31 = vsub.f32 %v1003_v7, %v499_v28  ;;  %v509_v32 = vsub.f32 %v1009_v10, %v499_v28 }
 0x22f   :  { %v514_v33 = vmul.f32 %v506_v29, %v506_v29  ;;  %v515_v34 = vmul.f32 %v507_v30, %v507_v30  ;;  %v516_v36 = vmul.f32 %v508_v31, %v508_v31  ;;  %v517_v41 = vmul.f32 %v509_v32, %v509_v32 }
 0x230   :  { %v504_v35 = vpop.permute.xlu1 %503 }
 0x231   :  { %v510_v37 = vsub.f32 %v1001_v4, %v504_v35  ;;  %v511_v38 = vsub.f32 %v1005_v8, %v504_v35  ;;  %v512_v39 = vsub.f32 %v1011_v11, %v504_v35  ;;  %v522_v40 = vadd.f32 %v515_v34, %v514_v33 }
 0x232   :  { %v513_v45 = vsub.f32 %v1018_v16, %v504_v35 }
 0x233   :  { %v518_v42 = vmul.f32 %v510_v37, %v510_v37  ;;  %v519_v43 = vmul.f32 %v511_v38, %v511_v38  ;;  %v523_v44 = vadd.f32 %v522_v40, %v516_v36  ;;  %v520_v47 = vmul.f32 %v512_v39, %v512_v39 }
 0x234   :  { %v521_v49 = vmul.f32 %v513_v45, %v513_v45 }
 0x235   :  { %v524_v46 = vadd.f32 %v523_v44, %v517_v41  ;;  %v527_v48 = vadd.f32 %v519_v43, %v518_v42 }
 0x237   :  { %525 = vadd.xlane.f32.xlu0 %v524_v46  ;;  %v528_v50 = vadd.f32 %v527_v48, %v520_v47 }
 0x239   :  { %v529_v51 = vadd.f32 %v528_v50, %v521_v49 }
 0x23b   :  { %530 = vadd.xlane.f32.xlu1 %v529_v51 }
 0x2c4   :  { %v526_v52 = vpop.xlane.xlu0 %525 }
 0x2c5   :  { %v534_v53 = vmul.f32 0.001953125, %v526_v52 }
 0x2c7   :  { %v536_v54 = vadd.f32 1e-05, %v534_v53 }
 0x2c8   :  { %v531_v55 = vpop.xlane.xlu1 %530 }
 0x2c9   :  { %791 = vrsqrt.f32 %v536_v54  ;;  %v535_v56 = vmul.f32 0.001953125, %v531_v55 }
 0x2cb   :  { %v537_v57 = vadd.f32 1e-05, %v535_v56 }
 0x2cd   :  { %793 = vrsqrt.f32 %v537_v57 }
 0x2d3   :  { %v792_v59 = vpop.eup %791 }
 0x2d4   :  { %v542_v60 = vmul.f32 %v792_v59, %v540_v58 }
 0x2d6   :  { %552 = vperm.xlu0 %708, %v542_v60   ;;  %v546_v0 = vmul.f32 %v542_v60, %v486_v25 }
 0x2d7   :  { %v794_v2 = vpop.eup %793 }
 0x2d8   :  { %v548_v3 = vsub.f32 %v544_v61, %v546_v0  ;;  %v543_v5 = vmul.f32 %v794_v2, %v541_v63 }
 0x2da   :  { %570 = vperm.xlu0 %708, %v548_v3   ;;  %557 = vperm.xlu1 %709, %v543_v5   ;;  %v547_v9 = vmul.f32 %v543_v5, %v487_v27 }
 0x2dc   :  { %v549_v12 = vsub.f32 %v545_v6, %v547_v9 }
 0x2de   :  { %575 = vperm.xlu0 %708, %v549_v12  }
 0x355   :  { %v553_v13 = vpop.permute.xlu0 %552 }
 0x356   :  { %v560_v14 = vmul.f32 %v553_v13, %v997_v62  ;;  %v561_v15 = vmul.f32 %v553_v13, %v999_v1  ;;  %v562_v17 = vmul.f32 %v553_v13, %v1003_v7  ;;  %v563_v18 = vmul.f32 %v553_v13, %v1009_v10 }
 0x359   :  { %v571_v19 = vpop.permute.xlu0 %570  ;;  %v558_v20 = vpop.permute.xlu1 %557 }
 0x35a   :  { %v578_v21 = vadd.f32 %v571_v19, %v560_v14  ;;  %v579_v22 = vadd.f32 %v571_v19, %v561_v15  ;;  %v580_v23 = vadd.f32 %v571_v19, %v562_v17  ;;  %v581_v24 = vadd.f32 %v571_v19, %v563_v18 }
 0x35b   :  { %v564_v25 = vmul.f32 %v558_v20, %v1001_v4  ;;  %v565_v26 = vmul.f32 %v558_v20, %v1005_v8  ;;  %v566_v27 = vmul.f32 %v558_v20, %v1011_v11  ;;  %v567_v10 = vmul.f32 %v558_v20, %v1018_v16 }
 0x35c   :  { %vm586_vm2 = vcmp.ge.f32.partialorder %v578_v21, 0.0  ;;  %vm587_vm3 = vcmp.ge.f32.partialorder %v579_v22, 0.0  ;;  %vm588_vm4 = vcmp.ge.f32.partialorder %v580_v23, 0.0  ;;  %vm589_vm5 = vcmp.ge.f32.partialorder %v581_v24, 0.0 }
 0x35d   :  { %v594_v62 = vmul.f32 0.01, %v578_v21  ;;  %v595_v1 = vmul.f32 0.01, %v579_v22  ;;  %v596_v7 = vmul.f32 0.01, %v580_v23  ;;  %v576_v28 = vpop.permute.xlu0 %575 }
 0x35e   :  { %v597_v29 = vmul.f32 0.01, %v581_v24  ;;  %v582_v30 = vadd.f32 %v576_v28, %v564_v25  ;;  %v583_v31 = vadd.f32 %v576_v28, %v565_v26  ;;  %v584_v32 = vadd.f32 %v576_v28, %v566_v27 }
 0x35f   :  { %v602_v33 = vsel %vm586_vm2, %v578_v21, %v594_v62  ;;  %v603_v4 = vsel %vm587_vm3, %v579_v22, %v595_v1  ;;  %v604_v34 = vsel %vm588_vm4, %v580_v23, %v596_v7  ;;  %v585_v8 = vadd.f32 %v576_v28, %v567_v10 }
 0x360   :  { %v605_v35 = vsel %vm589_vm5, %v581_v24, %v597_v29  ;;  %v702_v11 = vpack.c.bf16 %v603_v4, %v602_v33  ;;  %vm590_vm6 = vcmp.ge.f32.partialorder %v582_v30, 0.0  ;;  %vm591_vm7 = vcmp.ge.f32.partialorder %v583_v31, 0.0 }
 0x361   :  { %v703_v36 = vpack.c.bf16 %v605_v35, %v604_v34  ;;  %vm592_vm8 = vcmp.ge.f32.partialorder %v584_v32, 0.0  ;;  %vm593_vm9 = vcmp.ge.f32.partialorder %v585_v8, 0.0  ;;  %v598_v37 = vmul.f32 0.01, %v582_v30 }
 0x362   :  { %634 = vst [vmem:[%s1068_s5] sm:$0xff] %v702_v11  ;;  %v599_v16 = vmul.f32 0.01, %v583_v31  ;;  %v600_v38 = vmul.f32 0.01, %v584_v32  ;;  %v601_v39 = vmul.f32 0.01, %v585_v8 }
 0x363   :  { %635 = vst [vmem:[%s1068_s5 + $0x8] sm:$0xff] %v703_v36  ;;  %v606_v40 = vsel %vm590_vm6, %v582_v30, %v598_v37 }
 0x364   :  { %v607_v41 = vsel %vm591_vm7, %v583_v31, %v599_v16  ;;  %v608_v42 = vsel %vm592_vm8, %v584_v32, %v600_v38  ;;  %v609_v43 = vsel %vm593_vm9, %v585_v8, %v601_v39 }
 0x365   :  { %v704_v44 = vpack.c.bf16 %v607_v41, %v606_v40  ;;  %v705_v45 = vpack.c.bf16 %v609_v43, %v608_v42 }
 0x367   :  { %636 = vst [vmem:[%s1068_s5 + $0x10] sm:$0xff] %v704_v44  ;;  %637 = vst [vmem:[%s1068_s5 + $0x18] sm:$0xff] %v705_v45 }

// kernel: q_net_forward.8
= control target key start
LH: loop header
LB: loop body
LE: loop exit
PB: predicated region body
PF: predicated region fallthrough
CT: control target
= control target key end

     0   :  { %v314_v0 = vmov 0   ;;  %vm116_vm0 = vcmask 130048   ;;  %vm165_vm1 = vcmask 7168   ;;  %v315_v14 = vmov 0.0   ;;  %s413_s1 = inlined_call_operand.vmem [shape: bf16[144,72], index: 1, kind: input, shape index: {}]   ;;  %s414_s0 = inlined_call_operand.vmem [shape: bf16[16,144], index: 0, kind: input, shape index: {}]   ;;  %s415_s2 = inlined_call_operand.vmem [shape: f32[16,1], index: 2, kind: input, shape index: {}]   ;;  %s416_s3 = inlined_call_operand.vmem [shape: f32[16,1], index: 3, kind: input, shape index: {}]   ;;  %s417_s4 = inlined_call_operand.vmem [shape: f32[16,1], index: 4, kind: input, shape index: {}]   ;;  %s418_s5 = inlined_call_operand.vmem [shape: bf16[16,72], index: 5, kind: output, shape index: {}]  }
   0x1   :  { %120 = vmatprep.subr.bf16.mxu0 %v314_v0  ;;  %v298_v1 = vld [vmem:[%s413_s1] sm:$0xff]   ;;  %296 = vset.pattern.permute.xlu0 %v314_v0  ;;  %v299_v2 = vld [vmem:[%s413_s1 + $0x8] sm:$0xff]   ;;  %v300_v3 = vld [vmem:[%s413_s1 + $0x10] sm:$0xff]   ;;  %166 = vst.msk [vmem:[#allocation3] sm:$0xff] %vm165_vm1, %v315_v14  ;;  %vm170_vm2 = vcmask 588800   ;;  %vm271_vm4 = vcmask 584704  }
   0x2   :  { %297 = vset.pattern.permute.xlu1 %v314_v0  ;;  %121 = vmatpush1.bf16.msra.mxu0 %v298_v1  ;;  %v301_v4 = vld [vmem:[%s413_s1 + $0x18] sm:$0xff]   ;;  %v309_v5 = vld [vmem:[%s414_s0 + $0x4] ss:$8 sps:$4 sm:$0xff]   ;;  %v304_v10 = vld [vmem:[%s413_s1 + $0x30] sm:$0xff]   ;;  %167 = vst.msk [vmem:[#allocation3 + $0x8] sm:$0xff] %vm165_vm1, %v315_v14 }
   0x3   :  { %122 = vmatprep.subr.bf16.mxu0 %v314_v0  ;;  %v41_v6 = vld [vmem:[%s415_s2] sm:$0xff]  ;;  %289 = vmatprep.mubr.msk.bf16.mxu0 %vm116_vm0, %v309_v5  ;;  %v42_v7 = vld [vmem:[%s415_s2 + $0x8] sm:$0xff]  ;;  %v305_v11 = vld [vmem:[%s413_s1 + $0x38] sm:$0xff]  }
   0x4   :  { %45 = vperm.xlu0 %296, %v41_v6   ;;  %v302_v8 = vld [vmem:[%s413_s1 + $0x20] sm:$0xff]   ;;  %v303_v9 = vld [vmem:[%s413_s1 + $0x28] sm:$0xff]  }
   0x5   :  { %v306_v12 = vld [vmem:[%s413_s1 + $0x40] sm:$0xff]   ;;  %v224_v55 = vld [vmem:[%s416_s3 + $0x8] sm:$0xff] }
   0x6   :  { %123 = vmatpush1.bf16.msra.mxu0 %v299_v2  ;;  %v307_v13 = vld [vmem:[%s414_s0] ss:$8 sps:$4 sm:$0xff]  }
   0x7   :  { %124 = vmatprep.subr.bf16.mxu0 %v314_v0  ;;  %v223_v51 = vld [vmem:[%s416_s3] sm:$0xff]  ;;  %v228_v60 = vld [vmem:[%s417_s4 + $0x8] sm:$0xff] }
   0x8   :  { %50 = vperm.xlu0 %296, %v42_v7   ;;  %v168_v25 = vld [vmem:[#allocation3] sm:$0xff]  ;;  %v227_v54 = vld [vmem:[%s417_s4] sm:$0xff] }
   0x9   :  { %v169_v28 = vld [vmem:[#allocation3 + $0x8] sm:$0xff] }
   0xa   :  { %125 = vmatpush1.bf16.msra.mxu0 %v300_v3 }
   0xb   :  { %126 = vmatprep.subr.bf16.mxu0 %v314_v0 }
   0xe   :  { %127 = vmatpush1.bf16.msra.mxu0 %v301_v4 }
   0xf   :  { %128 = vmatprep.subr.bf16.mxu0 %v314_v0 }
  0x12   :  { %129 = vmatpush1.bf16.msra.mxu0 %v302_v8 }
  0x13   :  { %130 = vmatprep.subr.bf16.mxu0 %v314_v0 }
  0x16   :  { %131 = vmatpush1.bf16.msra.mxu0 %v303_v9 }
  0x17   :  { %132 = vmatprep.subr.bf16.mxu0 %v314_v0 }
  0x1a   :  { %133 = vmatpush1.bf16.msra.mxu0 %v304_v10 }
  0x1b   :  { %134 = vmatprep.subr.bf16.mxu0 %v314_v0 }
  0x1e   :  { %135 = vmatpush1.bf16.msra.mxu0 %v305_v11 }
  0x1f   :  { %136 = vmatprep.subr.bf16.mxu0 %v314_v0 }
  0x22   :  { %137 = vmatpush1.bf16.msra.mxu0 %v306_v12 }
  0x25   :  { %153 = vmatmul.mubr.bf16.vlgmr.msra.gmra.mrb[0].mxu0 %v307_v13 }
  0x83   :  { %v46_v15 = vpop.permute.xlu0 %45 }
  0x87   :  { %v51_v19 = vpop.permute.xlu0 %50 }
  0xf8   :  { %v154_v16 = vpop.f32.mrb[0].mxu0 }
  0xf9   :  { %v155_v17 = vadd.f32 %v154_v16, %v46_v15  ;;  %v156_v18 = vpop.f32.mrb[1].mxu0 }
  0xfa   :  { %v157_v20 = vpop.f32.mrb[2].mxu0 }
  0xfb   :  { %184 = vst.msk [vmem:[#allocation2] sm:$0xff] %vm170_vm2, %v155_v17  ;;  %v158_v21 = vadd.f32 %v157_v20, %v51_v19  ;;  %v159_v22 = vpop.f32.mrb[3].mxu0  ;;  %v171_v23 = vsel %vm170_vm2, %v155_v17, 0.0 }
  0xfc   :  { %172 = vadd.xlane.f32.xlu1 %v171_v23 }
  0xfd   :  { %185 = vst.msk [vmem:[#allocation2 + $0x8] sm:$0xff] %vm170_vm2, %v158_v21  ;;  %v174_v24 = vsel %vm170_vm2, %v158_v21, 0.0 }
 0x100   :  { %175 = vadd.xlane.f32.xlu1 %v174_v24 }
 0x102   :  { %v193_v35 = vld [vmem:[#allocation2] sm:$0xff] }
 0x104   :  { %v194_v39 = vld [vmem:[#allocation2 + $0x8] sm:$0xff] }
 0x189   :  { %v173_v26 = vpop.xlane.xlu1 %172 }
 0x18a   :  { %v177_v27 = vadd.f32 %v173_v26, %v168_v25 }
 0x18c   :  { %180 = vst.msk [vmem:[#allocation3] sm:$0xff] %vm165_vm1, %v177_v27 }
 0x18d   :  { %v176_v29 = vpop.xlane.xlu1 %175 }
 0x18e   :  { %v178_v30 = vadd.f32 %v176_v29, %v169_v28 }
 0x190   :  { %181 = vst.msk [vmem:[#allocation3 + $0x8] sm:$0xff] %vm165_vm1, %v178_v30 }
 0x193   :  { %v189_v31 = vld [vmem:[#allocation3] sm:$0xff] }
 0x194   :  { %v191_v32 = vmul.f32 0.013888889, %v189_v31 }
 0x196   :  { %197 = vperm.xlu0 %296, %v191_v32  }
 0x197   :  { %v190_v33 = vld [vmem:[#allocation3 + $0x8] sm:$0xff] }
 0x198   :  { %v192_v34 = vmul.f32 0.013888889, %v190_v33 }
 0x19a   :  { %202 = vperm.xlu1 %297, %v192_v34  }
 0x215   :  { %v198_v36 = vpop.permute.xlu0 %197 }
 0x216   :  { %v205_v37 = vsub.f32 %v193_v35, %v198_v36 }
 0x218   :  { %v207_v38 = vmul.f32 %v205_v37, %v205_v37 }
 0x219   :  { %v203_v40 = vpop.permute.xlu1 %202 }
 0x21a   :  { %v206_v41 = vsub.f32 %v194_v39, %v203_v40  ;;  %v209_v42 = vsel %vm170_vm2, %v207_v38, 0.0 }
 0x21b   :  { %210 = vadd.xlane.f32.xlu0 %v209_v42 }
 0x21c   :  { %v208_v43 = vmul.f32 %v206_v41, %v206_v41 }
 0x21e   :  { %v212_v44 = vsel %vm170_vm2, %v208_v43, 0.0 }
 0x21f   :  { %213 = vadd.xlane.f32.xlu1 %v212_v44 }
 0x2a8   :  { %v211_v45 = vpop.xlane.xlu0 %210 }
 0x2a9   :  { %v217_v46 = vmul.f32 0.013888889, %v211_v45 }
 0x2ab   :  { %v219_v47 = vadd.f32 1e-05, %v217_v46 }
 0x2ac   :  { %v214_v48 = vpop.xlane.xlu1 %213 }
 0x2ad   :  { %310 = vrsqrt.f32 %v219_v47  ;;  %v218_v49 = vmul.f32 0.013888889, %v214_v48 }
 0x2af   :  { %v220_v50 = vadd.f32 1e-05, %v218_v49 }
 0x2b1   :  { %312 = vrsqrt.f32 %v220_v50 }
 0x2b7   :  { %v311_v52 = vpop.eup %310 }
 0x2b8   :  { %v225_v53 = vmul.f32 %v311_v52, %v223_v51 }
 0x2ba   :  { %235 = vperm.xlu0 %296, %v225_v53   ;;  %v229_v56 = vmul.f32 %v225_v53, %v191_v32 }
 0x2bb   :  { %v313_v57 = vpop.eup %312 }
 0x2bc   :  { %v231_v58 = vsub.f32 %v227_v54, %v229_v56  ;;  %v226_v59 = vmul.f32 %v313_v57, %v224_v55 }
 0x2be   :  { %247 = vperm.xlu0 %296, %v231_v58   ;;  %240 = vperm.xlu1 %297, %v226_v59   ;;  %v230_v61 = vmul.f32 %v226_v59, %v192_v34 }
 0x2c0   :  { %v232_v62 = vsub.f32 %v228_v60, %v230_v61 }
 0x2c2   :  { %252 = vperm.xlu0 %296, %v232_v62  }
 0x339   :  { %v236_v63 = vpop.permute.xlu0 %235 }
 0x33a   :  { %v243_v0 = vmul.f32 %v236_v63, %v193_v35 }
 0x33d   :  { %v248_v1 = vpop.permute.xlu0 %247  ;;  %v241_v2 = vpop.permute.xlu1 %240 }
 0x33e   :  { %v255_v3 = vadd.f32 %v248_v1, %v243_v0  ;;  %v244_v5 = vmul.f32 %v241_v2, %v194_v39 }
 0x340   :  { %vm257_vm3 = vcmp.ge.f32.partialorder %v255_v3, 0.0  ;;  %v259_v4 = vmul.f32 0.01, %v255_v3 }
 0x341   :  { %v253_v6 = vpop.permute.xlu0 %252 }
 0x342   :  { %v261_v7 = vsel %vm257_vm3, %v255_v3, %v259_v4  ;;  %v256_v8 = vadd.f32 %v253_v6, %v244_v5 }
 0x343   :  { %v292_v9 = vpack.c.bf16 %v261_v7, %v261_v7 }
 0x344   :  { %vm258_vm5 = vcmp.ge.f32.partialorder %v256_v8, 0.0  ;;  %v260_v10 = vmul.f32 0.01, %v256_v8 }
 0x345   :  { %272 = vst.msk [vmem:[%s418_s5] sm:$0xf] %vm271_vm4, %v292_v9 }
 0x346   :  { %v262_v11 = vsel %vm258_vm5, %v256_v8, %v260_v10 }
 0x347   :  { %v293_v12 = vpack.c.bf16 %v262_v11, %v262_v11 }
 0x349   :  { %273 = vst.msk [vmem:[%s418_s5 + $0x4] sm:$0xf] %vm271_vm4, %v293_v12 }

// kernel: q_net_forward.9
= control target key start
LH: loop header
LB: loop body
LE: loop exit
PB: predicated region body
PF: predicated region fallthrough
CT: control target
= control target key end

     0   :  { %vm524_vm0 = vcmask 130048   ;;  %s9513_s1 = inlined_call_operand.vmem [shape: bf16[144,1024], index: 1, kind: input, shape index: {}]   ;;  %s9514_s0 = inlined_call_operand.vmem [shape: bf16[16,144], index: 0, kind: input, shape index: {}]   ;;  %s9515_s5 = inlined_call_operand.vmem [shape: bf16[1024,1024], index: 5, kind: input, shape index: {}]   ;;  %s9516_s2 = inlined_call_operand.vmem [shape: f32[1,1024], index: 2, kind: input, shape index: {}]   ;;  %s9517_s3 = inlined_call_operand.vmem [shape: f32[1,1024], index: 3, kind: input, shape index: {}]   ;;  %s9518_s4 = inlined_call_operand.vmem [shape: f32[1,1024], index: 4, kind: input, shape index: {}]   ;;  %s9519_s9 = inlined_call_operand.vmem [shape: bf16[1024,128], index: 9, kind: input, shape index: {}]   ;;  %s9520_s6 = inlined_call_operand.vmem [shape: f32[1,1024], index: 6, kind: input, shape index: {}]   ;;  %s9521_s7 = inlined_call_operand.vmem [shape: f32[1,1024], index: 7, kind: input, shape index: {}]   ;;  %s9522_s8 = inlined_call_operand.vmem [shape: f32[1,1024], index: 8, kind: input, shape index: {}]   ;;  %s9523_s10 = inlined_call_operand.vmem [shape: f32[1,128], index: 10, kind: input, shape index: {}]   ;;  %s9524_s11 = inlined_call_operand.vmem [shape: f32[16,128], index: 11, kind: output, shape index: {}]  }
   0x1   :  { %v41_v0 = vld [vmem:[%s9513_s1] sm:$0xff]  ;;  %v42_v9 = vld [vmem:[%s9513_s1 + $0x8] sm:$0xff] }
   0x2   :  { %v45_v1 = vld [vmem:[%s9513_s1 + $0x20] sm:$0xff]  ;;  %v46_v10 = vld [vmem:[%s9513_s1 + $0x28] sm:$0xff] }
   0x3   :  { %v49_v2 = vld [vmem:[%s9513_s1 + $0x40] sm:$0xff]  ;;  %v6001_v3 = vcombine.high %v41_v0, %v45_v1  ;;  %v6000_v4 = vcombine.low %v41_v0, %v45_v1  ;;  %v6003_v11 = vcombine.high %v42_v9, %v46_v10  ;;  %v6002_v12 = vcombine.low %v42_v9, %v46_v10  ;;  %v50_v13 = vld [vmem:[%s9513_s1 + $0x48] sm:$0xff]  ;;  %v44_v10 = vld [vmem:[%s9513_s1 + $0x18] sm:$0xff] }
   0x4   :  { %v53_v5 = vld [vmem:[%s9513_s1 + $0x60] sm:$0xff]  ;;  %v54_v14 = vld [vmem:[%s9513_s1 + $0x68] sm:$0xff] }
   0x5   :  { %v57_v6 = vld [vmem:[%s9513_s1 + $0x80] sm:$0xff]  ;;  %v6009_v7 = vcombine.high %v49_v2, %v53_v5  ;;  %528 = vmatprep.subr.bf16.mxu0 %v6001_v3  ;;  %v6008_v15 = vcombine.low %v49_v2, %v53_v5  ;;  %v6011_v16 = vcombine.high %v50_v13, %v54_v14  ;;  %v58_v17 = vld [vmem:[%s9513_s1 + $0x88] sm:$0xff]  ;;  %571 = vmatprep.subr.bf16.mxu1 %v6003_v11  ;;  %v48_v11 = vld [vmem:[%s9513_s1 + $0x38] sm:$0xff] }
   0x6   :  { %v61_v8 = vld [vmem:[%s9513_s1 + $0xa0] sm:$0xff]  ;;  %529 = vmatpush1.bf16.msra.mxu0 %v6000_v4  ;;  %v62_v19 = vld [vmem:[%s9513_s1 + $0xa8] sm:$0xff]  ;;  %572 = vmatpush1.bf16.msra.mxu1 %v6002_v12  ;;  %v6010_v22 = vcombine.low %v50_v13, %v54_v14  ;;  %v51_v14 = vld [vmem:[%s9513_s1 + $0x50] sm:$0xff] }
   0x7   :  { %530 = vmatprep.subr.bf16.mxu0 %v6009_v7  ;;  %v6017_v18 = vcombine.high %v57_v6, %v61_v8  ;;  %v65_v20 = vld [vmem:[%s9513_s1 + $0xc0] sm:$0xff]  ;;  %573 = vmatprep.subr.bf16.mxu1 %v6011_v16  ;;  %v6019_v23 = vcombine.high %v58_v17, %v62_v19  ;;  %v6016_v24 = vcombine.low %v57_v6, %v61_v8  ;;  %v66_v25 = vld [vmem:[%s9513_s1 + $0xc8] sm:$0xff]  ;;  %v43_v6 = vld [vmem:[%s9513_s1 + $0x10] sm:$0xff] }
   0x8   :  { %v69_v21 = vld [vmem:[%s9513_s1 + $0xe0] sm:$0xff]  ;;  %v70_v26 = vld [vmem:[%s9513_s1 + $0xe8] sm:$0xff]  ;;  %v6018_v30 = vcombine.low %v58_v17, %v62_v19  ;;  %v47_v7 = vld [vmem:[%s9513_s1 + $0x30] sm:$0xff]  ;;  %v6007_v17 = vcombine.high %v44_v10, %v48_v11 }
   0x9   :  { %v6025_v27 = vcombine.high %v65_v20, %v69_v21  ;;  %v73_v28 = vld [vmem:[%s9513_s1 + $0x100] sm:$0xff]  ;;  %v6027_v31 = vcombine.high %v66_v25, %v70_v26  ;;  %v6024_v33 = vcombine.low %v65_v20, %v69_v21  ;;  %v74_v34 = vld [vmem:[%s9513_s1 + $0x108] sm:$0xff]  ;;  %v6026_v39 = vcombine.low %v66_v25, %v70_v26  ;;  %v52_v19 = vld [vmem:[%s9513_s1 + $0x58] sm:$0xff] }
   0xa   :  { %531 = vmatpush1.bf16.msra.mxu0 %v6008_v15  ;;  %574 = vmatpush1.bf16.msra.mxu1 %v6010_v22  ;;  %v77_v29 = vld [vmem:[%s9513_s1 + $0x120] sm:$0xff]  ;;  %v78_v35 = vld [vmem:[%s9513_s1 + $0x128] sm:$0xff]  ;;  %v6005_v12 = vcombine.high %v43_v6, %v47_v7  ;;  %v55_v15 = vld [vmem:[%s9513_s1 + $0x70] sm:$0xff] }
   0xb   :  { %532 = vmatprep.subr.bf16.mxu0 %v6017_v18  ;;  %575 = vmatprep.subr.bf16.mxu1 %v6019_v23  ;;  %v7024_v32 = vld [vmem:[%s9514_s0 + $0x4] ss:$8 sps:$4 sm:$0xff]   ;;  %v6033_v36 = vcombine.high %v73_v28, %v77_v29  ;;  %v6035_v40 = vcombine.high %v74_v34, %v78_v35  ;;  %v6032_v41 = vcombine.low %v73_v28, %v77_v29  ;;  %v7105_v16 = vld [vmem:[%s9514_s0] ss:$8 sps:$4 sm:$0xff]   ;;  %v56_v20 = vld [vmem:[%s9513_s1 + $0x78] sm:$0xff] }
   0xc   :  { %6072 = vmatprep.mubr.msk.bf16.mxu0 %vm524_vm0, %v7024_v32  ;;  %v81_v37 = vld [vmem:[%s9513_s1 + $0x140] sm:$0xff]  ;;  %6073 = vmatprep.mubr.msk.bf16.mxu1 %vm524_vm0, %v7024_v32  ;;  %v82_v42 = vld [vmem:[%s9513_s1 + $0x148] sm:$0xff]  ;;  %v6034_v47 = vcombine.low %v74_v34, %v78_v35  ;;  %v6004_v18 = vcombine.low %v43_v6, %v47_v7  ;;  %v6013_v21 = vcombine.high %v51_v14, %v55_v15  ;;  %v59_v22 = vld [vmem:[%s9513_s1 + $0x90] sm:$0xff] }
   0xd   :  { %v85_v38 = vld [vmem:[%s9513_s1 + $0x160] sm:$0xff]  ;;  %v86_v43 = vld [vmem:[%s9513_s1 + $0x168] sm:$0xff]  ;;  %v63_v23 = vld [vmem:[%s9513_s1 + $0xb0] sm:$0xff]  ;;  %v6015_v25 = vcombine.high %v52_v19, %v56_v20  ;;  %v6012_v26 = vcombine.low %v51_v14, %v55_v15 }
   0xe   :  { %533 = vmatpush1.bf16.msra.mxu0 %v6016_v24  ;;  %576 = vmatpush1.bf16.msra.mxu1 %v6018_v30  ;;  %v6041_v44 = vcombine.high %v81_v37, %v85_v38  ;;  %v89_v45 = vld [vmem:[%s9513_s1 + $0x180] sm:$0xff]  ;;  %v6043_v48 = vcombine.high %v82_v42, %v86_v43  ;;  %v6040_v49 = vcombine.low %v81_v37, %v85_v38  ;;  %v90_v50 = vld [vmem:[%s9513_s1 + $0x188] sm:$0xff]  ;;  %v64_v28 = vld [vmem:[%s9513_s1 + $0xb8] sm:$0xff] }
   0xf   :  { %534 = vmatprep.subr.bf16.mxu0 %v6025_v27  ;;  %577 = vmatprep.subr.bf16.mxu1 %v6027_v31  ;;  %v93_v46 = vld [vmem:[%s9513_s1 + $0x1a0] sm:$0xff]  ;;  %v94_v51 = vld [vmem:[%s9513_s1 + $0x1a8] sm:$0xff]  ;;  %v6042_v55 = vcombine.low %v82_v42, %v86_v43  ;;  %v6006_v24 = vcombine.low %v44_v10, %v48_v11  ;;  %v60_v27 = vld [vmem:[%s9513_s1 + $0x98] sm:$0xff]  ;;  %v6021_v29 = vcombine.high %v59_v22, %v63_v23 }
  0x10   :  { %v6049_v52 = vcombine.high %v89_v45, %v93_v46  ;;  %v97_v53 = vld [vmem:[%s9513_s1 + $0x1c0] sm:$0xff]  ;;  %v6051_v56 = vcombine.high %v90_v50, %v94_v51  ;;  %v6048_v57 = vcombine.low %v89_v45, %v93_v46  ;;  %v98_v58 = vld [vmem:[%s9513_s1 + $0x1c8] sm:$0xff]  ;;  %v6050_v63 = vcombine.low %v90_v50, %v94_v51  ;;  %v67_v30 = vld [vmem:[%s9513_s1 + $0xd0] sm:$0xff] }
  0x11   :  { %v101_v54 = vld [vmem:[%s9513_s1 + $0x1e0] sm:$0xff]  ;;  %v102_v59 = vld [vmem:[%s9513_s1 + $0x1e8] sm:$0xff]  ;;  %v71_v31 = vld [vmem:[%s9513_s1 + $0xf0] sm:$0xff]  ;;  %v6023_v34 = vcombine.high %v60_v27, %v64_v28  ;;  %v6020_v35 = vcombine.low %v59_v22, %v63_v23 }
  0x12   :  { %535 = vmatpush1.bf16.msra.mxu0 %v6024_v33  ;;  %578 = vmatpush1.bf16.msra.mxu1 %v6026_v39  ;;  %v6057_v60 = vcombine.high %v97_v53, %v101_v54  ;;  %v105_v61 = vld [vmem:[%s9513_s1 + $0x200] sm:$0xff]  ;;  %v6059_v0 = vcombine.high %v98_v58, %v102_v59  ;;  %v6056_v1 = vcombine.low %v97_v53, %v101_v54  ;;  %v106_v2 = vld [vmem:[%s9513_s1 + $0x208] sm:$0xff]  ;;  %v72_v37 = vld [vmem:[%s9513_s1 + $0xf8] sm:$0xff] }
  0x13   :  { %536 = vmatprep.subr.bf16.mxu0 %v6033_v36  ;;  %579 = vmatprep.subr.bf16.mxu1 %v6035_v40  ;;  %v109_v62 = vld [vmem:[%s9513_s1 + $0x220] sm:$0xff]  ;;  %v110_v3 = vld [vmem:[%s9513_s1 + $0x228] sm:$0xff]  ;;  %v6058_v5 = vcombine.low %v98_v58, %v102_v59  ;;  %v6014_v33 = vcombine.low %v52_v19, %v56_v20  ;;  %v68_v36 = vld [vmem:[%s9513_s1 + $0xd8] sm:$0xff]  ;;  %v6029_v38 = vcombine.high %v67_v30, %v71_v31 }
  0x14   :  { %v6065_v4 = vcombine.high %v105_v61, %v109_v62  ;;  %v6067_v8 = vcombine.high %v106_v2, %v110_v3  ;;  %v6064_v9 = vcombine.low %v105_v61, %v109_v62  ;;  %v6066_v13 = vcombine.low %v106_v2, %v110_v3  ;;  %v75_v39 = vld [vmem:[%s9513_s1 + $0x110] sm:$0xff]  ;;  %v76_v43 = vld [vmem:[%s9513_s1 + $0x118] sm:$0xff]  ;;  %v1105_v19 = vld [vmem:[%s9515_s5] sm:$0xff] }
  0x15   :  { %v6022_v40 = vcombine.low %v60_v27, %v64_v28  ;;  %v6028_v42 = vcombine.low %v67_v30, %v71_v31  ;;  %v83_v46 = vld [vmem:[%s9513_s1 + $0x150] sm:$0xff]  ;;  %v84_v51 = vld [vmem:[%s9513_s1 + $0x158] sm:$0xff]  ;;  %v1109_v20 = vld [vmem:[%s9515_s5 + $0x20] sm:$0xff] }
  0x16   :  { %537 = vmatpush1.bf16.msra.mxu0 %v6032_v41  ;;  %580 = vmatpush1.bf16.msra.mxu1 %v6034_v47  ;;  %v6031_v41 = vcombine.high %v68_v36, %v72_v37  ;;  %v87_v47 = vld [vmem:[%s9513_s1 + $0x170] sm:$0xff]  ;;  %v92_v59 = vld [vmem:[%s9513_s1 + $0x198] sm:$0xff]  ;;  %v6078_v22 = vcombine.high %v1105_v19, %v1109_v20  ;;  %v1110_v23 = vld [vmem:[%s9515_s5 + $0x28] sm:$0xff] }
  0x17   :  { %538 = vmatprep.subr.bf16.mxu0 %v6041_v44  ;;  %581 = vmatprep.subr.bf16.mxu1 %v6043_v48  ;;  %v80_v44 = vld [vmem:[%s9513_s1 + $0x138] sm:$0xff]  ;;  %v6030_v48 = vcombine.low %v68_v36, %v72_v37  ;;  %v6045_v53 = vcombine.high %v83_v46, %v87_v47  ;;  %v91_v54 = vld [vmem:[%s9513_s1 + $0x190] sm:$0xff]  ;;  %v6044_v58 = vcombine.low %v83_v46, %v87_v47  ;;  %v1117_v27 = vld [vmem:[%s9515_s5 + $0x60] sm:$0xff] }
  0x18   :  { %v99_v62 = vld [vmem:[%s9513_s1 + $0x1d0] sm:$0xff]  ;;  %v100_v3 = vld [vmem:[%s9513_s1 + $0x1d8] sm:$0xff]  ;;  %v1114_v28 = vld [vmem:[%s9515_s5 + $0x48] sm:$0xff] }
  0x19   :  { %v107_v6 = vld [vmem:[%s9513_s1 + $0x210] sm:$0xff]  ;;  %v108_v11 = vld [vmem:[%s9513_s1 + $0x218] sm:$0xff]  ;;  %v1118_v30 = vld [vmem:[%s9515_s5 + $0x68] sm:$0xff] }
  0x1a   :  { %539 = vmatpush1.bf16.msra.mxu0 %v6040_v49  ;;  %582 = vmatpush1.bf16.msra.mxu1 %v6042_v55  ;;  %v6039_v49 = vcombine.high %v76_v43, %v80_v44  ;;  %v95_v55 = vld [vmem:[%s9513_s1 + $0x1b0] sm:$0xff]  ;;  %v1125_v36 = vld [vmem:[%s9515_s5 + $0xa0] sm:$0xff]  ;;  %v1122_v37 = vld [vmem:[%s9515_s5 + $0x88] sm:$0xff] }
  0x1b   :  { %540 = vmatprep.subr.bf16.mxu0 %v6049_v52  ;;  %583 = vmatprep.subr.bf16.mxu1 %v6051_v56  ;;  %v88_v52 = vld [vmem:[%s9513_s1 + $0x178] sm:$0xff]  ;;  %v6038_v56 = vcombine.low %v76_v43, %v80_v44  ;;  %v6053_v61 = vcombine.high %v91_v54, %v95_v55  ;;  %v6052_v2 = vcombine.low %v91_v54, %v95_v55  ;;  %v111_v7 = vld [vmem:[%s9513_s1 + $0x230] sm:$0xff]  ;;  %v1133_v43 = vld [vmem:[%s9515_s5 + $0xe0] sm:$0xff] }
  0x1c   :  { %v1130_v44 = vld [vmem:[%s9515_s5 + $0xc8] sm:$0xff] }
  0x1d   :  { %v1134_v46 = vld [vmem:[%s9515_s5 + $0xe8] sm:$0xff] }
  0x1e   :  { %541 = vmatpush1.bf16.msra.mxu0 %v6048_v57  ;;  %584 = vmatpush1.bf16.msra.mxu1 %v6050_v63  ;;  %v6047_v57 = vcombine.high %v84_v51, %v88_v52  ;;  %v103_v63 = vld [vmem:[%s9513_s1 + $0x1f0] sm:$0xff]  ;;  %v1142_v54 = vld [vmem:[%s9515_s5 + $0x128] sm:$0xff] }
  0x1f   :  { %542 = vmatprep.subr.bf16.mxu0 %v6057_v60  ;;  %585 = vmatprep.subr.bf16.mxu1 %v6059_v0  ;;  %v96_v60 = vld [vmem:[%s9513_s1 + $0x1b8] sm:$0xff]  ;;  %v6046_v0 = vcombine.low %v84_v51, %v88_v52  ;;  %v6060_v10 = vcombine.low %v99_v62, %v103_v63  ;;  %v1141_v51 = vld [vmem:[%s9515_s5 + $0x120] sm:$0xff]  ;;  %v1138_v52 = vld [vmem:[%s9515_s5 + $0x108] sm:$0xff] }
  0x22   :  { %543 = vmatpush1.bf16.msra.mxu0 %v6056_v1  ;;  %586 = vmatpush1.bf16.msra.mxu1 %v6058_v5  ;;  %v6055_v1 = vcombine.high %v92_v59, %v96_v60  ;;  %v6061_v5 = vcombine.high %v99_v62, %v103_v63  ;;  %v1150_v62 = vld [vmem:[%s9515_s5 + $0x168] sm:$0xff] }
  0x23   :  { %544 = vmatprep.subr.bf16.mxu0 %v6065_v4  ;;  %587 = vmatprep.subr.bf16.mxu1 %v6067_v8  ;;  %v104_v4 = vld [vmem:[%s9513_s1 + $0x1f8] sm:$0xff]  ;;  %v6054_v8 = vcombine.low %v92_v59, %v96_v60  ;;  %v1149_v59 = vld [vmem:[%s9515_s5 + $0x160] sm:$0xff]  ;;  %v1146_v60 = vld [vmem:[%s9515_s5 + $0x148] sm:$0xff] }
  0x24   :  { %v6062_v14 = vcombine.low %v100_v3, %v104_v4 }
  0x26   :  { %545 = vmatpush1.bf16.msra.mxu0 %v6064_v9  ;;  %588 = vmatpush1.bf16.msra.mxu1 %v6066_v13  ;;  %v6063_v9 = vcombine.high %v100_v3, %v104_v4  ;;  %v6069_v13 = vcombine.high %v107_v6, %v111_v7  ;;  %v1157_v3 = vld [vmem:[%s9515_s5 + $0x1a0] sm:$0xff]  ;;  %v1154_v4 = vld [vmem:[%s9515_s5 + $0x188] sm:$0xff] }
  0x27   :  { %614 = vmatprep.subr.bf16.mxu0 %v6005_v12  ;;  %657 = vmatprep.subr.bf16.mxu1 %v6007_v17  ;;  %v112_v12 = vld [vmem:[%s9513_s1 + $0x238] sm:$0xff]  ;;  %v6068_v17 = vcombine.low %v107_v6, %v111_v7  ;;  %v1158_v6 = vld [vmem:[%s9515_s5 + $0x1a8] sm:$0xff] }
  0x28   :  { %v6071_v15 = vcombine.high %v108_v11, %v112_v12 }
  0x29   :  { %561 = vmatmul.mubr.bf16.vlgmr.msra.gmra.mrb[0].mxu0 %v7105_v16  ;;  %604 = vmatmul.mubr.bf16.vlgmr.msra.gmra.mrb[0].mxu1 %v7105_v16 }
  0x2a   :  { %615 = vmatpush1.bf16.msra.mxu0 %v6004_v18  ;;  %6074 = vmatprep.mubr.msk.bf16.mxu0 %vm524_vm0, %v7024_v32  ;;  %v6070_v18 = vcombine.low %v108_v11, %v112_v12  ;;  %v1165_v11 = vld [vmem:[%s9515_s5 + $0x1e0] sm:$0xff]  ;;  %v1162_v12 = vld [vmem:[%s9515_s5 + $0x1c8] sm:$0xff] }
  0x2b   :  { %616 = vmatprep.subr.bf16.mxu0 %v6013_v21  ;;  %658 = vmatpush1.bf16.msra.mxu1 %v6006_v24  ;;  %v1106_v21 = vld [vmem:[%s9515_s5 + $0x8] sm:$0xff]  ;;  %v6077_v24 = vcombine.low %v1105_v19, %v1109_v20  ;;  %v1169_v19 = vld [vmem:[%s9515_s5 + $0x200] sm:$0xff] }
  0x2c   :  { %6075 = vmatprep.mubr.msk.bf16.mxu1 %vm524_vm0, %v7024_v32  ;;  %659 = vmatprep.subr.bf16.mxu1 %v6015_v25  ;;  %v79_v32 = vld [vmem:[%s9513_s1 + $0x130] sm:$0xff]  ;;  %v6079_v25 = vcombine.low %v1106_v21, %v1110_v23  ;;  %v1173_v20 = vld [vmem:[%s9515_s5 + $0x220] sm:$0xff] }
  0x2d   :  { %v6037_v45 = vcombine.high %v75_v39, %v79_v32  ;;  %v6036_v50 = vcombine.low %v75_v39, %v79_v32  ;;  %v1126_v39 = vld [vmem:[%s9515_s5 + $0xa8] sm:$0xff] }
  0x2e   :  { %617 = vmatpush1.bf16.msra.mxu0 %v6012_v26  ;;  %v1113_v26 = vld [vmem:[%s9515_s5 + $0x40] sm:$0xff] }
  0x2f   :  { %618 = vmatprep.subr.bf16.mxu0 %v6021_v29  ;;  %660 = vmatpush1.bf16.msra.mxu1 %v6014_v33  ;;  %v6086_v29 = vcombine.high %v1113_v26, %v1117_v27  ;;  %v6085_v31 = vcombine.low %v1113_v26, %v1117_v27  ;;  %v6087_v33 = vcombine.low %v1114_v28, %v1118_v30  ;;  %v1177_v26 = vld [vmem:[%s9515_s5 + $0x240] sm:$0xff] }
  0x30   :  { %661 = vmatprep.subr.bf16.mxu1 %v6023_v34  ;;  %v6088_v34 = vcombine.high %v1114_v28, %v1118_v30  ;;  %v1181_v27 = vld [vmem:[%s9515_s5 + $0x260] sm:$0xff]  ;;  %v1178_v28 = vld [vmem:[%s9515_s5 + $0x248] sm:$0xff] }
  0x31   :  { %v1182_v30 = vld [vmem:[%s9515_s5 + $0x268] sm:$0xff] }
  0x32   :  { %619 = vmatpush1.bf16.msra.mxu0 %v6020_v35  ;;  %v1121_v35 = vld [vmem:[%s9515_s5 + $0x80] sm:$0xff] }
  0x33   :  { %620 = vmatprep.subr.bf16.mxu0 %v6029_v38  ;;  %662 = vmatpush1.bf16.msra.mxu1 %v6022_v40  ;;  %v6094_v38 = vcombine.high %v1121_v35, %v1125_v36  ;;  %v6093_v32 = vcombine.low %v1121_v35, %v1125_v36  ;;  %v6095_v40 = vcombine.low %v1122_v37, %v1126_v39  ;;  %v1185_v35 = vld [vmem:[%s9515_s5 + $0x280] sm:$0xff] }
  0x34   :  { %663 = vmatprep.subr.bf16.mxu1 %v6031_v41  ;;  %v6096_v41 = vcombine.high %v1122_v37, %v1126_v39  ;;  %v1189_v36 = vld [vmem:[%s9515_s5 + $0x2a0] sm:$0xff]  ;;  %v1186_v37 = vld [vmem:[%s9515_s5 + $0x288] sm:$0xff] }
  0x35   :  { %v1190_v39 = vld [vmem:[%s9515_s5 + $0x2a8] sm:$0xff] }
  0x36   :  { %621 = vmatpush1.bf16.msra.mxu0 %v6028_v42  ;;  %v1129_v42 = vld [vmem:[%s9515_s5 + $0xc0] sm:$0xff] }
  0x37   :  { %622 = vmatprep.subr.bf16.mxu0 %v6037_v45  ;;  %664 = vmatpush1.bf16.msra.mxu1 %v6030_v48  ;;  %v6102_v45 = vcombine.high %v1129_v42, %v1133_v43  ;;  %v6101_v47 = vcombine.low %v1129_v42, %v1133_v43  ;;  %v6103_v48 = vcombine.low %v1130_v44, %v1134_v46  ;;  %v1193_v42 = vld [vmem:[%s9515_s5 + $0x2c0] sm:$0xff] }
  0x38   :  { %665 = vmatprep.subr.bf16.mxu1 %v6039_v49  ;;  %v6104_v49 = vcombine.high %v1130_v44, %v1134_v46  ;;  %v1197_v43 = vld [vmem:[%s9515_s5 + $0x2e0] sm:$0xff]  ;;  %v1194_v44 = vld [vmem:[%s9515_s5 + $0x2c8] sm:$0xff] }
  0x39   :  { %v1198_v46 = vld [vmem:[%s9515_s5 + $0x2e8] sm:$0xff] }
  0x3a   :  { %623 = vmatpush1.bf16.msra.mxu0 %v6036_v50  ;;  %v1137_v50 = vld [vmem:[%s9515_s5 + $0x100] sm:$0xff] }
  0x3b   :  { %624 = vmatprep.subr.bf16.mxu0 %v6045_v53  ;;  %666 = vmatpush1.bf16.msra.mxu1 %v6038_v56  ;;  %v6110_v53 = vcombine.high %v1137_v50, %v1141_v51  ;;  %v6109_v55 = vcombine.low %v1137_v50, %v1141_v51  ;;  %v6111_v56 = vcombine.low %v1138_v52, %v1142_v54  ;;  %v1201_v50 = vld [vmem:[%s9515_s5 + $0x300] sm:$0xff] }
  0x3c   :  { %667 = vmatprep.subr.bf16.mxu1 %v6047_v57  ;;  %v6112_v57 = vcombine.high %v1138_v52, %v1142_v54  ;;  %v1205_v51 = vld [vmem:[%s9515_s5 + $0x320] sm:$0xff]  ;;  %v1202_v52 = vld [vmem:[%s9515_s5 + $0x308] sm:$0xff] }
  0x3d   :  { %v1206_v54 = vld [vmem:[%s9515_s5 + $0x328] sm:$0xff] }
  0x3e   :  { %625 = vmatpush1.bf16.msra.mxu0 %v6044_v58  ;;  %v1145_v58 = vld [vmem:[%s9515_s5 + $0x140] sm:$0xff] }
  0x3f   :  { %626 = vmatprep.subr.bf16.mxu0 %v6053_v61  ;;  %668 = vmatpush1.bf16.msra.mxu1 %v6046_v0  ;;  %v6118_v61 = vcombine.high %v1145_v58, %v1149_v59  ;;  %v6117_v63 = vcombine.low %v1145_v58, %v1149_v59  ;;  %v6119_v0 = vcombine.low %v1146_v60, %v1150_v62  ;;  %v1209_v58 = vld [vmem:[%s9515_s5 + $0x340] sm:$0xff] }
  0x40   :  { %669 = vmatprep.subr.bf16.mxu1 %v6055_v1  ;;  %v6120_v1 = vcombine.high %v1146_v60, %v1150_v62  ;;  %v1213_v59 = vld [vmem:[%s9515_s5 + $0x360] sm:$0xff]  ;;  %v1210_v60 = vld [vmem:[%s9515_s5 + $0x348] sm:$0xff] }
  0x41   :  { %v1214_v62 = vld [vmem:[%s9515_s5 + $0x368] sm:$0xff] }
  0x42   :  { %627 = vmatpush1.bf16.msra.mxu0 %v6052_v2  ;;  %v1153_v2 = vld [vmem:[%s9515_s5 + $0x180] sm:$0xff] }
  0x43   :  { %628 = vmatprep.subr.bf16.mxu0 %v6061_v5  ;;  %670 = vmatpush1.bf16.msra.mxu1 %v6054_v8  ;;  %v6126_v5 = vcombine.high %v1153_v2, %v1157_v3  ;;  %v6125_v7 = vcombine.low %v1153_v2, %v1157_v3  ;;  %v6127_v8 = vcombine.low %v1154_v4, %v1158_v6  ;;  %v1217_v2 = vld [vmem:[%s9515_s5 + $0x380] sm:$0xff] }
  0x44   :  { %671 = vmatprep.subr.bf16.mxu1 %v6063_v9  ;;  %v6128_v9 = vcombine.high %v1154_v4, %v1158_v6  ;;  %v1221_v3 = vld [vmem:[%s9515_s5 + $0x3a0] sm:$0xff]  ;;  %v1218_v4 = vld [vmem:[%s9515_s5 + $0x388] sm:$0xff] }
  0x45   :  { %v1222_v6 = vld [vmem:[%s9515_s5 + $0x3a8] sm:$0xff] }
  0x46   :  { %629 = vmatpush1.bf16.msra.mxu0 %v6060_v10  ;;  %v1161_v10 = vld [vmem:[%s9515_s5 + $0x1c0] sm:$0xff] }
  0x47   :  { %630 = vmatprep.subr.bf16.mxu0 %v6069_v13  ;;  %672 = vmatpush1.bf16.msra.mxu1 %v6062_v14  ;;  %v6134_v13 = vcombine.high %v1161_v10, %v1165_v11  ;;  %v1166_v14 = vld [vmem:[%s9515_s5 + $0x1e8] sm:$0xff] }
  0x48   :  { %673 = vmatprep.subr.bf16.mxu1 %v6071_v15  ;;  %v6133_v15 = vcombine.low %v1161_v10, %v1165_v11  ;;  %v1225_v10 = vld [vmem:[%s9515_s5 + $0x3c0] sm:$0xff] }
  0x49   :  { %v1229_v11 = vld [vmem:[%s9515_s5 + $0x3e0] sm:$0xff] }
  0x4a   :  { %631 = vmatpush1.bf16.msra.mxu0 %v6068_v17  ;;  %v6135_v17 = vcombine.low %v1162_v12, %v1166_v14 }
  0x4b   :  { %674 = vmatpush1.bf16.msra.mxu1 %v6070_v18  ;;  %4219 = vmatprep.subr.bf16.mxu0 %v6078_v22  ;;  %v6136_v18 = vcombine.high %v1162_v12, %v1166_v14  ;;  %v6142_v22 = vcombine.high %v1169_v19, %v1173_v20  ;;  %v1226_v12 = vld [vmem:[%s9515_s5 + $0x3c8] sm:$0xff] }
  0x4c   :  { %v1230_v14 = vld [vmem:[%s9515_s5 + $0x3e8] sm:$0xff] }
  0x4d   :  { %647 = vmatmul.mubr.bf16.vlgmr.msra.gmra.mrb[4].mxu0 %v7105_v16 }
  0x4e   :  { %690 = vmatmul.mubr.bf16.vlgmr.msra.gmra.mrb[4].mxu1 %v7105_v16  ;;  %v6080_v16 = vcombine.high %v1106_v21, %v1110_v23  ;;  %4220 = vmatpush1.bf16.msra.mxu0 %v6077_v24  ;;  %v1170_v21 = vld [vmem:[%s9515_s5 + $0x208] sm:$0xff]  ;;  %v6141_v24 = vcombine.low %v1169_v19, %v1173_v20  ;;  %v7400_v19 = vld [vmem:[%s9515_s5 + $0x400] sm:$0xff] }
  0x4f   :  { %4221 = vmatprep.subr.bf16.mxu0 %v6086_v29  ;;  %v1174_v23 = vld [vmem:[%s9515_s5 + $0x228] sm:$0xff]  ;;  %v6150_v29 = vcombine.high %v1177_v26, %v1181_v27  ;;  %v7405_v20 = vld [vmem:[%s9515_s5 + $0x420] sm:$0xff] }
  0x50   :  { %4391 = vmatprep.subr.bf16.mxu1 %v6080_v16  ;;  %v6144_v16 = vcombine.high %v1170_v21, %v1174_v23 }
  0x51   :  { %4392 = vmatpush1.bf16.msra.mxu1 %v6079_v25  ;;  %v6143_v25 = vcombine.low %v1170_v21, %v1174_v23  ;;  %v7410_v21 = vld [vmem:[%s9515_s5 + $0x408] sm:$0xff] }
  0x52   :  { %4393 = vmatprep.subr.bf16.mxu1 %v6088_v34  ;;  %4222 = vmatpush1.bf16.msra.mxu0 %v6085_v31  ;;  %v6149_v31 = vcombine.low %v1177_v26, %v1181_v27  ;;  %v6152_v34 = vcombine.high %v1178_v28, %v1182_v30  ;;  %v7417_v23 = vld [vmem:[%s9515_s5 + $0x428] sm:$0xff]  ;;  %v115_v26 = vlaneseq }
  0x53   :  { %4223 = vmatprep.subr.bf16.mxu0 %v6094_v38  ;;  %v6158_v38 = vcombine.high %v1185_v35, %v1189_v36 }
  0x54   :  { %v7425_v27 = vshrl.u32 %v115_v26, 7 }
  0x55   :  { %4394 = vmatpush1.bf16.msra.mxu1 %v6087_v33  ;;  %v6151_v33 = vcombine.low %v1178_v28, %v1182_v30 }
  0x56   :  { %4395 = vmatprep.subr.bf16.mxu1 %v6096_v41  ;;  %4224 = vmatpush1.bf16.msra.mxu0 %v6093_v32  ;;  %v6157_v32 = vcombine.low %v1185_v35, %v1189_v36  ;;  %v6160_v41 = vcombine.high %v1186_v37, %v1190_v39  ;;  %v7428_v28 = vsub.s32 0, %v7425_v27  ;;  %v7436_v30 = vsub.s32 1, %v7425_v27 }
  0x57   :  { %4225 = vmatprep.subr.bf16.mxu0 %v6102_v45  ;;  %v6166_v45 = vcombine.high %v1193_v42, %v1197_v43  ;;  %vm705_vm1 = vcmp.lt.s32.totalorder %v7425_v27, 2 }
  0x58   :  { %9533 = vst [vmem:[#allocation2_spill] sm:$0xff] %v7428_v28  ;;  %9534 = vst [vmem:[#allocation3_spill] sm:$0xff] %v7436_v30 }
  0x59   :  { %4396 = vmatpush1.bf16.msra.mxu1 %v6095_v40  ;;  %v6159_v40 = vcombine.low %v1186_v37, %v1190_v39 }
  0x5a   :  { %4397 = vmatprep.subr.bf16.mxu1 %v6104_v49  ;;  %4226 = vmatpush1.bf16.msra.mxu0 %v6101_v47  ;;  %v6165_v47 = vcombine.low %v1193_v42, %v1197_v43  ;;  %v6168_v49 = vcombine.high %v1194_v44, %v1198_v46 }
  0x5b   :  { %4227 = vmatprep.subr.bf16.mxu0 %v6110_v53  ;;  %v6174_v53 = vcombine.high %v1201_v50, %v1205_v51 }
  0x5d   :  { %4398 = vmatpush1.bf16.msra.mxu1 %v6103_v48  ;;  %v6167_v48 = vcombine.low %v1194_v44, %v1198_v46 }
  0x5e   :  { %4399 = vmatprep.subr.bf16.mxu1 %v6112_v57  ;;  %4228 = vmatpush1.bf16.msra.mxu0 %v6109_v55  ;;  %v6173_v55 = vcombine.low %v1201_v50, %v1205_v51  ;;  %v6176_v57 = vcombine.high %v1202_v52, %v1206_v54 }
  0x5f   :  { %4229 = vmatprep.subr.bf16.mxu0 %v6118_v61  ;;  %v6182_v61 = vcombine.high %v1209_v58, %v1213_v59 }
  0x61   :  { %4400 = vmatpush1.bf16.msra.mxu1 %v6111_v56  ;;  %v6175_v56 = vcombine.low %v1202_v52, %v1206_v54 }
  0x62   :  { %4401 = vmatprep.subr.bf16.mxu1 %v6120_v1  ;;  %4230 = vmatpush1.bf16.msra.mxu0 %v6117_v63  ;;  %v6181_v63 = vcombine.low %v1209_v58, %v1213_v59  ;;  %v6184_v1 = vcombine.high %v1210_v60, %v1214_v62 }
  0x63   :  { %4231 = vmatprep.subr.bf16.mxu0 %v6126_v5  ;;  %v6190_v5 = vcombine.high %v1217_v2, %v1221_v3 }
  0x65   :  { %4402 = vmatpush1.bf16.msra.mxu1 %v6119_v0  ;;  %v6183_v0 = vcombine.low %v1210_v60, %v1214_v62 }
  0x66   :  { %4403 = vmatprep.subr.bf16.mxu1 %v6128_v9  ;;  %4232 = vmatpush1.bf16.msra.mxu0 %v6125_v7  ;;  %v6189_v7 = vcombine.low %v1217_v2, %v1221_v3  ;;  %v6192_v9 = vcombine.high %v1218_v4, %v1222_v6 }
  0x67   :  { %4233 = vmatprep.subr.bf16.mxu0 %v6134_v13  ;;  %v6198_v13 = vcombine.high %v1225_v10, %v1229_v11 }
  0x69   :  { %4404 = vmatpush1.bf16.msra.mxu1 %v6127_v8  ;;  %v6191_v8 = vcombine.low %v1218_v4, %v1222_v6 }
  0x6a   :  { %4405 = vmatprep.subr.bf16.mxu1 %v6136_v18  ;;  %4234 = vmatpush1.bf16.msra.mxu0 %v6133_v15  ;;  %v6197_v15 = vcombine.low %v1225_v10, %v1229_v11  ;;  %v6200_v18 = vcombine.high %v1226_v12, %v1230_v14 }
  0x6b   :  { %4235 = vmatprep.subr.bf16.mxu0 %v6142_v22  ;;  %v6206_v22 = vcombine.high %v7400_v19, %v7405_v20 }
  0x6d   :  { %4406 = vmatpush1.bf16.msra.mxu1 %v6135_v17  ;;  %v6199_v17 = vcombine.low %v1226_v12, %v1230_v14 }
  0x6e   :  { %4407 = vmatprep.subr.bf16.mxu1 %v6144_v16  ;;  %4236 = vmatpush1.bf16.msra.mxu0 %v6141_v24  ;;  %v6208_v16 = vcombine.high %v7410_v21, %v7417_v23 }
  0x6f   :  { %4237 = vmatprep.subr.bf16.mxu0 %v6150_v29  ;;  %v7433_v29 = vld [vmem:[%s9516_s2] sm:$0xff] }
  0x70   :  { %v122_v35 = vrot.slane %v7433_v29, %v7436_v30 }
  0x71   :  { %4408 = vmatpush1.bf16.msra.mxu1 %v6143_v25 }
  0x72   :  { %4409 = vmatprep.subr.bf16.mxu1 %v6152_v34  ;;  %4238 = vmatpush1.bf16.msra.mxu0 %v6149_v31  ;;  %v7439_v31 = vsub.s32 2, %v7425_v27  ;;  %v118_v34 = vrot.slane %v7433_v29, %v7428_v28 }
  0x73   :  { %4239 = vmatprep.subr.bf16.mxu0 %v6158_v38 }
  0x74   :  { %9535 = vst [vmem:[#allocation4_spill] sm:$0xff] %v7439_v31  ;;  %v126_v36 = vrot.slane %v7433_v29, %v7439_v31 }
  0x75   :  { %4410 = vmatpush1.bf16.msra.mxu1 %v6151_v33  ;;  %v7442_v33 = vsub.s32 3, %v7425_v27 }
  0x76   :  { %4411 = vmatprep.subr.bf16.mxu1 %v6160_v41  ;;  %4240 = vmatpush1.bf16.msra.mxu0 %v6157_v32 }
  0x77   :  { %4241 = vmatprep.subr.bf16.mxu0 %v6166_v45  ;;  %9536 = vst [vmem:[#allocation5_spill] sm:$0xff] %v7442_v33  ;;  %v130_v38 = vrot.slane %v7433_v29, %v7442_v33 }
  0x79   :  { %4412 = vmatpush1.bf16.msra.mxu1 %v6159_v40  ;;  %v6906_v40 = vmov 0.0  }
  0x7a   :  { %4413 = vmatprep.subr.bf16.mxu1 %v6168_v49  ;;  %4242 = vmatpush1.bf16.msra.mxu0 %v6165_v47  ;;  %v7453_v41 = vsel %vm705_vm1, 1.0, %v6906_v40 }
  0x7b   :  { %4243 = vmatprep.subr.bf16.mxu0 %v6174_v53 }
  0x7d   :  { %4414 = vmatpush1.bf16.msra.mxu1 %v6167_v48 }
  0x7e   :  { %4415 = vmatprep.subr.bf16.mxu1 %v6176_v57  ;;  %4244 = vmatpush1.bf16.msra.mxu0 %v6173_v55 }
  0x7f   :  { %4245 = vmatprep.subr.bf16.mxu0 %v6182_v61 }
  0x81   :  { %4416 = vmatpush1.bf16.msra.mxu1 %v6175_v56 }
  0x82   :  { %4417 = vmatprep.subr.bf16.mxu1 %v6184_v1  ;;  %4246 = vmatpush1.bf16.msra.mxu0 %v6181_v63 }
  0x83   :  { %4247 = vmatprep.subr.bf16.mxu0 %v6190_v5 }
  0x85   :  { %4418 = vmatpush1.bf16.msra.mxu1 %v6183_v0 }
  0x86   :  { %4419 = vmatprep.subr.bf16.mxu1 %v6192_v9  ;;  %4248 = vmatpush1.bf16.msra.mxu0 %v6189_v7 }
  0x87   :  { %4249 = vmatprep.subr.bf16.mxu0 %v6198_v13 }
  0x89   :  { %4420 = vmatpush1.bf16.msra.mxu1 %v6191_v8 }
  0x8a   :  { %4421 = vmatprep.subr.bf16.mxu1 %v6200_v18  ;;  %4250 = vmatpush1.bf16.msra.mxu0 %v6197_v15 }
  0x8b   :  { %4262 = vmatprep.subr.bf16.mxu0 %v6206_v22 }
  0x8d   :  { %4422 = vmatpush1.bf16.msra.mxu1 %v6199_v17 }
  0x8e   :  { %4434 = vmatprep.subr.bf16.mxu1 %v6208_v16 }
  0xfc   :  { %v562_v37 = vpop.f32.mrb[0].mxu0  ;;  %v605_v44 = vpop.f32.mrb[0].mxu1 }
  0xfd   :  { %v563_v39 = vadd.f32 %v562_v37, %v118_v34  ;;  %v564_v32 = vpop.f32.mrb[1].mxu0  ;;  %v606_v47 = vadd.f32 %v605_v44, %v126_v36  ;;  %v607_v48 = vpop.f32.mrb[1].mxu1 }
  0xfe   :  { %v565_v42 = vadd.f32 %v564_v32, %v122_v35  ;;  %v566_v43 = vpop.f32.mrb[2].mxu0  ;;  %v608_v50 = vadd.f32 %v607_v48, %v130_v38  ;;  %v609_v51 = vpop.f32.mrb[2].mxu1 }
  0xff   :  { %v567_v45 = vadd.f32 %v566_v43, %v118_v34  ;;  %v568_v46 = vpop.f32.mrb[3].mxu0  ;;  %v711_v52 = vmul.f32 %v7453_v41, %v563_v39  ;;  %v713_v54 = vmul.f32 %v7453_v41, %v606_v47  ;;  %v610_v55 = vadd.f32 %v609_v51, %v126_v36  ;;  %v611_v56 = vpop.f32.mrb[3].mxu1 }
 0x100   :  { %v569_v49 = vadd.f32 %v568_v46, %v122_v35  ;;  %v712_v57 = vmul.f32 %v7453_v41, %v565_v42  ;;  %v714_v59 = vmul.f32 %v7453_v41, %v608_v50  ;;  %v612_v60 = vadd.f32 %v611_v56, %v130_v38 }
 0x101   :  { %v719_v53 = vmul.f32 0.0, %v567_v45  ;;  %v721_v62 = vmul.f32 0.0, %v610_v55 }
 0x102   :  { %v720_v58 = vmul.f32 0.0, %v569_v49  ;;  %v722_v0 = vmul.f32 0.0, %v612_v60 }
 0x103   :  { %v727_v61 = vadd.f32 %v719_v53, %v711_v52  ;;  %v741_v2 = vadd.f32 %v721_v62, %v713_v54 }
 0x104   :  { %v734_v63 = vadd.f32 %v720_v58, %v712_v57  ;;  %v748_v4 = vadd.f32 %v722_v0, %v714_v59 }
 0x105   :  { %v728_v1 = vrot.slane %v727_v61, 4  ;;  %v742_v6 = vrot.slane %v741_v2, 4 }
 0x106   :  { %v735_v3 = vrot.slane %v734_v63, 4  ;;  %v749_v8 = vrot.slane %v748_v4, 4 }
 0x107   :  { %v729_v5 = vadd.f32 %v728_v1, %v727_v61  ;;  %v743_v10 = vadd.f32 %v742_v6, %v741_v2 }
 0x108   :  { %v736_v7 = vadd.f32 %v735_v3, %v734_v63  ;;  %v750_v12 = vadd.f32 %v749_v8, %v748_v4 }
 0x109   :  { %v730_v9 = vrot.slane %v729_v5, 2  ;;  %v744_v14 = vrot.slane %v743_v10, 2 }
 0x10a   :  { %v737_v11 = vrot.slane %v736_v7, 2  ;;  %v751_v17 = vrot.slane %v750_v12, 2 }
 0x10b   :  { %v731_v13 = vadd.f32 %v730_v9, %v729_v5  ;;  %v745_v22 = vadd.f32 %v744_v14, %v743_v10 }
 0x10c   :  { %v738_v15 = vadd.f32 %v737_v11, %v736_v7  ;;  %v752_v26 = vadd.f32 %v751_v17, %v750_v12  ;;  %v7491_v7 = vsub.s32 5, %v7425_v27 }
 0x10d   :  { %v732_v18 = vrot.slane %v731_v13, 1  ;;  %v746_v35 = vrot.slane %v745_v22, 1 }
 0x10e   :  { %v739_v16 = vrot.slane %v738_v15, 1  ;;  %v753_v37 = vrot.slane %v752_v26, 1 }
 0x10f   :  { %v733_v34 = vadd.f32 %v732_v18, %v731_v13  ;;  %v747_v32 = vadd.f32 %v746_v35, %v745_v22  ;;  %v138_v22 = vrot.slane %v7433_v29, %v7491_v7 }
 0x110   :  { %v740_v36 = vadd.f32 %v739_v16, %v738_v15  ;;  %v754_v43 = vadd.f32 %v753_v37, %v752_v26  ;;  %v7496_v15 = vsub.s32 6, %v7425_v27  ;;  %v7501_v16 = vsub.s32 7, %v7425_v27 }
 0x111   :  { %v783_v38 = vmul.f32 0.5, %v733_v34  ;;  %v785_v48 = vmul.f32 0.5, %v747_v32 }
 0x112   :  { %v784_v40 = vmul.f32 0.5, %v740_v36  ;;  %v786_v53 = vmul.f32 0.5, %v754_v43 }
 0x113   :  { %v7459_v44 = vsub.f32 %v563_v39, %v783_v38  ;;  %v7461_v46 = vsub.f32 %v567_v45, %v783_v38  ;;  %v7470_v57 = vsub.f32 %v606_v47, %v785_v48  ;;  %v7472_v58 = vsub.f32 %v610_v55, %v785_v48 }
 0x114   :  { %v7463_v51 = vsub.f32 %v565_v42, %v784_v40  ;;  %v7465_v52 = vsub.f32 %v569_v49, %v784_v40  ;;  %v7477_v59 = vsub.f32 %v608_v50, %v786_v53  ;;  %v7479_v42 = vsub.f32 %v612_v60, %v786_v53 }
 0x115   :  { %v807_v54 = vmul.f32 %v7453_v41, %v7459_v44  ;;  %v815_v56 = vmul.f32 0.0, %v7461_v46  ;;  %v809_v62 = vmul.f32 %v7453_v41, %v7470_v57  ;;  %v817_v63 = vmul.f32 0.0, %v7472_v58 }
 0x116   :  { %v808_v39 = vmul.f32 %v7453_v41, %v7463_v51  ;;  %v816_v45 = vmul.f32 0.0, %v7465_v52  ;;  %v810_v55 = vmul.f32 %v7453_v41, %v7477_v59  ;;  %v818_v1 = vmul.f32 0.0, %v7479_v42 }
 0x117   :  { %v823_v49 = vmul.f32 %v807_v54, %v807_v54  ;;  %v831_v61 = vmul.f32 %v815_v56, %v815_v56  ;;  %v825_v3 = vmul.f32 %v809_v62, %v809_v62  ;;  %v833_v50 = vmul.f32 %v817_v63, %v817_v63 }
 0x118   :  { %v824_v47 = vmul.f32 %v808_v39, %v808_v39  ;;  %v832_v0 = vmul.f32 %v816_v45, %v816_v45  ;;  %v7488_v60 = vsub.s32 4, %v7425_v27  ;;  %v826_v5 = vmul.f32 %v810_v55, %v810_v55 }
 0x119   :  { %v839_v2 = vadd.f32 %v831_v61, %v823_v49  ;;  %v834_v6 = vmul.f32 %v818_v1, %v818_v1  ;;  %v853_v9 = vadd.f32 %v833_v50, %v825_v3  ;;  %v142_v48 = vrot.slane %v7433_v29, %v7496_v15 }
 0x11a   :  { %v846_v4 = vadd.f32 %v832_v0, %v824_v47  ;;  %v134_v14 = vrot.slane %v7433_v29, %v7488_v60  ;;  %v146_v45 = vrot.slane %v7433_v29, %v7501_v16 }
 0x11b   :  { %v840_v8 = vrot.slane %v839_v2, 4  ;;  %v860_v11 = vadd.f32 %v834_v6, %v826_v5  ;;  %v854_v13 = vrot.slane %v853_v9, 4 }
 0x11c   :  { %v847_v10 = vrot.slane %v846_v4, 4 }
 0x11d   :  { %v841_v12 = vadd.f32 %v840_v8, %v839_v2  ;;  %v861_v18 = vrot.slane %v860_v11, 4  ;;  %v855_v34 = vadd.f32 %v854_v13, %v853_v9 }
 0x11e   :  { %v848_v17 = vadd.f32 %v847_v10, %v846_v4 }
 0x11f   :  { %v842_v26 = vrot.slane %v841_v12, 2  ;;  %v862_v36 = vadd.f32 %v861_v18, %v860_v11  ;;  %v856_v32 = vrot.slane %v855_v34, 2 }
 0x120   :  { %v849_v35 = vrot.slane %v848_v17, 2  ;;  %v648_v37 = vpop.f32.mrb[4].mxu0 }
 0x121   :  { %v843_v38 = vadd.f32 %v842_v26, %v841_v12  ;;  %v7503_v40 = vadd.f32 %v648_v37, %v134_v14  ;;  %v650_v43 = vpop.f32.mrb[5].mxu0  ;;  %v863_v54 = vrot.slane %v862_v36, 2  ;;  %v691_v27 = vpop.f32.mrb[4].mxu1  ;;  %v857_v61 = vadd.f32 %v856_v32, %v855_v34 }
 0x122   :  { %v850_v53 = vadd.f32 %v849_v35, %v848_v17  ;;  %v7507_v56 = vadd.f32 %v650_v43, %v138_v22  ;;  %v652_v39 = vpop.f32.mrb[6].mxu0  ;;  %v693_v0 = vpop.f32.mrb[5].mxu1  ;;  %v7520_v6 = vadd.f32 %v691_v27, %v142_v48 }
 0x123   :  { %v844_v49 = vrot.slane %v843_v38, 1  ;;  %v715_v62 = vmul.f32 %v7453_v41, %v7503_v40  ;;  %v7513_v63 = vadd.f32 %v652_v39, %v134_v14  ;;  %v654_v47 = vpop.f32.mrb[7].mxu0  ;;  %v864_v1 = vadd.f32 %v863_v54, %v862_v36  ;;  %v695_v50 = vpop.f32.mrb[6].mxu1 }
 0x124   :  { %v851_v55 = vrot.slane %v850_v53, 1  ;;  %v716_v2 = vmul.f32 %v7453_v41, %v7507_v56  ;;  %v7517_v3 = vadd.f32 %v654_v47, %v138_v22  ;;  %v858_v5 = vrot.slane %v857_v61, 1  ;;  %v697_v8 = vpop.f32.mrb[7].mxu1 }
 0x125   :  { %v845_v4 = vadd.f32 %v844_v49, %v843_v38  ;;  %v723_v29 = vmul.f32 0.0, %v7513_v63  ;;  %v865_v10 = vrot.slane %v864_v1, 1  ;;  %v7523_v12 = vadd.f32 %v693_v0, %v146_v45 }
 0x126   :  { %v852_v9 = vadd.f32 %v851_v55, %v850_v53  ;;  %v724_v11 = vmul.f32 0.0, %v7517_v3  ;;  %v859_v14 = vadd.f32 %v858_v5, %v857_v61  ;;  %v717_v18 = vmul.f32 %v7453_v41, %v7520_v6 }
 0x127   :  { %v895_v13 = vmul.f32 0.5, %v845_v4  ;;  %v755_v17 = vadd.f32 %v723_v29, %v715_v62  ;;  %v866_v26 = vadd.f32 %v865_v10, %v864_v1  ;;  %v718_v35 = vmul.f32 %v7453_v41, %v7523_v12  ;;  %v7537_v62 = vld [vmem:[%s9517_s3] sm:$0xff] }
 0x128   :  { %v896_v22 = vmul.f32 0.5, %v852_v9  ;;  %v762_v34 = vadd.f32 %v724_v11, %v716_v2  ;;  %v897_v37 = vmul.f32 0.5, %v859_v14  ;;  %v7529_v32 = vadd.f32 %v695_v50, %v142_v48  ;;  %v7556_v11 = vld [vmem:[%s9515_s5 + $0x440] sm:$0xff] }
 0x129   :  { %v903_v36 = vadd.f32 1e-05, %v895_v13  ;;  %v756_v38 = vrot.slane %v755_v17, 4  ;;  %v898_v53 = vmul.f32 0.5, %v866_v26  ;;  %v7531_v39 = vadd.f32 %v697_v8, %v146_v45  ;;  %v7543_v45 = vld [vmem:[%s9518_s4] sm:$0xff] }
 0x12a   :  { %v904_v43 = vadd.f32 1e-05, %v896_v22  ;;  %v763_v54 = vrot.slane %v762_v34, 4  ;;  %v905_v27 = vadd.f32 1e-05, %v897_v37  ;;  %v725_v61 = vmul.f32 0.0, %v7529_v32 }
 0x12b   :  { %6874 = vrsqrt.f32 %v903_v36  ;;  %v757_v49 = vadd.f32 %v756_v38, %v755_v17  ;;  %v906_v47 = vadd.f32 1e-05, %v898_v53  ;;  %v726_v48 = vmul.f32 0.0, %v7531_v39  ;;  %v7561_v13 = vld [vmem:[%s9515_s5 + $0x460] sm:$0xff] }
 0x12c   :  { %6876 = vrsqrt.f32 %v904_v43  ;;  %v764_v0 = vadd.f32 %v763_v54, %v762_v34  ;;  %v769_v1 = vadd.f32 %v725_v61, %v717_v18  ;;  %v939_v4 = vrot.slane %v7537_v62, %v7428_v28  ;;  %v7570_v34 = vld [vmem:[%s9515_s5 + $0x448] sm:$0xff]  ;;  %v7580_v36 = vld [vmem:[%s9515_s5 + $0x480] sm:$0xff] }
 0x12d   :  { %6878 = vrsqrt.f32 %v905_v27  ;;  %v758_v55 = vrot.slane %v757_v49, 2  ;;  %v776_v50 = vadd.f32 %v726_v48, %v718_v35  ;;  %v943_v5 = vrot.slane %v7537_v62, %v7436_v30  ;;  %v7575_v35 = vld [vmem:[%s9515_s5 + $0x468] sm:$0xff]  ;;  %v7589_v54 = vld [vmem:[%s9515_s5 + $0x4a0] sm:$0xff] }
 0x12e   :  { %6880 = vrsqrt.f32 %v906_v47  ;;  %v765_v2 = vrot.slane %v764_v0, 2  ;;  %v770_v8 = vrot.slane %v769_v1, 4  ;;  %v996_v9 = vrot.slane %v7543_v45, %v7428_v28  ;;  %v7594_v27 = vld [vmem:[%s9515_s5 + $0x488] sm:$0xff] }
 0x12f   :  { %v759_v29 = vadd.f32 %v758_v55, %v757_v49  ;;  %v1000_v10 = vrot.slane %v7543_v45, %v7436_v30  ;;  %v777_v17 = vrot.slane %v776_v50, 4  ;;  %v947_v18 = vrot.slane %v7537_v62, %v7439_v31  ;;  %v7599_v49 = vld [vmem:[%s9515_s5 + $0x4a8] sm:$0xff] }
 0x130   :  { %v766_v14 = vadd.f32 %v765_v2, %v764_v0  ;;  %v1004_v22 = vrot.slane %v7543_v45, %v7439_v31  ;;  %v771_v37 = vadd.f32 %v770_v8, %v769_v1  ;;  %v951_v38 = vrot.slane %v7537_v62, %v7442_v33 }
 0x131   :  { %v760_v26 = vrot.slane %v759_v29, 1  ;;  %v1008_v43 = vrot.slane %v7543_v45, %v7442_v33  ;;  %v778_v61 = vadd.f32 %v777_v17, %v776_v50 }
 0x132   :  { %v767_v53 = vrot.slane %v766_v14, 1  ;;  %v772_v55 = vrot.slane %v771_v37, 2 }
 0x133   :  { %v761_v47 = vadd.f32 %v760_v26, %v759_v29  ;;  %v779_v25 = vrot.slane %v778_v61, 2 }
 0x134   :  { %v768_v8 = vadd.f32 %v767_v53, %v766_v14  ;;  %v7613_v17 = vadd.f32 %v772_v55, %v771_v37 }
 0x135   :  { %v6875_v24 = vpop.eup %6874  ;;  %v787_v33 = vmul.f32 0.5, %v761_v47  ;;  %v7617_v30 = vadd.f32 %v779_v25, %v778_v61 }
 0x136   :  { %v6877_v26 = vpop.eup %6876  ;;  %v919_v0 = vmul.f32 %v6875_v24, %v7459_v44  ;;  %v927_v1 = vmul.f32 %v6875_v24, %v7461_v46  ;;  %v788_v48 = vmul.f32 0.5, %v768_v8 }
 0x137   :  { %v6879_v14 = vpop.eup %6878  ;;  %v920_v53 = vmul.f32 %v6877_v26, %v7463_v51  ;;  %v928_v47 = vmul.f32 %v6877_v26, %v7465_v52  ;;  %v7622_v50 = vsub.f32 %v7503_v40, %v787_v33  ;;  %v7625_v29 = vsub.f32 %v7513_v63, %v787_v33 }
 0x138   :  { %v6881_v37 = vpop.eup %6880  ;;  %v976_v55 = vmul.f32 %v939_v4, %v919_v0  ;;  %v984_v2 = vmul.f32 %v939_v4, %v927_v1  ;;  %v921_v44 = vmul.f32 %v6879_v14, %v7470_v57  ;;  %v929_v24 = vmul.f32 %v6879_v14, %v7472_v58 }
 0x139   :  { %v977_v25 = vmul.f32 %v943_v5, %v920_v53  ;;  %v985_v46 = vmul.f32 %v943_v5, %v928_v47  ;;  %v922_v61 = vmul.f32 %v6881_v37, %v7477_v59  ;;  %v930_v51 = vmul.f32 %v6881_v37, %v7479_v42 }
 0x13a   :  { %v1033_v52 = vadd.f32 %v996_v9, %v976_v55  ;;  %v1041_v8 = vadd.f32 %v996_v9, %v984_v2  ;;  %v978_v40 = vmul.f32 %v947_v18, %v921_v44  ;;  %v986_v26 = vmul.f32 %v947_v18, %v929_v24 }
 0x13b   :  { %v1034_v31 = vadd.f32 %v1000_v10, %v977_v25  ;;  %v1042_v33 = vadd.f32 %v1000_v10, %v985_v46  ;;  %v979_v63 = vmul.f32 %v951_v38, %v922_v61  ;;  %v987_v28 = vmul.f32 %v951_v38, %v930_v51 }
 0x13c   :  { %v1035_v0 = vadd.f32 %v1004_v22, %v978_v40  ;;  %v1043_v4 = vadd.f32 %v1004_v22, %v986_v26  ;;  %vm1049_vm2 = vcmp.ge.f32.partialorder %v1033_v52, 0.0  ;;  %vm1057_vm3 = vcmp.ge.f32.partialorder %v1041_v8, 0.0 }
 0x13d   :  { %v1036_v57 = vadd.f32 %v1008_v43, %v979_v63  ;;  %v1044_v58 = vadd.f32 %v1008_v43, %v987_v28  ;;  %vm1050_vm4 = vcmp.ge.f32.partialorder %v1034_v31, 0.0  ;;  %vm1058_vm5 = vcmp.ge.f32.partialorder %v1042_v33, 0.0 }
 0x13e   :  { %v1066_v5 = vmul.f32 0.01, %v1034_v31  ;;  %v1074_v59 = vmul.f32 0.01, %v1042_v33  ;;  %v1065_v1 = vmul.f32 0.01, %v1033_v52  ;;  %v811_v42 = vmul.f32 %v7453_v41, %v7622_v50 }
 0x13f   :  { %v1073_v9 = vmul.f32 0.01, %v1041_v8  ;;  %v819_v18 = vmul.f32 0.0, %v7625_v29  ;;  %v7635_v10 = vsub.f32 %v7507_v56, %v788_v48  ;;  %v7638_v22 = vsub.f32 %v7517_v3, %v788_v48 }
 0x140   :  { %v1082_v38 = vsel %vm1050_vm4, %v1034_v31, %v1066_v5  ;;  %v1090_v2 = vsel %vm1058_vm5, %v1042_v33, %v1074_v59  ;;  %v1081_v28 = vsel %vm1049_vm2, %v1033_v52, %v1065_v1  ;;  %v827_v43 = vmul.f32 %v811_v42, %v811_v42  ;;  %v1258_v5 = vld [vmem:[%s9515_s5 + $0x4c8] sm:$0xff] }
 0x141   :  { %v7641_v14 = vpack.c.bf16 %v1090_v2, %v1082_v38  ;;  %v1089_v53 = vsel %vm1057_vm3, %v1041_v8, %v1073_v9  ;;  %v835_v47 = vmul.f32 %v819_v18, %v819_v18  ;;  %v812_v37 = vmul.f32 %v7453_v41, %v7635_v10  ;;  %v1262_v59 = vld [vmem:[%s9515_s5 + $0x4e8] sm:$0xff] }
 0x142   :  { %v7646_v55 = vpack.c.bf16 %v1089_v53, %v1081_v28  ;;  %v820_v56 = vmul.f32 0.0, %v7638_v22  ;;  %vm1052_vm6 = vcmp.ge.f32.partialorder %v1036_v57, 0.0  ;;  %vm1060_vm7 = vcmp.ge.f32.partialorder %v1044_v58, 0.0 }
 0x143   :  { %4251 = vmatprep.mubr.bf16.mxu0 %v7641_v14  ;;  %4423 = vmatprep.mubr.bf16.mxu1 %v7641_v14  ;;  %v867_v31 = vadd.f32 %v835_v47, %v827_v43  ;;  %v828_v3 = vmul.f32 %v812_v37, %v812_v37  ;;  %v1068_v48 = vmul.f32 0.01, %v1036_v57  ;;  %v1076_v44 = vmul.f32 0.01, %v1044_v58  ;;  %v1269_v37 = vld [vmem:[%s9515_s5 + $0x520] sm:$0xff] }
 0x144   :  { %4252 = vmatmul.mubr.bf16.vlgmr.msra.gmra.mrb[8].mxu0 %v7646_v55  ;;  %4424 = vmatmul.mubr.bf16.vlgmr.msra.gmra.mrb[8].mxu1 %v7646_v55  ;;  %v836_v24 = vmul.f32 %v820_v56, %v820_v56  ;;  %vm1051_vm8 = vcmp.ge.f32.partialorder %v1035_v0, 0.0  ;;  %vm1059_vm9 = vcmp.ge.f32.partialorder %v1043_v4, 0.0  ;;  %v1067_v25 = vmul.f32 0.01, %v1035_v0 }
 0x145   :  { %v9537_v46 = vcombine.low %v7400_v19, %v7405_v20  ;;  %v9538_v61 = vcombine.low %v7410_v21, %v7417_v23  ;;  %v868_v51 = vrot.slane %v867_v31, 4  ;;  %v1084_v52 = vsel %vm1052_vm6, %v1036_v57, %v1068_v48  ;;  %v1257_v21 = vld [vmem:[%s9515_s5 + $0x4c0] sm:$0xff] }
 0x146   :  { %v1092_v8 = vsel %vm1060_vm7, %v1044_v58, %v1076_v44  ;;  %v1075_v40 = vmul.f32 0.01, %v1043_v4  ;;  %v9539_v26 = vcombine.high %v7556_v11, %v7561_v13  ;;  %v9540_v33 = vcombine.high %v7570_v34, %v7575_v35  ;;  %v1261_v58 = vld [vmem:[%s9515_s5 + $0x4e0] sm:$0xff] }
 0x147   :  { %4263 = vmatpush1.bf16.msra.mxu0 %v9537_v46  ;;  %4435 = vmatpush1.bf16.msra.mxu1 %v9538_v61  ;;  %v874_v19 = vadd.f32 %v836_v24, %v828_v3  ;;  %v7667_v20 = vpack.c.bf16 %v1092_v8, %v1084_v52  ;;  %v1083_v23 = vsel %vm1051_vm8, %v1035_v0, %v1067_v25  ;;  %v774_v63 = vrot.slane %v7613_v17, 1 }
 0x148   :  { %4264 = vmatprep.subr.bf16.mxu0 %v9539_v26  ;;  %4436 = vmatprep.subr.bf16.mxu1 %v9540_v33  ;;  %v869_v57 = vadd.f32 %v868_v51, %v867_v31  ;;  %v1091_v1 = vsel %vm1059_vm9, %v1043_v4, %v1075_v40  ;;  %v781_v42 = vrot.slane %v7617_v30, 1  ;;  %v9541_v2 = vcombine.low %v7556_v11, %v7561_v13  ;;  %v1274_v26 = vld [vmem:[%s9515_s5 + $0x548] sm:$0xff] }
 0x149   :  { %v875_v0 = vrot.slane %v874_v19, 4  ;;  %4294 = vmatprep.mubr.bf16.mxu0 %v7667_v20  ;;  %4466 = vmatprep.mubr.bf16.mxu1 %v7667_v20  ;;  %v7686_v9 = vpack.c.bf16 %v1091_v1, %v1083_v23  ;;  %v775_v18 = vadd.f32 %v774_v63, %v7613_v17  ;;  %v9542_v28 = vcombine.low %v7570_v34, %v7575_v35  ;;  %v1265_v35 = vld [vmem:[%s9515_s5 + $0x500] sm:$0xff]  ;;  %v1278_v33 = vld [vmem:[%s9515_s5 + $0x568] sm:$0xff] }
 0x14a   :  { %v870_v38 = vrot.slane %v869_v57, 2  ;;  %v6221_v4 = vcombine.low %v7580_v36, %v7589_v54  ;;  %v6223_v43 = vcombine.low %v7594_v27, %v7599_v49  ;;  %v782_v53 = vadd.f32 %v781_v42, %v7617_v30 }
 0x14b   :  { %4265 = vmatpush1.bf16.msra.mxu0 %v9541_v2  ;;  %4437 = vmatpush1.bf16.msra.mxu1 %v9542_v28  ;;  %v876_v47 = vadd.f32 %v875_v0, %v874_v19  ;;  %v9543_v17 = vcombine.high %v7580_v36, %v7589_v54  ;;  %v9544_v11 = vcombine.high %v7594_v27, %v7599_v49  ;;  %v789_v30 = vmul.f32 0.5, %v775_v18  ;;  %v1266_v36 = vld [vmem:[%s9515_s5 + $0x508] sm:$0xff] }
 0x14c   :  { %v6230_v13 = vcombine.high %v1257_v21, %v1261_v58  ;;  %v6232_v34 = vcombine.high %v1258_v5, %v1262_v59  ;;  %v871_v56 = vadd.f32 %v870_v38, %v869_v57  ;;  %v6229_v31 = vcombine.low %v1257_v21, %v1261_v58  ;;  %v1270_v54 = vld [vmem:[%s9515_s5 + $0x528] sm:$0xff]  ;;  %v1281_v38 = vld [vmem:[%s9515_s5 + $0x580] sm:$0xff] }
 0x14d   :  { %4266 = vmatprep.subr.bf16.mxu0 %v9543_v17  ;;  %4438 = vmatprep.subr.bf16.mxu1 %v9544_v11  ;;  %v790_v27 = vmul.f32 0.5, %v782_v53  ;;  %v877_v49 = vrot.slane %v876_v47, 2  ;;  %v6231_v3 = vcombine.low %v1258_v5, %v1262_v59  ;;  %v7719_v48 = vsub.f32 %v7520_v6, %v789_v30  ;;  %v1273_v6 = vld [vmem:[%s9515_s5 + $0x540] sm:$0xff]  ;;  %v1286_v53 = vld [vmem:[%s9515_s5 + $0x5a8] sm:$0xff] }
 0x14e   :  { %v7722_v44 = vsub.f32 %v7529_v32, %v789_v30  ;;  %v872_v24 = vrot.slane %v871_v56, 1  ;;  %v6238_v25 = vcombine.high %v1265_v35, %v1269_v37  ;;  %v6240_v52 = vcombine.high %v1266_v36, %v1270_v54  ;;  %v1277_v32 = vld [vmem:[%s9515_s5 + $0x560] sm:$0xff] }
 0x14f   :  { %4267 = vmatpush1.bf16.msra.mxu0 %v6221_v4  ;;  %4439 = vmatpush1.bf16.msra.mxu1 %v6223_v43  ;;  %v7725_v46 = vsub.f32 %v7523_v12, %v790_v27  ;;  %v7728_v61 = vsub.f32 %v7531_v39, %v790_v27  ;;  %v878_v51 = vadd.f32 %v877_v49, %v876_v47  ;;  %v1285_v4 = vld [vmem:[%s9515_s5 + $0x5a0] sm:$0xff]  ;;  %v1282_v43 = vld [vmem:[%s9515_s5 + $0x588] sm:$0xff] }
 0x150   :  { %4268 = vmatprep.subr.bf16.mxu0 %v6230_v13  ;;  %4440 = vmatprep.subr.bf16.mxu1 %v6232_v34  ;;  %v813_v8 = vmul.f32 %v7453_v41, %v7719_v48  ;;  %v821_v12 = vmul.f32 0.0, %v7722_v44  ;;  %v873_v40 = vadd.f32 %v872_v24, %v871_v56  ;;  %v6237_v39 = vcombine.low %v1265_v35, %v1269_v37  ;;  %v1290_v27 = vld [vmem:[%s9515_s5 + $0x5c8] sm:$0xff] }
 0x151   :  { %v814_v19 = vmul.f32 %v7453_v41, %v7725_v46  ;;  %v822_v21 = vmul.f32 0.0, %v7728_v61  ;;  %v879_v23 = vrot.slane %v878_v51, 1  ;;  %v6239_v63 = vcombine.low %v1266_v36, %v1270_v54  ;;  %v1293_v54 = vld [vmem:[%s9515_s5 + $0x5e0] sm:$0xff]  ;;  %v1294_v49 = vld [vmem:[%s9515_s5 + $0x5e8] sm:$0xff] }
 0x152   :  { %v829_v57 = vmul.f32 %v813_v8, %v813_v8  ;;  %v837_v58 = vmul.f32 %v821_v12, %v821_v12  ;;  %v899_v5 = vmul.f32 0.5, %v873_v40  ;;  %v6246_v59 = vcombine.high %v1273_v6, %v1277_v32  ;;  %v1297_v8 = vld [vmem:[%s9515_s5 + $0x600] sm:$0xff] }
 0x153   :  { %4269 = vmatpush1.bf16.msra.mxu0 %v6229_v31  ;;  %4441 = vmatpush1.bf16.msra.mxu1 %v6231_v3  ;;  %v830_v1 = vmul.f32 %v814_v19, %v814_v19  ;;  %v838_v42 = vmul.f32 %v822_v21, %v822_v21  ;;  %v880_v0 = vadd.f32 %v879_v23, %v878_v51  ;;  %v1289_v31 = vld [vmem:[%s9515_s5 + $0x5c0] sm:$0xff] }
 0x154   :  { %4270 = vmatprep.subr.bf16.mxu0 %v6238_v25  ;;  %4442 = vmatprep.subr.bf16.mxu1 %v6240_v52  ;;  %v6248_v18 = vcombine.high %v1274_v26, %v1278_v33  ;;  %v881_v2 = vadd.f32 %v837_v58, %v829_v57  ;;  %v907_v28 = vadd.f32 1e-05, %v899_v5  ;;  %v6245_v13 = vcombine.low %v1273_v6, %v1277_v32  ;;  %v1301_v40 = vld [vmem:[%s9515_s5 + $0x620] sm:$0xff] }
 0x155   :  { %v888_v47 = vadd.f32 %v838_v42, %v830_v1  ;;  %v900_v17 = vmul.f32 0.5, %v880_v0  ;;  %v6247_v34 = vcombine.low %v1274_v26, %v1278_v33  ;;  %v6254_v30 = vcombine.high %v1281_v38, %v1285_v4  ;;  %v1302_v26 = vld [vmem:[%s9515_s5 + $0x628] sm:$0xff]  ;;  %v1309_v1 = vld [vmem:[%s9515_s5 + $0x660] sm:$0xff] }
 0x156   :  { %v882_v11 = vrot.slane %v881_v2, 4  ;;  %6882 = vrsqrt.f32 %v907_v28  ;;  %v6256_v56 = vcombine.high %v1282_v43, %v1286_v53  ;;  %v6253_v25 = vcombine.low %v1281_v38, %v1285_v4  ;;  %v1306_v28 = vld [vmem:[%s9515_s5 + $0x648] sm:$0xff] }
 0x157   :  { %4271 = vmatpush1.bf16.msra.mxu0 %v6237_v39  ;;  %4443 = vmatpush1.bf16.msra.mxu1 %v6239_v63  ;;  %v889_v35 = vrot.slane %v888_v47, 4  ;;  %v908_v37 = vadd.f32 1e-05, %v900_v17  ;;  %v6255_v51 = vcombine.low %v1282_v43, %v1286_v53  ;;  %v6262_v6 = vcombine.high %v1289_v31, %v1293_v54  ;;  %v1298_v39 = vld [vmem:[%s9515_s5 + $0x608] sm:$0xff] }
 0x158   :  { %4272 = vmatprep.subr.bf16.mxu0 %v6246_v59  ;;  %4444 = vmatprep.subr.bf16.mxu1 %v6248_v18  ;;  %v883_v36 = vadd.f32 %v882_v11, %v881_v2  ;;  %v6264_v32 = vcombine.high %v1290_v27, %v1294_v49  ;;  %v955_v21 = vrot.slane %v7537_v62, %v7488_v60  ;;  %v1305_v59 = vld [vmem:[%s9515_s5 + $0x640] sm:$0xff]  ;;  %v1310_v4 = vld [vmem:[%s9515_s5 + $0x668] sm:$0xff] }
 0x159   :  { %v890_v3 = vadd.f32 %v889_v35, %v888_v47  ;;  %6884 = vrsqrt.f32 %v908_v37  ;;  %v6261_v23 = vcombine.low %v1289_v31, %v1293_v54  ;;  %v6263_v63 = vcombine.low %v1290_v27, %v1294_v49  ;;  %v1313_v37 = vld [vmem:[%s9515_s5 + $0x680] sm:$0xff]  ;;  %v1314_v54 = vld [vmem:[%s9515_s5 + $0x688] sm:$0xff] }
 0x15a   :  { %v884_v24 = vrot.slane %v883_v36, 2  ;;  %v6270_v58 = vcombine.high %v1297_v8, %v1301_v40  ;;  %v6272_v5 = vcombine.high %v1298_v39, %v1302_v26  ;;  %v1012_v18 = vrot.slane %v7543_v45, %v7488_v60  ;;  %v1318_v27 = vld [vmem:[%s9515_s5 + $0x6a8] sm:$0xff] }
 0x15b   :  { %4273 = vmatpush1.bf16.msra.mxu0 %v6245_v13  ;;  %4445 = vmatpush1.bf16.msra.mxu1 %v6247_v34  ;;  %v891_v52 = vrot.slane %v890_v3, 2  ;;  %v959_v38 = vrot.slane %v7537_v62, %v7491_v7  ;;  %v6269_v2 = vcombine.low %v1297_v8, %v1301_v40  ;;  %v6271_v17 = vcombine.low %v1298_v39, %v1302_v26  ;;  %v1321_v39 = vld [vmem:[%s9515_s5 + $0x6c0] sm:$0xff] }
 0x15c   :  { %4274 = vmatprep.subr.bf16.mxu0 %v6254_v30  ;;  %4446 = vmatprep.subr.bf16.mxu1 %v6256_v56  ;;  %v885_v12 = vadd.f32 %v884_v24, %v883_v36  ;;  %v1016_v13 = vrot.slane %v7543_v45, %v7491_v7  ;;  %v6277_v34 = vcombine.low %v1305_v59, %v1309_v1  ;;  %v1317_v30 = vld [vmem:[%s9515_s5 + $0x6a0] sm:$0xff] }
 0x15d   :  { %v892_v33 = vadd.f32 %v891_v52, %v890_v3  ;;  %v6278_v35 = vcombine.high %v1305_v59, %v1309_v1  ;;  %v6280_v36 = vcombine.high %v1306_v28, %v1310_v4  ;;  %v6288_v40 = vcombine.high %v1314_v54, %v1318_v27 }
 0x15e   :  { %v886_v19 = vrot.slane %v885_v12, 1 }
 0x15f   :  { %4275 = vmatpush1.bf16.msra.mxu0 %v6253_v25  ;;  %4447 = vmatpush1.bf16.msra.mxu1 %v6255_v51  ;;  %v893_v57 = vrot.slane %v892_v33, 1  ;;  %v6279_v25 = vcombine.low %v1306_v28, %v1310_v4  ;;  %v1330_v28 = vld [vmem:[%s9515_s5 + $0x708] sm:$0xff] }
 0x160   :  { %4276 = vmatprep.subr.bf16.mxu0 %v6262_v6  ;;  %4448 = vmatprep.subr.bf16.mxu1 %v6264_v32  ;;  %v887_v42 = vadd.f32 %v886_v19, %v885_v12  ;;  %v6883_v0 = vpop.eup %6882  ;;  %v6286_v32 = vcombine.high %v1313_v37, %v1317_v30  ;;  %v1325_v19 = vld [vmem:[%s9515_s5 + $0x6e0] sm:$0xff]  ;;  %v1334_v4 = vld [vmem:[%s9515_s5 + $0x728] sm:$0xff] }
 0x161   :  { %v894_v43 = vadd.f32 %v893_v57, %v892_v33  ;;  %v923_v53 = vmul.f32 %v6883_v0, %v7622_v50  ;;  %v931_v47 = vmul.f32 %v6883_v0, %v7625_v29  ;;  %v6287_v57 = vcombine.low %v1314_v54, %v1318_v27  ;;  %v1342_v54 = vld [vmem:[%s9515_s5 + $0x768] sm:$0xff] }
 0x162   :  { %v901_v11 = vmul.f32 0.5, %v887_v42  ;;  %v6294_v42 = vcombine.high %v1321_v39, %v1325_v19 }
 0x163   :  { %4277 = vmatpush1.bf16.msra.mxu0 %v6261_v23  ;;  %4449 = vmatpush1.bf16.msra.mxu1 %v6263_v63  ;;  %v902_v50 = vmul.f32 0.5, %v894_v43  ;;  %v6885_v56 = vpop.eup %6884  ;;  %v980_v29 = vmul.f32 %v955_v21, %v923_v53  ;;  %v988_v31 = vmul.f32 %v955_v21, %v931_v47  ;;  %v1322_v21 = vld [vmem:[%s9515_s5 + $0x6c8] sm:$0xff]  ;;  %v6285_v63 = vcombine.low %v1313_v37, %v1317_v30  ;;  %v1337_v30 = vld [vmem:[%s9515_s5 + $0x740] sm:$0xff] }
 0x164   :  { %4278 = vmatprep.subr.bf16.mxu0 %v6270_v58  ;;  %4450 = vmatprep.subr.bf16.mxu1 %v6272_v5  ;;  %v909_v49 = vadd.f32 1e-05, %v901_v11  ;;  %v924_v3 = vmul.f32 %v6885_v56, %v7635_v10  ;;  %v932_v24 = vmul.f32 %v6885_v56, %v7638_v22  ;;  %v1326_v23 = vld [vmem:[%s9515_s5 + $0x6e8] sm:$0xff]  ;;  %v6304_v37 = vcombine.high %v1330_v28, %v1334_v4 }
 0x165   :  { %v910_v51 = vadd.f32 1e-05, %v902_v50  ;;  %v1037_v52 = vadd.f32 %v1012_v18, %v980_v29  ;;  %v1045_v6 = vadd.f32 %v1012_v18, %v988_v31  ;;  %v6296_v0 = vcombine.high %v1322_v21, %v1326_v23  ;;  %v1329_v18 = vld [vmem:[%s9515_s5 + $0x700] sm:$0xff] }
 0x166   :  { %6886 = vrsqrt.f32 %v909_v49  ;;  %v981_v8 = vmul.f32 %v959_v38, %v924_v3  ;;  %v989_v12 = vmul.f32 %v959_v38, %v932_v24  ;;  %v6295_v11 = vcombine.low %v1322_v21, %v1326_v23  ;;  %v1341_v50 = vld [vmem:[%s9515_s5 + $0x760] sm:$0xff] }
 0x167   :  { %4279 = vmatpush1.bf16.msra.mxu0 %v6269_v2  ;;  %4451 = vmatpush1.bf16.msra.mxu1 %v6271_v17  ;;  %6888 = vrsqrt.f32 %v910_v51  ;;  %vm1053_vm10 = vcmp.ge.f32.partialorder %v1037_v52, 0.0  ;;  %vm1061_vm11 = vcmp.ge.f32.partialorder %v1045_v6, 0.0  ;;  %v1069_v10 = vmul.f32 0.01, %v1037_v52  ;;  %v1333_v2 = vld [vmem:[%s9515_s5 + $0x720] sm:$0xff] }
 0x168   :  { %4280 = vmatprep.subr.bf16.mxu0 %v6278_v35  ;;  %4452 = vmatprep.subr.bf16.mxu1 %v6280_v36  ;;  %v1077_v22 = vmul.f32 0.01, %v1045_v6  ;;  %v1038_v26 = vadd.f32 %v1016_v13, %v981_v8  ;;  %v1046_v33 = vadd.f32 %v1016_v13, %v989_v12  ;;  %v6293_v17 = vcombine.low %v1321_v39, %v1325_v19  ;;  %v1338_v36 = vld [vmem:[%s9515_s5 + $0x748] sm:$0xff]  ;;  %v1353_v23 = vld [vmem:[%s9515_s5 + $0x7c0] sm:$0xff] }
 0x169   :  { %v1085_v58 = vsel %vm1053_vm10, %v1037_v52, %v1069_v10  ;;  %v963_v13 = vrot.slane %v7537_v62, %v7496_v15  ;;  %v6302_v35 = vcombine.high %v1329_v18, %v1333_v2  ;;  %v967_v56 = vrot.slane %v7537_v62, %v7501_v16 }
 0x16a   :  { %v1093_v5 = vsel %vm1061_vm11, %v1045_v6, %v1077_v22  ;;  %vm1054_vm12 = vcmp.ge.f32.partialorder %v1038_v26, 0.0  ;;  %vm1062_vm13 = vcmp.ge.f32.partialorder %v1046_v33, 0.0  ;;  %v1070_v59 = vmul.f32 0.01, %v1038_v26 }
 0x16b   :  { %4281 = vmatpush1.bf16.msra.mxu0 %v6277_v34  ;;  %4453 = vmatpush1.bf16.msra.mxu1 %v6279_v25  ;;  %v1078_v1 = vmul.f32 0.01, %v1046_v33  ;;  %v7835_v38 = vpack.c.bf16 %v1093_v5, %v1085_v58  ;;  %v6301_v31 = vcombine.low %v1329_v18, %v1333_v2  ;;  %v1020_v3 = vrot.slane %v7543_v45, %v7496_v15  ;;  %v1357_v5 = vld [vmem:[%s9515_s5 + $0x7e0] sm:$0xff] }
 0x16c   :  { %4282 = vmatprep.subr.bf16.mxu0 %v6286_v32  ;;  %4454 = vmatprep.subr.bf16.mxu1 %v6288_v40  ;;  %v1086_v43 = vsel %vm1054_vm12, %v1038_v26, %v1070_v59  ;;  %v6303_v24 = vcombine.low %v1330_v28, %v1334_v4  ;;  %v1024_v51 = vrot.slane %v7543_v45, %v7501_v16  ;;  %v1346_v45 = vld [vmem:[%s9515_s5 + $0x788] sm:$0xff] }
 0x16d   :  { %v1094_v53 = vsel %vm1062_vm13, %v1046_v33, %v1078_v1  ;;  %v6310_v52 = vcombine.high %v1337_v30, %v1341_v50  ;;  %v6309_v40 = vcombine.low %v1337_v30, %v1341_v50  ;;  %v6311_v22 = vcombine.low %v1338_v36, %v1342_v54  ;;  %v1354_v59 = vld [vmem:[%s9515_s5 + $0x7c8] sm:$0xff] }
 0x16e   :  { %v7846_v47 = vpack.c.bf16 %v1094_v53, %v1086_v43  ;;  %v1358_v1 = vld [vmem:[%s9515_s5 + $0x7e8] sm:$0xff]  ;;  %v6325_v50 = vcombine.low %v1353_v23, %v1357_v5 }
 0x16f   :  { %4283 = vmatpush1.bf16.msra.mxu0 %v6285_v63  ;;  %4455 = vmatpush1.bf16.msra.mxu1 %v6287_v57  ;;  %v1366_v30 = vld [vmem:[%s9515_s5 + $0x828] sm:$0xff] }
 0x170   :  { %v6887_v34 = vpop.eup %6886  ;;  %4284 = vmatprep.subr.bf16.mxu0 %v6294_v42  ;;  %4456 = vmatprep.subr.bf16.mxu1 %v6296_v0 }
 0x171   :  { %v6889_v29 = vpop.eup %6888  ;;  %v925_v27 = vmul.f32 %v6887_v34, %v7719_v48  ;;  %v933_v49 = vmul.f32 %v6887_v34, %v7722_v44  ;;  %v1345_v48 = vld [vmem:[%s9515_s5 + $0x780] sm:$0xff] }
 0x172   :  { %v926_v62 = vmul.f32 %v6889_v29, %v7725_v46  ;;  %v934_v25 = vmul.f32 %v6889_v29, %v7728_v61  ;;  %v1349_v44 = vld [vmem:[%s9515_s5 + $0x7a0] sm:$0xff]  ;;  %v6312_v46 = vcombine.high %v1338_v36, %v1342_v54  ;;  %v1350_v61 = vld [vmem:[%s9515_s5 + $0x7a8] sm:$0xff] }
 0x173   :  { %4285 = vmatpush1.bf16.msra.mxu0 %v6293_v17  ;;  %4457 = vmatpush1.bf16.msra.mxu1 %v6295_v11  ;;  %v982_v6 = vmul.f32 %v963_v13, %v925_v27  ;;  %v990_v32 = vmul.f32 %v963_v13, %v933_v49  ;;  %v6318_v26 = vcombine.high %v1345_v48, %v1349_v44  ;;  %v1361_v13 = vld [vmem:[%s9515_s5 + $0x800] sm:$0xff]  ;;  %v1370_v27 = vld [vmem:[%s9515_s5 + $0x848] sm:$0xff] }
 0x174   :  { %4286 = vmatprep.subr.bf16.mxu0 %v6302_v35  ;;  %4458 = vmatprep.subr.bf16.mxu1 %v6304_v37  ;;  %v983_v8 = vmul.f32 %v967_v56, %v926_v62  ;;  %v991_v12 = vmul.f32 %v967_v56, %v934_v25  ;;  %v6320_v21 = vcombine.high %v1346_v45, %v1350_v61  ;;  %v1365_v35 = vld [vmem:[%s9515_s5 + $0x820] sm:$0xff]  ;;  %v1362_v37 = vld [vmem:[%s9515_s5 + $0x808] sm:$0xff] }
 0x175   :  { %v1039_v39 = vadd.f32 %v1020_v3, %v982_v6  ;;  %v1047_v10 = vadd.f32 %v1020_v3, %v990_v32  ;;  %v6317_v18 = vcombine.low %v1345_v48, %v1349_v44  ;;  %v6319_v4 = vcombine.low %v1346_v45, %v1350_v61  ;;  %v1369_v36 = vld [vmem:[%s9515_s5 + $0x840] sm:$0xff]  ;;  %v1374_v49 = vld [vmem:[%s9515_s5 + $0x868] sm:$0xff] }
 0x176   :  { %v1040_v33 = vadd.f32 %v1024_v51, %v983_v8  ;;  %v1048_v19 = vadd.f32 %v1024_v51, %v991_v12  ;;  %v6326_v17 = vcombine.high %v1353_v23, %v1357_v5  ;;  %v6328_v11 = vcombine.high %v1354_v59, %v1358_v1  ;;  %v1373_v54 = vld [vmem:[%s9515_s5 + $0x860] sm:$0xff]  ;;  %v1378_v48 = vld [vmem:[%s9515_s5 + $0x888] sm:$0xff] }
 0x177   :  { %4287 = vmatpush1.bf16.msra.mxu0 %v6301_v31  ;;  %4459 = vmatpush1.bf16.msra.mxu1 %v6303_v24  ;;  %vm1055_vm14 = vcmp.ge.f32.partialorder %v1039_v39, 0.0  ;;  %vm1063_vm15 = vcmp.ge.f32.partialorder %v1047_v10, 0.0  ;;  %v1071_v63 = vmul.f32 0.01, %v1039_v39  ;;  %v1079_v42 = vmul.f32 0.01, %v1047_v10 }
 0x178   :  { %4288 = vmatprep.subr.bf16.mxu0 %v6310_v52  ;;  %4460 = vmatprep.subr.bf16.mxu1 %v6312_v46  ;;  %vm1056_vm0 = vcmp.ge.f32.partialorder %v1040_v33, 0.0  ;;  %vm1064_vm1 = vcmp.ge.f32.partialorder %v1048_v19, 0.0  ;;  %v1072_v57 = vmul.f32 0.01, %v1040_v33  ;;  %v1080_v58 = vmul.f32 0.01, %v1048_v19 }
 0x179   :  { %v1087_v0 = vsel %vm1055_vm14, %v1039_v39, %v1071_v63  ;;  %v1095_v53 = vsel %vm1063_vm15, %v1047_v10, %v1079_v42  ;;  %v6327_v56 = vcombine.low %v1354_v59, %v1358_v1  ;;  %v6334_v29 = vcombine.high %v1361_v13, %v1365_v35  ;;  %v1377_v51 = vld [vmem:[%s9515_s5 + $0x880] sm:$0xff]  ;;  %v1382_v44 = vld [vmem:[%s9515_s5 + $0x8a8] sm:$0xff] }
 0x17a   :  { %v1088_v2 = vsel %vm1056_vm0, %v1040_v33, %v1072_v57  ;;  %v1096_v28 = vsel %vm1064_vm1, %v1048_v19, %v1080_v58  ;;  %v7902_v34 = vpack.c.bf16 %v1095_v53, %v1087_v0  ;;  %v6336_v31 = vcombine.high %v1362_v37, %v1366_v30  ;;  %v1381_v52 = vld [vmem:[%s9515_s5 + $0x8a0] sm:$0xff]  ;;  %v1386_v12 = vld [vmem:[%s9515_s5 + $0x8c8] sm:$0xff] }
 0x17b   :  { %4289 = vmatpush1.bf16.msra.mxu0 %v6309_v40  ;;  %4461 = vmatpush1.bf16.msra.mxu1 %v6311_v22  ;;  %v7896_v43 = vpack.c.bf16 %v1096_v28, %v1088_v2  ;;  %v6333_v3 = vcombine.low %v1361_v13, %v1365_v35  ;;  %v6335_v24 = vcombine.low %v1362_v37, %v1366_v30  ;;  %v1385_v61 = vld [vmem:[%s9515_s5 + $0x8c0] sm:$0xff]  ;;  %v1390_v40 = vld [vmem:[%s9515_s5 + $0x8e8] sm:$0xff] }
 0x17c   :  { %4290 = vmatprep.subr.bf16.mxu0 %v6318_v26  ;;  %4462 = vmatprep.subr.bf16.mxu1 %v6320_v21  ;;  %v6342_v62 = vcombine.high %v1369_v36, %v1373_v54  ;;  %v6344_v25 = vcombine.high %v1370_v27, %v1374_v49  ;;  %v6341_v6 = vcombine.low %v1369_v36, %v1373_v54  ;;  %v1389_v8 = vld [vmem:[%s9515_s5 + $0x8e0] sm:$0xff]  ;;  %v1394_v21 = vld [vmem:[%s9515_s5 + $0x908] sm:$0xff] }
 0x17d   :  { %v6343_v32 = vcombine.low %v1370_v27, %v1374_v49  ;;  %v6350_v46 = vcombine.high %v1377_v51, %v1381_v52  ;;  %v6352_v45 = vcombine.high %v1378_v48, %v1382_v44  ;;  %v6349_v39 = vcombine.low %v1377_v51, %v1381_v52  ;;  %v1393_v33 = vld [vmem:[%s9515_s5 + $0x900] sm:$0xff]  ;;  %v1398_v23 = vld [vmem:[%s9515_s5 + $0x928] sm:$0xff] }
 0x17e   :  { %v6351_v10 = vcombine.low %v1378_v48, %v1382_v44  ;;  %v6358_v22 = vcombine.high %v1385_v61, %v1389_v8  ;;  %v6360_v26 = vcombine.high %v1386_v12, %v1390_v40  ;;  %v1397_v19 = vld [vmem:[%s9515_s5 + $0x920] sm:$0xff]  ;;  %v6357_v63 = vcombine.low %v1385_v61, %v1389_v8  ;;  %v1402_v42 = vld [vmem:[%s9515_s5 + $0x948] sm:$0xff] }
 0x17f   :  { %4291 = vmatpush1.bf16.msra.mxu0 %v6317_v18  ;;  %4463 = vmatpush1.bf16.msra.mxu1 %v6319_v4  ;;  %v6359_v57 = vcombine.low %v1386_v12, %v1390_v40  ;;  %v6366_v58 = vcombine.high %v1393_v33, %v1397_v19  ;;  %v6368_v5 = vcombine.high %v1394_v21, %v1398_v23  ;;  %v1401_v59 = vld [vmem:[%s9515_s5 + $0x940] sm:$0xff]  ;;  %v1406_v0 = vld [vmem:[%s9515_s5 + $0x968] sm:$0xff] }
 0x180   :  { %4292 = vmatprep.subr.bf16.mxu0 %v6326_v17  ;;  %4464 = vmatprep.subr.bf16.mxu1 %v6328_v11  ;;  %v1405_v1 = vld [vmem:[%s9515_s5 + $0x960] sm:$0xff]  ;;  %v6365_v18 = vcombine.low %v1393_v33, %v1397_v19  ;;  %v6367_v2 = vcombine.low %v1394_v21, %v1398_v23  ;;  %v6376_v4 = vcombine.high %v1402_v42, %v1406_v0  ;;  %v1410_v11 = vld [vmem:[%s9515_s5 + $0x988] sm:$0xff] }
 0x181   :  { %v6374_v28 = vcombine.high %v1401_v59, %v1405_v1  ;;  %v1409_v53 = vld [vmem:[%s9515_s5 + $0x980] sm:$0xff]  ;;  %v1414_v13 = vld [vmem:[%s9515_s5 + $0x9a8] sm:$0xff]  ;;  %v6373_v35 = vcombine.low %v1401_v59, %v1405_v1  ;;  %v6375_v37 = vcombine.low %v1402_v42, %v1406_v0 }
 0x182   :  { %v1413_v17 = vld [vmem:[%s9515_s5 + $0x9a0] sm:$0xff]  ;;  %v1422_v36 = vld [vmem:[%s9515_s5 + $0x9e8] sm:$0xff]  ;;  %v6383_v27 = vcombine.low %v1410_v11, %v1414_v13 }
 0x183   :  { %4293 = vmatpush1.bf16.msra.mxu0 %v6325_v50  ;;  %4465 = vmatpush1.bf16.msra.mxu1 %v6327_v56  ;;  %v6382_v30 = vcombine.high %v1409_v53, %v1413_v17  ;;  %v6384_v50 = vcombine.high %v1410_v11, %v1414_v13  ;;  %v1417_v56 = vld [vmem:[%s9515_s5 + $0x9c0] sm:$0xff]  ;;  %v6381_v54 = vcombine.low %v1409_v53, %v1413_v17  ;;  %v1430_v51 = vld [vmem:[%s9515_s5 + $0xa28] sm:$0xff] }
 0x184   :  { %4305 = vmatprep.subr.bf16.mxu0 %v6334_v29  ;;  %4477 = vmatprep.subr.bf16.mxu1 %v6336_v31  ;;  %v1421_v29 = vld [vmem:[%s9515_s5 + $0x9e0] sm:$0xff]  ;;  %v1418_v31 = vld [vmem:[%s9515_s5 + $0x9c8] sm:$0xff] }
 0x185   :  { %v6390_v49 = vcombine.high %v1417_v56, %v1421_v29  ;;  %v6389_v52 = vcombine.low %v1417_v56, %v1421_v29  ;;  %v6391_v48 = vcombine.low %v1418_v31, %v1422_v36  ;;  %v1438_v61 = vld [vmem:[%s9515_s5 + $0xa68] sm:$0xff] }
 0x186   :  { %4295 = vmatmul.mubr.bf16.vlgmr.msra.gmra.mrb[8].mxu0 %v7686_v9  ;;  %4467 = vmatmul.mubr.bf16.vlgmr.msra.gmra.mrb[8].mxu1 %v7686_v9  ;;  %v1446_v33 = vld [vmem:[%s9515_s5 + $0xaa8] sm:$0xff] }
 0x187   :  { %4306 = vmatpush1.bf16.msra.mxu0 %v6333_v3  ;;  %4478 = vmatpush1.bf16.msra.mxu1 %v6335_v24  ;;  %v6392_v3 = vcombine.high %v1418_v31, %v1422_v36  ;;  %v1425_v24 = vld [vmem:[%s9515_s5 + $0xa00] sm:$0xff]  ;;  %v1454_v59 = vld [vmem:[%s9515_s5 + $0xae8] sm:$0xff] }
 0x188   :  { %4307 = vmatprep.subr.bf16.mxu0 %v6342_v62  ;;  %4479 = vmatprep.subr.bf16.mxu1 %v6344_v25  ;;  %v1429_v62 = vld [vmem:[%s9515_s5 + $0xa20] sm:$0xff]  ;;  %v1426_v25 = vld [vmem:[%s9515_s5 + $0xa08] sm:$0xff] }
 0x189   :  { %4337 = vmatprep.mubr.bf16.mxu0 %v7846_v47  ;;  %4509 = vmatprep.mubr.bf16.mxu1 %v7846_v47  ;;  %v6398_v44 = vcombine.high %v1425_v24, %v1429_v62  ;;  %v6397_v8 = vcombine.low %v1425_v24, %v1429_v62  ;;  %v6399_v12 = vcombine.low %v1426_v25, %v1430_v51  ;;  %v1462_v53 = vld [vmem:[%s9515_s5 + $0xb28] sm:$0xff] }
 0x18a   :  { %v1470_v56 = vld [vmem:[%s9515_s5 + $0xb68] sm:$0xff] }
 0x18b   :  { %4308 = vmatpush1.bf16.msra.mxu0 %v6341_v6  ;;  %4480 = vmatpush1.bf16.msra.mxu1 %v6343_v32  ;;  %v6400_v6 = vcombine.high %v1426_v25, %v1430_v51  ;;  %v1433_v32 = vld [vmem:[%s9515_s5 + $0xa40] sm:$0xff]  ;;  %v1478_v24 = vld [vmem:[%s9515_s5 + $0xba8] sm:$0xff] }
 0x18c   :  { %4309 = vmatprep.subr.bf16.mxu0 %v6350_v46  ;;  %4481 = vmatprep.subr.bf16.mxu1 %v6352_v45  ;;  %v1437_v46 = vld [vmem:[%s9515_s5 + $0xa60] sm:$0xff]  ;;  %v1434_v45 = vld [vmem:[%s9515_s5 + $0xa48] sm:$0xff] }
 0x18d   :  { %v6406_v40 = vcombine.high %v1433_v32, %v1437_v46  ;;  %v6405_v19 = vcombine.low %v1433_v32, %v1437_v46  ;;  %v6407_v21 = vcombine.low %v1434_v45, %v1438_v61  ;;  %v1486_v32 = vld [vmem:[%s9515_s5 + $0xbe8] sm:$0xff] }
 0x18f   :  { %4310 = vmatpush1.bf16.msra.mxu0 %v6349_v39  ;;  %4482 = vmatpush1.bf16.msra.mxu1 %v6351_v10  ;;  %v6408_v39 = vcombine.high %v1434_v45, %v1438_v61  ;;  %v1441_v10 = vld [vmem:[%s9515_s5 + $0xa80] sm:$0xff] }
 0x190   :  { %4311 = vmatprep.subr.bf16.mxu0 %v6358_v22  ;;  %4483 = vmatprep.subr.bf16.mxu1 %v6360_v26  ;;  %v1445_v22 = vld [vmem:[%s9515_s5 + $0xaa0] sm:$0xff]  ;;  %v1442_v26 = vld [vmem:[%s9515_s5 + $0xa88] sm:$0xff] }
 0x191   :  { %v6414_v23 = vcombine.high %v1441_v10, %v1445_v22  ;;  %v6413_v1 = vcombine.low %v1441_v10, %v1445_v22  ;;  %v6415_v42 = vcombine.low %v1442_v26, %v1446_v33  ;;  %v1494_v10 = vld [vmem:[%s9515_s5 + $0xc28] sm:$0xff] }
 0x193   :  { %4312 = vmatpush1.bf16.msra.mxu0 %v6357_v63  ;;  %4484 = vmatpush1.bf16.msra.mxu1 %v6359_v57  ;;  %v6416_v63 = vcombine.high %v1442_v26, %v1446_v33  ;;  %v1449_v57 = vld [vmem:[%s9515_s5 + $0xac0] sm:$0xff] }
 0x194   :  { %4313 = vmatprep.subr.bf16.mxu0 %v6366_v58  ;;  %4485 = vmatprep.subr.bf16.mxu1 %v6368_v5  ;;  %v1453_v58 = vld [vmem:[%s9515_s5 + $0xae0] sm:$0xff]  ;;  %v1450_v5 = vld [vmem:[%s9515_s5 + $0xac8] sm:$0xff] }
 0x195   :  { %v6422_v0 = vcombine.high %v1449_v57, %v1453_v58  ;;  %v6421_v17 = vcombine.low %v1449_v57, %v1453_v58  ;;  %v6423_v11 = vcombine.low %v1450_v5, %v1454_v59  ;;  %v1502_v57 = vld [vmem:[%s9515_s5 + $0xc68] sm:$0xff] }
 0x197   :  { %4314 = vmatpush1.bf16.msra.mxu0 %v6365_v18  ;;  %4486 = vmatpush1.bf16.msra.mxu1 %v6367_v2  ;;  %v6424_v18 = vcombine.high %v1450_v5, %v1454_v59  ;;  %v1457_v2 = vld [vmem:[%s9515_s5 + $0xb00] sm:$0xff] }
 0x198   :  { %4315 = vmatprep.subr.bf16.mxu0 %v6374_v28  ;;  %4487 = vmatprep.subr.bf16.mxu1 %v6376_v4  ;;  %v1461_v28 = vld [vmem:[%s9515_s5 + $0xb20] sm:$0xff]  ;;  %v1458_v4 = vld [vmem:[%s9515_s5 + $0xb08] sm:$0xff] }
 0x199   :  { %v6430_v13 = vcombine.high %v1457_v2, %v1461_v28  ;;  %v6429_v29 = vcombine.low %v1457_v2, %v1461_v28  ;;  %v6431_v31 = vcombine.low %v1458_v4, %v1462_v53  ;;  %v1510_v2 = vld [vmem:[%s9515_s5 + $0xca8] sm:$0xff] }
 0x19b   :  { %4316 = vmatpush1.bf16.msra.mxu0 %v6373_v35  ;;  %4488 = vmatpush1.bf16.msra.mxu1 %v6375_v37  ;;  %v6432_v35 = vcombine.high %v1458_v4, %v1462_v53  ;;  %v1465_v37 = vld [vmem:[%s9515_s5 + $0xb40] sm:$0xff] }
 0x19c   :  { %4317 = vmatprep.subr.bf16.mxu0 %v6382_v30  ;;  %4489 = vmatprep.subr.bf16.mxu1 %v6384_v50  ;;  %v1469_v30 = vld [vmem:[%s9515_s5 + $0xb60] sm:$0xff]  ;;  %v1466_v50 = vld [vmem:[%s9515_s5 + $0xb48] sm:$0xff] }
 0x19d   :  { %v6438_v36 = vcombine.high %v1465_v37, %v1469_v30  ;;  %v6437_v62 = vcombine.low %v1465_v37, %v1469_v30  ;;  %v6439_v25 = vcombine.low %v1466_v50, %v1470_v56  ;;  %v1518_v37 = vld [vmem:[%s9515_s5 + $0xce8] sm:$0xff] }
 0x19f   :  { %4318 = vmatpush1.bf16.msra.mxu0 %v6381_v54  ;;  %4490 = vmatpush1.bf16.msra.mxu1 %v6383_v27  ;;  %v6440_v54 = vcombine.high %v1466_v50, %v1470_v56  ;;  %v1473_v27 = vld [vmem:[%s9515_s5 + $0xb80] sm:$0xff] }
 0x1a0   :  { %4319 = vmatprep.subr.bf16.mxu0 %v6390_v49  ;;  %4491 = vmatprep.subr.bf16.mxu1 %v6392_v3  ;;  %v1477_v49 = vld [vmem:[%s9515_s5 + $0xba0] sm:$0xff]  ;;  %v1474_v3 = vld [vmem:[%s9515_s5 + $0xb88] sm:$0xff] }
 0x1a1   :  { %v6446_v51 = vcombine.high %v1473_v27, %v1477_v49  ;;  %v6445_v46 = vcombine.low %v1473_v27, %v1477_v49  ;;  %v6447_v45 = vcombine.low %v1474_v3, %v1478_v24  ;;  %v1526_v27 = vld [vmem:[%s9515_s5 + $0xd28] sm:$0xff] }
 0x1a3   :  { %4320 = vmatpush1.bf16.msra.mxu0 %v6389_v52  ;;  %4492 = vmatpush1.bf16.msra.mxu1 %v6391_v48  ;;  %v6448_v52 = vcombine.high %v1474_v3, %v1478_v24  ;;  %v1481_v48 = vld [vmem:[%s9515_s5 + $0xbc0] sm:$0xff] }
 0x1a4   :  { %4321 = vmatprep.subr.bf16.mxu0 %v6398_v44  ;;  %4493 = vmatprep.subr.bf16.mxu1 %v6400_v6  ;;  %v1485_v44 = vld [vmem:[%s9515_s5 + $0xbe0] sm:$0xff]  ;;  %v1482_v6 = vld [vmem:[%s9515_s5 + $0xbc8] sm:$0xff] }
 0x1a5   :  { %v6454_v61 = vcombine.high %v1481_v48, %v1485_v44  ;;  %v6453_v22 = vcombine.low %v1481_v48, %v1485_v44  ;;  %v6455_v26 = vcombine.low %v1482_v6, %v1486_v32  ;;  %v1534_v48 = vld [vmem:[%s9515_s5 + $0xd68] sm:$0xff] }
 0x1a7   :  { %4322 = vmatpush1.bf16.msra.mxu0 %v6397_v8  ;;  %4494 = vmatpush1.bf16.msra.mxu1 %v6399_v12  ;;  %v6456_v8 = vcombine.high %v1482_v6, %v1486_v32  ;;  %v1489_v12 = vld [vmem:[%s9515_s5 + $0xc00] sm:$0xff] }
 0x1a8   :  { %4323 = vmatprep.subr.bf16.mxu0 %v6406_v40  ;;  %4495 = vmatprep.subr.bf16.mxu1 %v6408_v39  ;;  %v1493_v40 = vld [vmem:[%s9515_s5 + $0xc20] sm:$0xff]  ;;  %v1490_v39 = vld [vmem:[%s9515_s5 + $0xc08] sm:$0xff] }
 0x1a9   :  { %v6462_v33 = vcombine.high %v1489_v12, %v1493_v40  ;;  %v6461_v58 = vcombine.low %v1489_v12, %v1493_v40  ;;  %v6463_v5 = vcombine.low %v1490_v39, %v1494_v10  ;;  %v1542_v12 = vld [vmem:[%s9515_s5 + $0xda8] sm:$0xff] }
 0x1ab   :  { %4324 = vmatpush1.bf16.msra.mxu0 %v6405_v19  ;;  %4496 = vmatpush1.bf16.msra.mxu1 %v6407_v21  ;;  %v6464_v19 = vcombine.high %v1490_v39, %v1494_v10  ;;  %v1497_v21 = vld [vmem:[%s9515_s5 + $0xc40] sm:$0xff] }
 0x1ac   :  { %4325 = vmatprep.subr.bf16.mxu0 %v6414_v23  ;;  %4497 = vmatprep.subr.bf16.mxu1 %v6416_v63  ;;  %v1501_v23 = vld [vmem:[%s9515_s5 + $0xc60] sm:$0xff]  ;;  %v1498_v63 = vld [vmem:[%s9515_s5 + $0xc48] sm:$0xff] }
 0x1ad   :  { %v6470_v59 = vcombine.high %v1497_v21, %v1501_v23  ;;  %v6469_v28 = vcombine.low %v1497_v21, %v1501_v23  ;;  %v6471_v4 = vcombine.low %v1498_v63, %v1502_v57  ;;  %v1550_v21 = vld [vmem:[%s9515_s5 + $0xde8] sm:$0xff] }
 0x1af   :  { %4326 = vmatpush1.bf16.msra.mxu0 %v6413_v1  ;;  %4498 = vmatpush1.bf16.msra.mxu1 %v6415_v42  ;;  %v6472_v1 = vcombine.high %v1498_v63, %v1502_v57  ;;  %v1505_v42 = vld [vmem:[%s9515_s5 + $0xc80] sm:$0xff] }
 0x1b0   :  { %4327 = vmatprep.subr.bf16.mxu0 %v6422_v0  ;;  %4499 = vmatprep.subr.bf16.mxu1 %v6424_v18  ;;  %v1509_v0 = vld [vmem:[%s9515_s5 + $0xca0] sm:$0xff]  ;;  %v1506_v18 = vld [vmem:[%s9515_s5 + $0xc88] sm:$0xff] }
 0x1b1   :  { %v6478_v53 = vcombine.high %v1505_v42, %v1509_v0  ;;  %v6477_v30 = vcombine.low %v1505_v42, %v1509_v0  ;;  %v6479_v50 = vcombine.low %v1506_v18, %v1510_v2  ;;  %v1558_v42 = vld [vmem:[%s9515_s5 + $0xe28] sm:$0xff] }
 0x1b3   :  { %4328 = vmatpush1.bf16.msra.mxu0 %v6421_v17  ;;  %4500 = vmatpush1.bf16.msra.mxu1 %v6423_v11  ;;  %v6480_v17 = vcombine.high %v1506_v18, %v1510_v2  ;;  %v1513_v11 = vld [vmem:[%s9515_s5 + $0xcc0] sm:$0xff] }
 0x1b4   :  { %4329 = vmatprep.subr.bf16.mxu0 %v6430_v13  ;;  %4501 = vmatprep.subr.bf16.mxu1 %v6432_v35  ;;  %v1517_v13 = vld [vmem:[%s9515_s5 + $0xce0] sm:$0xff]  ;;  %v1514_v35 = vld [vmem:[%s9515_s5 + $0xcc8] sm:$0xff] }
 0x1b5   :  { %v6486_v56 = vcombine.high %v1513_v11, %v1517_v13  ;;  %v6485_v49 = vcombine.low %v1513_v11, %v1517_v13  ;;  %v6487_v3 = vcombine.low %v1514_v35, %v1518_v37  ;;  %v1566_v11 = vld [vmem:[%s9515_s5 + $0xe68] sm:$0xff] }
 0x1b7   :  { %4330 = vmatpush1.bf16.msra.mxu0 %v6429_v29  ;;  %4502 = vmatpush1.bf16.msra.mxu1 %v6431_v31  ;;  %v6488_v29 = vcombine.high %v1514_v35, %v1518_v37  ;;  %v1521_v31 = vld [vmem:[%s9515_s5 + $0xd00] sm:$0xff] }
 0x1b8   :  { %4331 = vmatprep.subr.bf16.mxu0 %v6438_v36  ;;  %4503 = vmatprep.subr.bf16.mxu1 %v6440_v54  ;;  %v1525_v36 = vld [vmem:[%s9515_s5 + $0xd20] sm:$0xff]  ;;  %v1522_v54 = vld [vmem:[%s9515_s5 + $0xd08] sm:$0xff] }
 0x1b9   :  { %v6494_v24 = vcombine.high %v1521_v31, %v1525_v36  ;;  %v6493_v44 = vcombine.low %v1521_v31, %v1525_v36  ;;  %v6495_v6 = vcombine.low %v1522_v54, %v1526_v27  ;;  %v1574_v31 = vld [vmem:[%s9515_s5 + $0xea8] sm:$0xff] }
 0x1bb   :  { %4332 = vmatpush1.bf16.msra.mxu0 %v6437_v62  ;;  %4504 = vmatpush1.bf16.msra.mxu1 %v6439_v25  ;;  %v6496_v62 = vcombine.high %v1522_v54, %v1526_v27  ;;  %v1529_v25 = vld [vmem:[%s9515_s5 + $0xd40] sm:$0xff] }
 0x1bc   :  { %4333 = vmatprep.subr.bf16.mxu0 %v6446_v51  ;;  %4505 = vmatprep.subr.bf16.mxu1 %v6448_v52  ;;  %v1533_v51 = vld [vmem:[%s9515_s5 + $0xd60] sm:$0xff]  ;;  %v1530_v52 = vld [vmem:[%s9515_s5 + $0xd48] sm:$0xff] }
 0x1bd   :  { %v6502_v32 = vcombine.high %v1529_v25, %v1533_v51  ;;  %v6501_v40 = vcombine.low %v1529_v25, %v1533_v51  ;;  %v6503_v39 = vcombine.low %v1530_v52, %v1534_v48  ;;  %v1582_v25 = vld [vmem:[%s9515_s5 + $0xee8] sm:$0xff] }
 0x1bf   :  { %4334 = vmatpush1.bf16.msra.mxu0 %v6445_v46  ;;  %4506 = vmatpush1.bf16.msra.mxu1 %v6447_v45  ;;  %v6504_v46 = vcombine.high %v1530_v52, %v1534_v48  ;;  %v1537_v45 = vld [vmem:[%s9515_s5 + $0xd80] sm:$0xff] }
 0x1c0   :  { %4335 = vmatprep.subr.bf16.mxu0 %v6454_v61  ;;  %4507 = vmatprep.subr.bf16.mxu1 %v6456_v8  ;;  %v1541_v61 = vld [vmem:[%s9515_s5 + $0xda0] sm:$0xff]  ;;  %v1538_v8 = vld [vmem:[%s9515_s5 + $0xd88] sm:$0xff] }
 0x1c1   :  { %v6510_v10 = vcombine.high %v1537_v45, %v1541_v61  ;;  %v6509_v23 = vcombine.low %v1537_v45, %v1541_v61  ;;  %v6511_v63 = vcombine.low %v1538_v8, %v1542_v12  ;;  %v1590_v45 = vld [vmem:[%s9515_s5 + $0xf28] sm:$0xff] }
 0x1c3   :  { %4336 = vmatpush1.bf16.msra.mxu0 %v6453_v22  ;;  %4508 = vmatpush1.bf16.msra.mxu1 %v6455_v26  ;;  %v6512_v22 = vcombine.high %v1538_v8, %v1542_v12  ;;  %v1545_v26 = vld [vmem:[%s9515_s5 + $0xdc0] sm:$0xff] }
 0x1c4   :  { %4348 = vmatprep.subr.bf16.mxu0 %v6462_v33  ;;  %4520 = vmatprep.subr.bf16.mxu1 %v6464_v19  ;;  %v1549_v33 = vld [vmem:[%s9515_s5 + $0xde0] sm:$0xff]  ;;  %v1546_v19 = vld [vmem:[%s9515_s5 + $0xdc8] sm:$0xff] }
 0x1c5   :  { %v6518_v57 = vcombine.high %v1545_v26, %v1549_v33  ;;  %v6517_v0 = vcombine.low %v1545_v26, %v1549_v33  ;;  %v6519_v18 = vcombine.low %v1546_v19, %v1550_v21  ;;  %v1598_v26 = vld [vmem:[%s9515_s5 + $0xf68] sm:$0xff] }
 0x1c6   :  { %4338 = vmatmul.mubr.bf16.vlgmr.msra.gmra.mrb[8].mxu0 %v7835_v38  ;;  %4510 = vmatmul.mubr.bf16.vlgmr.msra.gmra.mrb[8].mxu1 %v7835_v38 }
 0x1c7   :  { %4349 = vmatpush1.bf16.msra.mxu0 %v6461_v58  ;;  %4521 = vmatpush1.bf16.msra.mxu1 %v6463_v5  ;;  %v6520_v58 = vcombine.high %v1546_v19, %v1550_v21  ;;  %v1553_v5 = vld [vmem:[%s9515_s5 + $0xe00] sm:$0xff] }
 0x1c8   :  { %4350 = vmatprep.subr.bf16.mxu0 %v6470_v59  ;;  %4522 = vmatprep.subr.bf16.mxu1 %v6472_v1  ;;  %v1557_v59 = vld [vmem:[%s9515_s5 + $0xe20] sm:$0xff]  ;;  %v1554_v1 = vld [vmem:[%s9515_s5 + $0xe08] sm:$0xff] }
 0x1c9   :  { %4380 = vmatprep.mubr.bf16.mxu0 %v7896_v43  ;;  %4552 = vmatprep.mubr.bf16.mxu1 %v7896_v43  ;;  %v6526_v2 = vcombine.high %v1553_v5, %v1557_v59  ;;  %v6525_v13 = vcombine.low %v1553_v5, %v1557_v59  ;;  %v6527_v35 = vcombine.low %v1554_v1, %v1558_v42  ;;  %v1606_v5 = vld [vmem:[%s9515_s5 + $0xfa8] sm:$0xff] }
 0x1cb   :  { %4351 = vmatpush1.bf16.msra.mxu0 %v6469_v28  ;;  %4523 = vmatpush1.bf16.msra.mxu1 %v6471_v4  ;;  %v6528_v28 = vcombine.high %v1554_v1, %v1558_v42  ;;  %v1561_v4 = vld [vmem:[%s9515_s5 + $0xe40] sm:$0xff] }
 0x1cc   :  { %4352 = vmatprep.subr.bf16.mxu0 %v6478_v53  ;;  %4524 = vmatprep.subr.bf16.mxu1 %v6480_v17  ;;  %v1565_v53 = vld [vmem:[%s9515_s5 + $0xe60] sm:$0xff]  ;;  %v1562_v17 = vld [vmem:[%s9515_s5 + $0xe48] sm:$0xff] }
 0x1cd   :  { %v6534_v37 = vcombine.high %v1561_v4, %v1565_v53  ;;  %v6533_v36 = vcombine.low %v1561_v4, %v1565_v53  ;;  %v6535_v54 = vcombine.low %v1562_v17, %v1566_v11  ;;  %v1614_v4 = vld [vmem:[%s9515_s5 + $0xfe8] sm:$0xff] }
 0x1cf   :  { %4353 = vmatpush1.bf16.msra.mxu0 %v6477_v30  ;;  %4525 = vmatpush1.bf16.msra.mxu1 %v6479_v50  ;;  %v6536_v30 = vcombine.high %v1562_v17, %v1566_v11  ;;  %v1569_v50 = vld [vmem:[%s9515_s5 + $0xe80] sm:$0xff] }
 0x1d0   :  { %4354 = vmatprep.subr.bf16.mxu0 %v6486_v56  ;;  %4526 = vmatprep.subr.bf16.mxu1 %v6488_v29  ;;  %v1573_v56 = vld [vmem:[%s9515_s5 + $0xea0] sm:$0xff]  ;;  %v1570_v29 = vld [vmem:[%s9515_s5 + $0xe88] sm:$0xff] }
 0x1d1   :  { %v6542_v27 = vcombine.high %v1569_v50, %v1573_v56  ;;  %v6541_v51 = vcombine.low %v1569_v50, %v1573_v56  ;;  %v6543_v52 = vcombine.low %v1570_v29, %v1574_v31  ;;  %v1112_v50 = vld [vmem:[%s9515_s5 + $0x38] sm:$0xff] }
 0x1d3   :  { %4355 = vmatpush1.bf16.msra.mxu0 %v6485_v49  ;;  %4527 = vmatpush1.bf16.msra.mxu1 %v6487_v3  ;;  %v6544_v49 = vcombine.high %v1570_v29, %v1574_v31  ;;  %v1577_v3 = vld [vmem:[%s9515_s5 + $0xec0] sm:$0xff] }
 0x1d4   :  { %4356 = vmatprep.subr.bf16.mxu0 %v6494_v24  ;;  %4528 = vmatprep.subr.bf16.mxu1 %v6496_v62  ;;  %v1581_v24 = vld [vmem:[%s9515_s5 + $0xee0] sm:$0xff]  ;;  %v1578_v62 = vld [vmem:[%s9515_s5 + $0xec8] sm:$0xff] }
 0x1d5   :  { %v6550_v48 = vcombine.high %v1577_v3, %v1581_v24  ;;  %v6549_v61 = vcombine.low %v1577_v3, %v1581_v24  ;;  %v6551_v8 = vcombine.low %v1578_v62, %v1582_v25  ;;  %v1120_v3 = vld [vmem:[%s9515_s5 + $0x78] sm:$0xff] }
 0x1d7   :  { %4357 = vmatpush1.bf16.msra.mxu0 %v6493_v44  ;;  %4529 = vmatpush1.bf16.msra.mxu1 %v6495_v6  ;;  %v6552_v44 = vcombine.high %v1578_v62, %v1582_v25  ;;  %v1585_v6 = vld [vmem:[%s9515_s5 + $0xf00] sm:$0xff] }
 0x1d8   :  { %4358 = vmatprep.subr.bf16.mxu0 %v6502_v32  ;;  %4530 = vmatprep.subr.bf16.mxu1 %v6504_v46  ;;  %v1589_v32 = vld [vmem:[%s9515_s5 + $0xf20] sm:$0xff]  ;;  %v1586_v46 = vld [vmem:[%s9515_s5 + $0xf08] sm:$0xff] }
 0x1d9   :  { %v6558_v12 = vcombine.high %v1585_v6, %v1589_v32  ;;  %v6557_v33 = vcombine.low %v1585_v6, %v1589_v32  ;;  %v6559_v19 = vcombine.low %v1586_v46, %v1590_v45  ;;  %v1128_v6 = vld [vmem:[%s9515_s5 + $0xb8] sm:$0xff] }
 0x1db   :  { %4359 = vmatpush1.bf16.msra.mxu0 %v6501_v40  ;;  %4531 = vmatpush1.bf16.msra.mxu1 %v6503_v39  ;;  %v6560_v40 = vcombine.high %v1586_v46, %v1590_v45  ;;  %v1593_v39 = vld [vmem:[%s9515_s5 + $0xf40] sm:$0xff] }
 0x1dc   :  { %4360 = vmatprep.subr.bf16.mxu0 %v6510_v10  ;;  %4532 = vmatprep.subr.bf16.mxu1 %v6512_v22  ;;  %v1597_v10 = vld [vmem:[%s9515_s5 + $0xf60] sm:$0xff]  ;;  %v1594_v22 = vld [vmem:[%s9515_s5 + $0xf48] sm:$0xff] }
 0x1dd   :  { %v6566_v21 = vcombine.high %v1593_v39, %v1597_v10  ;;  %v6565_v59 = vcombine.low %v1593_v39, %v1597_v10  ;;  %v6567_v1 = vcombine.low %v1594_v22, %v1598_v26 }
 0x1df   :  { %4361 = vmatpush1.bf16.msra.mxu0 %v6509_v23  ;;  %4533 = vmatpush1.bf16.msra.mxu1 %v6511_v63  ;;  %v6568_v23 = vcombine.high %v1594_v22, %v1598_v26  ;;  %v1601_v63 = vld [vmem:[%s9515_s5 + $0xf80] sm:$0xff] }
 0x1e0   :  { %4362 = vmatprep.subr.bf16.mxu0 %v6518_v57  ;;  %4534 = vmatprep.subr.bf16.mxu1 %v6520_v58  ;;  %v1605_v57 = vld [vmem:[%s9515_s5 + $0xfa0] sm:$0xff]  ;;  %v1602_v58 = vld [vmem:[%s9515_s5 + $0xf88] sm:$0xff] }
 0x1e1   :  { %v6574_v42 = vcombine.high %v1601_v63, %v1605_v57  ;;  %v6573_v53 = vcombine.low %v1601_v63, %v1605_v57  ;;  %v6575_v17 = vcombine.low %v1602_v58, %v1606_v5 }
 0x1e3   :  { %4363 = vmatpush1.bf16.msra.mxu0 %v6517_v0  ;;  %4535 = vmatpush1.bf16.msra.mxu1 %v6519_v18  ;;  %v6576_v0 = vcombine.high %v1602_v58, %v1606_v5  ;;  %v1609_v18 = vld [vmem:[%s9515_s5 + $0xfc0] sm:$0xff] }
 0x1e4   :  { %4364 = vmatprep.subr.bf16.mxu0 %v6526_v2  ;;  %4536 = vmatprep.subr.bf16.mxu1 %v6528_v28  ;;  %v1613_v2 = vld [vmem:[%s9515_s5 + $0xfe0] sm:$0xff]  ;;  %v1610_v28 = vld [vmem:[%s9515_s5 + $0xfc8] sm:$0xff] }
 0x1e5   :  { %v6582_v11 = vcombine.high %v1609_v18, %v1613_v2  ;;  %v6581_v56 = vcombine.low %v1609_v18, %v1613_v2  ;;  %v6583_v29 = vcombine.low %v1610_v28, %v1614_v4 }
 0x1e7   :  { %4365 = vmatpush1.bf16.msra.mxu0 %v6525_v13  ;;  %4537 = vmatpush1.bf16.msra.mxu1 %v6527_v35  ;;  %v6584_v13 = vcombine.high %v1610_v28, %v1614_v4  ;;  %v1107_v35 = vld [vmem:[%s9515_s5 + $0x10] sm:$0xff] }
 0x1e8   :  { %4366 = vmatprep.subr.bf16.mxu0 %v6534_v37  ;;  %4538 = vmatprep.subr.bf16.mxu1 %v6536_v30  ;;  %v1111_v37 = vld [vmem:[%s9515_s5 + $0x30] sm:$0xff]  ;;  %v1108_v30 = vld [vmem:[%s9515_s5 + $0x18] sm:$0xff] }
 0x1e9   :  { %v6082_v31 = vcombine.high %v1107_v35, %v1111_v37  ;;  %v6081_v24 = vcombine.low %v1107_v35, %v1111_v37  ;;  %v6083_v62 = vcombine.low %v1108_v30, %v1112_v50 }
 0x1eb   :  { %4367 = vmatpush1.bf16.msra.mxu0 %v6533_v36  ;;  %4539 = vmatpush1.bf16.msra.mxu1 %v6535_v54  ;;  %v6084_v36 = vcombine.high %v1108_v30, %v1112_v50  ;;  %v1115_v54 = vld [vmem:[%s9515_s5 + $0x50] sm:$0xff] }
 0x1ec   :  { %4368 = vmatprep.subr.bf16.mxu0 %v6542_v27  ;;  %4540 = vmatprep.subr.bf16.mxu1 %v6544_v49  ;;  %v1119_v27 = vld [vmem:[%s9515_s5 + $0x70] sm:$0xff]  ;;  %v1116_v49 = vld [vmem:[%s9515_s5 + $0x58] sm:$0xff] }
 0x1ed   :  { %v6090_v25 = vcombine.high %v1115_v54, %v1119_v27  ;;  %v6089_v32 = vcombine.low %v1115_v54, %v1119_v27  ;;  %v6091_v46 = vcombine.low %v1116_v49, %v1120_v3 }
 0x1ef   :  { %4369 = vmatpush1.bf16.msra.mxu0 %v6541_v51  ;;  %4541 = vmatpush1.bf16.msra.mxu1 %v6543_v52  ;;  %v6092_v51 = vcombine.high %v1116_v49, %v1120_v3  ;;  %v1123_v52 = vld [vmem:[%s9515_s5 + $0x90] sm:$0xff] }
 0x1f0   :  { %4370 = vmatprep.subr.bf16.mxu0 %v6550_v48  ;;  %4542 = vmatprep.subr.bf16.mxu1 %v6552_v44  ;;  %v1127_v48 = vld [vmem:[%s9515_s5 + $0xb0] sm:$0xff]  ;;  %v1124_v44 = vld [vmem:[%s9515_s5 + $0x98] sm:$0xff] }
 0x1f1   :  { %v6098_v45 = vcombine.high %v1123_v52, %v1127_v48  ;;  %v6097_v39 = vcombine.low %v1123_v52, %v1127_v48  ;;  %v6099_v10 = vcombine.low %v1124_v44, %v1128_v6 }
 0x1f3   :  { %4371 = vmatpush1.bf16.msra.mxu0 %v6549_v61  ;;  %4543 = vmatpush1.bf16.msra.mxu1 %v6551_v8  ;;  %v6100_v61 = vcombine.high %v1124_v44, %v1128_v6  ;;  %v1131_v8 = vld [vmem:[%s9515_s5 + $0xd0] sm:$0xff] }
 0x1f4   :  { %4372 = vmatprep.subr.bf16.mxu0 %v6558_v12  ;;  %4544 = vmatprep.subr.bf16.mxu1 %v6560_v40  ;;  %v1135_v12 = vld [vmem:[%s9515_s5 + $0xf0] sm:$0xff]  ;;  %v1132_v40 = vld [vmem:[%s9515_s5 + $0xd8] sm:$0xff] }
 0x1f5   :  { %v6106_v22 = vcombine.high %v1131_v8, %v1135_v12  ;;  %v6105_v63 = vcombine.low %v1131_v8, %v1135_v12 }
 0x1f7   :  { %4373 = vmatpush1.bf16.msra.mxu0 %v6557_v33  ;;  %4545 = vmatpush1.bf16.msra.mxu1 %v6559_v19  ;;  %v1139_v33 = vld [vmem:[%s9515_s5 + $0x110] sm:$0xff] }
 0x1f8   :  { %4374 = vmatprep.subr.bf16.mxu0 %v6566_v21  ;;  %4546 = vmatprep.subr.bf16.mxu1 %v6568_v23  ;;  %v1143_v19 = vld [vmem:[%s9515_s5 + $0x130] sm:$0xff]  ;;  %v1140_v21 = vld [vmem:[%s9515_s5 + $0x118] sm:$0xff] }
 0x1f9   :  { %v1144_v23 = vld [vmem:[%s9515_s5 + $0x138] sm:$0xff]  ;;  %v6114_v58 = vcombine.high %v1139_v33, %v1143_v19  ;;  %v6113_v18 = vcombine.low %v1139_v33, %v1143_v19 }
 0x1fa   :  { %v6116_v5 = vcombine.high %v1140_v21, %v1144_v23  ;;  %v6115_v2 = vcombine.low %v1140_v21, %v1144_v23 }
 0x1fb   :  { %4375 = vmatpush1.bf16.msra.mxu0 %v6565_v59  ;;  %4547 = vmatpush1.bf16.msra.mxu1 %v6567_v1  ;;  %v1147_v59 = vld [vmem:[%s9515_s5 + $0x150] sm:$0xff] }
 0x1fc   :  { %4376 = vmatprep.subr.bf16.mxu0 %v6574_v42  ;;  %4548 = vmatprep.subr.bf16.mxu1 %v6576_v0  ;;  %v1151_v1 = vld [vmem:[%s9515_s5 + $0x170] sm:$0xff]  ;;  %v1148_v42 = vld [vmem:[%s9515_s5 + $0x158] sm:$0xff] }
 0x1fd   :  { %v1152_v0 = vld [vmem:[%s9515_s5 + $0x178] sm:$0xff]  ;;  %v6122_v28 = vcombine.high %v1147_v59, %v1151_v1  ;;  %v6121_v35 = vcombine.low %v1147_v59, %v1151_v1 }
 0x1fe   :  { %v6124_v4 = vcombine.high %v1148_v42, %v1152_v0  ;;  %v6123_v37 = vcombine.low %v1148_v42, %v1152_v0 }
 0x1ff   :  { %4377 = vmatpush1.bf16.msra.mxu0 %v6573_v53  ;;  %4549 = vmatpush1.bf16.msra.mxu1 %v6575_v17  ;;  %v1155_v53 = vld [vmem:[%s9515_s5 + $0x190] sm:$0xff] }
 0x200   :  { %4378 = vmatprep.subr.bf16.mxu0 %v6582_v11  ;;  %4550 = vmatprep.subr.bf16.mxu1 %v6584_v13  ;;  %v1159_v17 = vld [vmem:[%s9515_s5 + $0x1b0] sm:$0xff]  ;;  %v1156_v11 = vld [vmem:[%s9515_s5 + $0x198] sm:$0xff] }
 0x201   :  { %v1160_v13 = vld [vmem:[%s9515_s5 + $0x1b8] sm:$0xff]  ;;  %v6130_v30 = vcombine.high %v1155_v53, %v1159_v17  ;;  %v6129_v54 = vcombine.low %v1155_v53, %v1159_v17 }
 0x202   :  { %v6132_v50 = vcombine.high %v1156_v11, %v1160_v13  ;;  %v6131_v27 = vcombine.low %v1156_v11, %v1160_v13 }
 0x203   :  { %4379 = vmatpush1.bf16.msra.mxu0 %v6581_v56  ;;  %4551 = vmatpush1.bf16.msra.mxu1 %v6583_v29  ;;  %v1163_v56 = vld [vmem:[%s9515_s5 + $0x1d0] sm:$0xff] }
 0x204   :  { %4563 = vmatprep.subr.bf16.mxu0 %v6082_v31  ;;  %4735 = vmatprep.subr.bf16.mxu1 %v6084_v36  ;;  %v1167_v29 = vld [vmem:[%s9515_s5 + $0x1f0] sm:$0xff]  ;;  %v1164_v31 = vld [vmem:[%s9515_s5 + $0x1d8] sm:$0xff] }
 0x205   :  { %v1168_v36 = vld [vmem:[%s9515_s5 + $0x1f8] sm:$0xff]  ;;  %v6138_v49 = vcombine.high %v1163_v56, %v1167_v29  ;;  %v6137_v52 = vcombine.low %v1163_v56, %v1167_v29 }
 0x206   :  { %4381 = vmatmul.mubr.bf16.vlgmr.msra.gmra.mrb[8].mxu0 %v7902_v34  ;;  %4553 = vmatmul.mubr.bf16.vlgmr.msra.gmra.mrb[8].mxu1 %v7902_v34  ;;  %v6140_v3 = vcombine.high %v1164_v31, %v1168_v36  ;;  %v6139_v48 = vcombine.low %v1164_v31, %v1168_v36 }
 0x207   :  { %4564 = vmatpush1.bf16.msra.mxu0 %v6081_v24  ;;  %4595 = vmatprep.mubr.bf16.mxu0 %v7641_v14  ;;  %v1171_v24 = vld [vmem:[%s9515_s5 + $0x210] sm:$0xff] }
 0x208   :  { %4736 = vmatpush1.bf16.msra.mxu1 %v6083_v62  ;;  %4767 = vmatprep.mubr.bf16.mxu1 %v7641_v14  ;;  %v1136_v14 = vld [vmem:[%s9515_s5 + $0xf8] sm:$0xff]  ;;  %v1175_v62 = vld [vmem:[%s9515_s5 + $0x230] sm:$0xff] }
 0x209   :  { %4565 = vmatprep.subr.bf16.mxu0 %v6090_v25  ;;  %4737 = vmatprep.subr.bf16.mxu1 %v6092_v51  ;;  %v6108_v26 = vcombine.high %v1132_v40, %v1136_v14  ;;  %v6107_v57 = vcombine.low %v1132_v40, %v1136_v14  ;;  %v1172_v25 = vld [vmem:[%s9515_s5 + $0x218] sm:$0xff]  ;;  %v6146_v44 = vcombine.high %v1171_v24, %v1175_v62 }
 0x20a   :  { %v1176_v51 = vld [vmem:[%s9515_s5 + $0x238] sm:$0xff]  ;;  %v6145_v8 = vcombine.low %v1171_v24, %v1175_v62 }
 0x20b   :  { %4566 = vmatpush1.bf16.msra.mxu0 %v6089_v32  ;;  %v6148_v6 = vcombine.high %v1172_v25, %v1176_v51  ;;  %v1179_v32 = vld [vmem:[%s9515_s5 + $0x250] sm:$0xff]  ;;  %v6147_v12 = vcombine.low %v1172_v25, %v1176_v51 }
 0x20c   :  { %4738 = vmatpush1.bf16.msra.mxu1 %v6091_v46  ;;  %4567 = vmatprep.subr.bf16.mxu0 %v6098_v45  ;;  %v1183_v46 = vld [vmem:[%s9515_s5 + $0x270] sm:$0xff]  ;;  %v1180_v45 = vld [vmem:[%s9515_s5 + $0x258] sm:$0xff] }
 0x20d   :  { %4739 = vmatprep.subr.bf16.mxu1 %v6100_v61  ;;  %v1184_v61 = vld [vmem:[%s9515_s5 + $0x278] sm:$0xff]  ;;  %v6154_v40 = vcombine.high %v1179_v32, %v1183_v46  ;;  %v6153_v33 = vcombine.low %v1179_v32, %v1183_v46 }
 0x20e   :  { %v6156_v14 = vcombine.high %v1180_v45, %v1184_v61  ;;  %v6155_v19 = vcombine.low %v1180_v45, %v1184_v61 }
 0x20f   :  { %4568 = vmatpush1.bf16.msra.mxu0 %v6097_v39  ;;  %v1187_v39 = vld [vmem:[%s9515_s5 + $0x290] sm:$0xff] }
 0x210   :  { %4740 = vmatpush1.bf16.msra.mxu1 %v6099_v10  ;;  %4569 = vmatprep.subr.bf16.mxu0 %v6106_v22  ;;  %v1191_v10 = vld [vmem:[%s9515_s5 + $0x2b0] sm:$0xff]  ;;  %v1188_v22 = vld [vmem:[%s9515_s5 + $0x298] sm:$0xff] }
 0x211   :  { %4741 = vmatprep.subr.bf16.mxu1 %v6108_v26  ;;  %v1192_v26 = vld [vmem:[%s9515_s5 + $0x2b8] sm:$0xff]  ;;  %v6162_v21 = vcombine.high %v1187_v39, %v1191_v10  ;;  %v6161_v59 = vcombine.low %v1187_v39, %v1191_v10 }
 0x212   :  { %v6164_v23 = vcombine.high %v1188_v22, %v1192_v26  ;;  %v6163_v1 = vcombine.low %v1188_v22, %v1192_v26 }
 0x213   :  { %4570 = vmatpush1.bf16.msra.mxu0 %v6105_v63  ;;  %v1195_v63 = vld [vmem:[%s9515_s5 + $0x2d0] sm:$0xff] }
 0x214   :  { %4742 = vmatpush1.bf16.msra.mxu1 %v6107_v57  ;;  %4571 = vmatprep.subr.bf16.mxu0 %v6114_v58  ;;  %v1199_v57 = vld [vmem:[%s9515_s5 + $0x2f0] sm:$0xff]  ;;  %v1196_v58 = vld [vmem:[%s9515_s5 + $0x2d8] sm:$0xff] }
 0x215   :  { %4743 = vmatprep.subr.bf16.mxu1 %v6116_v5  ;;  %v1200_v5 = vld [vmem:[%s9515_s5 + $0x2f8] sm:$0xff]  ;;  %v6170_v42 = vcombine.high %v1195_v63, %v1199_v57  ;;  %v6169_v53 = vcombine.low %v1195_v63, %v1199_v57 }
 0x216   :  { %v6172_v0 = vcombine.high %v1196_v58, %v1200_v5  ;;  %v6171_v17 = vcombine.low %v1196_v58, %v1200_v5  ;;  %v1248_v63 = vld [vmem:[%s9515_s5 + $0x478] sm:$0xff]  ;;  %v1251_v5 = vld [vmem:[%s9515_s5 + $0x490] sm:$0xff] }
 0x217   :  { %4572 = vmatpush1.bf16.msra.mxu0 %v6113_v18  ;;  %v1203_v18 = vld [vmem:[%s9515_s5 + $0x310] sm:$0xff] }
 0x218   :  { %4744 = vmatpush1.bf16.msra.mxu1 %v6115_v2  ;;  %4573 = vmatprep.subr.bf16.mxu0 %v6122_v28  ;;  %v1207_v2 = vld [vmem:[%s9515_s5 + $0x330] sm:$0xff]  ;;  %v1204_v28 = vld [vmem:[%s9515_s5 + $0x318] sm:$0xff] }
 0x219   :  { %4745 = vmatprep.subr.bf16.mxu1 %v6124_v4  ;;  %v1208_v4 = vld [vmem:[%s9515_s5 + $0x338] sm:$0xff]  ;;  %v6178_v11 = vcombine.high %v1203_v18, %v1207_v2  ;;  %v6177_v56 = vcombine.low %v1203_v18, %v1207_v2 }
 0x21a   :  { %v6180_v13 = vcombine.high %v1204_v28, %v1208_v4  ;;  %v6179_v29 = vcombine.low %v1204_v28, %v1208_v4 }
 0x21b   :  { %4574 = vmatpush1.bf16.msra.mxu0 %v6121_v35  ;;  %v1211_v35 = vld [vmem:[%s9515_s5 + $0x350] sm:$0xff] }
 0x21c   :  { %4746 = vmatpush1.bf16.msra.mxu1 %v6123_v37  ;;  %4575 = vmatprep.subr.bf16.mxu0 %v6130_v30  ;;  %v1215_v37 = vld [vmem:[%s9515_s5 + $0x370] sm:$0xff]  ;;  %v1212_v30 = vld [vmem:[%s9515_s5 + $0x358] sm:$0xff] }
 0x21d   :  { %4747 = vmatprep.subr.bf16.mxu1 %v6132_v50  ;;  %v1216_v50 = vld [vmem:[%s9515_s5 + $0x378] sm:$0xff]  ;;  %v6186_v31 = vcombine.high %v1211_v35, %v1215_v37  ;;  %v6185_v24 = vcombine.low %v1211_v35, %v1215_v37 }
 0x21e   :  { %v6188_v36 = vcombine.high %v1212_v30, %v1216_v50  ;;  %v6187_v62 = vcombine.low %v1212_v30, %v1216_v50  ;;  %v1267_v30 = vld [vmem:[%s9515_s5 + $0x510] sm:$0xff] }
 0x21f   :  { %4576 = vmatpush1.bf16.msra.mxu0 %v6129_v54  ;;  %v1219_v54 = vld [vmem:[%s9515_s5 + $0x390] sm:$0xff] }
 0x220   :  { %4748 = vmatpush1.bf16.msra.mxu1 %v6131_v27  ;;  %4577 = vmatprep.subr.bf16.mxu0 %v6138_v49  ;;  %v1223_v27 = vld [vmem:[%s9515_s5 + $0x3b0] sm:$0xff]  ;;  %v1220_v49 = vld [vmem:[%s9515_s5 + $0x398] sm:$0xff] }
 0x221   :  { %4749 = vmatprep.subr.bf16.mxu1 %v6140_v3  ;;  %v1224_v3 = vld [vmem:[%s9515_s5 + $0x3b8] sm:$0xff]  ;;  %v6194_v25 = vcombine.high %v1219_v54, %v1223_v27  ;;  %v6193_v32 = vcombine.low %v1219_v54, %v1223_v27  ;;  %v1271_v50 = vld [vmem:[%s9515_s5 + $0x530] sm:$0xff] }
 0x222   :  { %v6196_v51 = vcombine.high %v1220_v49, %v1224_v3  ;;  %v6195_v46 = vcombine.low %v1220_v49, %v1224_v3  ;;  %v6242_v54 = vcombine.high %v1267_v30, %v1271_v50  ;;  %v1275_v49 = vld [vmem:[%s9515_s5 + $0x550] sm:$0xff] }
 0x223   :  { %4578 = vmatpush1.bf16.msra.mxu0 %v6137_v52  ;;  %v1227_v52 = vld [vmem:[%s9515_s5 + $0x3d0] sm:$0xff] }
 0x224   :  { %4750 = vmatpush1.bf16.msra.mxu1 %v6139_v48  ;;  %4579 = vmatprep.subr.bf16.mxu0 %v6146_v44  ;;  %v1231_v48 = vld [vmem:[%s9515_s5 + $0x3f0] sm:$0xff]  ;;  %v1228_v44 = vld [vmem:[%s9515_s5 + $0x3d8] sm:$0xff] }
 0x225   :  { %4751 = vmatprep.subr.bf16.mxu1 %v6148_v6  ;;  %v1232_v6 = vld [vmem:[%s9515_s5 + $0x3f8] sm:$0xff]  ;;  %v6202_v45 = vcombine.high %v1227_v52, %v1231_v48  ;;  %v6201_v39 = vcombine.low %v1227_v52, %v1231_v48  ;;  %v1279_v3 = vld [vmem:[%s9515_s5 + $0x570] sm:$0xff] }
 0x226   :  { %v6204_v61 = vcombine.high %v1228_v44, %v1232_v6  ;;  %v6203_v10 = vcombine.low %v1228_v44, %v1232_v6  ;;  %v6250_v52 = vcombine.high %v1275_v49, %v1279_v3  ;;  %v1283_v44 = vld [vmem:[%s9515_s5 + $0x590] sm:$0xff] }
 0x227   :  { %4580 = vmatpush1.bf16.msra.mxu0 %v6145_v8  ;;  %v1235_v8 = vld [vmem:[%s9515_s5 + $0x410] sm:$0xff] }
 0x228   :  { %4752 = vmatpush1.bf16.msra.mxu1 %v6147_v12  ;;  %4581 = vmatprep.subr.bf16.mxu0 %v6154_v40  ;;  %v1239_v12 = vld [vmem:[%s9515_s5 + $0x430] sm:$0xff]  ;;  %v1236_v40 = vld [vmem:[%s9515_s5 + $0x418] sm:$0xff] }
 0x229   :  { %4753 = vmatprep.subr.bf16.mxu1 %v6156_v14  ;;  %v1240_v14 = vld [vmem:[%s9515_s5 + $0x438] sm:$0xff]  ;;  %v6210_v22 = vcombine.high %v1235_v8, %v1239_v12  ;;  %v1287_v6 = vld [vmem:[%s9515_s5 + $0x5b0] sm:$0xff] }
 0x22a   :  { %v6212_v26 = vcombine.high %v1236_v40, %v1240_v14  ;;  %v6211_v57 = vcombine.low %v1236_v40, %v1240_v14  ;;  %v1291_v40 = vld [vmem:[%s9515_s5 + $0x5d0] sm:$0xff] }
 0x22b   :  { %4582 = vmatpush1.bf16.msra.mxu0 %v6153_v33  ;;  %v1243_v33 = vld [vmem:[%s9515_s5 + $0x450] sm:$0xff] }
 0x22c   :  { %4754 = vmatpush1.bf16.msra.mxu1 %v6155_v19  ;;  %4583 = vmatprep.subr.bf16.mxu0 %v6162_v21  ;;  %v1247_v19 = vld [vmem:[%s9515_s5 + $0x470] sm:$0xff]  ;;  %v6209_v21 = vcombine.low %v1235_v8, %v1239_v12  ;;  %v6258_v8 = vcombine.high %v1283_v44, %v1287_v6 }
 0x22d   :  { %4755 = vmatprep.subr.bf16.mxu1 %v6164_v23  ;;  %v1244_v23 = vld [vmem:[%s9515_s5 + $0x458] sm:$0xff]  ;;  %v6218_v58 = vcombine.high %v1243_v33, %v1247_v19  ;;  %v6217_v18 = vcombine.low %v1243_v33, %v1247_v19  ;;  %v1295_v14 = vld [vmem:[%s9515_s5 + $0x5f0] sm:$0xff] }
 0x22e   :  { %v6219_v2 = vcombine.low %v1244_v23, %v1248_v63  ;;  %v6266_v33 = vcombine.high %v1291_v40, %v1295_v14 }
 0x22f   :  { %4584 = vmatpush1.bf16.msra.mxu0 %v6161_v59  ;;  %v1255_v59 = vld [vmem:[%s9515_s5 + $0x4b0] sm:$0xff] }
 0x230   :  { %4756 = vmatpush1.bf16.msra.mxu1 %v6163_v1  ;;  %4585 = vmatprep.subr.bf16.mxu0 %v6170_v42  ;;  %v6220_v1 = vcombine.high %v1244_v23, %v1248_v63  ;;  %v1252_v42 = vld [vmem:[%s9515_s5 + $0x498] sm:$0xff]  ;;  %v6226_v28 = vcombine.high %v1251_v5, %v1255_v59  ;;  %v1303_v23 = vld [vmem:[%s9515_s5 + $0x630] sm:$0xff] }
 0x231   :  { %4757 = vmatprep.subr.bf16.mxu1 %v6172_v0  ;;  %v1256_v0 = vld [vmem:[%s9515_s5 + $0x4b8] sm:$0xff] }
 0x232   :  { %v6228_v4 = vcombine.high %v1252_v42, %v1256_v0  ;;  %v1300_v63 = vld [vmem:[%s9515_s5 + $0x618] sm:$0xff] }
 0x233   :  { %4586 = vmatpush1.bf16.msra.mxu0 %v6169_v53  ;;  %v1259_v53 = vld [vmem:[%s9515_s5 + $0x4d0] sm:$0xff] }
 0x234   :  { %4758 = vmatpush1.bf16.msra.mxu1 %v6171_v17  ;;  %4587 = vmatprep.subr.bf16.mxu0 %v6178_v11  ;;  %v1263_v17 = vld [vmem:[%s9515_s5 + $0x4f0] sm:$0xff]  ;;  %v1264_v11 = vld [vmem:[%s9515_s5 + $0x4f8] sm:$0xff] }
 0x235   :  { %4759 = vmatprep.subr.bf16.mxu1 %v6180_v13  ;;  %v6227_v13 = vcombine.low %v1252_v42, %v1256_v0  ;;  %v6234_v35 = vcombine.high %v1259_v53, %v1263_v17  ;;  %v1307_v42 = vld [vmem:[%s9515_s5 + $0x650] sm:$0xff] }
 0x236   :  { %v1311_v0 = vld [vmem:[%s9515_s5 + $0x670] sm:$0xff] }
 0x237   :  { %4588 = vmatpush1.bf16.msra.mxu0 %v6177_v56  ;;  %v1268_v56 = vld [vmem:[%s9515_s5 + $0x518] sm:$0xff] }
 0x238   :  { %4760 = vmatpush1.bf16.msra.mxu1 %v6179_v29  ;;  %4589 = vmatprep.subr.bf16.mxu0 %v6186_v31  ;;  %v1272_v29 = vld [vmem:[%s9515_s5 + $0x538] sm:$0xff]  ;;  %v6233_v31 = vcombine.low %v1259_v53, %v1263_v17  ;;  %v6282_v53 = vcombine.high %v1307_v42, %v1311_v0 }
 0x239   :  { %4761 = vmatprep.subr.bf16.mxu1 %v6188_v36  ;;  %v6244_v27 = vcombine.high %v1268_v56, %v1272_v29 }
 0x23b   :  { %4590 = vmatpush1.bf16.msra.mxu0 %v6185_v24  ;;  %v1276_v24 = vld [vmem:[%s9515_s5 + $0x558] sm:$0xff] }
 0x23c   :  { %4762 = vmatpush1.bf16.msra.mxu1 %v6187_v62  ;;  %4591 = vmatprep.subr.bf16.mxu0 %v6194_v25  ;;  %v1280_v62 = vld [vmem:[%s9515_s5 + $0x578] sm:$0xff]  ;;  %v6241_v25 = vcombine.low %v1267_v30, %v1271_v50 }
 0x23d   :  { %4763 = vmatprep.subr.bf16.mxu1 %v6196_v51  ;;  %v6243_v51 = vcombine.low %v1268_v56, %v1272_v29  ;;  %v6252_v48 = vcombine.high %v1276_v24, %v1280_v62  ;;  %v1323_v56 = vld [vmem:[%s9515_s5 + $0x6d0] sm:$0xff] }
 0x23e   :  { %v1327_v29 = vld [vmem:[%s9515_s5 + $0x6f0] sm:$0xff] }
 0x23f   :  { %4592 = vmatpush1.bf16.msra.mxu0 %v6193_v32  ;;  %v1284_v32 = vld [vmem:[%s9515_s5 + $0x598] sm:$0xff] }
 0x240   :  { %4764 = vmatpush1.bf16.msra.mxu1 %v6195_v46  ;;  %4593 = vmatprep.subr.bf16.mxu0 %v6202_v45  ;;  %v1288_v46 = vld [vmem:[%s9515_s5 + $0x5b8] sm:$0xff]  ;;  %v6249_v45 = vcombine.low %v1275_v49, %v1279_v3  ;;  %v6298_v49 = vcombine.high %v1323_v56, %v1327_v29 }
 0x241   :  { %4765 = vmatprep.subr.bf16.mxu1 %v6204_v61  ;;  %v6251_v61 = vcombine.low %v1276_v24, %v1280_v62  ;;  %v6260_v12 = vcombine.high %v1284_v32, %v1288_v46  ;;  %v1331_v24 = vld [vmem:[%s9515_s5 + $0x710] sm:$0xff] }
 0x242   :  { %v1335_v62 = vld [vmem:[%s9515_s5 + $0x730] sm:$0xff] }
 0x243   :  { %4594 = vmatpush1.bf16.msra.mxu0 %v6201_v39  ;;  %v1292_v39 = vld [vmem:[%s9515_s5 + $0x5d8] sm:$0xff] }
 0x244   :  { %4766 = vmatpush1.bf16.msra.mxu1 %v6203_v10  ;;  %4606 = vmatprep.subr.bf16.mxu0 %v6210_v22  ;;  %v1296_v10 = vld [vmem:[%s9515_s5 + $0x5f8] sm:$0xff]  ;;  %v6257_v22 = vcombine.low %v1283_v44, %v1287_v6  ;;  %v6306_v44 = vcombine.high %v1331_v24, %v1335_v62 }
 0x245   :  { %4778 = vmatprep.subr.bf16.mxu1 %v6212_v26  ;;  %v6259_v26 = vcombine.low %v1284_v32, %v1288_v46  ;;  %v6268_v19 = vcombine.high %v1292_v39, %v1296_v10  ;;  %v1339_v32 = vld [vmem:[%s9515_s5 + $0x750] sm:$0xff] }
 0x246   :  { %4596 = vmatmul.mubr.bf16.vlgmr.msra.gmra.mrb[12].mxu0 %v7646_v55  ;;  %v1343_v46 = vld [vmem:[%s9515_s5 + $0x770] sm:$0xff] }
 0x247   :  { %4768 = vmatmul.mubr.bf16.vlgmr.msra.gmra.mrb[12].mxu1 %v7646_v55  ;;  %4607 = vmatpush1.bf16.msra.mxu0 %v6209_v21  ;;  %v1260_v55 = vld [vmem:[%s9515_s5 + $0x4d8] sm:$0xff]  ;;  %v1299_v21 = vld [vmem:[%s9515_s5 + $0x610] sm:$0xff] }
 0x248   :  { %4638 = vmatprep.mubr.bf16.mxu0 %v7667_v20  ;;  %4779 = vmatpush1.bf16.msra.mxu1 %v6211_v57  ;;  %v6236_v37 = vcombine.high %v1260_v55, %v1264_v11  ;;  %v6235_v36 = vcombine.low %v1260_v55, %v1264_v11  ;;  %v1304_v57 = vld [vmem:[%s9515_s5 + $0x638] sm:$0xff]  ;;  %v1315_v55 = vld [vmem:[%s9515_s5 + $0x690] sm:$0xff] }
 0x249   :  { %4810 = vmatprep.mubr.bf16.mxu1 %v7667_v20  ;;  %4608 = vmatprep.subr.bf16.mxu0 %v6218_v58  ;;  %v6225_v20 = vcombine.low %v1251_v5, %v1255_v59  ;;  %v6265_v58 = vcombine.low %v1291_v40, %v1295_v14  ;;  %v6267_v5 = vcombine.low %v1292_v39, %v1296_v10  ;;  %v1319_v11 = vld [vmem:[%s9515_s5 + $0x6b0] sm:$0xff] }
 0x24a   :  { %4780 = vmatprep.subr.bf16.mxu1 %v6220_v1  ;;  %v6274_v59 = vcombine.high %v1299_v21, %v1303_v23  ;;  %v6276_v1 = vcombine.high %v1300_v63, %v1304_v57  ;;  %v6290_v30 = vcombine.high %v1315_v55, %v1319_v11  ;;  %v6314_v40 = vcombine.high %v1339_v32, %v1343_v46  ;;  %v1347_v39 = vld [vmem:[%s9515_s5 + $0x790] sm:$0xff] }
 0x24b   :  { %4609 = vmatpush1.bf16.msra.mxu0 %v6217_v18  ;;  %v1308_v18 = vld [vmem:[%s9515_s5 + $0x658] sm:$0xff]  ;;  %v1351_v10 = vld [vmem:[%s9515_s5 + $0x7b0] sm:$0xff] }
 0x24c   :  { %4781 = vmatpush1.bf16.msra.mxu1 %v6219_v2  ;;  %4610 = vmatprep.subr.bf16.mxu0 %v6226_v28  ;;  %v1312_v2 = vld [vmem:[%s9515_s5 + $0x678] sm:$0xff]  ;;  %v6273_v28 = vcombine.low %v1299_v21, %v1303_v23  ;;  %v6322_v21 = vcombine.high %v1347_v39, %v1351_v10 }
 0x24d   :  { %4782 = vmatprep.subr.bf16.mxu1 %v6228_v4  ;;  %v6275_v4 = vcombine.low %v1300_v63, %v1304_v57  ;;  %v6284_v17 = vcombine.high %v1308_v18, %v1312_v2  ;;  %v1355_v63 = vld [vmem:[%s9515_s5 + $0x7d0] sm:$0xff] }
 0x24e   :  { %v1359_v57 = vld [vmem:[%s9515_s5 + $0x7f0] sm:$0xff] }
 0x24f   :  { %4611 = vmatpush1.bf16.msra.mxu0 %v6225_v20  ;;  %v1316_v20 = vld [vmem:[%s9515_s5 + $0x698] sm:$0xff] }
 0x250   :  { %4783 = vmatpush1.bf16.msra.mxu1 %v6227_v13  ;;  %4612 = vmatprep.subr.bf16.mxu0 %v6234_v35  ;;  %v1320_v13 = vld [vmem:[%s9515_s5 + $0x6b8] sm:$0xff]  ;;  %v6281_v35 = vcombine.low %v1307_v42, %v1311_v0  ;;  %v6330_v42 = vcombine.high %v1355_v63, %v1359_v57 }
 0x251   :  { %4784 = vmatprep.subr.bf16.mxu1 %v6236_v37  ;;  %v6283_v37 = vcombine.low %v1308_v18, %v1312_v2  ;;  %v6292_v50 = vcombine.high %v1316_v20, %v1320_v13  ;;  %v1363_v18 = vld [vmem:[%s9515_s5 + $0x810] sm:$0xff] }
 0x252   :  { %v1367_v2 = vld [vmem:[%s9515_s5 + $0x830] sm:$0xff] }
 0x253   :  { %4613 = vmatpush1.bf16.msra.mxu0 %v6233_v31  ;;  %v1324_v31 = vld [vmem:[%s9515_s5 + $0x6d8] sm:$0xff] }
 0x254   :  { %4785 = vmatpush1.bf16.msra.mxu1 %v6235_v36  ;;  %4614 = vmatprep.subr.bf16.mxu0 %v6242_v54  ;;  %v1328_v36 = vld [vmem:[%s9515_s5 + $0x6f8] sm:$0xff]  ;;  %v6289_v54 = vcombine.low %v1315_v55, %v1319_v11  ;;  %v6338_v55 = vcombine.high %v1363_v18, %v1367_v2 }
 0x255   :  { %4786 = vmatprep.subr.bf16.mxu1 %v6244_v27  ;;  %v6291_v27 = vcombine.low %v1316_v20, %v1320_v13  ;;  %v6300_v3 = vcombine.high %v1324_v31, %v1328_v36  ;;  %v1371_v20 = vld [vmem:[%s9515_s5 + $0x850] sm:$0xff] }
 0x256   :  { %v1375_v13 = vld [vmem:[%s9515_s5 + $0x870] sm:$0xff] }
 0x257   :  { %4615 = vmatpush1.bf16.msra.mxu0 %v6241_v25  ;;  %v1332_v25 = vld [vmem:[%s9515_s5 + $0x718] sm:$0xff] }
 0x258   :  { %4787 = vmatpush1.bf16.msra.mxu1 %v6243_v51  ;;  %4616 = vmatprep.subr.bf16.mxu0 %v6250_v52  ;;  %v1336_v51 = vld [vmem:[%s9515_s5 + $0x738] sm:$0xff]  ;;  %v6297_v52 = vcombine.low %v1323_v56, %v1327_v29  ;;  %v6346_v56 = vcombine.high %v1371_v20, %v1375_v13  ;;  %v1379_v29 = vld [vmem:[%s9515_s5 + $0x890] sm:$0xff] }
 0x259   :  { %4788 = vmatprep.subr.bf16.mxu1 %v6252_v48  ;;  %v6299_v48 = vcombine.low %v1324_v31, %v1328_v36  ;;  %v6308_v6 = vcombine.high %v1332_v25, %v1336_v51  ;;  %v1383_v31 = vld [vmem:[%s9515_s5 + $0x8b0] sm:$0xff]  ;;  %v1380_v36 = vld [vmem:[%s9515_s5 + $0x898] sm:$0xff] }
 0x25b   :  { %4617 = vmatpush1.bf16.msra.mxu0 %v6249_v45  ;;  %v1340_v45 = vld [vmem:[%s9515_s5 + $0x758] sm:$0xff] }
 0x25c   :  { %4789 = vmatpush1.bf16.msra.mxu1 %v6251_v61  ;;  %4618 = vmatprep.subr.bf16.mxu0 %v6258_v8  ;;  %v1344_v61 = vld [vmem:[%s9515_s5 + $0x778] sm:$0xff]  ;;  %v6305_v8 = vcombine.low %v1331_v24, %v1335_v62  ;;  %v6354_v62 = vcombine.high %v1379_v29, %v1383_v31 }
 0x25d   :  { %4790 = vmatprep.subr.bf16.mxu1 %v6260_v12  ;;  %v6307_v12 = vcombine.low %v1332_v25, %v1336_v51  ;;  %v6316_v14 = vcombine.high %v1340_v45, %v1344_v61  ;;  %v1391_v25 = vld [vmem:[%s9515_s5 + $0x8f0] sm:$0xff] }
 0x25f   :  { %4619 = vmatpush1.bf16.msra.mxu0 %v6257_v22  ;;  %v1348_v22 = vld [vmem:[%s9515_s5 + $0x798] sm:$0xff] }
 0x260   :  { %4791 = vmatpush1.bf16.msra.mxu1 %v6259_v26  ;;  %4620 = vmatprep.subr.bf16.mxu0 %v6266_v33  ;;  %v1352_v26 = vld [vmem:[%s9515_s5 + $0x7b8] sm:$0xff]  ;;  %v6313_v33 = vcombine.low %v1339_v32, %v1343_v46  ;;  %v1399_v32 = vld [vmem:[%s9515_s5 + $0x930] sm:$0xff] }
 0x261   :  { %4792 = vmatprep.subr.bf16.mxu1 %v6268_v19  ;;  %v6315_v19 = vcombine.low %v1340_v45, %v1344_v61  ;;  %v6324_v23 = vcombine.high %v1348_v22, %v1352_v26  ;;  %v1396_v45 = vld [vmem:[%s9515_s5 + $0x918] sm:$0xff] }
 0x262   :  { %v1400_v61 = vld [vmem:[%s9515_s5 + $0x938] sm:$0xff] }
 0x263   :  { %4621 = vmatpush1.bf16.msra.mxu0 %v6265_v58  ;;  %v1356_v58 = vld [vmem:[%s9515_s5 + $0x7d8] sm:$0xff] }
 0x264   :  { %4793 = vmatpush1.bf16.msra.mxu1 %v6267_v5  ;;  %4622 = vmatprep.subr.bf16.mxu0 %v6274_v59  ;;  %v1360_v5 = vld [vmem:[%s9515_s5 + $0x7f8] sm:$0xff]  ;;  %v6321_v59 = vcombine.low %v1347_v39, %v1351_v10  ;;  %v1407_v39 = vld [vmem:[%s9515_s5 + $0x970] sm:$0xff]  ;;  %v6372_v10 = vcombine.high %v1396_v45, %v1400_v61 }
 0x265   :  { %4794 = vmatprep.subr.bf16.mxu1 %v6276_v1  ;;  %v6323_v1 = vcombine.low %v1348_v22, %v1352_v26  ;;  %v6332_v0 = vcombine.high %v1356_v58, %v1360_v5  ;;  %v1404_v22 = vld [vmem:[%s9515_s5 + $0x958] sm:$0xff] }
 0x266   :  { %v1408_v26 = vld [vmem:[%s9515_s5 + $0x978] sm:$0xff] }
 0x267   :  { %4623 = vmatpush1.bf16.msra.mxu0 %v6273_v28  ;;  %v1364_v28 = vld [vmem:[%s9515_s5 + $0x818] sm:$0xff] }
 0x268   :  { %4795 = vmatpush1.bf16.msra.mxu1 %v6275_v4  ;;  %4624 = vmatprep.subr.bf16.mxu0 %v6282_v53  ;;  %v1368_v4 = vld [vmem:[%s9515_s5 + $0x838] sm:$0xff]  ;;  %v6329_v53 = vcombine.low %v1355_v63, %v1359_v57  ;;  %v1415_v63 = vld [vmem:[%s9515_s5 + $0x9b0] sm:$0xff]  ;;  %v6380_v57 = vcombine.high %v1404_v22, %v1408_v26 }
 0x269   :  { %4796 = vmatprep.subr.bf16.mxu1 %v6284_v17  ;;  %v6331_v17 = vcombine.low %v1356_v58, %v1360_v5  ;;  %v6340_v11 = vcombine.high %v1364_v28, %v1368_v4  ;;  %v1412_v58 = vld [vmem:[%s9515_s5 + $0x998] sm:$0xff] }
 0x26a   :  { %v1416_v5 = vld [vmem:[%s9515_s5 + $0x9b8] sm:$0xff] }
 0x26b   :  { %4625 = vmatpush1.bf16.msra.mxu0 %v6281_v35  ;;  %v6337_v35 = vcombine.low %v1363_v18, %v1367_v2  ;;  %v1423_v18 = vld [vmem:[%s9515_s5 + $0x9f0] sm:$0xff]  ;;  %v6388_v2 = vcombine.high %v1412_v58, %v1416_v5 }
 0x26c   :  { %4797 = vmatpush1.bf16.msra.mxu1 %v6283_v37  ;;  %4626 = vmatprep.subr.bf16.mxu0 %v6290_v30  ;;  %v1372_v37 = vld [vmem:[%s9515_s5 + $0x858] sm:$0xff] }
 0x26d   :  { %4798 = vmatprep.subr.bf16.mxu1 %v6292_v50  ;;  %v1376_v30 = vld [vmem:[%s9515_s5 + $0x878] sm:$0xff]  ;;  %v6339_v50 = vcombine.low %v1364_v28, %v1368_v4 }
 0x26e   :  { %v6347_v24 = vcombine.low %v1372_v37, %v1376_v30  ;;  %v1420_v28 = vld [vmem:[%s9515_s5 + $0x9d8] sm:$0xff] }
 0x26f   :  { %4627 = vmatpush1.bf16.msra.mxu0 %v6289_v54  ;;  %v6348_v54 = vcombine.high %v1372_v37, %v1376_v30  ;;  %v1424_v4 = vld [vmem:[%s9515_s5 + $0x9f8] sm:$0xff] }
 0x270   :  { %4799 = vmatpush1.bf16.msra.mxu1 %v6291_v27  ;;  %4628 = vmatprep.subr.bf16.mxu0 %v6298_v49  ;;  %v1384_v27 = vld [vmem:[%s9515_s5 + $0x8b8] sm:$0xff]  ;;  %v6345_v49 = vcombine.low %v1371_v20, %v1375_v13  ;;  %v1431_v20 = vld [vmem:[%s9515_s5 + $0xa30] sm:$0xff]  ;;  %v6396_v13 = vcombine.high %v1420_v28, %v1424_v4 }
 0x271   :  { %4800 = vmatprep.subr.bf16.mxu1 %v6300_v3  ;;  %v1387_v3 = vld [vmem:[%s9515_s5 + $0x8d0] sm:$0xff]  ;;  %v6356_v51 = vcombine.high %v1380_v36, %v1384_v27  ;;  %v1432_v37 = vld [vmem:[%s9515_s5 + $0xa38] sm:$0xff] }
 0x273   :  { %4629 = vmatpush1.bf16.msra.mxu0 %v6297_v52  ;;  %v1392_v52 = vld [vmem:[%s9515_s5 + $0x8f8] sm:$0xff] }
 0x274   :  { %4801 = vmatpush1.bf16.msra.mxu1 %v6299_v48  ;;  %4630 = vmatprep.subr.bf16.mxu0 %v6306_v44  ;;  %v6353_v48 = vcombine.low %v1379_v29, %v1383_v31  ;;  %v1395_v44 = vld [vmem:[%s9515_s5 + $0x910] sm:$0xff] }
 0x275   :  { %4802 = vmatprep.subr.bf16.mxu1 %v6308_v6  ;;  %v6362_v6 = vcombine.high %v1387_v3, %v1391_v25  ;;  %v1439_v31 = vld [vmem:[%s9515_s5 + $0xa70] sm:$0xff] }
 0x277   :  { %4631 = vmatpush1.bf16.msra.mxu0 %v6305_v8  ;;  %v6361_v8 = vcombine.low %v1387_v3, %v1391_v25  ;;  %v1443_v3 = vld [vmem:[%s9515_s5 + $0xa90] sm:$0xff] }
 0x278   :  { %4803 = vmatpush1.bf16.msra.mxu1 %v6307_v12  ;;  %4632 = vmatprep.subr.bf16.mxu0 %v6314_v40  ;;  %v1403_v12 = vld [vmem:[%s9515_s5 + $0x950] sm:$0xff] }
 0x279   :  { %4804 = vmatprep.subr.bf16.mxu1 %v6316_v14  ;;  %v6370_v14 = vcombine.high %v1395_v44, %v1399_v32 }
 0x27b   :  { %4633 = vmatpush1.bf16.msra.mxu0 %v6313_v33  ;;  %v6369_v33 = vcombine.low %v1395_v44, %v1399_v32  ;;  %v1451_v44 = vld [vmem:[%s9515_s5 + $0xad0] sm:$0xff] }
 0x27c   :  { %4805 = vmatpush1.bf16.msra.mxu1 %v6315_v19  ;;  %4634 = vmatprep.subr.bf16.mxu0 %v6322_v21  ;;  %v1411_v19 = vld [vmem:[%s9515_s5 + $0x990] sm:$0xff]  ;;  %v6371_v21 = vcombine.low %v1396_v45, %v1400_v61  ;;  %v1456_v45 = vld [vmem:[%s9515_s5 + $0xaf8] sm:$0xff] }
 0x27d   :  { %4806 = vmatprep.subr.bf16.mxu1 %v6324_v23  ;;  %v6378_v23 = vcombine.high %v1403_v12, %v1407_v39 }
 0x27f   :  { %4635 = vmatpush1.bf16.msra.mxu0 %v6321_v59  ;;  %v6377_v59 = vcombine.low %v1403_v12, %v1407_v39  ;;  %v1459_v12 = vld [vmem:[%s9515_s5 + $0xb10] sm:$0xff] }
 0x280   :  { %4807 = vmatpush1.bf16.msra.mxu1 %v6323_v1  ;;  %4636 = vmatprep.subr.bf16.mxu0 %v6330_v42  ;;  %v1419_v1 = vld [vmem:[%s9515_s5 + $0x9d0] sm:$0xff]  ;;  %v6379_v42 = vcombine.low %v1404_v22, %v1408_v26  ;;  %v1464_v22 = vld [vmem:[%s9515_s5 + $0xb38] sm:$0xff] }
 0x281   :  { %4808 = vmatprep.subr.bf16.mxu1 %v6332_v0  ;;  %v6386_v0 = vcombine.high %v1411_v19, %v1415_v63  ;;  %v6393_v30 = vcombine.low %v1419_v1, %v1423_v18 }
 0x283   :  { %4637 = vmatpush1.bf16.msra.mxu0 %v6329_v53  ;;  %v6385_v53 = vcombine.low %v1411_v19, %v1415_v63  ;;  %v1467_v19 = vld [vmem:[%s9515_s5 + $0xb50] sm:$0xff] }
 0x284   :  { %4809 = vmatpush1.bf16.msra.mxu1 %v6331_v17  ;;  %4649 = vmatprep.subr.bf16.mxu0 %v6338_v55  ;;  %v1427_v17 = vld [vmem:[%s9515_s5 + $0xa10] sm:$0xff]  ;;  %v6387_v55 = vcombine.low %v1412_v58, %v1416_v5  ;;  %v1472_v58 = vld [vmem:[%s9515_s5 + $0xb78] sm:$0xff] }
 0x285   :  { %4821 = vmatprep.subr.bf16.mxu1 %v6340_v11  ;;  %v6394_v11 = vcombine.high %v1419_v1, %v1423_v18  ;;  %v6402_v29 = vcombine.high %v1427_v17, %v1431_v20  ;;  %v1475_v1 = vld [vmem:[%s9515_s5 + $0xb90] sm:$0xff] }
 0x286   :  { %4639 = vmatmul.mubr.bf16.vlgmr.msra.gmra.mrb[12].mxu0 %v7686_v9 }
 0x287   :  { %4811 = vmatmul.mubr.bf16.vlgmr.msra.gmra.mrb[12].mxu1 %v7686_v9  ;;  %4650 = vmatpush1.bf16.msra.mxu0 %v6337_v35  ;;  %v1388_v9 = vld [vmem:[%s9515_s5 + $0x8d8] sm:$0xff] }
 0x288   :  { %4681 = vmatprep.mubr.bf16.mxu0 %v7846_v47  ;;  %4822 = vmatpush1.bf16.msra.mxu1 %v6339_v50  ;;  %v6364_v46 = vcombine.high %v1388_v9, %v1392_v52  ;;  %v6363_v40 = vcombine.low %v1388_v9, %v1392_v52  ;;  %v1428_v35 = vld [vmem:[%s9515_s5 + $0xa18] sm:$0xff]  ;;  %v1435_v50 = vld [vmem:[%s9515_s5 + $0xa50] sm:$0xff] }
 0x289   :  { %4853 = vmatprep.mubr.bf16.mxu1 %v7846_v47  ;;  %4651 = vmatprep.subr.bf16.mxu0 %v6346_v56  ;;  %v6355_v47 = vcombine.low %v1380_v36, %v1384_v27  ;;  %v6395_v56 = vcombine.low %v1420_v28, %v1424_v4  ;;  %v6404_v36 = vcombine.high %v1428_v35, %v1432_v37  ;;  %v1440_v27 = vld [vmem:[%s9515_s5 + $0xa78] sm:$0xff] }
 0x28a   :  { %4823 = vmatprep.subr.bf16.mxu1 %v6348_v54  ;;  %v1436_v54 = vld [vmem:[%s9515_s5 + $0xa58] sm:$0xff]  ;;  %v6410_v25 = vcombine.high %v1435_v50, %v1439_v31 }
 0x28b   :  { %4652 = vmatpush1.bf16.msra.mxu0 %v6345_v49  ;;  %v6401_v49 = vcombine.low %v1427_v17, %v1431_v20  ;;  %v6412_v9 = vcombine.high %v1436_v54, %v1440_v27  ;;  %v1448_v52 = vld [vmem:[%s9515_s5 + $0xab8] sm:$0xff]  ;;  %v1483_v17 = vld [vmem:[%s9515_s5 + $0xbd0] sm:$0xff] }
 0x28c   :  { %4824 = vmatpush1.bf16.msra.mxu1 %v6347_v24  ;;  %4653 = vmatprep.subr.bf16.mxu0 %v6354_v62  ;;  %v1447_v24 = vld [vmem:[%s9515_s5 + $0xab0] sm:$0xff]  ;;  %v6403_v62 = vcombine.low %v1428_v35, %v1432_v37  ;;  %v1480_v28 = vld [vmem:[%s9515_s5 + $0xbb8] sm:$0xff] }
 0x28d   :  { %4825 = vmatprep.subr.bf16.mxu1 %v6356_v51  ;;  %v1444_v51 = vld [vmem:[%s9515_s5 + $0xa98] sm:$0xff]  ;;  %v6418_v32 = vcombine.high %v1443_v3, %v1447_v24 }
 0x28e   :  { %v6420_v61 = vcombine.high %v1444_v51, %v1448_v52  ;;  %v1488_v35 = vld [vmem:[%s9515_s5 + $0xbf8] sm:$0xff] }
 0x28f   :  { %4654 = vmatpush1.bf16.msra.mxu0 %v6353_v48  ;;  %v6409_v48 = vcombine.low %v1435_v50, %v1439_v31  ;;  %v1491_v31 = vld [vmem:[%s9515_s5 + $0xc10] sm:$0xff] }
 0x290   :  { %4826 = vmatpush1.bf16.msra.mxu1 %v6355_v47  ;;  %4655 = vmatprep.subr.bf16.mxu0 %v6362_v6  ;;  %v1455_v47 = vld [vmem:[%s9515_s5 + $0xaf0] sm:$0xff]  ;;  %v6411_v6 = vcombine.low %v1436_v54, %v1440_v27  ;;  %v1492_v54 = vld [vmem:[%s9515_s5 + $0xc18] sm:$0xff] }
 0x291   :  { %4827 = vmatprep.subr.bf16.mxu1 %v6364_v46  ;;  %v1452_v46 = vld [vmem:[%s9515_s5 + $0xad8] sm:$0xff]  ;;  %v6426_v39 = vcombine.high %v1451_v44, %v1455_v47 }
 0x292   :  { %v6428_v26 = vcombine.high %v1452_v46, %v1456_v45  ;;  %v1496_v27 = vld [vmem:[%s9515_s5 + $0xc38] sm:$0xff] }
 0x293   :  { %4656 = vmatpush1.bf16.msra.mxu0 %v6361_v8  ;;  %v6417_v8 = vcombine.low %v1443_v3, %v1447_v24 }
 0x294   :  { %4828 = vmatpush1.bf16.msra.mxu1 %v6363_v40  ;;  %4657 = vmatprep.subr.bf16.mxu0 %v6370_v14  ;;  %v1463_v40 = vld [vmem:[%s9515_s5 + $0xb30] sm:$0xff]  ;;  %v6419_v14 = vcombine.low %v1444_v51, %v1448_v52  ;;  %v1500_v52 = vld [vmem:[%s9515_s5 + $0xc58] sm:$0xff] }
 0x295   :  { %4829 = vmatprep.subr.bf16.mxu1 %v6372_v10  ;;  %v1460_v10 = vld [vmem:[%s9515_s5 + $0xb18] sm:$0xff]  ;;  %v6434_v63 = vcombine.high %v1459_v12, %v1463_v40  ;;  %v1503_v51 = vld [vmem:[%s9515_s5 + $0xc70] sm:$0xff] }
 0x296   :  { %v6436_v5 = vcombine.high %v1460_v10, %v1464_v22 }
 0x297   :  { %4658 = vmatpush1.bf16.msra.mxu0 %v6369_v33  ;;  %v6425_v33 = vcombine.low %v1451_v44, %v1455_v47  ;;  %v6467_v44 = vcombine.low %v1492_v54, %v1496_v27 }
 0x298   :  { %4830 = vmatpush1.bf16.msra.mxu1 %v6371_v21  ;;  %4659 = vmatprep.subr.bf16.mxu0 %v6378_v23  ;;  %v1471_v21 = vld [vmem:[%s9515_s5 + $0xb70] sm:$0xff]  ;;  %v6427_v23 = vcombine.low %v1452_v46, %v1456_v45  ;;  %v1508_v45 = vld [vmem:[%s9515_s5 + $0xc98] sm:$0xff] }
 0x299   :  { %4831 = vmatprep.subr.bf16.mxu1 %v6380_v57  ;;  %v1468_v57 = vld [vmem:[%s9515_s5 + $0xb58] sm:$0xff]  ;;  %v6442_v18 = vcombine.high %v1467_v19, %v1471_v21 }
 0x29a   :  { %v6444_v4 = vcombine.high %v1468_v57, %v1472_v58 }
 0x29b   :  { %4660 = vmatpush1.bf16.msra.mxu0 %v6377_v59  ;;  %v6433_v59 = vcombine.low %v1459_v12, %v1463_v40 }
 0x29c   :  { %4832 = vmatpush1.bf16.msra.mxu1 %v6379_v42  ;;  %4661 = vmatprep.subr.bf16.mxu0 %v6386_v0  ;;  %v1479_v42 = vld [vmem:[%s9515_s5 + $0xbb0] sm:$0xff]  ;;  %v6435_v0 = vcombine.low %v1460_v10, %v1464_v22  ;;  %v1520_v22 = vld [vmem:[%s9515_s5 + $0xcf8] sm:$0xff] }
 0x29d   :  { %4833 = vmatprep.subr.bf16.mxu1 %v6388_v2  ;;  %v1476_v2 = vld [vmem:[%s9515_s5 + $0xb98] sm:$0xff]  ;;  %v6450_v20 = vcombine.high %v1475_v1, %v1479_v42  ;;  %v1519_v10 = vld [vmem:[%s9515_s5 + $0xcf0] sm:$0xff] }
 0x29e   :  { %v6452_v37 = vcombine.high %v1476_v2, %v1480_v28  ;;  %v6451_v50 = vcombine.low %v1476_v2, %v1480_v28  ;;  %v1536_v2 = vld [vmem:[%s9515_s5 + $0xd78] sm:$0xff] }
 0x29f   :  { %4662 = vmatpush1.bf16.msra.mxu0 %v6385_v53  ;;  %v6441_v53 = vcombine.low %v1467_v19, %v1471_v21  ;;  %v1523_v21 = vld [vmem:[%s9515_s5 + $0xd10] sm:$0xff] }
 0x2a0   :  { %4834 = vmatpush1.bf16.msra.mxu1 %v6387_v55  ;;  %4663 = vmatprep.subr.bf16.mxu0 %v6394_v11  ;;  %v1487_v55 = vld [vmem:[%s9515_s5 + $0xbf0] sm:$0xff]  ;;  %v6443_v11 = vcombine.low %v1468_v57, %v1472_v58  ;;  %v1528_v57 = vld [vmem:[%s9515_s5 + $0xd38] sm:$0xff] }
 0x2a1   :  { %4835 = vmatprep.subr.bf16.mxu1 %v6396_v13  ;;  %v1484_v13 = vld [vmem:[%s9515_s5 + $0xbd8] sm:$0xff] }
 0x2a2   :  { %v6459_v3 = vcombine.low %v1484_v13, %v1488_v35 }
 0x2a3   :  { %4664 = vmatpush1.bf16.msra.mxu0 %v6393_v30  ;;  %v6449_v30 = vcombine.low %v1475_v1, %v1479_v42  ;;  %v1531_v42 = vld [vmem:[%s9515_s5 + $0xd50] sm:$0xff] }
 0x2a4   :  { %4836 = vmatpush1.bf16.msra.mxu1 %v6395_v56  ;;  %4665 = vmatprep.subr.bf16.mxu0 %v6402_v29  ;;  %v6458_v56 = vcombine.high %v1483_v17, %v1487_v55  ;;  %v6460_v29 = vcombine.high %v1484_v13, %v1488_v35  ;;  %v9546_v13 = vld [vmem:[#allocation4_spill] sm:$0xff] }
 0x2a5   :  { %4837 = vmatprep.subr.bf16.mxu1 %v6404_v36  ;;  %v1495_v36 = vld [vmem:[%s9515_s5 + $0xc30] sm:$0xff] }
 0x2a6   :  { %v6466_v24 = vcombine.high %v1491_v31, %v1495_v36 }
 0x2a7   :  { %4666 = vmatpush1.bf16.msra.mxu0 %v6401_v49  ;;  %v6457_v49 = vcombine.low %v1483_v17, %v1487_v55 }
 0x2a8   :  { %4838 = vmatpush1.bf16.msra.mxu1 %v6403_v62  ;;  %4667 = vmatprep.subr.bf16.mxu0 %v6410_v25  ;;  %v6468_v62 = vcombine.high %v1492_v54, %v1496_v27  ;;  %v1499_v25 = vld [vmem:[%s9515_s5 + $0xc50] sm:$0xff]  ;;  %v1540_v54 = vld [vmem:[%s9515_s5 + $0xd98] sm:$0xff] }
 0x2a9   :  { %4839 = vmatprep.subr.bf16.mxu1 %v6412_v9  ;;  %v6465_v9 = vcombine.low %v1491_v31, %v1495_v36  ;;  %v6474_v47 = vcombine.high %v1499_v25, %v1503_v51  ;;  %v1544_v27 = vld [vmem:[%s9515_s5 + $0xdb8] sm:$0xff] }
 0x2ab   :  { %4668 = vmatpush1.bf16.msra.mxu0 %v6409_v48  ;;  %v1504_v48 = vld [vmem:[%s9515_s5 + $0xc78] sm:$0xff] }
 0x2ac   :  { %4840 = vmatpush1.bf16.msra.mxu1 %v6411_v6  ;;  %4669 = vmatprep.subr.bf16.mxu0 %v6418_v32  ;;  %v1507_v6 = vld [vmem:[%s9515_s5 + $0xc90] sm:$0xff]  ;;  %v6476_v46 = vcombine.high %v1500_v52, %v1504_v48  ;;  %v6475_v12 = vcombine.low %v1500_v52, %v1504_v48 }
 0x2ad   :  { %4841 = vmatprep.subr.bf16.mxu1 %v6420_v61  ;;  %v1511_v32 = vld [vmem:[%s9515_s5 + $0xcb0] sm:$0xff]  ;;  %v1512_v61 = vld [vmem:[%s9515_s5 + $0xcb8] sm:$0xff] }
 0x2ae   :  { %v6482_v40 = vcombine.high %v1507_v6, %v1511_v32 }
 0x2af   :  { %4670 = vmatpush1.bf16.msra.mxu0 %v6417_v8  ;;  %v6473_v8 = vcombine.low %v1499_v25, %v1503_v51  ;;  %v1547_v25 = vld [vmem:[%s9515_s5 + $0xdd0] sm:$0xff] }
 0x2b0   :  { %4842 = vmatpush1.bf16.msra.mxu1 %v6419_v14  ;;  %4671 = vmatprep.subr.bf16.mxu0 %v6426_v39  ;;  %v6484_v14 = vcombine.high %v1508_v45, %v1512_v61  ;;  %v1515_v39 = vld [vmem:[%s9515_s5 + $0xcd0] sm:$0xff] }
 0x2b1   :  { %4843 = vmatprep.subr.bf16.mxu1 %v6428_v26  ;;  %v6483_v26 = vcombine.low %v1508_v45, %v1512_v61  ;;  %v6489_v58 = vcombine.low %v1515_v39, %v1519_v10  ;;  %v1551_v51 = vld [vmem:[%s9515_s5 + $0xdf0] sm:$0xff] }
 0x2b3   :  { %4672 = vmatpush1.bf16.msra.mxu0 %v6425_v33  ;;  %v6490_v33 = vcombine.high %v1515_v39, %v1519_v10 }
 0x2b4   :  { %4844 = vmatpush1.bf16.msra.mxu1 %v6427_v23  ;;  %4673 = vmatprep.subr.bf16.mxu0 %v6434_v63  ;;  %v1527_v23 = vld [vmem:[%s9515_s5 + $0xd30] sm:$0xff]  ;;  %v1524_v63 = vld [vmem:[%s9515_s5 + $0xd18] sm:$0xff] }
 0x2b5   :  { %4845 = vmatprep.subr.bf16.mxu1 %v6436_v5  ;;  %v6500_v1 = vcombine.high %v1524_v63, %v1528_v57  ;;  %v6497_v28 = vcombine.low %v1523_v21, %v1527_v23 }
 0x2b7   :  { %4674 = vmatpush1.bf16.msra.mxu0 %v6433_v59  ;;  %v6498_v59 = vcombine.high %v1523_v21, %v1527_v23  ;;  %v1555_v23 = vld [vmem:[%s9515_s5 + $0xe10] sm:$0xff] }
 0x2b8   :  { %4846 = vmatpush1.bf16.msra.mxu1 %v6435_v0  ;;  %4675 = vmatprep.subr.bf16.mxu0 %v6442_v18  ;;  %v1535_v0 = vld [vmem:[%s9515_s5 + $0xd70] sm:$0xff]  ;;  %v1532_v18 = vld [vmem:[%s9515_s5 + $0xd58] sm:$0xff] }
 0x2b9   :  { %4847 = vmatprep.subr.bf16.mxu1 %v6444_v4  ;;  %v8960_v4 = vld [vmem:[%s9520_s6] sm:$0xff]  ;;  %v6506_v17 = vcombine.high %v1531_v42, %v1535_v0  ;;  %v6508_v55 = vcombine.high %v1532_v18, %v1536_v2  ;;  %v6505_v36 = vcombine.low %v1531_v42, %v1535_v0  ;;  %v1560_v42 = vld [vmem:[%s9515_s5 + $0xe38] sm:$0xff] }
 0x2ba   :  { %v1630_v35 = vrot.slane %v8960_v4, %v9546_v13 }
 0x2bb   :  { %4676 = vmatpush1.bf16.msra.mxu0 %v6441_v53  ;;  %v6499_v53 = vcombine.low %v1524_v63, %v1528_v57  ;;  %v1559_v63 = vld [vmem:[%s9515_s5 + $0xe30] sm:$0xff] }
 0x2bc   :  { %4848 = vmatpush1.bf16.msra.mxu1 %v6443_v11  ;;  %4677 = vmatprep.subr.bf16.mxu0 %v6450_v20  ;;  %v9545_v11 = vld [vmem:[#allocation2_spill] sm:$0xff] }
 0x2bd   :  { %4849 = vmatprep.subr.bf16.mxu1 %v6452_v37  ;;  %v1622_v20 = vrot.slane %v8960_v4, %v9545_v11  ;;  %v1539_v37 = vld [vmem:[%s9515_s5 + $0xd90] sm:$0xff] }
 0x2bf   :  { %4678 = vmatpush1.bf16.msra.mxu0 %v6449_v30  ;;  %v1543_v30 = vld [vmem:[%s9515_s5 + $0xdb0] sm:$0xff] }
 0x2c0   :  { %4850 = vmatpush1.bf16.msra.mxu1 %v6451_v50  ;;  %4679 = vmatprep.subr.bf16.mxu0 %v6458_v56  ;;  %v9547_v50 = vld [vmem:[#allocation3_spill] sm:$0xff] }
 0x2c1   :  { %4851 = vmatprep.subr.bf16.mxu1 %v6460_v29  ;;  %v1626_v56 = vrot.slane %v8960_v4, %v9547_v50  ;;  %v9548_v29 = vld [vmem:[#allocation5_spill] sm:$0xff] }
 0x2c2   :  { %v1634_v31 = vrot.slane %v8960_v4, %v9548_v29 }
 0x2c3   :  { %4680 = vmatpush1.bf16.msra.mxu0 %v6457_v49  ;;  %v6507_v49 = vcombine.low %v1532_v18, %v1536_v2 }
 0x2c4   :  { %4852 = vmatpush1.bf16.msra.mxu1 %v6459_v3  ;;  %4692 = vmatprep.subr.bf16.mxu0 %v6466_v24 }
 0x2c5   :  { %4864 = vmatprep.subr.bf16.mxu1 %v6468_v62  ;;  %v6514_v62 = vcombine.high %v1539_v37, %v1543_v30 }
 0x2c6   :  { %4682 = vmatmul.mubr.bf16.vlgmr.msra.gmra.mrb[12].mxu0 %v7835_v38 }
 0x2c7   :  { %4854 = vmatmul.mubr.bf16.vlgmr.msra.gmra.mrb[12].mxu1 %v7835_v38  ;;  %4693 = vmatpush1.bf16.msra.mxu0 %v6465_v9  ;;  %v1516_v38 = vld [vmem:[%s9515_s5 + $0xcd8] sm:$0xff] }
 0x2c8   :  { %4724 = vmatprep.mubr.bf16.mxu0 %v7896_v43  ;;  %4865 = vmatpush1.bf16.msra.mxu1 %v6467_v44  ;;  %v6492_v19 = vcombine.high %v1516_v38, %v1520_v22  ;;  %v6491_v5 = vcombine.low %v1516_v38, %v1520_v22  ;;  %v6521_v22 = vcombine.low %v1547_v25, %v1551_v51 }
 0x2c9   :  { %4896 = vmatprep.mubr.bf16.mxu1 %v7896_v43  ;;  %4694 = vmatprep.subr.bf16.mxu0 %v6474_v47  ;;  %v6481_v43 = vcombine.low %v1507_v6, %v1511_v32  ;;  %v6516_v47 = vcombine.high %v1540_v54, %v1544_v27  ;;  %v1548_v6 = vld [vmem:[%s9515_s5 + $0xdd8] sm:$0xff] }
 0x2ca   :  { %4866 = vmatprep.subr.bf16.mxu1 %v6476_v46  ;;  %v1552_v32 = vld [vmem:[%s9515_s5 + $0xdf8] sm:$0xff] }
 0x2cb   :  { %4695 = vmatpush1.bf16.msra.mxu0 %v6473_v8  ;;  %v6524_v21 = vcombine.high %v1548_v6, %v1552_v32 }
 0x2cc   :  { %4867 = vmatpush1.bf16.msra.mxu1 %v6475_v12  ;;  %4696 = vmatprep.subr.bf16.mxu0 %v6482_v40  ;;  %v6513_v12 = vcombine.low %v1539_v37, %v1543_v30  ;;  %v6515_v40 = vcombine.low %v1540_v54, %v1544_v27  ;;  %v1563_v30 = vld [vmem:[%s9515_s5 + $0xe50] sm:$0xff]  ;;  %v1564_v54 = vld [vmem:[%s9515_s5 + $0xe58] sm:$0xff] }
 0x2cd   :  { %4868 = vmatprep.subr.bf16.mxu1 %v6484_v14  ;;  %v1568_v27 = vld [vmem:[%s9515_s5 + $0xe78] sm:$0xff] }
 0x2cf   :  { %4697 = vmatpush1.bf16.msra.mxu0 %v6481_v43  ;;  %v6522_v43 = vcombine.high %v1547_v25, %v1551_v51 }
 0x2d0   :  { %4869 = vmatpush1.bf16.msra.mxu1 %v6483_v26  ;;  %4698 = vmatprep.subr.bf16.mxu0 %v6490_v33 }
 0x2d1   :  { %4870 = vmatprep.subr.bf16.mxu1 %v6492_v19  ;;  %v6523_v19 = vcombine.low %v1548_v6, %v1552_v32  ;;  %v6540_v6 = vcombine.high %v1564_v54, %v1568_v27  ;;  %v1571_v32 = vld [vmem:[%s9515_s5 + $0xe90] sm:$0xff] }
 0x2d3   :  { %4699 = vmatpush1.bf16.msra.mxu0 %v6489_v58 }
 0x2d4   :  { %4871 = vmatpush1.bf16.msra.mxu1 %v6491_v5  ;;  %4700 = vmatprep.subr.bf16.mxu0 %v6498_v59 }
 0x2d5   :  { %4872 = vmatprep.subr.bf16.mxu1 %v6500_v1  ;;  %v1556_v1 = vld [vmem:[%s9515_s5 + $0xe18] sm:$0xff] }
 0x2d6   :  { %v6532_v37 = vcombine.high %v1556_v1, %v1560_v42 }
 0x2d7   :  { %4701 = vmatpush1.bf16.msra.mxu0 %v6497_v28 }
 0x2d8   :  { %4873 = vmatpush1.bf16.msra.mxu1 %v6499_v53  ;;  %4702 = vmatprep.subr.bf16.mxu0 %v6506_v17 }
 0x2d9   :  { %v4382_v3 = vpop.f32.mrb[8].mxu0  ;;  %v4554_v24 = vpop.f32.mrb[8].mxu1  ;;  %4874 = vmatprep.subr.bf16.mxu1 %v6508_v55  ;;  %v6530_v55 = vcombine.high %v1555_v23, %v1559_v63 }
 0x2da   :  { %v8988_v9 = vadd.f32 %v4382_v3, %v1622_v20  ;;  %v8990_v52 = vadd.f32 %v4554_v24, %v1630_v35  ;;  %v4384_v48 = vpop.f32.mrb[9].mxu0  ;;  %v4556_v44 = vpop.f32.mrb[9].mxu1  ;;  %v6529_v24 = vcombine.low %v1555_v23, %v1559_v63  ;;  %v9066_v23 = vld [vmem:[%s9515_s5 + $0xef0] sm:$0xff] }
 0x2db   :  { %v8998_v46 = vadd.f32 %v4384_v48, %v1626_v56  ;;  %v9000_v45 = vadd.f32 %v4556_v44, %v1634_v31  ;;  %v4386_v61 = vpop.f32.mrb[10].mxu0  ;;  %v4558_v8 = vpop.f32.mrb[10].mxu1  ;;  %4703 = vmatpush1.bf16.msra.mxu0 %v6505_v36 }
 0x2dc   :  { %v9002_v14 = vadd.f32 %v4386_v61, %v1622_v20  ;;  %v9004_v39 = vadd.f32 %v4558_v8, %v1630_v35  ;;  %4875 = vmatpush1.bf16.msra.mxu1 %v6507_v49  ;;  %v4388_v10 = vpop.f32.mrb[11].mxu0  ;;  %v4560_v38 = vpop.f32.mrb[11].mxu1  ;;  %4704 = vmatprep.subr.bf16.mxu0 %v6514_v62  ;;  %v4909_v57 = vmul.f32 %v8988_v9, %v7453_v41  ;;  %v1575_v61 = vld [vmem:[%s9515_s5 + $0xeb0] sm:$0xff] }
 0x2dd   :  { %v9006_v26 = vadd.f32 %v4388_v10, %v1626_v56  ;;  %v9008_v33 = vadd.f32 %v4560_v38, %v1634_v31  ;;  %v4911_v58 = vmul.f32 %v8990_v52, %v7453_v41  ;;  %4876 = vmatprep.subr.bf16.mxu1 %v6516_v47  ;;  %v4910_v0 = vmul.f32 %v8998_v46, %v7453_v41  ;;  %v1567_v56 = vld [vmem:[%s9515_s5 + $0xe70] sm:$0xff]  ;;  %v1576_v10 = vld [vmem:[%s9515_s5 + $0xeb8] sm:$0xff] }
 0x2de   :  { %v4917_v5 = vmul.f32 0.0, %v9002_v14  ;;  %v4919_v59 = vmul.f32 0.0, %v9004_v39  ;;  %v4912_v18 = vmul.f32 %v9000_v45, %v7453_v41  ;;  %v6531_v62 = vcombine.low %v1556_v1, %v1560_v42 }
 0x2df   :  { %v4918_v2 = vmul.f32 0.0, %v9006_v26  ;;  %v4920_v28 = vmul.f32 0.0, %v9008_v33  ;;  %4705 = vmatpush1.bf16.msra.mxu0 %v6513_v12  ;;  %v6538_v48 = vcombine.high %v1563_v30, %v1567_v56 }
 0x2e0   :  { %v4925_v53 = vadd.f32 %v4917_v5, %v4909_v57  ;;  %v4939_v17 = vadd.f32 %v4919_v59, %v4911_v58  ;;  %4877 = vmatpush1.bf16.msra.mxu1 %v6515_v40  ;;  %4706 = vmatprep.subr.bf16.mxu0 %v6522_v43  ;;  %v1572_v40 = vld [vmem:[%s9515_s5 + $0xe98] sm:$0xff]  ;;  %v6537_v43 = vcombine.low %v1563_v30, %v1567_v56 }
 0x2e1   :  { %v4932_v20 = vadd.f32 %v4918_v2, %v4910_v0  ;;  %v4946_v35 = vadd.f32 %v4920_v28, %v4912_v18  ;;  %4878 = vmatprep.subr.bf16.mxu1 %v6524_v21  ;;  %v9061_v21 = vld [vmem:[%s9515_s5 + $0xed0] sm:$0xff]  ;;  %v6546_v58 = vcombine.high %v1571_v32, %v1575_v61  ;;  %v9071_v5 = vld [vmem:[%s9515_s5 + $0xed8] sm:$0xff]  ;;  %v6545_v0 = vcombine.low %v1571_v32, %v1575_v61 }
 0x2e2   :  { %v4926_v31 = vrot.slane %v4925_v53, 4  ;;  %v4940_v36 = vrot.slane %v4939_v17, 4  ;;  %v9076_v59 = vld [vmem:[%s9515_s5 + $0xef8] sm:$0xff]  ;;  %v6548_v18 = vcombine.high %v1572_v40, %v1576_v10  ;;  %v6553_v30 = vcombine.low %v9061_v21, %v9066_v23 }
 0x2e3   :  { %v4933_v49 = vrot.slane %v4932_v20, 4  ;;  %v4947_v3 = vrot.slane %v4946_v35, 4  ;;  %4707 = vmatpush1.bf16.msra.mxu0 %v6521_v22  ;;  %v6555_v56 = vcombine.low %v9071_v5, %v9076_v59 }
 0x2e4   :  { %v4927_v25 = vadd.f32 %v4926_v31, %v4925_v53  ;;  %v4941_v51 = vadd.f32 %v4940_v36, %v4939_v17  ;;  %4879 = vmatpush1.bf16.msra.mxu1 %v6523_v19  ;;  %4708 = vmatprep.subr.bf16.mxu0 %v6530_v55  ;;  %v6539_v19 = vcombine.low %v1564_v54, %v1568_v27  ;;  %v9083_v55 = vld [vmem:[%s9515_s5 + $0xf10] sm:$0xff]  ;;  %v9097_v31 = vld [vmem:[%s9515_s5 + $0xf18] sm:$0xff] }
 0x2e5   :  { %v4934_v44 = vadd.f32 %v4933_v49, %v4932_v20  ;;  %v4948_v47 = vadd.f32 %v4947_v3, %v4946_v35  ;;  %4880 = vmatprep.subr.bf16.mxu1 %v6532_v37  ;;  %v6547_v53 = vcombine.low %v1572_v40, %v1576_v10  ;;  %v6554_v17 = vcombine.high %v9061_v21, %v9066_v23  ;;  %v9088_v20 = vld [vmem:[%s9515_s5 + $0xf30] sm:$0xff]  ;;  %v9102_v36 = vld [vmem:[%s9515_s5 + $0xf38] sm:$0xff] }
 0x2e6   :  { %v4928_v8 = vrot.slane %v4927_v25, 2  ;;  %v4942_v12 = vrot.slane %v4941_v51, 2  ;;  %v9107_v54 = vld [vmem:[%s9515_s5 + $0xf50] sm:$0xff]  ;;  %v6556_v3 = vcombine.high %v9071_v5, %v9076_v59  ;;  %v6563_v61 = vcombine.low %v9097_v31, %v9102_v36 }
 0x2e7   :  { %v4935_v38 = vrot.slane %v4934_v44, 2  ;;  %v4949_v22 = vrot.slane %v4948_v47, 2  ;;  %4709 = vmatpush1.bf16.msra.mxu0 %v6529_v24  ;;  %v9114_v24 = vld [vmem:[%s9515_s5 + $0xf70] sm:$0xff] }
 0x2e8   :  { %v4929_v63 = vadd.f32 %v4928_v8, %v4927_v25  ;;  %v4943_v57 = vadd.f32 %v4942_v12, %v4941_v51  ;;  %4881 = vmatpush1.bf16.msra.mxu1 %v6531_v62  ;;  %4710 = vmatprep.subr.bf16.mxu0 %v6538_v48  ;;  %v9119_v62 = vld [vmem:[%s9515_s5 + $0xf58] sm:$0xff]  ;;  %v6564_v8 = vcombine.high %v9097_v31, %v9102_v36 }
 0x2e9   :  { %v4936_v1 = vadd.f32 %v4935_v38, %v4934_v44  ;;  %v4950_v42 = vadd.f32 %v4949_v22, %v4948_v47  ;;  %4882 = vmatprep.subr.bf16.mxu1 %v6540_v6  ;;  %v9124_v25 = vld [vmem:[%s9515_s5 + $0xf78] sm:$0xff]  ;;  %v6561_v44 = vcombine.low %v9083_v55, %v9088_v20  ;;  %v6562_v47 = vcombine.high %v9083_v55, %v9088_v20 }
 0x2ea   :  { %v4930_v2 = vrot.slane %v4929_v63, 1  ;;  %v4944_v28 = vrot.slane %v4943_v57, 1  ;;  %v6570_v10 = vcombine.high %v9107_v54, %v9114_v24  ;;  %v6572_v38 = vcombine.high %v9119_v62, %v9124_v25 }
 0x2eb   :  { %v4937_v35 = vrot.slane %v4936_v1, 1  ;;  %v4951_v37 = vrot.slane %v4950_v42, 1  ;;  %4711 = vmatpush1.bf16.msra.mxu0 %v6537_v43  ;;  %v6569_v31 = vcombine.low %v9107_v54, %v9114_v24  ;;  %v1615_v54 = vld [vmem:[%s9515_s5 + $0xff0] sm:$0xff] }
 0x2ec   :  { %v4931_v27 = vadd.f32 %v4930_v2, %v4929_v63  ;;  %v4945_v49 = vadd.f32 %v4944_v28, %v4943_v57  ;;  %4883 = vmatpush1.bf16.msra.mxu1 %v6539_v19  ;;  %4712 = vmatprep.subr.bf16.mxu0 %v6546_v58 }
 0x2ed   :  { %v4938_v51 = vadd.f32 %v4937_v35, %v4936_v1  ;;  %v4952_v48 = vadd.f32 %v4951_v37, %v4950_v42  ;;  %4884 = vmatprep.subr.bf16.mxu1 %v6548_v18  ;;  %v1604_v35 = vld [vmem:[%s9515_s5 + $0xf98] sm:$0xff] }
 0x2ee   :  { %v4981_v6 = vmul.f32 0.5, %v4931_v27  ;;  %v4983_v32 = vmul.f32 0.5, %v4945_v49  ;;  %v1608_v37 = vld [vmem:[%s9515_s5 + $0xfb8] sm:$0xff]  ;;  %v6571_v49 = vcombine.low %v9119_v62, %v9124_v25 }
 0x2ef   :  { %v4982_v12 = vmul.f32 0.5, %v4938_v51  ;;  %v4984_v40 = vmul.f32 0.5, %v4952_v48  ;;  %4713 = vmatpush1.bf16.msra.mxu0 %v6545_v0  ;;  %v1616_v62 = vld [vmem:[%s9515_s5 + $0xff8] sm:$0xff] }
 0x2f0   :  { %v9139_v22 = vsub.f32 %v8988_v9, %v4981_v6  ;;  %v9142_v43 = vsub.f32 %v9002_v14, %v4981_v6  ;;  %v9145_v19 = vsub.f32 %v8990_v52, %v4983_v32  ;;  %v9148_v21 = vsub.f32 %v9004_v39, %v4983_v32  ;;  %4885 = vmatpush1.bf16.msra.mxu1 %v6547_v53  ;;  %v1603_v53 = vld [vmem:[%s9515_s5 + $0xf90] sm:$0xff]  ;;  %v1612_v32 = vld [vmem:[%s9515_s5 + $0xfd8] sm:$0xff] }
 0x2f1   :  { %v9151_v23 = vsub.f32 %v8998_v46, %v4982_v12  ;;  %v9154_v63 = vsub.f32 %v9006_v26, %v4982_v12  ;;  %v9157_v57 = vsub.f32 %v9000_v45, %v4984_v40  ;;  %v9160_v9 = vsub.f32 %v9008_v33, %v4984_v40  ;;  %4714 = vmatprep.subr.bf16.mxu0 %v6554_v17  ;;  %v1607_v17 = vld [vmem:[%s9515_s5 + $0xfb0] sm:$0xff] }
 0x2f2   :  { %v5005_v52 = vmul.f32 %v7453_v41, %v9139_v22  ;;  %v5013_v14 = vmul.f32 0.0, %v9142_v43  ;;  %v5007_v39 = vmul.f32 %v7453_v41, %v9145_v19  ;;  %v5015_v46 = vmul.f32 0.0, %v9148_v21  ;;  %4886 = vmatprep.subr.bf16.mxu1 %v6556_v3  ;;  %v1611_v6 = vld [vmem:[%s9515_s5 + $0xfd0] sm:$0xff] }
 0x2f3   :  { %v5006_v26 = vmul.f32 %v7453_v41, %v9151_v23  ;;  %v5014_v45 = vmul.f32 0.0, %v9154_v63  ;;  %v5008_v33 = vmul.f32 %v7453_v41, %v9157_v57  ;;  %v5016_v58 = vmul.f32 0.0, %v9160_v9  ;;  %4715 = vmatpush1.bf16.msra.mxu0 %v6553_v30 }
 0x2f4   :  { %v5021_v5 = vmul.f32 %v5005_v52, %v5005_v52  ;;  %v5029_v59 = vmul.f32 %v5013_v14, %v5013_v14  ;;  %v5023_v1 = vmul.f32 %v5007_v39, %v5007_v39  ;;  %v5031_v42 = vmul.f32 %v5015_v46, %v5015_v46  ;;  %4887 = vmatpush1.bf16.msra.mxu1 %v6555_v56 }
 0x2f5   :  { %v5022_v0 = vmul.f32 %v5006_v26, %v5006_v26  ;;  %v5030_v18 = vmul.f32 %v5014_v45, %v5014_v45  ;;  %v5024_v2 = vmul.f32 %v5008_v33, %v5008_v33  ;;  %v5032_v28 = vmul.f32 %v5016_v58, %v5016_v58  ;;  %4716 = vmatprep.subr.bf16.mxu0 %v6562_v47 }
 0x2f6   :  { %v5037_v55 = vadd.f32 %v5029_v59, %v5021_v5  ;;  %v5051_v20 = vadd.f32 %v5031_v42, %v5023_v1  ;;  %4888 = vmatprep.subr.bf16.mxu1 %v6564_v8  ;;  %v6578_v3 = vcombine.high %v1603_v53, %v1607_v17  ;;  %v6580_v47 = vcombine.high %v1604_v35, %v1608_v37  ;;  %v6810_v42 = vld [vmem:[%s9519_s9 + $0x40] sm:$0xff]  }
 0x2f7   :  { %v5044_v30 = vadd.f32 %v5030_v18, %v5022_v0  ;;  %v5058_v56 = vadd.f32 %v5032_v28, %v5024_v2  ;;  %4717 = vmatpush1.bf16.msra.mxu0 %v6561_v44  ;;  %v6577_v8 = vcombine.low %v1603_v53, %v1607_v17  ;;  %v6588_v39 = vcombine.high %v1612_v32, %v1616_v62  ;;  %v6811_v2 = vld [vmem:[%s9519_s9 + $0xc0] sm:$0xff]  }
 0x2f8   :  { %v5038_v36 = vrot.slane %v5037_v55, 4  ;;  %v5052_v27 = vrot.slane %v5051_v20, 4  ;;  %4889 = vmatpush1.bf16.msra.mxu1 %v6563_v61  ;;  %4718 = vmatprep.subr.bf16.mxu0 %v6570_v10  ;;  %v6579_v10 = vcombine.low %v1604_v35, %v1608_v37  ;;  %v6585_v58 = vcombine.low %v1611_v6, %v1615_v54 }
 0x2f9   :  { %v5045_v51 = vrot.slane %v5044_v30, 4  ;;  %v5059_v48 = vrot.slane %v5058_v56, 4  ;;  %4890 = vmatprep.subr.bf16.mxu1 %v6572_v38  ;;  %v6586_v38 = vcombine.high %v1611_v6, %v1615_v54  ;;  %v6587_v1 = vcombine.low %v1612_v32, %v1616_v62  ;;  %v6817_v6 = vld [vmem:[%s9519_s9 + $0x88] sm:$0xff]   ;;  %v6818_v54 = vld [vmem:[%s9519_s9 + $0x50] sm:$0xff]   ;;  %v6822_v32 = vld [vmem:[%s9519_s9 + $0x58] sm:$0xff]  }
 0x2fa   :  { %v5039_v24 = vadd.f32 %v5038_v36, %v5037_v55  ;;  %v5053_v44 = vadd.f32 %v5052_v27, %v5051_v20  ;;  %v6812_v20 = vld [vmem:[%s9519_s9] sm:$0xff]   ;;  %v6815_v27 = vld [vmem:[%s9519_s9 + $0xc8] sm:$0xff]   ;;  %v6823_v62 = vld [vmem:[%s9519_s9 + $0xd8] sm:$0xff]  }
 0x2fb   :  { %v5046_v25 = vadd.f32 %v5045_v51, %v5044_v30  ;;  %v5060_v61 = vadd.f32 %v5059_v48, %v5058_v56  ;;  %4719 = vmatpush1.bf16.msra.mxu0 %v6569_v31  ;;  %v6813_v30 = vld [vmem:[%s9519_s9 + $0x80] sm:$0xff]   ;;  %v6814_v56 = vld [vmem:[%s9519_s9 + $0x48] sm:$0xff]  }
 0x2fc   :  { %v5040_v12 = vrot.slane %v5039_v24, 2  ;;  %v5054_v40 = vrot.slane %v5053_v44, 2  ;;  %4891 = vmatpush1.bf16.msra.mxu1 %v6571_v49  ;;  %4720 = vmatprep.subr.bf16.mxu0 %v6578_v3 }
 0x2fd   :  { %v5047_v52 = vrot.slane %v5046_v25, 2  ;;  %v5061_v14 = vrot.slane %v5060_v61, 2  ;;  %4892 = vmatprep.subr.bf16.mxu1 %v6580_v47  ;;  %v6816_v47 = vld [vmem:[%s9519_s9 + $0x8] sm:$0xff]  }
 0x2fe   :  { %v5041_v46 = vadd.f32 %v5040_v12, %v5039_v24  ;;  %v5055_v26 = vadd.f32 %v5054_v40, %v5053_v44  ;;  %v6820_v24 = vld [vmem:[%s9519_s9 + $0x10] sm:$0xff]   ;;  %v6825_v12 = vld [vmem:[%s9519_s9 + $0x98] sm:$0xff]   ;;  %v6826_v40 = vld [vmem:[%s9519_s9 + $0x60] sm:$0xff]  }
 0x2ff   :  { %v5048_v45 = vadd.f32 %v5047_v52, %v5046_v25  ;;  %v5062_v33 = vadd.f32 %v5061_v14, %v5060_v61  ;;  %4721 = vmatpush1.bf16.msra.mxu0 %v6577_v8  ;;  %v6821_v44 = vld [vmem:[%s9519_s9 + $0x90] sm:$0xff]   ;;  %v9249_v25 = vld [vmem:[%s9521_s7] sm:$0xff]  ;;  %v6824_v8 = vld [vmem:[%s9519_s9 + $0x18] sm:$0xff]  }
 0x300   :  { %v5042_v5 = vrot.slane %v5041_v46, 1  ;;  %v5056_v59 = vrot.slane %v5055_v26, 1  ;;  %4893 = vmatpush1.bf16.msra.mxu1 %v6579_v10  ;;  %4722 = vmatprep.subr.bf16.mxu0 %v6586_v38  ;;  %v9254_v61 = vld [vmem:[%s9522_s8] sm:$0xff]  ;;  %v5137_v10 = vrot.slane %v9249_v25, %v9545_v11 }
 0x301   :  { %v5049_v0 = vrot.slane %v5048_v45, 1  ;;  %v5063_v18 = vrot.slane %v5062_v33, 1  ;;  %4894 = vmatprep.subr.bf16.mxu1 %v6588_v39  ;;  %v6827_v38 = vld [vmem:[%s9519_s9 + $0xe0] sm:$0xff]   ;;  %v5194_v14 = vrot.slane %v9254_v61, %v9545_v11  ;;  %v5145_v39 = vrot.slane %v9249_v25, %v9546_v13 }
 0x302   :  { %v5043_v28 = vadd.f32 %v5042_v5, %v5041_v46  ;;  %v5057_v53 = vadd.f32 %v5056_v59, %v5055_v26  ;;  %v5141_v46 = vrot.slane %v9249_v25, %v9547_v50  ;;  %v5149_v26 = vrot.slane %v9249_v25, %v9548_v29  ;;  %v6828_v59 = vld [vmem:[%s9519_s9 + $0x20] sm:$0xff]  }
 0x303   :  { %v5050_v17 = vadd.f32 %v5049_v0, %v5048_v45  ;;  %v5064_v55 = vadd.f32 %v5063_v18, %v5062_v33  ;;  %4723 = vmatpush1.bf16.msra.mxu0 %v6585_v58  ;;  %v5202_v5 = vrot.slane %v9254_v61, %v9546_v13  ;;  %v5198_v11 = vrot.slane %v9254_v61, %v9547_v50  ;;  %v6829_v13 = vld [vmem:[%s9519_s9 + $0xa0] sm:$0xff]  }
 0x304   :  { %v5093_v35 = vmul.f32 0.5, %v5043_v28  ;;  %v5095_v37 = vmul.f32 0.5, %v5057_v53  ;;  %4895 = vmatpush1.bf16.msra.mxu1 %v6587_v1  ;;  %6654 = vmatprep.subr.bf16.mxu0 %v6810_v42 }
 0x305   :  { %v5094_v31 = vmul.f32 0.5, %v5050_v17  ;;  %v5096_v36 = vmul.f32 0.5, %v5064_v55  ;;  %6676 = vmatprep.subr.bf16.mxu1 %v6811_v2 }
 0x306   :  { %v5101_v49 = vadd.f32 1e-05, %v5093_v35  ;;  %v5103_v3 = vadd.f32 1e-05, %v5095_v37  ;;  %4725 = vmatmul.mubr.bf16.vlgmr.msra.gmra.mrb[12].mxu0 %v7902_v34 }
 0x307   :  { %v5102_v51 = vadd.f32 1e-05, %v5094_v31  ;;  %v5104_v48 = vadd.f32 1e-05, %v5096_v36  ;;  %4897 = vmatmul.mubr.bf16.vlgmr.msra.gmra.mrb[12].mxu1 %v7902_v34  ;;  %6655 = vmatpush3.bf16.msra.mxu0 %v6812_v20  ;;  %v6819_v34 = vld [vmem:[%s9519_s9 + $0xd0] sm:$0xff]  }
 0x308   :  { %6890 = vrsqrt.f32 %v5101_v49  ;;  %6677 = vmatpush3.bf16.msra.mxu1 %v6813_v30  ;;  %6656 = vmatprep.subr.bf16.mxu0 %v6814_v56  ;;  %v6835_v49 = vld [vmem:[%s9519_s9 + $0xf0] sm:$0xff]  }
 0x309   :  { %6892 = vrsqrt.f32 %v5103_v3  ;;  %6678 = vmatprep.subr.bf16.mxu1 %v6815_v27 }
 0x30a   :  { %6894 = vrsqrt.f32 %v5102_v51 }
 0x30b   :  { %6896 = vrsqrt.f32 %v5104_v48  ;;  %6657 = vmatpush3.bf16.msra.mxu0 %v6816_v47  ;;  %v6836_v48 = vld [vmem:[%s9519_s9 + $0x30] sm:$0xff]  }
 0x30c   :  { %6679 = vmatpush3.bf16.msra.mxu1 %v6817_v6  ;;  %6658 = vmatprep.subr.bf16.mxu0 %v6818_v54  ;;  %v6837_v47 = vld [vmem:[%s9519_s9 + $0xb0] sm:$0xff]  }
 0x30d   :  { %6680 = vmatprep.subr.bf16.mxu1 %v6819_v34 }
 0x30f   :  { %6659 = vmatpush3.bf16.msra.mxu0 %v6820_v24 }
 0x310   :  { %6681 = vmatpush3.bf16.msra.mxu1 %v6821_v44  ;;  %6660 = vmatprep.subr.bf16.mxu0 %v6822_v32 }
 0x311   :  { %6682 = vmatprep.subr.bf16.mxu1 %v6823_v62 }
 0x312   :  { %v6891_v52 = vpop.eup %6890 }
 0x313   :  { %v6893_v45 = vpop.eup %6892  ;;  %v5117_v33 = vmul.f32 %v6891_v52, %v9139_v22  ;;  %v5125_v58 = vmul.f32 %v6891_v52, %v9142_v43  ;;  %6661 = vmatpush3.bf16.msra.mxu0 %v6824_v8  ;;  %v5206_v22 = vrot.slane %v9254_v61, %v9548_v29  ;;  %v6831_v29 = vld [vmem:[%s9519_s9 + $0xe8] sm:$0xff]  }
 0x314   :  { %v6895_v1 = vpop.eup %6894  ;;  %v5119_v42 = vmul.f32 %v6893_v45, %v9145_v19  ;;  %v5127_v0 = vmul.f32 %v6893_v45, %v9148_v21  ;;  %6683 = vmatpush3.bf16.msra.mxu1 %v6825_v12  ;;  %6662 = vmatprep.subr.bf16.mxu0 %v6826_v40  ;;  %v6830_v19 = vld [vmem:[%s9519_s9 + $0x68] sm:$0xff]   ;;  %v6838_v40 = vld [vmem:[%s9519_s9 + $0x78] sm:$0xff]  }
 0x315   :  { %v6897_v50 = vpop.eup %6896  ;;  %v5174_v43 = vmul.f32 %v5137_v10, %v5117_v33  ;;  %v5182_v18 = vmul.f32 %v5137_v10, %v5125_v58  ;;  %v5118_v2 = vmul.f32 %v6895_v1, %v9151_v23  ;;  %v5126_v28 = vmul.f32 %v6895_v1, %v9154_v63  ;;  %6684 = vmatprep.subr.bf16.mxu1 %v6827_v38  ;;  %v6832_v63 = vld [vmem:[%s9519_s9 + $0x28] sm:$0xff]   ;;  %v6840_v33 = vld [vmem:[%s9519_s9 + $0x38] sm:$0xff]  }
 0x316   :  { %v5176_v21 = vmul.f32 %v5145_v39, %v5119_v42  ;;  %v5184_v53 = vmul.f32 %v5145_v39, %v5127_v0  ;;  %v5120_v17 = vmul.f32 %v6897_v50, %v9157_v57  ;;  %v5128_v55 = vmul.f32 %v6897_v50, %v9160_v9  ;;  %v6833_v57 = vld [vmem:[%s9519_s9 + $0xa8] sm:$0xff]   ;;  %v6834_v9 = vld [vmem:[%s9519_s9 + $0x70] sm:$0xff]   ;;  %v6842_v0 = vld [vmem:[%s9519_s9 + $0x140] sm:$0xff]  }
 0x317   :  { %v5231_v20 = vadd.f32 %v5194_v14, %v5174_v43  ;;  %v5239_v35 = vadd.f32 %v5194_v14, %v5182_v18  ;;  %v5175_v23 = vmul.f32 %v5141_v46, %v5118_v2  ;;  %v5183_v37 = vmul.f32 %v5141_v46, %v5126_v28  ;;  %6663 = vmatpush3.bf16.msra.mxu0 %v6828_v59  ;;  %v6839_v46 = vld [vmem:[%s9519_s9 + $0xf8] sm:$0xff]   ;;  %v6845_v50 = vld [vmem:[%s9519_s9 + $0x180] sm:$0xff]   ;;  %v6846_v43 = vld [vmem:[%s9519_s9 + $0x148] sm:$0xff]  }
 0x318   :  { %v5233_v30 = vadd.f32 %v5202_v5, %v5176_v21  ;;  %v5241_v56 = vadd.f32 %v5202_v5, %v5184_v53  ;;  %v5177_v31 = vmul.f32 %v5149_v26, %v5120_v17  ;;  %v5185_v36 = vmul.f32 %v5149_v26, %v5128_v55  ;;  %6685 = vmatpush3.bf16.msra.mxu1 %v6829_v13  ;;  %v6841_v5 = vld [vmem:[%s9519_s9 + $0xb8] sm:$0xff]   ;;  %v6844_v13 = vld [vmem:[%s9519_s9 + $0x100] sm:$0xff]   ;;  %v6847_v18 = vld [vmem:[%s9519_s9 + $0x1c8] sm:$0xff]  }
 0x319   :  { %v5240_v27 = vadd.f32 %v5198_v11, %v5183_v37  ;;  %6664 = vmatprep.subr.bf16.mxu0 %v6830_v19  ;;  %6686 = vmatprep.subr.bf16.mxu1 %v6831_v29  ;;  %v5232_v3 = vadd.f32 %v5198_v11, %v5175_v23  ;;  %vm5247_vm2 = vcmp.ge.f32.partialorder %v5231_v20, 0.0  ;;  %vm5255_vm3 = vcmp.ge.f32.partialorder %v5239_v35, 0.0  ;;  %v6848_v2 = vld [vmem:[%s9519_s9 + $0x108] sm:$0xff]   ;;  %v6850_v19 = vld [vmem:[%s9519_s9 + $0x150] sm:$0xff]   ;;  %v6854_v17 = vld [vmem:[%s9519_s9 + $0x158] sm:$0xff]  }
 0x31a   :  { %v5242_v51 = vadd.f32 %v5206_v22, %v5185_v36  ;;  %v5234_v6 = vadd.f32 %v5206_v22, %v5177_v31  ;;  %v5263_v54 = vmul.f32 0.01, %v5231_v20  ;;  %v5271_v34 = vmul.f32 0.01, %v5239_v35  ;;  %v6843_v22 = vld [vmem:[%s9519_s9 + $0x1c0] sm:$0xff]   ;;  %v6849_v28 = vld [vmem:[%s9519_s9 + $0x188] sm:$0xff]  }
 0x31b   :  { %6665 = vmatpush3.bf16.msra.mxu0 %v6832_v63  ;;  %vm5248_vm4 = vcmp.ge.f32.partialorder %v5232_v3, 0.0  ;;  %vm5256_vm5 = vcmp.ge.f32.partialorder %v5240_v27, 0.0  ;;  %v5264_v24 = vmul.f32 0.01, %v5232_v3  ;;  %v5272_v44 = vmul.f32 0.01, %v5240_v27 }
 0x31c   :  { %6687 = vmatpush3.bf16.msra.mxu1 %v6833_v57  ;;  %6666 = vmatprep.subr.bf16.mxu0 %v6834_v9  ;;  %vm5250_vm6 = vcmp.ge.f32.partialorder %v5234_v6, 0.0  ;;  %vm5258_vm7 = vcmp.ge.f32.partialorder %v5242_v51, 0.0  ;;  %v5266_v32 = vmul.f32 0.01, %v5234_v6  ;;  %v5274_v62 = vmul.f32 0.01, %v5242_v51 }
 0x31d   :  { %6688 = vmatprep.subr.bf16.mxu1 %v6835_v49  ;;  %v5280_v8 = vsel %vm5248_vm4, %v5232_v3, %v5264_v24  ;;  %v5288_v12 = vsel %vm5256_vm5, %v5240_v27, %v5272_v44  ;;  %v5279_v10 = vsel %vm5247_vm2, %v5231_v20, %v5263_v54  ;;  %v5287_v38 = vsel %vm5255_vm3, %v5239_v35, %v5271_v34  ;;  %v6851_v29 = vld [vmem:[%s9519_s9 + $0x1d0] sm:$0xff]   ;;  %v6855_v55 = vld [vmem:[%s9519_s9 + $0x1d8] sm:$0xff]   ;;  %v6858_v23 = vld [vmem:[%s9519_s9 + $0x160] sm:$0xff]  }
 0x31e   :  { %v5296_v52 = vpack.c.bf16 %v5288_v12, %v5280_v8  ;;  %v5282_v14 = vsel %vm5250_vm6, %v5234_v6, %v5266_v32  ;;  %v5290_v39 = vsel %vm5258_vm7, %v5242_v51, %v5274_v62  ;;  %v5295_v26 = vpack.c.bf16 %v5287_v38, %v5279_v10  ;;  %v6852_v21 = vld [vmem:[%s9519_s9 + $0x110] sm:$0xff]   ;;  %v6856_v20 = vld [vmem:[%s9519_s9 + $0x118] sm:$0xff]   ;;  %v6859_v37 = vld [vmem:[%s9519_s9 + $0x1e0] sm:$0xff]  }
 0x31f   :  { %6667 = vmatpush3.bf16.msra.mxu0 %v6836_v48  ;;  %v5298_v45 = vpack.c.bf16 %v5290_v39, %v5282_v14  ;;  %vm5249_vm8 = vcmp.ge.f32.partialorder %v5233_v30, 0.0  ;;  %vm5257_vm9 = vcmp.ge.f32.partialorder %v5241_v56, 0.0  ;;  %v5265_v58 = vmul.f32 0.01, %v5233_v30  ;;  %v6853_v53 = vld [vmem:[%s9519_s9 + $0x190] sm:$0xff]   ;;  %v6857_v35 = vld [vmem:[%s9519_s9 + $0x198] sm:$0xff]  }
 0x320   :  { %5854 = vmatprep.mubr.bf16.mxu0 %v5296_v52  ;;  %6689 = vmatpush3.bf16.msra.mxu1 %v6837_v47  ;;  %v5273_v11 = vmul.f32 0.01, %v5241_v56  ;;  %v6860_v63 = vld [vmem:[%s9519_s9 + $0x120] sm:$0xff]   ;;  %v6863_v31 = vld [vmem:[%s9519_s9 + $0x1e8] sm:$0xff]   ;;  %v6866_v9 = vld [vmem:[%s9519_s9 + $0x170] sm:$0xff]   ;;  %v1638_v54 = vrot.slane %v8960_v4, %v7488_v60  ;;  %v1646_v34 = vrot.slane %v8960_v4, %v7496_v15  ;;  %v1642_v24 = vrot.slane %v8960_v4, %v7491_v7 }
 0x321   :  { %5895 = vmatprep.mubr.bf16.mxu1 %v5298_v45  ;;  %6668 = vmatprep.subr.bf16.mxu0 %v6838_v40  ;;  %v5281_v59 = vsel %vm5249_vm8, %v5233_v30, %v5265_v58  ;;  %v6861_v30 = vld [vmem:[%s9519_s9 + $0x1a0] sm:$0xff]   ;;  %v6864_v36 = vld [vmem:[%s9519_s9 + $0x128] sm:$0xff]   ;;  %v6867_v27 = vld [vmem:[%s9519_s9 + $0x1f0] sm:$0xff]   ;;  %v1650_v44 = vrot.slane %v8960_v4, %v7501_v16 }
 0x322   :  { %6690 = vmatprep.subr.bf16.mxu1 %v6839_v46  ;;  %v5289_v1 = vsel %vm5257_vm9, %v5241_v56, %v5273_v11  ;;  %v6862_v56 = vld [vmem:[%s9519_s9 + $0x168] sm:$0xff]   ;;  %v6868_v49 = vld [vmem:[%s9519_s9 + $0x130] sm:$0xff]   ;;  %v6870_v51 = vld [vmem:[%s9519_s9 + $0x178] sm:$0xff]  }
 0x323   :  { %6669 = vmatpush3.bf16.msra.mxu0 %v6840_v33  ;;  %v5297_v42 = vpack.c.bf16 %v5289_v1, %v5281_v59  ;;  %v6865_v57 = vld [vmem:[%s9519_s9 + $0x1a8] sm:$0xff]   ;;  %v6869_v3 = vld [vmem:[%s9519_s9 + $0x1b0] sm:$0xff]   ;;  %v6871_v48 = vld [vmem:[%s9519_s9 + $0x1f8] sm:$0xff]  }
 0x324   :  { %6691 = vmatpush3.bf16.msra.mxu1 %v6841_v5  ;;  %6698 = vmatprep.subr.bf16.mxu0 %v6842_v0  ;;  %v6872_v47 = vld [vmem:[%s9519_s9 + $0x138] sm:$0xff]  }
 0x325   :  { %6720 = vmatprep.subr.bf16.mxu1 %v6843_v22  ;;  %v6873_v6 = vld [vmem:[%s9519_s9 + $0x1b8] sm:$0xff]  }
 0x326   :  { %5855 = vmatmul.mubr.bf16.vlgmr.msra.gmra.mrb[16].mxu0 %v5295_v26 }
 0x327   :  { %5896 = vmatmul.mubr.bf16.vlgmr.msra.gmra.mrb[16].mxu1 %v5297_v42  ;;  %6699 = vmatpush3.bf16.msra.mxu0 %v6844_v13 }
 0x328   :  { %6721 = vmatpush3.bf16.msra.mxu1 %v6845_v50  ;;  %6700 = vmatprep.subr.bf16.mxu0 %v6846_v43 }
 0x329   :  { %6722 = vmatprep.subr.bf16.mxu1 %v6847_v18 }
 0x32b   :  { %6701 = vmatpush3.bf16.msra.mxu0 %v6848_v2 }
 0x32c   :  { %6723 = vmatpush3.bf16.msra.mxu1 %v6849_v28  ;;  %6702 = vmatprep.subr.bf16.mxu0 %v6850_v19 }
 0x32d   :  { %6724 = vmatprep.subr.bf16.mxu1 %v6851_v29 }
 0x32f   :  { %6703 = vmatpush3.bf16.msra.mxu0 %v6852_v21 }
 0x330   :  { %6725 = vmatpush3.bf16.msra.mxu1 %v6853_v53  ;;  %6704 = vmatprep.subr.bf16.mxu0 %v6854_v17 }
 0x331   :  { %6726 = vmatprep.subr.bf16.mxu1 %v6855_v55 }
 0x333   :  { %6705 = vmatpush3.bf16.msra.mxu0 %v6856_v20 }
 0x334   :  { %6727 = vmatpush3.bf16.msra.mxu1 %v6857_v35  ;;  %6706 = vmatprep.subr.bf16.mxu0 %v6858_v23 }
 0x335   :  { %6728 = vmatprep.subr.bf16.mxu1 %v6859_v37 }
 0x337   :  { %6707 = vmatpush3.bf16.msra.mxu0 %v6860_v63 }
 0x338   :  { %6729 = vmatpush3.bf16.msra.mxu1 %v6861_v30  ;;  %6708 = vmatprep.subr.bf16.mxu0 %v6862_v56 }
 0x339   :  { %6730 = vmatprep.subr.bf16.mxu1 %v6863_v31 }
 0x33b   :  { %6709 = vmatpush3.bf16.msra.mxu0 %v6864_v36 }
 0x33c   :  { %6731 = vmatpush3.bf16.msra.mxu1 %v6865_v57  ;;  %6710 = vmatprep.subr.bf16.mxu0 %v6866_v9 }
 0x33d   :  { %6732 = vmatprep.subr.bf16.mxu1 %v6867_v27 }
 0x33f   :  { %6711 = vmatpush3.bf16.msra.mxu0 %v6868_v49 }
 0x340   :  { %6733 = vmatpush3.bf16.msra.mxu1 %v6869_v3  ;;  %6712 = vmatprep.subr.bf16.mxu0 %v6870_v51 }
 0x341   :  { %6734 = vmatprep.subr.bf16.mxu1 %v6871_v48 }
 0x343   :  { %6713 = vmatpush3.bf16.msra.mxu0 %v6872_v47 }
 0x344   :  { %6735 = vmatpush3.bf16.msra.mxu1 %v6873_v6 }
 0x3d9   :  { %v4726_v32 = vpop.f32.mrb[12].mxu0 }
 0x3da   :  { %v6750_v62 = vadd.f32 %v4726_v32, %v1638_v54  ;;  %v4898_v8 = vpop.f32.mrb[12].mxu1  ;;  %v4728_v12 = vpop.f32.mrb[13].mxu0 }
 0x3db   :  { %v6754_v40 = vadd.f32 %v4898_v8, %v1646_v34  ;;  %v6751_v10 = vadd.f32 %v4728_v12, %v1642_v24  ;;  %v4900_v38 = vpop.f32.mrb[13].mxu1  ;;  %v4730_v52 = vpop.f32.mrb[14].mxu0 }
 0x3dc   :  { %v6755_v14 = vadd.f32 %v4900_v38, %v1650_v44  ;;  %v6752_v39 = vadd.f32 %v4730_v52, %v1638_v54  ;;  %v4902_v46 = vpop.f32.mrb[14].mxu1  ;;  %v4732_v26 = vpop.f32.mrb[15].mxu0  ;;  %v4913_v5 = vmul.f32 %v6750_v62, %v7453_v41 }
 0x3dd   :  { %v6756_v45 = vadd.f32 %v4902_v46, %v1646_v34  ;;  %v6753_v33 = vadd.f32 %v4732_v26, %v1642_v24  ;;  %v4904_v58 = vpop.f32.mrb[15].mxu1  ;;  %v4915_v4 = vmul.f32 %v6754_v40, %v7453_v41  ;;  %v4914_v1 = vmul.f32 %v6751_v10, %v7453_v41 }
 0x3de   :  { %v4921_v11 = vmul.f32 0.0, %v6752_v39  ;;  %v6757_v59 = vadd.f32 %v4904_v58, %v1650_v44  ;;  %v4916_v22 = vmul.f32 %v6755_v14, %v7453_v41 }
 0x3df   :  { %v4923_v42 = vmul.f32 0.0, %v6756_v45  ;;  %v4922_v0 = vmul.f32 0.0, %v6753_v33 }
 0x3e0   :  { %v4953_v13 = vadd.f32 %v4921_v11, %v4913_v5  ;;  %v4924_v50 = vmul.f32 0.0, %v6757_v59 }
 0x3e1   :  { %v4967_v43 = vadd.f32 %v4923_v42, %v4915_v4  ;;  %v4960_v18 = vadd.f32 %v4922_v0, %v4914_v1 }
 0x3e2   :  { %v4954_v2 = vrot.slane %v4953_v13, 4  ;;  %v4974_v28 = vadd.f32 %v4924_v50, %v4916_v22 }
 0x3e3   :  { %v4968_v19 = vrot.slane %v4967_v43, 4  ;;  %v4961_v29 = vrot.slane %v4960_v18, 4 }
 0x3e4   :  { %v4955_v21 = vadd.f32 %v4954_v2, %v4953_v13  ;;  %v4975_v53 = vrot.slane %v4974_v28, 4 }
 0x3e5   :  { %v4969_v17 = vadd.f32 %v4968_v19, %v4967_v43  ;;  %v4962_v55 = vadd.f32 %v4961_v29, %v4960_v18 }
 0x3e6   :  { %v4956_v20 = vrot.slane %v4955_v21, 2  ;;  %v4976_v35 = vadd.f32 %v4975_v53, %v4974_v28 }
 0x3e7   :  { %v4970_v23 = vrot.slane %v4969_v17, 2  ;;  %v4963_v37 = vrot.slane %v4962_v55, 2 }
 0x3e8   :  { %v4957_v63 = vadd.f32 %v4956_v20, %v4955_v21  ;;  %v4977_v30 = vrot.slane %v4976_v35, 2 }
 0x3e9   :  { %v4971_v56 = vadd.f32 %v4970_v23, %v4969_v17  ;;  %v4964_v31 = vadd.f32 %v4963_v37, %v4962_v55 }
 0x3ea   :  { %v4958_v36 = vrot.slane %v4957_v63, 1  ;;  %v4978_v57 = vadd.f32 %v4977_v30, %v4976_v35 }
 0x3eb   :  { %v4972_v9 = vrot.slane %v4971_v56, 1  ;;  %v4965_v27 = vrot.slane %v4964_v31, 1 }
 0x3ec   :  { %v4959_v49 = vadd.f32 %v4958_v36, %v4957_v63  ;;  %v4979_v3 = vrot.slane %v4978_v57, 1 }
 0x3ed   :  { %v4973_v51 = vadd.f32 %v4972_v9, %v4971_v56  ;;  %v4966_v48 = vadd.f32 %v4965_v27, %v4964_v31 }
 0x3ee   :  { %v4985_v47 = vmul.f32 0.5, %v4959_v49  ;;  %v4980_v6 = vadd.f32 %v4979_v3, %v4978_v57 }
 0x3ef   :  { %v4987_v54 = vmul.f32 0.5, %v4973_v51  ;;  %v4986_v34 = vmul.f32 0.5, %v4966_v48 }
 0x3f0   :  { %v9444_v24 = vsub.f32 %v6750_v62, %v4985_v47  ;;  %v9446_v44 = vsub.f32 %v6752_v39, %v4985_v47  ;;  %v4988_v32 = vmul.f32 0.5, %v4980_v6 }
 0x3f1   :  { %v9448_v8 = vsub.f32 %v6754_v40, %v4987_v54  ;;  %v9450_v12 = vsub.f32 %v6756_v45, %v4987_v54  ;;  %v9452_v38 = vsub.f32 %v6751_v10, %v4986_v34  ;;  %v9454_v52 = vsub.f32 %v6753_v33, %v4986_v34 }
 0x3f2   :  { %v5009_v46 = vmul.f32 %v7453_v41, %v9444_v24  ;;  %v5017_v26 = vmul.f32 0.0, %v9446_v44  ;;  %v9459_v58 = vsub.f32 %v6755_v14, %v4988_v32  ;;  %v9461_v62 = vsub.f32 %v6757_v59, %v4988_v32 }
 0x3f3   :  { %v5011_v39 = vmul.f32 %v7453_v41, %v9448_v8  ;;  %v5019_v40 = vmul.f32 0.0, %v9450_v12  ;;  %v5010_v10 = vmul.f32 %v7453_v41, %v9452_v38  ;;  %v5018_v45 = vmul.f32 0.0, %v9454_v52 }
 0x3f4   :  { %v5025_v33 = vmul.f32 %v5009_v46, %v5009_v46  ;;  %v5033_v5 = vmul.f32 %v5017_v26, %v5017_v26  ;;  %v5012_v11 = vmul.f32 %v7453_v41, %v9459_v58  ;;  %v5020_v14 = vmul.f32 0.0, %v9461_v62  ;;  %v6589_v41 = vld [vmem:[%s9523_s10] ss:$0 sm:$0xff] }
 0x3f5   :  { %v5027_v4 = vmul.f32 %v5011_v39, %v5011_v39  ;;  %v5035_v59 = vmul.f32 %v5019_v40, %v5019_v40  ;;  %v5026_v1 = vmul.f32 %v5010_v10, %v5010_v10  ;;  %v5034_v42 = vmul.f32 %v5018_v45, %v5018_v45 }
 0x3f6   :  { %v5065_v0 = vadd.f32 %v5033_v5, %v5025_v33  ;;  %v5028_v22 = vmul.f32 %v5012_v11, %v5012_v11  ;;  %v5036_v13 = vmul.f32 %v5020_v14, %v5020_v14 }
 0x3f7   :  { %v5079_v50 = vadd.f32 %v5035_v59, %v5027_v4  ;;  %v5072_v43 = vadd.f32 %v5034_v42, %v5026_v1 }
 0x3f8   :  { %v5066_v18 = vrot.slane %v5065_v0, 4  ;;  %v5086_v2 = vadd.f32 %v5036_v13, %v5028_v22 }
 0x3f9   :  { %v5080_v28 = vrot.slane %v5079_v50, 4  ;;  %v5073_v19 = vrot.slane %v5072_v43, 4  ;;  %v6670_v29 = vpop.f32.mrb[16].mxu0 }
 0x3fa   :  { %v5067_v21 = vadd.f32 %v5066_v18, %v5065_v0  ;;  %v5087_v53 = vrot.slane %v5086_v2, 4  ;;  %v6692_v17 = vpop.f32.mrb[16].mxu1  ;;  %v6671_v55 = vpop.f32.mrb[17].mxu0  ;;  %v5153_v18 = vrot.slane %v9249_v25, %v7488_v60 }
 0x3fb   :  { %v5081_v20 = vadd.f32 %v5080_v28, %v5079_v50  ;;  %v5074_v35 = vadd.f32 %v5073_v19, %v5072_v43  ;;  %v6672_v23 = vadd.f32 %v6671_v55, %v6670_v29  ;;  %v6693_v37 = vpop.f32.mrb[17].mxu1  ;;  %v6673_v63 = vpop.f32.mrb[18].mxu0  ;;  %v5210_v28 = vrot.slane %v9254_v61, %v7488_v60 }
 0x3fc   :  { %v5068_v30 = vrot.slane %v5067_v21, 2  ;;  %v5088_v56 = vadd.f32 %v5087_v53, %v5086_v2  ;;  %v6694_v31 = vadd.f32 %v6693_v37, %v6692_v17  ;;  %v6695_v36 = vpop.f32.mrb[18].mxu1  ;;  %v6674_v57 = vpop.f32.mrb[19].mxu0  ;;  %v5161_v19 = vrot.slane %v9249_v25, %v7496_v15 }
 0x3fd   :  { %v5082_v9 = vrot.slane %v5081_v20, 2  ;;  %v5075_v27 = vrot.slane %v5074_v35, 2  ;;  %v5857_v49 = vadd.f32 %v6672_v23, %v6589_v41  ;;  %v6675_v3 = vadd.f32 %v6674_v57, %v6673_v63  ;;  %v6696_v51 = vpop.f32.mrb[19].mxu1 }
 0x3fe   :  { %v5069_v48 = vadd.f32 %v5068_v30, %v5067_v21  ;;  %v5089_v47 = vrot.slane %v5088_v56, 2  ;;  %v6697_v6 = vadd.f32 %v6696_v51, %v6695_v36  ;;  %v5218_v29 = vrot.slane %v9254_v61, %v7496_v15 }
 0x3ff   :  { %v5083_v54 = vadd.f32 %v5082_v9, %v5081_v20  ;;  %v5076_v34 = vadd.f32 %v5075_v27, %v5074_v35  ;;  %v9475_v32 = vadd.f32 %v6694_v31, %v5857_v49  ;;  %v5860_v46 = vadd.f32 %v6675_v3, %v6589_v41 }
 0x400   :  { %v5070_v26 = vrot.slane %v5069_v48, 1  ;;  %v5090_v39 = vadd.f32 %v5089_v47, %v5088_v56  ;;  %v5157_v41 = vrot.slane %v9249_v25, %v7491_v7  ;;  %v5214_v55 = vrot.slane %v9254_v61, %v7491_v7 }
 0x401   :  { %v5084_v40 = vrot.slane %v5083_v54, 1  ;;  %v5077_v10 = vrot.slane %v5076_v34, 1  ;;  %v9477_v45 = vadd.f32 %v6697_v6, %v5860_v46  ;;  %v5165_v23 = vrot.slane %v9249_v25, %v7501_v16 }
 0x402   :  { %v5071_v33 = vadd.f32 %v5070_v26, %v5069_v48  ;;  %v5091_v5 = vrot.slane %v5090_v39, 1  ;;  %v5222_v15 = vrot.slane %v9254_v61, %v7501_v16 }
 0x403   :  { %v5085_v11 = vadd.f32 %v5084_v40, %v5083_v54  ;;  %v5078_v14 = vadd.f32 %v5077_v10, %v5076_v34 }
 0x404   :  { %v5097_v4 = vmul.f32 0.5, %v5071_v33  ;;  %v5092_v59 = vadd.f32 %v5091_v5, %v5090_v39 }
 0x405   :  { %v5099_v1 = vmul.f32 0.5, %v5085_v11  ;;  %v5098_v42 = vmul.f32 0.5, %v5078_v14 }
 0x406   :  { %v5105_v0 = vadd.f32 1e-05, %v5097_v4  ;;  %v5100_v22 = vmul.f32 0.5, %v5092_v59 }
 0x407   :  { %v5107_v13 = vadd.f32 1e-05, %v5099_v1  ;;  %v5106_v50 = vadd.f32 1e-05, %v5098_v42 }
 0x408   :  { %6898 = vrsqrt.f32 %v5105_v0  ;;  %v5108_v43 = vadd.f32 1e-05, %v5100_v22 }
 0x409   :  { %6900 = vrsqrt.f32 %v5107_v13 }
 0x40a   :  { %6902 = vrsqrt.f32 %v5106_v50 }
 0x40b   :  { %6904 = vrsqrt.f32 %v5108_v43 }
 0x412   :  { %v6899_v2 = vpop.eup %6898 }
 0x413   :  { %v6901_v21 = vpop.eup %6900  ;;  %v5121_v53 = vmul.f32 %v6899_v2, %v9444_v24  ;;  %v5129_v17 = vmul.f32 %v6899_v2, %v9446_v44 }
 0x414   :  { %v6903_v20 = vpop.eup %6902  ;;  %v5123_v60 = vmul.f32 %v6901_v21, %v9448_v8  ;;  %v5131_v35 = vmul.f32 %v6901_v21, %v9450_v12 }
 0x415   :  { %v6905_v24 = vpop.eup %6904  ;;  %v5178_v37 = vmul.f32 %v5153_v18, %v5121_v53  ;;  %v5186_v44 = vmul.f32 %v5153_v18, %v5129_v17  ;;  %v5122_v63 = vmul.f32 %v6903_v20, %v9452_v38  ;;  %v5130_v30 = vmul.f32 %v6903_v20, %v9454_v52 }
 0x416   :  { %v5180_v56 = vmul.f32 %v5161_v19, %v5123_v60  ;;  %v5188_v7 = vmul.f32 %v5161_v19, %v5131_v35  ;;  %v5124_v31 = vmul.f32 %v6905_v24, %v9459_v58  ;;  %v5132_v8 = vmul.f32 %v6905_v24, %v9461_v62 }
 0x417   :  { %v5235_v12 = vadd.f32 %v5210_v28, %v5178_v37  ;;  %v5243_v36 = vadd.f32 %v5210_v28, %v5186_v44  ;;  %v5179_v57 = vmul.f32 %v5157_v41, %v5122_v63  ;;  %v5187_v25 = vmul.f32 %v5157_v41, %v5130_v30 }
 0x418   :  { %v5237_v9 = vadd.f32 %v5218_v29, %v5180_v56  ;;  %v5245_v27 = vadd.f32 %v5218_v29, %v5188_v7  ;;  %v5181_v16 = vmul.f32 %v5165_v23, %v5124_v31  ;;  %v5189_v61 = vmul.f32 %v5165_v23, %v5132_v8 }
 0x419   :  { %v5244_v49 = vadd.f32 %v5214_v55, %v5187_v25  ;;  %v5236_v3 = vadd.f32 %v5214_v55, %v5179_v57  ;;  %vm5251_vm10 = vcmp.ge.f32.partialorder %v5235_v12, 0.0  ;;  %vm5259_vm11 = vcmp.ge.f32.partialorder %v5243_v36, 0.0 }
 0x41a   :  { %v5246_v38 = vadd.f32 %v5222_v15, %v5189_v61  ;;  %v5238_v52 = vadd.f32 %v5222_v15, %v5181_v16  ;;  %v5267_v51 = vmul.f32 0.01, %v5235_v12  ;;  %v5275_v48 = vmul.f32 0.01, %v5243_v36 }
 0x41b   :  { %vm5252_vm12 = vcmp.ge.f32.partialorder %v5236_v3, 0.0  ;;  %vm5260_vm13 = vcmp.ge.f32.partialorder %v5244_v49, 0.0  ;;  %v5268_v58 = vmul.f32 0.01, %v5236_v3  ;;  %v5276_v62 = vmul.f32 0.01, %v5244_v49 }
 0x41c   :  { %vm5254_vm14 = vcmp.ge.f32.partialorder %v5238_v52, 0.0  ;;  %vm5262_vm15 = vcmp.ge.f32.partialorder %v5246_v38, 0.0  ;;  %v5270_v47 = vmul.f32 0.01, %v5238_v52  ;;  %v5278_v6 = vmul.f32 0.01, %v5246_v38 }
 0x41d   :  { %v5284_v54 = vsel %vm5252_vm12, %v5236_v3, %v5268_v58  ;;  %v5292_v34 = vsel %vm5260_vm13, %v5244_v49, %v5276_v62  ;;  %v5283_v46 = vsel %vm5251_vm10, %v5235_v12, %v5267_v51  ;;  %v5291_v26 = vsel %vm5259_vm11, %v5243_v36, %v5275_v48 }
 0x41e   :  { %v5300_v39 = vpack.c.bf16 %v5292_v34, %v5284_v54  ;;  %v5286_v40 = vsel %vm5254_vm14, %v5238_v52, %v5270_v47  ;;  %v5294_v10 = vsel %vm5262_vm15, %v5246_v38, %v5278_v6  ;;  %v5299_v33 = vpack.c.bf16 %v5291_v26, %v5283_v46 }
 0x41f   :  { %v5302_v5 = vpack.c.bf16 %v5294_v10, %v5286_v40  ;;  %vm5253_vm0 = vcmp.ge.f32.partialorder %v5237_v9, 0.0  ;;  %vm5261_vm1 = vcmp.ge.f32.partialorder %v5245_v27, 0.0  ;;  %v5269_v11 = vmul.f32 0.01, %v5237_v9 }
 0x420   :  { %5936 = vmatprep.mubr.bf16.mxu0 %v5300_v39  ;;  %v5277_v14 = vmul.f32 0.01, %v5245_v27 }
 0x421   :  { %5977 = vmatprep.mubr.bf16.mxu1 %v5302_v5  ;;  %5937 = vmatmul.mubr.bf16.vlgmr.msra.gmra.mrb[20].mxu0 %v5299_v33  ;;  %v5285_v4 = vsel %vm5253_vm0, %v5237_v9, %v5269_v11 }
 0x422   :  { %v5293_v59 = vsel %vm5261_vm1, %v5245_v27, %v5277_v14 }
 0x423   :  { %v5301_v1 = vpack.c.bf16 %v5293_v59, %v5285_v4 }
 0x425   :  { %5978 = vmatmul.mubr.bf16.vlgmr.msra.gmra.mrb[20].mxu1 %v5301_v1 }
 0x4f4   :  { %v6714_v42 = vpop.f32.mrb[20].mxu0 }
 0x4f5   :  { %v6715_v0 = vpop.f32.mrb[21].mxu0 }
 0x4f6   :  { %v6716_v22 = vadd.f32 %v6715_v0, %v6714_v42  ;;  %v6717_v13 = vpop.f32.mrb[22].mxu0 }
 0x4f7   :  { %v6718_v50 = vpop.f32.mrb[23].mxu0 }
 0x4f8   :  { %v6736_v43 = vpop.f32.mrb[20].mxu1  ;;  %v5939_v18 = vadd.f32 %v6716_v22, %v9475_v32  ;;  %v6719_v2 = vadd.f32 %v6718_v50, %v6717_v13 }
 0x4f9   :  { %v6737_v28 = vpop.f32.mrb[21].mxu1 }
 0x4fa   :  { %v6738_v19 = vadd.f32 %v6737_v28, %v6736_v43  ;;  %v6739_v29 = vpop.f32.mrb[22].mxu1  ;;  %v5942_v21 = vadd.f32 %v6719_v2, %v9477_v45 }
 0x4fb   :  { %v6740_v53 = vpop.f32.mrb[23].mxu1 }
 0x4fc   :  { %v5980_v17 = vadd.f32 %v6738_v19, %v5939_v18  ;;  %v6741_v41 = vadd.f32 %v6740_v53, %v6739_v29 }
 0x4fe   :  { %vm5986_vm2 = vcmp.ge.f32.partialorder %v5980_v17, 0.0  ;;  %v5988_v55 = vmul.f32 0.01, %v5980_v17  ;;  %v5983_v20 = vadd.f32 %v6741_v41, %v5942_v21 }
 0x500   :  { %v5990_v60 = vsel %vm5986_vm2, %v5980_v17, %v5988_v55  ;;  %vm5987_vm3 = vcmp.ge.f32.partialorder %v5983_v20, 0.0  ;;  %v5989_v35 = vmul.f32 0.01, %v5983_v20 }
 0x501   :  { %5992 = vst [vmem:[%s9524_s11] sm:$0xff] %v5990_v60 }
 0x502   :  { %v5991_v32 = vsel %vm5987_vm3, %v5983_v20, %v5989_v35 }
 0x503   :  { %5993 = vst [vmem:[%s9524_s11 + $0x8] sm:$0xff] %v5991_v32 }

</bundles_post_ra>
